<compile_context>
chip_gen: v7x
topology: tpu7x:2x2x1
jax: 0.10.0
libtpu: 0.0.40
codegen_flags: <defaults>
</compile_context>

<pallas_src>
import functools

import jax
import jax.numpy as jnp
from jax.experimental import pallas as pl
from jax.experimental.pallas import tpu as pltpu

EPS = 1e-5


# ---------------------------------------------------------------------------
# Pass 1: fused 1px pad + conv1 + shortcut 1x1 conv + partial BN stats
# ---------------------------------------------------------------------------
def _conv1_shortcut_kernel(x_ref, w1_ref, ws_ref,
                           y1_ref, ysc_ref, st1_ref, stsc_ref, *scratch):
    # x_ref:   (1, H, W, Cin)   unpadded input block (one image, NHWC, f32)
    # w1_ref:  (9*Cin, Cout)    conv1 weights, row = tap*Cin + cin, tap = dy*3+dx
    # ws_ref:  (Cin, Cout)      1x1 shortcut weights
    # y1_ref, ysc_ref: (1, H, W, Cout)  raw (pre-BN) conv outputs (store dtype)
    # st1_ref, stsc_ref: (1, 2, Cout)   per-image [sum, sum_sq] (f32)
    # scratch[0]: xpad (H+2, W+2, Cin) mxu dtype, halo-zeroed, interior = x
    # scratch[1]: col  (H*W, 9*Cin)    mxu dtype (only for the small-C im2col path)
    xpad_ref = scratch[0]
    col_ref = scratch[1] if len(scratch) > 1 else None
    _, H, W, Cin = x_ref.shape
    Cout = y1_ref.shape[-1]
    rows = H * W
    wdt = w1_ref.dtype

    x = x_ref[...].reshape(H, W, Cin)

    # fused 1-px zero pad: halo zero (cheap, done per-step for megacore safety)
    zrow = jnp.zeros((1, W + 2, Cin), xpad_ref.dtype)
    zcol = jnp.zeros((H + 2, 1, Cin), xpad_ref.dtype)
    xpad_ref[0:1, :, :] = zrow
    xpad_ref[H + 1:H + 2, :, :] = zrow
    xpad_ref[:, 0:1, :] = zcol
    xpad_ref[:, W + 1:W + 2, :] = zcol
    xpad_ref[1:H + 1, 1:W + 1, :] = x.astype(xpad_ref.dtype)

    # shortcut 1x1 conv first: early MXU work that can overlap the im2col build
    ysc = jnp.dot(x.reshape(rows, Cin).astype(wdt), ws_ref[...],
                  preferred_element_type=jnp.float32)

    if col_ref is not None:
        # small-channel path: pack the 9 taps along lanes -> one big-K matmul
        for t in range(9):
            dy, dx = t // 3, t % 3
            col_ref[:, t * Cin:(t + 1) * Cin] = (
                xpad_ref[dy:dy + H, dx:dx + W, :].reshape(rows, Cin))
        y1 = jnp.dot(col_ref[...], w1_ref[...], preferred_element_type=jnp.float32)
    else:
        # large-channel path: 9 accumulated K=Cin dots, single f32 accumulator chain
        y1 = jnp.zeros((rows, Cout), jnp.float32)
        for t in range(9):
            dy, dx = t // 3, t % 3
            xt = xpad_ref[dy:dy + H, dx:dx + W, :].reshape(rows, Cin)
            y1 = y1 + jnp.dot(xt, w1_ref[t * Cin:(t + 1) * Cin, :],
                              preferred_element_type=jnp.float32)

    y1_ref[...] = y1.reshape(1, H, W, Cout).astype(y1_ref.dtype)
    ysc_ref[...] = ysc.reshape(1, H, W, Cout).astype(ysc_ref.dtype)

    # single-pass BN statistics (sum, sum of squares) per channel, always f32
    st1_ref[:, 0:1, :] = jnp.sum(y1, axis=0, keepdims=True).reshape(1, 1, Cout)
    st1_ref[:, 1:2, :] = jnp.sum(y1 * y1, axis=0, keepdims=True).reshape(1, 1, Cout)
    stsc_ref[:, 0:1, :] = jnp.sum(ysc, axis=0, keepdims=True).reshape(1, 1, Cout)
    stsc_ref[:, 1:2, :] = jnp.sum(ysc * ysc, axis=0, keepdims=True).reshape(1, 1, Cout)


# ---------------------------------------------------------------------------
# Pass 2: BN1 affine + ReLU applied on the fly, conv2, partial BN2 stats
# ---------------------------------------------------------------------------
def _bn1_relu_conv2_kernel(y1_ref, ab1_ref, w2_ref, y2_ref, st2_ref, *scratch):
    # y1_ref:  (1, H, W, Cout)  raw conv1 output (store dtype)
    # ab1_ref: (2, Cout)        BN1 folded to affine [scale; shift] (f32)
    # w2_ref:  (9*Cout, Cout)
    # y2_ref:  (1, H, W, Cout)  raw conv2 output (store dtype)
    # st2_ref: (1, 2, Cout)     [sum, sum_sq] (f32)
    # scratch[0]: pad (H+2, W+2, Cout) mxu dtype
    # scratch[1]: col (H*W, 9*Cout)    mxu dtype (only for the small-C im2col path)
    pad_ref = scratch[0]
    col_ref = scratch[1] if len(scratch) > 1 else None
    _, H, W, Cout = y1_ref.shape
    rows = H * W

    a1 = ab1_ref[0:1, :]
    b1 = ab1_ref[1:2, :]
    out1 = jnp.maximum(
        y1_ref[...].reshape(rows, Cout).astype(jnp.float32) * a1 + b1, 0.0)

    # zero only the 1-pixel halo (per-step for megacore safety), write the interior
    zrow = jnp.zeros((1, W + 2, Cout), pad_ref.dtype)
    zcol = jnp.zeros((H + 2, 1, Cout), pad_ref.dtype)
    pad_ref[0:1, :, :] = zrow
    pad_ref[H + 1:H + 2, :, :] = zrow
    pad_ref[:, 0:1, :] = zcol
    pad_ref[:, W + 1:W + 2, :] = zcol
    pad_ref[1:H + 1, 1:W + 1, :] = out1.reshape(H, W, Cout).astype(pad_ref.dtype)

    if col_ref is not None:
        for t in range(9):
            dy, dx = t // 3, t % 3
            col_ref[:, t * Cout:(t + 1) * Cout] = (
                pad_ref[dy:dy + H, dx:dx + W, :].reshape(rows, Cout))
        y2 = jnp.dot(col_ref[...], w2_ref[...], preferred_element_type=jnp.float32)
    else:
        y2 = jnp.zeros((rows, Cout), jnp.float32)
        for t in range(9):
            dy, dx = t // 3, t % 3
            xt = pad_ref[dy:dy + H, dx:dx + W, :].reshape(rows, Cout)
            y2 = y2 + jnp.dot(xt, w2_ref[t * Cout:(t + 1) * Cout, :],
                              preferred_element_type=jnp.float32)

    y2_ref[...] = y2.reshape(1, H, W, Cout).astype(y2_ref.dtype)
    st2_ref[:, 0:1, :] = jnp.sum(y2, axis=0, keepdims=True).reshape(1, 1, Cout)
    st2_ref[:, 1:2, :] = jnp.sum(y2 * y2, axis=0, keepdims=True).reshape(1, 1, Cout)


# ---------------------------------------------------------------------------
# Pass 3: BN2 + BN_shortcut affine, residual add, final ReLU
# ---------------------------------------------------------------------------
def _bn2_add_relu_kernel(y2_ref, ysc_ref, ab2_ref, absc_ref, o_ref):
    _, TH, W, Cout = y2_ref.shape
    rows = TH * W
    a2, b2 = ab2_ref[0:1, :], ab2_ref[1:2, :]
    asc, bsc = absc_ref[0:1, :], absc_ref[1:2, :]
    y2 = y2_ref[...].reshape(rows, Cout).astype(jnp.float32)
    ysc = ysc_ref[...].reshape(rows, Cout).astype(jnp.float32)
    out = jnp.maximum(y2 * a2 + b2 + ysc * asc + bsc, 0.0)
    o_ref[...] = out.reshape(1, TH, W, Cout).astype(o_ref.dtype)


# ---------------------------------------------------------------------------
# Wrapper helpers
# ---------------------------------------------------------------------------
def _bn_affine(stats, gamma, beta, count):
    """stats: (N, 2, C) per-tile [sum, sum_sq] -> (2, C) [scale; shift] (train-mode BN)."""
    s = jnp.sum(stats[:, 0, :], axis=0)
    q = jnp.sum(stats[:, 1, :], axis=0)
    mean = s / count
    var = jnp.maximum(q / count - mean * mean, 0.0)   # clamp: f32 cancellation safety
    a = gamma * jax.lax.rsqrt(var + EPS)
    b = beta - mean * a
    return jnp.stack([a, b], axis=0).astype(jnp.float32)


def _vmem_limit_bytes():
    """~100 MiB on 128-MiB-VMEM chips (v2..v6), 48 MiB otherwise (v7x has 64 MiB)."""
    try:
        kind = jax.devices()[0].device_kind.lower()
    except Exception:
        kind = ""
    if any(t in kind for t in ("v2", "v3", "v4", "v5", "v6")):
        return 100 * 1024 * 1024
    return 48 * 1024 * 1024


def _pick_th(H, W, Cout, itemsize, target_bytes=2 * 1024 * 1024):
    """Largest power-of-two row block of H with per-tensor block <= target_bytes."""
    th = H
    while th % 2 == 0 and th > 8 and th * W * Cout * itemsize > target_bytes:
        th //= 2
    return th


# ---------------------------------------------------------------------------
# Forward
# ---------------------------------------------------------------------------
@functools.partial(jax.jit, static_argnames=("mxu_dtype",))
def resblock_forward(x_nchw, params, mxu_dtype=jnp.bfloat16):
    """x_nchw: (N, Cin, H, W) float32 (PyTorch layout). Returns (N, Cout, H, W) f32.

    mxu_dtype: dtype of MXU operands, im2col/pad scratch, and inter-pass HBM
    intermediates.  bf16 (default) is right on all generations (MXUs are bf16
    units); use jnp.float32 only for exact verification.
    """
    N, Cin, H, W = x_nchw.shape
    Cout = params["w1"].shape[0]
    count = float(N * H * W)
    store_dtype = mxu_dtype  # inter-pass activations make full HBM round trips

    # TODO(synk): fuse this NCHW->NHWC transpose (and the final NHWC->NCHW) into
    # pass 1 / pass 3 to save two HBM round trips of the activations.
    x = jnp.transpose(x_nchw, (0, 2, 3, 1)).astype(jnp.float32)

    # pack conv weights for the matmuls: row index = tap*C + c, tap = dy*3+dx
    w1p = jnp.transpose(params["w1"], (2, 3, 1, 0)).reshape(9 * Cin, Cout).astype(mxu_dtype)
    w2p = jnp.transpose(params["w2"], (2, 3, 1, 0)).reshape(9 * Cout, Cout).astype(mxu_dtype)
    wsp = jnp.transpose(params["ws"].reshape(Cout, Cin), (1, 0)).astype(mxu_dtype)

    cparams = pltpu.CompilerParams(
        dimension_semantics=("parallel",),   # images shard across TCs on megacore
        vmem_limit_bytes=_vmem_limit_bytes(),
    )

    # small channels -> materialized im2col (one big-K dot); big channels -> 9
    # accumulated dots on shifted views (no col scratch, MRB-friendly on v7x).
    use_im2col_1 = Cin < 128
    use_im2col_2 = Cout < 128

    # ---- pass 1: pad + conv1 + shortcut conv + BN1 / BN_sc partial stats ----
    scratch1 = [pltpu.VMEM((H + 2, W + 2, Cin), mxu_dtype)]
    if use_im2col_1:
        scratch1.append(pltpu.VMEM((H * W, 9 * Cin), mxu_dtype))

    y1, ysc, st1, stsc = pl.pallas_call(
        _conv1_shortcut_kernel,
        out_shape=(
            jax.ShapeDtypeStruct((N, H, W, Cout), store_dtype),
            jax.ShapeDtypeStruct((N, H, W, Cout), store_dtype),
            jax.ShapeDtypeStruct((N, 2, Cout), jnp.float32),
            jax.ShapeDtypeStruct((N, 2, Cout), jnp.float32),
        ),
        grid=(N,),
        in_specs=[
            pl.BlockSpec((1, H, W, Cin), lambda n: (n, 0, 0, 0)),
            pl.BlockSpec((9 * Cin, Cout), lambda n: (0, 0)),
            pl.BlockSpec((Cin, Cout), lambda n: (0, 0)),
        ],
        out_specs=(
            pl.BlockSpec((1, H, W, Cout), lambda n: (n, 0, 0, 0)),
            pl.BlockSpec((1, H, W, Cout), lambda n: (n, 0, 0, 0)),
            pl.BlockSpec((1, 2, Cout), lambda n: (n, 0, 0)),
            pl.BlockSpec((1, 2, Cout), lambda n: (n, 0, 0)),
        ),
        scratch_shapes=scratch1,
        compiler_params=cparams,
    )(x, w1p, wsp)

    g1, b1 = params["g1"].astype(jnp.float32), params["b1"].astype(jnp.float32)
    g2, b2 = params["g2"].astype(jnp.float32), params["b2"].astype(jnp.float32)
    gs, bs = params["gs"].astype(jnp.float32), params["bs"].astype(jnp.float32)
    ab1 = _bn_affine(st1, g1, b1, count)
    absc = _bn_affine(stsc, gs, bs, count)

    # ---- pass 2: BN1 + ReLU fused into conv2, BN2 partial stats ----
    scratch2 = [pltpu.VMEM((H + 2, W + 2, Cout), mxu_dtype)]
    if use_im2col_2:
        scratch2.append(pltpu.VMEM((H * W, 9 * Cout), mxu_dtype))

    y2, st2 = pl.pallas_call(
        _bn1_relu_conv2_kernel,
        out_shape=(
            jax.ShapeDtypeStruct((N, H, W, Cout), store_dtype),
            jax.ShapeDtypeStruct((N, 2, Cout), jnp.float32),
        ),
        grid=(N,),
        in_specs=[
            pl.BlockSpec((1, H, W, Cout), lambda n: (n, 0, 0, 0)),
            pl.BlockSpec((2, Cout), lambda n: (0, 0)),
            pl.BlockSpec((9 * Cout, Cout), lambda n: (0, 0)),
        ],
        out_specs=(
            pl.BlockSpec((1, H, W, Cout), lambda n: (n, 0, 0, 0)),
            pl.BlockSpec((1, 2, Cout), lambda n: (n, 0, 0)),
        ),
        scratch_shapes=scratch2,
        compiler_params=cparams,
    )(y1, ab1, w2p)

    ab2 = _bn_affine(st2, g2, b2, count)

    # ---- pass 3: BN2 + BN_sc affine, residual add, final ReLU ----
    TH = _pick_th(H, W, Cout, jnp.dtype(store_dtype).itemsize)
    out_nhwc = pl.pallas_call(
        _bn2_add_relu_kernel,
        out_shape=jax.ShapeDtypeStruct((N, H, W, Cout), jnp.float32),
        grid=(N, H // TH),
        in_specs=[
            pl.BlockSpec((1, TH, W, Cout), lambda n, h: (n, h, 0, 0)),
            pl.BlockSpec((1, TH, W, Cout), lambda n, h: (n, h, 0, 0)),
            pl.BlockSpec((2, Cout), lambda n, h: (0, 0)),
            pl.BlockSpec((2, Cout), lambda n, h: (0, 0)),
        ],
        out_specs=pl.BlockSpec((1, TH, W, Cout), lambda n, h: (n, h, 0, 0)),
        compiler_params=pltpu.CompilerParams(
            dimension_semantics=("parallel", "parallel"),
            vmem_limit_bytes=_vmem_limit_bytes()),
    )(y2, ysc, ab2, absc)

    return jnp.transpose(out_nhwc, (0, 3, 1, 2))  # back to NCHW


# ---------------------------------------------------------------------------
# Pure-JAX reference of the PyTorch forward (training-mode BN)
# ---------------------------------------------------------------------------
def resblock_ref(x_nchw, params):
    def conv(x, w, pad):
        return jax.lax.conv_general_dilated(
            x, w, window_strides=(1, 1), padding=((pad, pad), (pad, pad)),
            dimension_numbers=("NCHW", "OIHW", "NCHW"))

    def bn(x, gamma, beta):
        mean = x.mean(axis=(0, 2, 3), keepdims=True)
        var = jnp.square(x - mean).mean(axis=(0, 2, 3), keepdims=True)
        return ((x - mean) * jax.lax.rsqrt(var + EPS)
                * gamma[None, :, None, None] + beta[None, :, None, None])

    out = jax.nn.relu(bn(conv(x_nchw, params["w1"], 1), params["g1"], params["b1"]))
    out = bn(conv(out, params["w2"], 1), params["g2"], params["b2"])
    sc = bn(conv(x_nchw, params["ws"], 0), params["gs"], params["bs"])
    return jax.nn.relu(out + sc)


if __name__ == "__main__":
    N, Cin, Cout, H, W = 2, 4, 8, 16, 16

    key = jax.random.PRNGKey(0)
    keys = jax.random.split(key, 10)
    x = jax.random.normal(keys[0], (N, Cin, H, W), jnp.float32)
    params = dict(
        w1=0.2 * jax.random.normal(keys[1], (Cout, Cin, 3, 3), jnp.float32),
        g1=1.0 + 0.1 * jax.random.normal(keys[2], (Cout,), jnp.float32),
        b1=0.1 * jax.random.normal(keys[3], (Cout,), jnp.float32),
        w2=0.2 * jax.random.normal(keys[4], (Cout, Cout, 3, 3), jnp.float32),
        g2=1.0 + 0.1 * jax.random.normal(keys[5], (Cout,), jnp.float32),
        b2=0.1 * jax.random.normal(keys[6], (Cout,), jnp.float32),
        ws=0.2 * jax.random.normal(keys[7], (Cout, Cin, 1, 1), jnp.float32),
        gs=1.0 + 0.1 * jax.random.normal(keys[8], (Cout,), jnp.float32),
        bs=0.1 * jax.random.normal(keys[9], (Cout,), jnp.float32),
    )

    ref = jax.block_until_ready(resblock_ref(x, params))

    # exact-precision path (f32 MXU operands & f32 intermediates) — strict check
    out_f32 = jax.block_until_ready(
        resblock_forward(x, params, mxu_dtype=jnp.float32))
    assert out_f32.shape == (N, Cout, H, W), out_f32.shape
    if not jnp.allclose(out_f32, ref, atol=1e-3, rtol=1e-3):
        raise AssertionError(
            f"f32 path mismatch vs reference, max abs err = "
            f"{jnp.max(jnp.abs(out_f32 - ref))}")

    # default bf16 path (bf16 MXU operands + bf16 intermediates) — loose tolerance
    out_bf16 = jax.block_until_ready(resblock_forward(x, params))
    if not jnp.allclose(out_bf16, ref, atol=1e-1, rtol=1e-1):
        raise AssertionError(
            f"bf16 path mismatch vs reference, max abs err = "
            f"{jnp.max(jnp.abs(out_bf16 - ref))}")

    print("KERNEL_OK")
</pallas_src>

<mosaic_0001>
module attributes {stable_mosaic.version = 11 : i64} {
  func.func @_conv1_shortcut_kernel(%arg0: i32, %arg1: memref<1x16x16x4xf32, #tpu.memory_space<vmem>>, %arg2: memref<36x8xf32, #tpu.memory_space<vmem>>, %arg3: memref<4x8xf32, #tpu.memory_space<vmem>>, %arg4: memref<1x16x16x8xf32, #tpu.memory_space<vmem>>, %arg5: memref<1x16x16x8xf32, #tpu.memory_space<vmem>>, %arg6: memref<1x2x8xf32, #tpu.memory_space<vmem>>, %arg7: memref<1x2x8xf32, #tpu.memory_space<vmem>>, %arg8: memref<18x18x4xf32, #tpu.memory_space<vmem>>, %arg9: memref<256x36xf32, #tpu.memory_space<vmem>>) attributes {dimension_semantics = [#tpu.dimension_semantics<parallel>], iteration_bounds = array<i64: 2>, scalar_prefetch = 0 : i64, scratch_operands = 2 : i64, tpu.core_type = #tpu.core_type<tc>, window_params = [{transform_indices = @transform_0, window_bounds = array<i64: 1, 16, 16, 4>}, {pipeline_mode = #tpu.pipeline_mode<synchronous>, transform_indices = @transform_1, window_bounds = array<i64: 36, 8>}, {pipeline_mode = #tpu.pipeline_mode<synchronous>, transform_indices = @transform_2, window_bounds = array<i64: 4, 8>}, {transform_indices = @transform_3, window_bounds = array<i64: 1, 16, 16, 8>}, {transform_indices = @transform_4, window_bounds = array<i64: 1, 16, 16, 8>}, {transform_indices = @transform_5, window_bounds = array<i64: 1, 2, 8>}, {transform_indices = @transform_6, window_bounds = array<i64: 1, 2, 8>}]} {
    %c0 = arith.constant 0 : index
    %c0_0 = arith.constant 0 : index
    %c0_1 = arith.constant 0 : index
    %c0_2 = arith.constant 0 : index
    %0 = vector.load %arg1[%c0, %c0_0, %c0_1, %c0_2] : memref<1x16x16x4xf32, #tpu.memory_space<vmem>>, vector<1x16x16x4xf32>
    %1 = vector.shape_cast %0 : vector<1x16x16x4xf32> to vector<16x16x4xf32>
    %cst = arith.constant 0.000000e+00 : f32
    %2 = vector.broadcast %cst : f32 to vector<1x18x4xf32>
    %cst_3 = arith.constant 0.000000e+00 : f32
    %3 = vector.broadcast %cst_3 : f32 to vector<18x1x4xf32>
    %c0_4 = arith.constant 0 : index
    %c0_5 = arith.constant 0 : index
    %c0_6 = arith.constant 0 : index
    %4 = vector.load %arg8[%c0_4, %c0_5, %c0_6] : memref<18x18x4xf32, #tpu.memory_space<vmem>>, vector<1x18x4xf32>
    tpu.vector_store %arg8[%c0_4, %c0_5, %c0_6], %2 {strides = array<i32>} : memref<18x18x4xf32, #tpu.memory_space<vmem>>, vector<1x18x4xf32>,
    %c17 = arith.constant 17 : index
    %c0_7 = arith.constant 0 : index
    %c0_8 = arith.constant 0 : index
    %5 = vector.load %arg8[%c17, %c0_7, %c0_8] : memref<18x18x4xf32, #tpu.memory_space<vmem>>, vector<1x18x4xf32>
    tpu.vector_store %arg8[%c17, %c0_7, %c0_8], %2 {strides = array<i32>} : memref<18x18x4xf32, #tpu.memory_space<vmem>>, vector<1x18x4xf32>,
    %c0_9 = arith.constant 0 : index
    %c0_10 = arith.constant 0 : index
    %c0_11 = arith.constant 0 : index
    %6 = vector.load %arg8[%c0_9, %c0_10, %c0_11] : memref<18x18x4xf32, #tpu.memory_space<vmem>>, vector<18x1x4xf32>
    tpu.vector_store %arg8[%c0_9, %c0_10, %c0_11], %3 {strides = array<i32>} : memref<18x18x4xf32, #tpu.memory_space<vmem>>, vector<18x1x4xf32>,
    %c0_12 = arith.constant 0 : index
    %c17_13 = arith.constant 17 : index
    %c0_14 = arith.constant 0 : index
    %7 = vector.load %arg8[%c0_12, %c17_13, %c0_14] : memref<18x18x4xf32, #tpu.memory_space<vmem>>, vector<18x1x4xf32>
    tpu.vector_store %arg8[%c0_12, %c17_13, %c0_14], %3 {strides = array<i32>} : memref<18x18x4xf32, #tpu.memory_space<vmem>>, vector<18x1x4xf32>,
    %c1 = arith.constant 1 : index
    %c1_15 = arith.constant 1 : index
    %c0_16 = arith.constant 0 : index
    %8 = vector.load %arg8[%c1, %c1_15, %c0_16] : memref<18x18x4xf32, #tpu.memory_space<vmem>>, vector<16x16x4xf32>
    tpu.vector_store %arg8[%c1, %c1_15, %c0_16], %1 {strides = array<i32>} : memref<18x18x4xf32, #tpu.memory_space<vmem>>, vector<16x16x4xf32>,
    %9 = vector.shape_cast %1 : vector<16x16x4xf32> to vector<256x4xf32>
    %c0_17 = arith.constant 0 : index
    %c0_18 = arith.constant 0 : index
    %10 = vector.load %arg3[%c0_17, %c0_18] : memref<4x8xf32, #tpu.memory_space<vmem>>, vector<4x8xf32>
    %cst_19 = arith.constant dense<0.000000e+00> : vector<256x8xf32>
    %11 = tpu.matmul %9, %10, %cst_19 {dimension_numbers = #tpu.dot_dimension_numbers<[1], [0], [0], [1], [0, 0, 1, 1], [], []>} : vector<256x4xf32>, vector<4x8xf32>, vector<256x8xf32> -> vector<256x8xf32>
    %c0_20 = arith.constant 0 : index
    %c0_21 = arith.constant 0 : index
    %c0_22 = arith.constant 0 : index
    %12 = vector.load %arg8[%c0_20, %c0_21, %c0_22] : memref<18x18x4xf32, #tpu.memory_space<vmem>>, vector<16x16x4xf32>
    %13 = vector.shape_cast %12 : vector<16x16x4xf32> to vector<256x4xf32>
    %c0_23 = arith.constant 0 : index
    %c0_24 = arith.constant 0 : index
    %14 = vector.load %arg9[%c0_23, %c0_24] : memref<256x36xf32, #tpu.memory_space<vmem>>, vector<256x4xf32>
    tpu.vector_store %arg9[%c0_23, %c0_24], %13 {strides = array<i32>} : memref<256x36xf32, #tpu.memory_space<vmem>>, vector<256x4xf32>,
    %c0_25 = arith.constant 0 : index
    %c1_26 = arith.constant 1 : index
    %c0_27 = arith.constant 0 : index
    %15 = vector.load %arg8[%c0_25, %c1_26, %c0_27] : memref<18x18x4xf32, #tpu.memory_space<vmem>>, vector<16x16x4xf32>
    %16 = vector.shape_cast %15 : vector<16x16x4xf32> to vector<256x4xf32>
    %c0_28 = arith.constant 0 : index
    %c4 = arith.constant 4 : index
    %17 = vector.load %arg9[%c0_28, %c4] : memref<256x36xf32, #tpu.memory_space<vmem>>, vector<256x4xf32>
    tpu.vector_store %arg9[%c0_28, %c4], %16 {strides = array<i32>} : memref<256x36xf32, #tpu.memory_space<vmem>>, vector<256x4xf32>,
    %c0_29 = arith.constant 0 : index
    %c2 = arith.constant 2 : index
    %c0_30 = arith.constant 0 : index
    %18 = vector.load %arg8[%c0_29, %c2, %c0_30] : memref<18x18x4xf32, #tpu.memory_space<vmem>>, vector<16x16x4xf32>
    %19 = vector.shape_cast %18 : vector<16x16x4xf32> to vector<256x4xf32>
    %c0_31 = arith.constant 0 : index
    %c8 = arith.constant 8 : index
    %20 = vector.load %arg9[%c0_31, %c8] : memref<256x36xf32, #tpu.memory_space<vmem>>, vector<256x4xf32>
    tpu.vector_store %arg9[%c0_31, %c8], %19 {strides = array<i32>} : memref<256x36xf32, #tpu.memory_space<vmem>>, vector<256x4xf32>,
    %c1_32 = arith.constant 1 : index
    %c0_33 = arith.constant 0 : index
    %c0_34 = arith.constant 0 : index
    %21 = vector.load %arg8[%c1_32, %c0_33, %c0_34] : memref<18x18x4xf32, #tpu.memory_space<vmem>>, vector<16x16x4xf32>
    %22 = vector.shape_cast %21 : vector<16x16x4xf32> to vector<256x4xf32>
    %c0_35 = arith.constant 0 : index
    %c12 = arith.constant 12 : index
    %23 = vector.load %arg9[%c0_35, %c12] : memref<256x36xf32, #tpu.memory_space<vmem>>, vector<256x4xf32>
    tpu.vector_store %arg9[%c0_35, %c12], %22 {strides = array<i32>} : memref<256x36xf32, #tpu.memory_space<vmem>>, vector<256x4xf32>,
    %c1_36 = arith.constant 1 : index
    %c1_37 = arith.constant 1 : index
    %c0_38 = arith.constant 0 : index
    %24 = vector.load %arg8[%c1_36, %c1_37, %c0_38] : memref<18x18x4xf32, #tpu.memory_space<vmem>>, vector<16x16x4xf32>
    %25 = vector.shape_cast %24 : vector<16x16x4xf32> to vector<256x4xf32>
    %c0_39 = arith.constant 0 : index
    %c16 = arith.constant 16 : index
    %26 = vector.load %arg9[%c0_39, %c16] : memref<256x36xf32, #tpu.memory_space<vmem>>, vector<256x4xf32>
    tpu.vector_store %arg9[%c0_39, %c16], %25 {strides = array<i32>} : memref<256x36xf32, #tpu.memory_space<vmem>>, vector<256x4xf32>,
    %c1_40 = arith.constant 1 : index
    %c2_41 = arith.constant 2 : index
    %c0_42 = arith.constant 0 : index
    %27 = vector.load %arg8[%c1_40, %c2_41, %c0_42] : memref<18x18x4xf32, #tpu.memory_space<vmem>>, vector<16x16x4xf32>
    %28 = vector.shape_cast %27 : vector<16x16x4xf32> to vector<256x4xf32>
    %c0_43 = arith.constant 0 : index
    %c20 = arith.constant 20 : index
    %29 = vector.load %arg9[%c0_43, %c20] : memref<256x36xf32, #tpu.memory_space<vmem>>, vector<256x4xf32>
    tpu.vector_store %arg9[%c0_43, %c20], %28 {strides = array<i32>} : memref<256x36xf32, #tpu.memory_space<vmem>>, vector<256x4xf32>,
    %c2_44 = arith.constant 2 : index
    %c0_45 = arith.constant 0 : index
    %c0_46 = arith.constant 0 : index
    %30 = vector.load %arg8[%c2_44, %c0_45, %c0_46] : memref<18x18x4xf32, #tpu.memory_space<vmem>>, vector<16x16x4xf32>
    %31 = vector.shape_cast %30 : vector<16x16x4xf32> to vector<256x4xf32>
    %c0_47 = arith.constant 0 : index
    %c24 = arith.constant 24 : index
    %32 = vector.load %arg9[%c0_47, %c24] : memref<256x36xf32, #tpu.memory_space<vmem>>, vector<256x4xf32>
    tpu.vector_store %arg9[%c0_47, %c24], %31 {strides = array<i32>} : memref<256x36xf32, #tpu.memory_space<vmem>>, vector<256x4xf32>,
    %c2_48 = arith.constant 2 : index
    %c1_49 = arith.constant 1 : index
    %c0_50 = arith.constant 0 : index
    %33 = vector.load %arg8[%c2_48, %c1_49, %c0_50] : memref<18x18x4xf32, #tpu.memory_space<vmem>>, vector<16x16x4xf32>
    %34 = vector.shape_cast %33 : vector<16x16x4xf32> to vector<256x4xf32>
    %c0_51 = arith.constant 0 : index
    %c28 = arith.constant 28 : index
    %35 = vector.load %arg9[%c0_51, %c28] : memref<256x36xf32, #tpu.memory_space<vmem>>, vector<256x4xf32>
    tpu.vector_store %arg9[%c0_51, %c28], %34 {strides = array<i32>} : memref<256x36xf32, #tpu.memory_space<vmem>>, vector<256x4xf32>,
    %c2_52 = arith.constant 2 : index
    %c2_53 = arith.constant 2 : index
    %c0_54 = arith.constant 0 : index
    %36 = vector.load %arg8[%c2_52, %c2_53, %c0_54] : memref<18x18x4xf32, #tpu.memory_space<vmem>>, vector<16x16x4xf32>
    %37 = vector.shape_cast %36 : vector<16x16x4xf32> to vector<256x4xf32>
    %c0_55 = arith.constant 0 : index
    %c32 = arith.constant 32 : index
    %38 = vector.load %arg9[%c0_55, %c32] : memref<256x36xf32, #tpu.memory_space<vmem>>, vector<256x4xf32>
    tpu.vector_store %arg9[%c0_55, %c32], %37 {strides = array<i32>} : memref<256x36xf32, #tpu.memory_space<vmem>>, vector<256x4xf32>,
    %c0_56 = arith.constant 0 : index
    %c0_57 = arith.constant 0 : index
    %39 = vector.load %arg9[%c0_56, %c0_57] : memref<256x36xf32, #tpu.memory_space<vmem>>, vector<256x36xf32>
    %c0_58 = arith.constant 0 : index
    %c0_59 = arith.constant 0 : index
    %40 = vector.load %arg2[%c0_58, %c0_59] : memref<36x8xf32, #tpu.memory_space<vmem>>, vector<36x8xf32>
    %cst_60 = arith.constant dense<0.000000e+00> : vector<256x8xf32>
    %41 = tpu.matmul %39, %40, %cst_60 {dimension_numbers = #tpu.dot_dimension_numbers<[1], [0], [0], [1], [0, 0, 1, 1], [], []>} : vector<256x36xf32>, vector<36x8xf32>, vector<256x8xf32> -> vector<256x8xf32>
    %42 = vector.shape_cast %41 : vector<256x8xf32> to vector<1x16x16x8xf32>
    %c0_61 = arith.constant 0 : index
    %c0_62 = arith.constant 0 : index
    %c0_63 = arith.constant 0 : index
    %c0_64 = arith.constant 0 : index
    %43 = vector.load %arg4[%c0_61, %c0_62, %c0_63, %c0_64] : memref<1x16x16x8xf32, #tpu.memory_space<vmem>>, vector<1x16x16x8xf32>
    tpu.vector_store %arg4[%c0_61, %c0_62, %c0_63, %c0_64], %42 {strides = array<i32>} : memref<1x16x16x8xf32, #tpu.memory_space<vmem>>, vector<1x16x16x8xf32>,
    %44 = vector.shape_cast %11 : vector<256x8xf32> to vector<1x16x16x8xf32>
    %c0_65 = arith.constant 0 : index
    %c0_66 = arith.constant 0 : index
    %c0_67 = arith.constant 0 : index
    %c0_68 = arith.constant 0 : index
    %45 = vector.load %arg5[%c0_65, %c0_66, %c0_67, %c0_68] : memref<1x16x16x8xf32, #tpu.memory_space<vmem>>, vector<1x16x16x8xf32>
    tpu.vector_store %arg5[%c0_65, %c0_66, %c0_67, %c0_68], %44 {strides = array<i32>} : memref<1x16x16x8xf32, #tpu.memory_space<vmem>>, vector<1x16x16x8xf32>,
    %cst_69 = arith.constant dense<0.000000e+00> : vector<8xf32>
    %46 = vector.multi_reduction <add>, %41, %cst_69 [0] : vector<256x8xf32> to vector<8xf32>
    %47 = vector.shape_cast %46 : vector<8xf32> to vector<1x8xf32>
    %48 = vector.shape_cast %47 : vector<1x8xf32> to vector<1x1x8xf32>
    %c0_70 = arith.constant 0 : index
    %c0_71 = arith.constant 0 : index
    %c0_72 = arith.constant 0 : index
    %49 = vector.load %arg6[%c0_70, %c0_71, %c0_72] : memref<1x2x8xf32, #tpu.memory_space<vmem>>, vector<1x1x8xf32>
    tpu.vector_store %arg6[%c0_70, %c0_71, %c0_72], %48 {strides = array<i32>} : memref<1x2x8xf32, #tpu.memory_space<vmem>>, vector<1x1x8xf32>,
    %50 = arith.mulf %41, %41 : vector<256x8xf32>
    %cst_73 = arith.constant dense<0.000000e+00> : vector<8xf32>
    %51 = vector.multi_reduction <add>, %50, %cst_73 [0] : vector<256x8xf32> to vector<8xf32>
    %52 = vector.shape_cast %51 : vector<8xf32> to vector<1x8xf32>
    %53 = vector.shape_cast %52 : vector<1x8xf32> to vector<1x1x8xf32>
    %c0_74 = arith.constant 0 : index
    %c1_75 = arith.constant 1 : index
    %c0_76 = arith.constant 0 : index
    %54 = vector.load %arg6[%c0_74, %c1_75, %c0_76] : memref<1x2x8xf32, #tpu.memory_space<vmem>>, vector<1x1x8xf32>
    tpu.vector_store %arg6[%c0_74, %c1_75, %c0_76], %53 {strides = array<i32>} : memref<1x2x8xf32, #tpu.memory_space<vmem>>, vector<1x1x8xf32>,
    %cst_77 = arith.constant dense<0.000000e+00> : vector<8xf32>
    %55 = vector.multi_reduction <add>, %11, %cst_77 [0] : vector<256x8xf32> to vector<8xf32>
    %56 = vector.shape_cast %55 : vector<8xf32> to vector<1x8xf32>
    %57 = vector.shape_cast %56 : vector<1x8xf32> to vector<1x1x8xf32>
    %c0_78 = arith.constant 0 : index
    %c0_79 = arith.constant 0 : index
    %c0_80 = arith.constant 0 : index
    %58 = vector.load %arg7[%c0_78, %c0_79, %c0_80] : memref<1x2x8xf32, #tpu.memory_space<vmem>>, vector<1x1x8xf32>
    tpu.vector_store %arg7[%c0_78, %c0_79, %c0_80], %57 {strides = array<i32>} : memref<1x2x8xf32, #tpu.memory_space<vmem>>, vector<1x1x8xf32>,
    %59 = arith.mulf %11, %11 : vector<256x8xf32>
    %cst_81 = arith.constant dense<0.000000e+00> : vector<8xf32>
    %60 = vector.multi_reduction <add>, %59, %cst_81 [0] : vector<256x8xf32> to vector<8xf32>
    %61 = vector.shape_cast %60 : vector<8xf32> to vector<1x8xf32>
    %62 = vector.shape_cast %61 : vector<1x8xf32> to vector<1x1x8xf32>
    %c0_82 = arith.constant 0 : index
    %c1_83 = arith.constant 1 : index
    %c0_84 = arith.constant 0 : index
    %63 = vector.load %arg7[%c0_82, %c1_83, %c0_84] : memref<1x2x8xf32, #tpu.memory_space<vmem>>, vector<1x1x8xf32>
    tpu.vector_store %arg7[%c0_82, %c1_83, %c0_84], %62 {strides = array<i32>} : memref<1x2x8xf32, #tpu.memory_space<vmem>>, vector<1x1x8xf32>,
    return
  }
  func.func @transform_0(%arg0: i32) -> (i32, i32, i32, i32) {
    %c0_i32 = arith.constant 0 : i32
    %c0_i32_0 = arith.constant 0 : i32
    %c0_i32_1 = arith.constant 0 : i32
    %c0_i32_2 = arith.constant 0 : i32
    return %arg0, %c0_i32, %c0_i32_0, %c0_i32_1 : i32, i32, i32, i32
  }
  func.func @transform_1(%arg0: i32) -> (i32, i32) {
    %c0_i32 = arith.constant 0 : i32
    %c0_i32_0 = arith.constant 0 : i32
    %c0_i32_1 = arith.constant 0 : i32
    return %c0_i32, %c0_i32_0 : i32, i32
  }
  func.func @transform_2(%arg0: i32) -> (i32, i32) {
    %c0_i32 = arith.constant 0 : i32
    %c0_i32_0 = arith.constant 0 : i32
    %c0_i32_1 = arith.constant 0 : i32
    return %c0_i32, %c0_i32_0 : i32, i32
  }
  func.func @transform_3(%arg0: i32) -> (i32, i32, i32, i32) {
    %c0_i32 = arith.constant 0 : i32
    %c0_i32_0 = arith.constant 0 : i32
    %c0_i32_1 = arith.constant 0 : i32
    %c0_i32_2 = arith.constant 0 : i32
    return %arg0, %c0_i32, %c0_i32_0, %c0_i32_1 : i32, i32, i32, i32
  }
  func.func @transform_4(%arg0: i32) -> (i32, i32, i32, i32) {
    %c0_i32 = arith.constant 0 : i32
    %c0_i32_0 = arith.constant 0 : i32
    %c0_i32_1 = arith.constant 0 : i32
    %c0_i32_2 = arith.constant 0 : i32
    return %arg0, %c0_i32, %c0_i32_0, %c0_i32_1 : i32, i32, i32, i32
  }
  func.func @transform_5(%arg0: i32) -> (i32, i32, i32) {
    %c0_i32 = arith.constant 0 : i32
    %c0_i32_0 = arith.constant 0 : i32
    %c0_i32_1 = arith.constant 0 : i32
    return %arg0, %c0_i32, %c0_i32_0 : i32, i32, i32
  }
  func.func @transform_6(%arg0: i32) -> (i32, i32, i32) {
    %c0_i32 = arith.constant 0 : i32
    %c0_i32_0 = arith.constant 0 : i32
    %c0_i32_1 = arith.constant 0 : i32
    return %arg0, %c0_i32, %c0_i32_0 : i32, i32, i32
  }
}

module attributes {stable_mosaic.version = 11 : i64} {
  func.func @_bn2_add_relu_kernel(%arg0: i32, %arg1: i32, %arg2: memref<1x16x16x8xf32, #tpu.memory_space<vmem>>, %arg3: memref<1x16x16x8xf32, #tpu.memory_space<vmem>>, %arg4: memref<2x8xf32, #tpu.memory_space<vmem>>, %arg5: memref<2x8xf32, #tpu.memory_space<vmem>>, %arg6: memref<1x16x16x8xf32, #tpu.memory_space<vmem>>) attributes {dimension_semantics = [#tpu.dimension_semantics<parallel>, #tpu.dimension_semantics<parallel>], iteration_bounds = array<i64: 2, 1>, scalar_prefetch = 0 : i64, scratch_operands = 0 : i64, tpu.core_type = #tpu.core_type<tc>, window_params = [{transform_indices = @transform_0, window_bounds = array<i64: 1, 16, 16, 8>}, {transform_indices = @transform_1, window_bounds = array<i64: 1, 16, 16, 8>}, {pipeline_mode = #tpu.pipeline_mode<synchronous>, transform_indices = @transform_2, window_bounds = array<i64: 2, 8>}, {pipeline_mode = #tpu.pipeline_mode<synchronous>, transform_indices = @transform_3, window_bounds = array<i64: 2, 8>}, {transform_indices = @transform_4, window_bounds = array<i64: 1, 16, 16, 8>}]} {
    %c0 = arith.constant 0 : index
    %c0_0 = arith.constant 0 : index
    %0 = vector.load %arg4[%c0, %c0_0] : memref<2x8xf32, #tpu.memory_space<vmem>>, vector<1x8xf32>
    %c1 = arith.constant 1 : index
    %c0_1 = arith.constant 0 : index
    %1 = vector.load %arg4[%c1, %c0_1] : memref<2x8xf32, #tpu.memory_space<vmem>>, vector<1x8xf32>
    %c0_2 = arith.constant 0 : index
    %c0_3 = arith.constant 0 : index
    %2 = vector.load %arg5[%c0_2, %c0_3] : memref<2x8xf32, #tpu.memory_space<vmem>>, vector<1x8xf32>
    %c1_4 = arith.constant 1 : index
    %c0_5 = arith.constant 0 : index
    %3 = vector.load %arg5[%c1_4, %c0_5] : memref<2x8xf32, #tpu.memory_space<vmem>>, vector<1x8xf32>
    %c0_6 = arith.constant 0 : index
    %c0_7 = arith.constant 0 : index
    %c0_8 = arith.constant 0 : index
    %c0_9 = arith.constant 0 : index
    %4 = vector.load %arg2[%c0_6, %c0_7, %c0_8, %c0_9] : memref<1x16x16x8xf32, #tpu.memory_space<vmem>>, vector<1x16x16x8xf32>
    %5 = vector.shape_cast %4 : vector<1x16x16x8xf32> to vector<256x8xf32>
    %c0_10 = arith.constant 0 : index
    %c0_11 = arith.constant 0 : index
    %c0_12 = arith.constant 0 : index
    %c0_13 = arith.constant 0 : index
    %6 = vector.load %arg3[%c0_10, %c0_11, %c0_12, %c0_13] : memref<1x16x16x8xf32, #tpu.memory_space<vmem>>, vector<1x16x16x8xf32>
    %7 = vector.shape_cast %6 : vector<1x16x16x8xf32> to vector<256x8xf32>
    %8 = vector.broadcast %0 : vector<1x8xf32> to vector<256x8xf32>
    %9 = arith.mulf %5, %8 : vector<256x8xf32>
    %10 = vector.broadcast %1 : vector<1x8xf32> to vector<256x8xf32>
    %11 = arith.addf %9, %10 : vector<256x8xf32>
    %12 = vector.broadcast %2 : vector<1x8xf32> to vector<256x8xf32>
    %13 = arith.mulf %7, %12 : vector<256x8xf32>
    %14 = arith.addf %11, %13 : vector<256x8xf32>
    %15 = vector.broadcast %3 : vector<1x8xf32> to vector<256x8xf32>
    %16 = arith.addf %14, %15 : vector<256x8xf32>
    %cst = arith.constant 0.000000e+00 : f32
    %17 = vector.broadcast %cst : f32 to vector<256x8xf32>
    %18 = arith.maximumf %16, %17 : vector<256x8xf32>
    %19 = vector.shape_cast %18 : vector<256x8xf32> to vector<1x16x16x8xf32>
    %c0_14 = arith.constant 0 : index
    %c0_15 = arith.constant 0 : index
    %c0_16 = arith.constant 0 : index
    %c0_17 = arith.constant 0 : index
    %20 = vector.load %arg6[%c0_14, %c0_15, %c0_16, %c0_17] : memref<1x16x16x8xf32, #tpu.memory_space<vmem>>, vector<1x16x16x8xf32>
    tpu.vector_store %arg6[%c0_14, %c0_15, %c0_16, %c0_17], %19 {strides = array<i32>} : memref<1x16x16x8xf32, #tpu.memory_space<vmem>>, vector<1x16x16x8xf32>,
    return
  }
  func.func @transform_0(%arg0: i32, %arg1: i32) -> (i32, i32, i32, i32) {
    %c0_i32 = arith.constant 0 : i32
    %c0_i32_0 = arith.constant 0 : i32
    %c0_i32_1 = arith.constant 0 : i32
    return %arg0, %arg1, %c0_i32, %c0_i32_0 : i32, i32, i32, i32
  }
  func.func @transform_1(%arg0: i32, %arg1: i32) -> (i32, i32, i32, i32) {
    %c0_i32 = arith.constant 0 : i32
    %c0_i32_0 = arith.constant 0 : i32
    %c0_i32_1 = arith.constant 0 : i32
    return %arg0, %arg1, %c0_i32, %c0_i32_0 : i32, i32, i32, i32
  }
  func.func @transform_2(%arg0: i32, %arg1: i32) -> (i32, i32) {
    %c0_i32 = arith.constant 0 : i32
    %c0_i32_0 = arith.constant 0 : i32
    %c0_i32_1 = arith.constant 0 : i32
    return %c0_i32, %c0_i32_0 : i32, i32
  }
  func.func @transform_3(%arg0: i32, %arg1: i32) -> (i32, i32) {
    %c0_i32 = arith.constant 0 : i32
    %c0_i32_0 = arith.constant 0 : i32
    %c0_i32_1 = arith.constant 0 : i32
    return %c0_i32, %c0_i32_0 : i32, i32
  }
  func.func @transform_4(%arg0: i32, %arg1: i32) -> (i32, i32, i32, i32) {
    %c0_i32 = arith.constant 0 : i32
    %c0_i32_0 = arith.constant 0 : i32
    %c0_i32_1 = arith.constant 0 : i32
    return %arg0, %arg1, %c0_i32, %c0_i32_0 : i32, i32, i32, i32
  }
}

module attributes {stable_mosaic.version = 11 : i64} {
  func.func @_bn1_relu_conv2_kernel(%arg0: i32, %arg1: memref<1x16x16x8xf32, #tpu.memory_space<vmem>>, %arg2: memref<2x8xf32, #tpu.memory_space<vmem>>, %arg3: memref<72x8xf32, #tpu.memory_space<vmem>>, %arg4: memref<1x16x16x8xf32, #tpu.memory_space<vmem>>, %arg5: memref<1x2x8xf32, #tpu.memory_space<vmem>>, %arg6: memref<18x18x8xf32, #tpu.memory_space<vmem>>, %arg7: memref<256x72xf32, #tpu.memory_space<vmem>>) attributes {dimension_semantics = [#tpu.dimension_semantics<parallel>], iteration_bounds = array<i64: 2>, scalar_prefetch = 0 : i64, scratch_operands = 2 : i64, tpu.core_type = #tpu.core_type<tc>, window_params = [{transform_indices = @transform_0, window_bounds = array<i64: 1, 16, 16, 8>}, {pipeline_mode = #tpu.pipeline_mode<synchronous>, transform_indices = @transform_1, window_bounds = array<i64: 2, 8>}, {pipeline_mode = #tpu.pipeline_mode<synchronous>, transform_indices = @transform_2, window_bounds = array<i64: 72, 8>}, {transform_indices = @transform_3, window_bounds = array<i64: 1, 16, 16, 8>}, {transform_indices = @transform_4, window_bounds = array<i64: 1, 2, 8>}]} {
    %c0 = arith.constant 0 : index
    %c0_0 = arith.constant 0 : index
    %0 = vector.load %arg2[%c0, %c0_0] : memref<2x8xf32, #tpu.memory_space<vmem>>, vector<1x8xf32>
    %c1 = arith.constant 1 : index
    %c0_1 = arith.constant 0 : index
    %1 = vector.load %arg2[%c1, %c0_1] : memref<2x8xf32, #tpu.memory_space<vmem>>, vector<1x8xf32>
    %c0_2 = arith.constant 0 : index
    %c0_3 = arith.constant 0 : index
    %c0_4 = arith.constant 0 : index
    %c0_5 = arith.constant 0 : index
    %2 = vector.load %arg1[%c0_2, %c0_3, %c0_4, %c0_5] : memref<1x16x16x8xf32, #tpu.memory_space<vmem>>, vector<1x16x16x8xf32>
    %3 = vector.shape_cast %2 : vector<1x16x16x8xf32> to vector<256x8xf32>
    %4 = vector.broadcast %0 : vector<1x8xf32> to vector<256x8xf32>
    %5 = arith.mulf %3, %4 : vector<256x8xf32>
    %6 = vector.broadcast %1 : vector<1x8xf32> to vector<256x8xf32>
    %7 = arith.addf %5, %6 : vector<256x8xf32>
    %cst = arith.constant 0.000000e+00 : f32
    %8 = vector.broadcast %cst : f32 to vector<256x8xf32>
    %9 = arith.maximumf %7, %8 : vector<256x8xf32>
    %cst_6 = arith.constant 0.000000e+00 : f32
    %10 = vector.broadcast %cst_6 : f32 to vector<1x18x8xf32>
    %cst_7 = arith.constant 0.000000e+00 : f32
    %11 = vector.broadcast %cst_7 : f32 to vector<18x1x8xf32>
    %c0_8 = arith.constant 0 : index
    %c0_9 = arith.constant 0 : index
    %c0_10 = arith.constant 0 : index
    %12 = vector.load %arg6[%c0_8, %c0_9, %c0_10] : memref<18x18x8xf32, #tpu.memory_space<vmem>>, vector<1x18x8xf32>
    tpu.vector_store %arg6[%c0_8, %c0_9, %c0_10], %10 {strides = array<i32>} : memref<18x18x8xf32, #tpu.memory_space<vmem>>, vector<1x18x8xf32>,
    %c17 = arith.constant 17 : index
    %c0_11 = arith.constant 0 : index
    %c0_12 = arith.constant 0 : index
    %13 = vector.load %arg6[%c17, %c0_11, %c0_12] : memref<18x18x8xf32, #tpu.memory_space<vmem>>, vector<1x18x8xf32>
    tpu.vector_store %arg6[%c17, %c0_11, %c0_12], %10 {strides = array<i32>} : memref<18x18x8xf32, #tpu.memory_space<vmem>>, vector<1x18x8xf32>,
    %c0_13 = arith.constant 0 : index
    %c0_14 = arith.constant 0 : index
    %c0_15 = arith.constant 0 : index
    %14 = vector.load %arg6[%c0_13, %c0_14, %c0_15] : memref<18x18x8xf32, #tpu.memory_space<vmem>>, vector<18x1x8xf32>
    tpu.vector_store %arg6[%c0_13, %c0_14, %c0_15], %11 {strides = array<i32>} : memref<18x18x8xf32, #tpu.memory_space<vmem>>, vector<18x1x8xf32>,
    %c0_16 = arith.constant 0 : index
    %c17_17 = arith.constant 17 : index
    %c0_18 = arith.constant 0 : index
    %15 = vector.load %arg6[%c0_16, %c17_17, %c0_18] : memref<18x18x8xf32, #tpu.memory_space<vmem>>, vector<18x1x8xf32>
    tpu.vector_store %arg6[%c0_16, %c17_17, %c0_18], %11 {strides = array<i32>} : memref<18x18x8xf32, #tpu.memory_space<vmem>>, vector<18x1x8xf32>,
    %16 = vector.shape_cast %9 : vector<256x8xf32> to vector<16x16x8xf32>
    %c1_19 = arith.constant 1 : index
    %c1_20 = arith.constant 1 : index
    %c0_21 = arith.constant 0 : index
    %17 = vector.load %arg6[%c1_19, %c1_20, %c0_21] : memref<18x18x8xf32, #tpu.memory_space<vmem>>, vector<16x16x8xf32>
    tpu.vector_store %arg6[%c1_19, %c1_20, %c0_21], %16 {strides = array<i32>} : memref<18x18x8xf32, #tpu.memory_space<vmem>>, vector<16x16x8xf32>,
    %c0_22 = arith.constant 0 : index
    %c0_23 = arith.constant 0 : index
    %c0_24 = arith.constant 0 : index
    %18 = vector.load %arg6[%c0_22, %c0_23, %c0_24] : memref<18x18x8xf32, #tpu.memory_space<vmem>>, vector<16x16x8xf32>
    %19 = vector.shape_cast %18 : vector<16x16x8xf32> to vector<256x8xf32>
    %c0_25 = arith.constant 0 : index
    %c0_26 = arith.constant 0 : index
    %20 = vector.load %arg7[%c0_25, %c0_26] : memref<256x72xf32, #tpu.memory_space<vmem>>, vector<256x8xf32>
    tpu.vector_store %arg7[%c0_25, %c0_26], %19 {strides = array<i32>} : memref<256x72xf32, #tpu.memory_space<vmem>>, vector<256x8xf32>,
    %c0_27 = arith.constant 0 : index
    %c1_28 = arith.constant 1 : index
    %c0_29 = arith.constant 0 : index
    %21 = vector.load %arg6[%c0_27, %c1_28, %c0_29] : memref<18x18x8xf32, #tpu.memory_space<vmem>>, vector<16x16x8xf32>
    %22 = vector.shape_cast %21 : vector<16x16x8xf32> to vector<256x8xf32>
    %c0_30 = arith.constant 0 : index
    %c8 = arith.constant 8 : index
    %23 = vector.load %arg7[%c0_30, %c8] : memref<256x72xf32, #tpu.memory_space<vmem>>, vector<256x8xf32>
    tpu.vector_store %arg7[%c0_30, %c8], %22 {strides = array<i32>} : memref<256x72xf32, #tpu.memory_space<vmem>>, vector<256x8xf32>,
    %c0_31 = arith.constant 0 : index
    %c2 = arith.constant 2 : index
    %c0_32 = arith.constant 0 : index
    %24 = vector.load %arg6[%c0_31, %c2, %c0_32] : memref<18x18x8xf32, #tpu.memory_space<vmem>>, vector<16x16x8xf32>
    %25 = vector.shape_cast %24 : vector<16x16x8xf32> to vector<256x8xf32>
    %c0_33 = arith.constant 0 : index
    %c16 = arith.constant 16 : index
    %26 = vector.load %arg7[%c0_33, %c16] : memref<256x72xf32, #tpu.memory_space<vmem>>, vector<256x8xf32>
    tpu.vector_store %arg7[%c0_33, %c16], %25 {strides = array<i32>} : memref<256x72xf32, #tpu.memory_space<vmem>>, vector<256x8xf32>,
    %c1_34 = arith.constant 1 : index
    %c0_35 = arith.constant 0 : index
    %c0_36 = arith.constant 0 : index
    %27 = vector.load %arg6[%c1_34, %c0_35, %c0_36] : memref<18x18x8xf32, #tpu.memory_space<vmem>>, vector<16x16x8xf32>
    %28 = vector.shape_cast %27 : vector<16x16x8xf32> to vector<256x8xf32>
    %c0_37 = arith.constant 0 : index
    %c24 = arith.constant 24 : index
    %29 = vector.load %arg7[%c0_37, %c24] : memref<256x72xf32, #tpu.memory_space<vmem>>, vector<256x8xf32>
    tpu.vector_store %arg7[%c0_37, %c24], %28 {strides = array<i32>} : memref<256x72xf32, #tpu.memory_space<vmem>>, vector<256x8xf32>,
    %c1_38 = arith.constant 1 : index
    %c1_39 = arith.constant 1 : index
    %c0_40 = arith.constant 0 : index
    %30 = vector.load %arg6[%c1_38, %c1_39, %c0_40] : memref<18x18x8xf32, #tpu.memory_space<vmem>>, vector<16x16x8xf32>
    %31 = vector.shape_cast %30 : vector<16x16x8xf32> to vector<256x8xf32>
    %c0_41 = arith.constant 0 : index
    %c32 = arith.constant 32 : index
    %32 = vector.load %arg7[%c0_41, %c32] : memref<256x72xf32, #tpu.memory_space<vmem>>, vector<256x8xf32>
    tpu.vector_store %arg7[%c0_41, %c32], %31 {strides = array<i32>} : memref<256x72xf32, #tpu.memory_space<vmem>>, vector<256x8xf32>,
    %c1_42 = arith.constant 1 : index
    %c2_43 = arith.constant 2 : index
    %c0_44 = arith.constant 0 : index
    %33 = vector.load %arg6[%c1_42, %c2_43, %c0_44] : memref<18x18x8xf32, #tpu.memory_space<vmem>>, vector<16x16x8xf32>
    %34 = vector.shape_cast %33 : vector<16x16x8xf32> to vector<256x8xf32>
    %c0_45 = arith.constant 0 : index
    %c40 = arith.constant 40 : index
    %35 = vector.load %arg7[%c0_45, %c40] : memref<256x72xf32, #tpu.memory_space<vmem>>, vector<256x8xf32>
    tpu.vector_store %arg7[%c0_45, %c40], %34 {strides = array<i32>} : memref<256x72xf32, #tpu.memory_space<vmem>>, vector<256x8xf32>,
    %c2_46 = arith.constant 2 : index
    %c0_47 = arith.constant 0 : index
    %c0_48 = arith.constant 0 : index
    %36 = vector.load %arg6[%c2_46, %c0_47, %c0_48] : memref<18x18x8xf32, #tpu.memory_space<vmem>>, vector<16x16x8xf32>
    %37 = vector.shape_cast %36 : vector<16x16x8xf32> to vector<256x8xf32>
    %c0_49 = arith.constant 0 : index
    %c48 = arith.constant 48 : index
    %38 = vector.load %arg7[%c0_49, %c48] : memref<256x72xf32, #tpu.memory_space<vmem>>, vector<256x8xf32>
    tpu.vector_store %arg7[%c0_49, %c48], %37 {strides = array<i32>} : memref<256x72xf32, #tpu.memory_space<vmem>>, vector<256x8xf32>,
    %c2_50 = arith.constant 2 : index
    %c1_51 = arith.constant 1 : index
    %c0_52 = arith.constant 0 : index
    %39 = vector.load %arg6[%c2_50, %c1_51, %c0_52] : memref<18x18x8xf32, #tpu.memory_space<vmem>>, vector<16x16x8xf32>
    %40 = vector.shape_cast %39 : vector<16x16x8xf32> to vector<256x8xf32>
    %c0_53 = arith.constant 0 : index
    %c56 = arith.constant 56 : index
    %41 = vector.load %arg7[%c0_53, %c56] : memref<256x72xf32, #tpu.memory_space<vmem>>, vector<256x8xf32>
    tpu.vector_store %arg7[%c0_53, %c56], %40 {strides = array<i32>} : memref<256x72xf32, #tpu.memory_space<vmem>>, vector<256x8xf32>,
    %c2_54 = arith.constant 2 : index
    %c2_55 = arith.constant 2 : index
    %c0_56 = arith.constant 0 : index
    %42 = vector.load %arg6[%c2_54, %c2_55, %c0_56] : memref<18x18x8xf32, #tpu.memory_space<vmem>>, vector<16x16x8xf32>
    %43 = vector.shape_cast %42 : vector<16x16x8xf32> to vector<256x8xf32>
    %c0_57 = arith.constant 0 : index
    %c64 = arith.constant 64 : index
    %44 = vector.load %arg7[%c0_57, %c64] : memref<256x72xf32, #tpu.memory_space<vmem>>, vector<256x8xf32>
    tpu.vector_store %arg7[%c0_57, %c64], %43 {strides = array<i32>} : memref<256x72xf32, #tpu.memory_space<vmem>>, vector<256x8xf32>,
    %c0_58 = arith.constant 0 : index
    %c0_59 = arith.constant 0 : index
    %45 = vector.load %arg7[%c0_58, %c0_59] : memref<256x72xf32, #tpu.memory_space<vmem>>, vector<256x72xf32>
    %c0_60 = arith.constant 0 : index
    %c0_61 = arith.constant 0 : index
    %46 = vector.load %arg3[%c0_60, %c0_61] : memref<72x8xf32, #tpu.memory_space<vmem>>, vector<72x8xf32>
    %cst_62 = arith.constant dense<0.000000e+00> : vector<256x8xf32>
    %47 = tpu.matmul %45, %46, %cst_62 {dimension_numbers = #tpu.dot_dimension_numbers<[1], [0], [0], [1], [0, 0, 1, 1], [], []>} : vector<256x72xf32>, vector<72x8xf32>, vector<256x8xf32> -> vector<256x8xf32>
    %48 = vector.shape_cast %47 : vector<256x8xf32> to vector<1x16x16x8xf32>
    %c0_63 = arith.constant 0 : index
    %c0_64 = arith.constant 0 : index
    %c0_65 = arith.constant 0 : index
    %c0_66 = arith.constant 0 : index
    %49 = vector.load %arg4[%c0_63, %c0_64, %c0_65, %c0_66] : memref<1x16x16x8xf32, #tpu.memory_space<vmem>>, vector<1x16x16x8xf32>
    tpu.vector_store %arg4[%c0_63, %c0_64, %c0_65, %c0_66], %48 {strides = array<i32>} : memref<1x16x16x8xf32, #tpu.memory_space<vmem>>, vector<1x16x16x8xf32>,
    %cst_67 = arith.constant dense<0.000000e+00> : vector<8xf32>
    %50 = vector.multi_reduction <add>, %47, %cst_67 [0] : vector<256x8xf32> to vector<8xf32>
    %51 = vector.shape_cast %50 : vector<8xf32> to vector<1x8xf32>
    %52 = vector.shape_cast %51 : vector<1x8xf32> to vector<1x1x8xf32>
    %c0_68 = arith.constant 0 : index
    %c0_69 = arith.constant 0 : index
    %c0_70 = arith.constant 0 : index
    %53 = vector.load %arg5[%c0_68, %c0_69, %c0_70] : memref<1x2x8xf32, #tpu.memory_space<vmem>>, vector<1x1x8xf32>
    tpu.vector_store %arg5[%c0_68, %c0_69, %c0_70], %52 {strides = array<i32>} : memref<1x2x8xf32, #tpu.memory_space<vmem>>, vector<1x1x8xf32>,
    %54 = arith.mulf %47, %47 : vector<256x8xf32>
    %cst_71 = arith.constant dense<0.000000e+00> : vector<8xf32>
    %55 = vector.multi_reduction <add>, %54, %cst_71 [0] : vector<256x8xf32> to vector<8xf32>
    %56 = vector.shape_cast %55 : vector<8xf32> to vector<1x8xf32>
    %57 = vector.shape_cast %56 : vector<1x8xf32> to vector<1x1x8xf32>
    %c0_72 = arith.constant 0 : index
    %c1_73 = arith.constant 1 : index
    %c0_74 = arith.constant 0 : index
    %58 = vector.load %arg5[%c0_72, %c1_73, %c0_74] : memref<1x2x8xf32, #tpu.memory_space<vmem>>, vector<1x1x8xf32>
    tpu.vector_store %arg5[%c0_72, %c1_73, %c0_74], %57 {strides = array<i32>} : memref<1x2x8xf32, #tpu.memory_space<vmem>>, vector<1x1x8xf32>,
    return
  }
  func.func @transform_0(%arg0: i32) -> (i32, i32, i32, i32) {
    %c0_i32 = arith.constant 0 : i32
    %c0_i32_0 = arith.constant 0 : i32
    %c0_i32_1 = arith.constant 0 : i32
    %c0_i32_2 = arith.constant 0 : i32
    return %arg0, %c0_i32, %c0_i32_0, %c0_i32_1 : i32, i32, i32, i32
  }
  func.func @transform_1(%arg0: i32) -> (i32, i32) {
    %c0_i32 = arith.constant 0 : i32
    %c0_i32_0 = arith.constant 0 : i32
    %c0_i32_1 = arith.constant 0 : i32
    return %c0_i32, %c0_i32_0 : i32, i32
  }
  func.func @transform_2(%arg0: i32) -> (i32, i32) {
    %c0_i32 = arith.constant 0 : i32
    %c0_i32_0 = arith.constant 0 : i32
    %c0_i32_1 = arith.constant 0 : i32
    return %c0_i32, %c0_i32_0 : i32, i32
  }
  func.func @transform_3(%arg0: i32) -> (i32, i32, i32, i32) {
    %c0_i32 = arith.constant 0 : i32
    %c0_i32_0 = arith.constant 0 : i32
    %c0_i32_1 = arith.constant 0 : i32
    %c0_i32_2 = arith.constant 0 : i32
    return %arg0, %c0_i32, %c0_i32_0, %c0_i32_1 : i32, i32, i32, i32
  }
  func.func @transform_4(%arg0: i32) -> (i32, i32, i32) {
    %c0_i32 = arith.constant 0 : i32
    %c0_i32_0 = arith.constant 0 : i32
    %c0_i32_1 = arith.constant 0 : i32
    return %arg0, %c0_i32, %c0_i32_0 : i32, i32, i32
  }
}

</mosaic_0001>

<bundles_post_ra>
// kernel: resblock_forward.5
= control target key start
LH: loop header
LB: loop body
LE: loop exit
PB: predicated region body
PF: predicated region fallthrough
CT: control target
= control target key end

     0   :  { %s800_s15 = smov 0   ;;  %s802_s16 = smov 0   ;;  %s1123_s0 = inlined_call_operand.vmem [shape: f32[2,16,16,8], index: 0, kind: input, shape index: {}]   ;;  %s1124_s1 = inlined_call_operand.vmem [shape: f32[2,16,16,8], index: 1, kind: input, shape index: {}]   ;;  %s1125_s2 = inlined_call_operand.vmem [shape: f32[2,8], index: 2, kind: input, shape index: {}]   ;;  %s1126_s3 = inlined_call_operand.vmem [shape: f32[2,8], index: 3, kind: input, shape index: {}]   ;;  %s1127_s4 = inlined_call_operand.vmem [shape: f32[2,16,16,8], index: 4, kind: output, shape index: {}]  }
   0x1   :  { %s804_s17 = smov 0  }
   0x2 LB: > { %s26_s18 = sadd.s32 1, %s769_s16  ;;  %p711_p0 = scmp.ge.s32.totalorder %s773_s17, 1  ;;  %s773_s17 = sphi %s804_s17, %s14_s17   ;;  %s769_s16 = sphi %s802_s16, %s1129_s16   ;;  %s765_s15 = sphi %s800_s15, %s1128_s15  }
   0x3   : > { %p28_p1 = scmp.ge.s32.totalorder %s26_s18, 2  ;;  %p202_p2 = scmp.lt.s32.totalorder %s773_s17, 3 }
   0x5   : > { %s1131_s18 = smov (%p28_p1, %s26_s18), 0  ;;  %p203_p3 = pnand %p711_p0, %p202_p2 }
   0x6   : > { %p249_p4 = scmp.lt.s32.totalorder (!%p203_p3), %s765_s15, 1  ;;  %v823_v0 = vld [vmem:[%s1125_s2] ss:$0 sm:$0xff] (!%p203_p3)  ;;  %v845_v2 = vld [vmem:[%s1125_s2 + $0x1] ss:$0 sm:$0xff] (!%p203_p3)  ;;  %vm557_vm0 = vcmask (!%p203_p3), 64512  }
   0x7   : > { %206 = sbr.rel (%p203_p3) target bundleno = 73 (0x49), region = 36  ;;  %v828_v1 = vld [vmem:[%s1126_s3] ss:$0 sm:$0xff] (!%p203_p3)  ;;  %v872_v25 = vld [vmem:[%s1126_s3 + $0x1] ss:$0 sm:$0xff] (!%p203_p3) }
   0xe   : > { %s1133_s15 = smov (!%p249_p4, %s765_s15), 1 }
   0xf   : > { %s818_s19 = sshll.u32 %s1133_s15, 8 }
  0x10   : > { %s834_s26 = scalar_lea.vmem %s1123_s0, %s818_s19  ;;  %s840_s29 = scalar_lea.vmem %s1124_s1, %s818_s19 }
  0x11   : > { %v285_v3 = vld [vmem:[%s834_s26] sm:$0xff]  ;;  %v286_v5 = vld [vmem:[%s834_s26 + $0x8] sm:$0xff]  ;;  %v287_v10 = vld [vmem:[%s834_s26 + $0x10] sm:$0xff]  ;;  %s893_s10 = scalar_lea.vmem %s1127_s4, %s818_s19 }
  0x12   : > { %v317_v4 = vld [vmem:[%s840_s29] sm:$0xff]  ;;  %v353_v6 = vmul.f32 %v823_v0, %v285_v3  ;;  %v318_v8 = vld [vmem:[%s840_s29 + $0x8] sm:$0xff]  ;;  %v354_v9 = vmul.f32 %v823_v0, %v286_v5  ;;  %v319_v11 = vld [vmem:[%s840_s29 + $0x10] sm:$0xff]  ;;  %v355_v13 = vmul.f32 %v823_v0, %v287_v10 }
  0x13   : > { %v425_v7 = vmul.f32 %v828_v1, %v317_v4  ;;  %v426_v12 = vmul.f32 %v828_v1, %v318_v8  ;;  %v427_v14 = vmul.f32 %v828_v1, %v319_v11  ;;  %v288_v15 = vld [vmem:[%s834_s26 + $0x18] sm:$0xff]  ;;  %v289_v17 = vld [vmem:[%s834_s26 + $0x20] sm:$0xff]  ;;  %v290_v23 = vld [vmem:[%s834_s26 + $0x28] sm:$0xff] }
  0x14   : > { %v320_v16 = vld [vmem:[%s840_s29 + $0x18] sm:$0xff]  ;;  %v389_v18 = vadd.f32 %v845_v2, %v353_v6  ;;  %v390_v19 = vadd.f32 %v845_v2, %v354_v9  ;;  %v356_v20 = vmul.f32 %v823_v0, %v288_v15  ;;  %v321_v22 = vld [vmem:[%s840_s29 + $0x20] sm:$0xff]  ;;  %v322_v24 = vld [vmem:[%s840_s29 + $0x28] sm:$0xff]  ;;  %v391_v26 = vadd.f32 %v845_v2, %v355_v13 }
  0x15   : > { %v428_v21 = vmul.f32 %v828_v1, %v320_v16  ;;  %v357_v27 = vmul.f32 %v823_v0, %v289_v17  ;;  %v429_v28 = vmul.f32 %v828_v1, %v321_v22  ;;  %v358_v29 = vmul.f32 %v823_v0, %v290_v23  ;;  %v291_v30 = vld [vmem:[%s834_s26 + $0x30] sm:$0xff]  ;;  %v292_v40 = vld [vmem:[%s834_s26 + $0x38] sm:$0xff]  ;;  %v293_v50 = vld [vmem:[%s834_s26 + $0x40] sm:$0xff] }
  0x16   : > { %v323_v31 = vld [vmem:[%s840_s29 + $0x30] sm:$0xff]  ;;  %v457_v32 = vadd.f32 %v425_v7, %v389_v18  ;;  %v458_v33 = vadd.f32 %v426_v12, %v390_v19  ;;  %v392_v34 = vadd.f32 %v845_v2, %v356_v20  ;;  %v430_v35 = vmul.f32 %v828_v1, %v322_v24  ;;  %v324_v49 = vld [vmem:[%s840_s29 + $0x38] sm:$0xff]  ;;  %v325_v55 = vld [vmem:[%s840_s29 + $0x40] sm:$0xff] }
  0x17   : > { %v459_v36 = vadd.f32 %v427_v14, %v391_v26  ;;  %v393_v37 = vadd.f32 %v845_v2, %v357_v27  ;;  %v394_v38 = vadd.f32 %v845_v2, %v358_v29  ;;  %v359_v39 = vmul.f32 %v823_v0, %v291_v30  ;;  %v294_v60 = vld [vmem:[%s834_s26 + $0x48] sm:$0xff]  ;;  %v295_v5 = vld [vmem:[%s834_s26 + $0x50] sm:$0xff]  ;;  %v296_v7 = vld [vmem:[%s834_s26 + $0x58] sm:$0xff] }
  0x18   : > { %v493_v41 = vadd.f32 %v872_v25, %v457_v32  ;;  %v494_v42 = vadd.f32 %v872_v25, %v458_v33  ;;  %v460_v43 = vadd.f32 %v428_v21, %v392_v34  ;;  %v431_v44 = vmul.f32 %v828_v1, %v323_v31  ;;  %v326_v61 = vld [vmem:[%s840_s29 + $0x48] sm:$0xff]  ;;  %v327_v6 = vld [vmem:[%s840_s29 + $0x50] sm:$0xff]  ;;  %v328_v12 = vld [vmem:[%s840_s29 + $0x58] sm:$0xff] }
  0x19   : > { %v495_v45 = vadd.f32 %v872_v25, %v459_v36  ;;  %v461_v46 = vadd.f32 %v429_v28, %v393_v37  ;;  %v462_v47 = vadd.f32 %v430_v35, %v394_v38  ;;  %v395_v48 = vadd.f32 %v845_v2, %v359_v39  ;;  %v297_v17 = vld [vmem:[%s834_s26 + $0x60] sm:$0xff]  ;;  %v298_v23 = vld [vmem:[%s834_s26 + $0x68] sm:$0xff]  ;;  %v299_v34 = vld [vmem:[%s834_s26 + $0x70] sm:$0xff] }
  0x1a   : > { %v525_v51 = vmax.f32 %v493_v41, 0.0  ;;  %v526_v52 = vmax.f32 %v494_v42, 0.0  ;;  %v496_v53 = vadd.f32 %v872_v25, %v460_v43  ;;  %v360_v54 = vmul.f32 %v823_v0, %v292_v40  ;;  %v329_v18 = vld [vmem:[%s840_s29 + $0x60] sm:$0xff]  ;;  %v330_v29 = vld [vmem:[%s840_s29 + $0x68] sm:$0xff]  ;;  %v331_v39 = vld [vmem:[%s840_s29 + $0x70] sm:$0xff] }
  0x1b   : > { %v527_v56 = vmax.f32 %v495_v45, 0.0  ;;  %v497_v57 = vadd.f32 %v872_v25, %v461_v46  ;;  %v498_v58 = vadd.f32 %v872_v25, %v462_v47  ;;  %v463_v59 = vadd.f32 %v431_v44, %v395_v48  ;;  %v300_v44 = vld [vmem:[%s834_s26 + $0x78] sm:$0xff] }
  0x1c   : > { %558 = vst.msk [vmem:[%s893_s10] sm:$0xff] %vm557_vm0, %v525_v51  ;;  %559 = vst.msk [vmem:[%s893_s10 + $0x8] sm:$0xff] %vm557_vm0, %v526_v52  ;;  %v528_v62 = vmax.f32 %v496_v53, 0.0  ;;  %v396_v63 = vadd.f32 %v845_v2, %v360_v54  ;;  %v432_v3 = vmul.f32 %v828_v1, %v324_v49  ;;  %v361_v4 = vmul.f32 %v823_v0, %v293_v50  ;;  %v332_v49 = vld [vmem:[%s840_s29 + $0x78] sm:$0xff]  ;;  %v301_v54 = vld [vmem:[%s834_s26 + $0x80] sm:$0xff] }
  0x1d   : > { %560 = vst.msk [vmem:[%s893_s10 + $0x10] sm:$0xff] %vm557_vm0, %v527_v56  ;;  %v529_v8 = vmax.f32 %v497_v57, 0.0  ;;  %v530_v9 = vmax.f32 %v498_v58, 0.0  ;;  %v499_v10 = vadd.f32 %v872_v25, %v463_v59  ;;  %v433_v11 = vmul.f32 %v828_v1, %v325_v55  ;;  %v333_v59 = vld [vmem:[%s840_s29 + $0x80] sm:$0xff] }
  0x1e   : > { %561 = vst.msk [vmem:[%s893_s10 + $0x18] sm:$0xff] %vm557_vm0, %v528_v62  ;;  %v464_v13 = vadd.f32 %v432_v3, %v396_v63  ;;  %v397_v14 = vadd.f32 %v845_v2, %v361_v4  ;;  %v362_v15 = vmul.f32 %v823_v0, %v294_v60  ;;  %v434_v16 = vmul.f32 %v828_v1, %v326_v61  ;;  %v302_v60 = vld [vmem:[%s834_s26 + $0x88] sm:$0xff] }
  0x1f   : > { %562 = vst.msk [vmem:[%s893_s10 + $0x20] sm:$0xff] %vm557_vm0, %v529_v8  ;;  %563 = vst.msk [vmem:[%s893_s10 + $0x28] sm:$0xff] %vm557_vm0, %v530_v9  ;;  %v531_v19 = vmax.f32 %v499_v10, 0.0  ;;  %v363_v20 = vmul.f32 %v823_v0, %v295_v5  ;;  %v435_v21 = vmul.f32 %v828_v1, %v327_v6  ;;  %v364_v22 = vmul.f32 %v823_v0, %v296_v7  ;;  %v334_v61 = vld [vmem:[%s840_s29 + $0x88] sm:$0xff]  ;;  %v303_v9 = vld [vmem:[%s834_s26 + $0x90] sm:$0xff] }
  0x20   : > { %v500_v24 = vadd.f32 %v872_v25, %v464_v13  ;;  %v465_v26 = vadd.f32 %v433_v11, %v397_v14  ;;  %v398_v27 = vadd.f32 %v845_v2, %v362_v15  ;;  %v436_v28 = vmul.f32 %v828_v1, %v328_v12  ;;  %v335_v10 = vld [vmem:[%s840_s29 + $0x90] sm:$0xff]  ;;  %v304_v11 = vld [vmem:[%s834_s26 + $0x98] sm:$0xff] }
  0x21   : > { %564 = vst.msk [vmem:[%s893_s10 + $0x30] sm:$0xff] %vm557_vm0, %v531_v19  ;;  %v399_v30 = vadd.f32 %v845_v2, %v363_v20  ;;  %v400_v31 = vadd.f32 %v845_v2, %v364_v22  ;;  %v365_v32 = vmul.f32 %v823_v0, %v297_v17  ;;  %v437_v33 = vmul.f32 %v828_v1, %v329_v18 }
  0x22   : > { %v532_v35 = vmax.f32 %v500_v24, 0.0  ;;  %v501_v36 = vadd.f32 %v872_v25, %v465_v26  ;;  %v466_v37 = vadd.f32 %v434_v16, %v398_v27  ;;  %v366_v38 = vmul.f32 %v823_v0, %v298_v23  ;;  %v336_v16 = vld [vmem:[%s840_s29 + $0x98] sm:$0xff]  ;;  %v337_v27 = vld [vmem:[%s840_s29 + $0xa0] sm:$0xff] }
  0x23   : > { %v467_v40 = vadd.f32 %v435_v21, %v399_v30  ;;  %v468_v41 = vadd.f32 %v436_v28, %v400_v31  ;;  %v401_v42 = vadd.f32 %v845_v2, %v365_v32  ;;  %v438_v43 = vmul.f32 %v828_v1, %v330_v29  ;;  %v305_v21 = vld [vmem:[%s834_s26 + $0xa0] sm:$0xff]  ;;  %v306_v28 = vld [vmem:[%s834_s26 + $0xa8] sm:$0xff] }
  0x24   : > { %565 = vst.msk [vmem:[%s893_s10 + $0x38] sm:$0xff] %vm557_vm0, %v532_v35  ;;  %v533_v45 = vmax.f32 %v501_v36, 0.0  ;;  %v502_v46 = vadd.f32 %v872_v25, %v466_v37  ;;  %v402_v47 = vadd.f32 %v845_v2, %v366_v38  ;;  %v367_v48 = vmul.f32 %v823_v0, %v299_v34  ;;  %v338_v37 = vld [vmem:[%s840_s29 + $0xa8] sm:$0xff]  ;;  %v307_v38 = vld [vmem:[%s834_s26 + $0xb0] sm:$0xff] }
  0x25   : > { %v503_v50 = vadd.f32 %v872_v25, %v467_v40  ;;  %v504_v51 = vadd.f32 %v872_v25, %v468_v41  ;;  %v469_v52 = vadd.f32 %v437_v33, %v401_v42  ;;  %v439_v53 = vmul.f32 %v828_v1, %v331_v39 }
  0x26   : > { %566 = vst.msk [vmem:[%s893_s10 + $0x40] sm:$0xff] %vm557_vm0, %v533_v45  ;;  %v534_v55 = vmax.f32 %v502_v46, 0.0  ;;  %v470_v56 = vadd.f32 %v438_v43, %v402_v47  ;;  %v403_v57 = vadd.f32 %v845_v2, %v367_v48  ;;  %v368_v58 = vmul.f32 %v823_v0, %v300_v44  ;;  %v339_v47 = vld [vmem:[%s840_s29 + $0xb0] sm:$0xff]  ;;  %v308_v48 = vld [vmem:[%s834_s26 + $0xb8] sm:$0xff] }
  0x27   : > { %v535_v62 = vmax.f32 %v503_v50, 0.0  ;;  %v536_v63 = vmax.f32 %v504_v51, 0.0  ;;  %v505_v3 = vadd.f32 %v872_v25, %v469_v52  ;;  %v440_v4 = vmul.f32 %v828_v1, %v332_v49 }
  0x28   : > { %567 = vst.msk [vmem:[%s893_s10 + $0x48] sm:$0xff] %vm557_vm0, %v534_v55  ;;  %v506_v5 = vadd.f32 %v872_v25, %v470_v56  ;;  %v471_v6 = vadd.f32 %v439_v53, %v403_v57  ;;  %v404_v7 = vadd.f32 %v845_v2, %v368_v58  ;;  %v369_v8 = vmul.f32 %v823_v0, %v301_v54  ;;  %v340_v53 = vld [vmem:[%s840_s29 + $0xb8] sm:$0xff]  ;;  %v309_v58 = vld [vmem:[%s834_s26 + $0xc0] sm:$0xff] }
  0x29   : > { %568 = vst.msk [vmem:[%s893_s10 + $0x50] sm:$0xff] %vm557_vm0, %v535_v62  ;;  %569 = vst.msk [vmem:[%s893_s10 + $0x58] sm:$0xff] %vm557_vm0, %v536_v63  ;;  %v537_v12 = vmax.f32 %v505_v3, 0.0  ;;  %v441_v13 = vmul.f32 %v828_v1, %v333_v59  ;;  %v370_v14 = vmul.f32 %v823_v0, %v302_v60  ;;  %v442_v15 = vmul.f32 %v828_v1, %v334_v61  ;;  %v341_v63 = vld [vmem:[%s840_s29 + $0xc0] sm:$0xff]  ;;  %v310_v3 = vld [vmem:[%s834_s26 + $0xc8] sm:$0xff] }
  0x2a   : > { %v538_v17 = vmax.f32 %v506_v5, 0.0  ;;  %v507_v18 = vadd.f32 %v872_v25, %v471_v6  ;;  %v472_v19 = vadd.f32 %v440_v4, %v404_v7  ;;  %v405_v20 = vadd.f32 %v845_v2, %v369_v8  ;;  %v342_v4 = vld [vmem:[%s840_s29 + $0xc8] sm:$0xff] }
  0x2b   : > { %570 = vst.msk [vmem:[%s893_s10 + $0x60] sm:$0xff] %vm557_vm0, %v537_v12  ;;  %v406_v22 = vadd.f32 %v845_v2, %v370_v14  ;;  %v371_v23 = vmul.f32 %v823_v0, %v303_v9  ;;  %v443_v24 = vmul.f32 %v828_v1, %v335_v10  ;;  %v372_v26 = vmul.f32 %v823_v0, %v304_v11  ;;  %v343_v14 = vld [vmem:[%s840_s29 + $0xd0] sm:$0xff] }
  0x2c   : > { %571 = vst.msk [vmem:[%s893_s10 + $0x68] sm:$0xff] %vm557_vm0, %v538_v17  ;;  %v539_v29 = vmax.f32 %v507_v18, 0.0  ;;  %v508_v30 = vadd.f32 %v872_v25, %v472_v19  ;;  %v473_v31 = vadd.f32 %v441_v13, %v405_v20  ;;  %v444_v32 = vmul.f32 %v828_v1, %v336_v16  ;;  %v311_v13 = vld [vmem:[%s834_s26 + $0xd0] sm:$0xff]  ;;  %v344_v20 = vld [vmem:[%s840_s29 + $0xd8] sm:$0xff] }
  0x2d   : > { %v474_v33 = vadd.f32 %v442_v15, %v406_v22  ;;  %v407_v34 = vadd.f32 %v845_v2, %v371_v23  ;;  %v408_v35 = vadd.f32 %v845_v2, %v372_v26  ;;  %v373_v36 = vmul.f32 %v823_v0, %v305_v21  ;;  %v312_v15 = vld [vmem:[%s834_s26 + $0xd8] sm:$0xff]  ;;  %v313_v26 = vld [vmem:[%s834_s26 + $0xe0] sm:$0xff] }
  0x2e   : > { %572 = vst.msk [vmem:[%s893_s10 + $0x70] sm:$0xff] %vm557_vm0, %v539_v29  ;;  %v540_v39 = vmax.f32 %v508_v30, 0.0  ;;  %v509_v40 = vadd.f32 %v872_v25, %v473_v31  ;;  %v445_v41 = vmul.f32 %v828_v1, %v337_v27  ;;  %v374_v42 = vmul.f32 %v823_v0, %v306_v28  ;;  %v345_v31 = vld [vmem:[%s840_s29 + $0xe0] sm:$0xff] }
  0x2f   : > { %v510_v43 = vadd.f32 %v872_v25, %v474_v33  ;;  %v475_v44 = vadd.f32 %v443_v24, %v407_v34  ;;  %v476_v45 = vadd.f32 %v444_v32, %v408_v35  ;;  %v409_v46 = vadd.f32 %v845_v2, %v373_v36  ;;  %v314_v32 = vld [vmem:[%s834_s26 + $0xe8] sm:$0xff] }
  0x30   : > { %573 = vst.msk [vmem:[%s893_s10 + $0x78] sm:$0xff] %vm557_vm0, %v540_v39  ;;  %v541_v49 = vmax.f32 %v509_v40, 0.0  ;;  %v410_v50 = vadd.f32 %v845_v2, %v374_v42  ;;  %v446_v51 = vmul.f32 %v828_v1, %v338_v37  ;;  %v375_v52 = vmul.f32 %v823_v0, %v307_v38  ;;  %v315_v42 = vld [vmem:[%s834_s26 + $0xf0] sm:$0xff] }
  0x31   : > { %v542_v54 = vmax.f32 %v510_v43, 0.0  ;;  %v511_v55 = vadd.f32 %v872_v25, %v475_v44  ;;  %v512_v56 = vadd.f32 %v872_v25, %v476_v45  ;;  %v477_v57 = vadd.f32 %v445_v41, %v409_v46  ;;  %v346_v41 = vld [vmem:[%s840_s29 + $0xe8] sm:$0xff] }
  0x32   : > { %574 = vst.msk [vmem:[%s893_s10 + $0x80] sm:$0xff] %vm557_vm0, %v541_v49  ;;  %v478_v59 = vadd.f32 %v446_v51, %v410_v50  ;;  %v411_v60 = vadd.f32 %v845_v2, %v375_v52  ;;  %v447_v61 = vmul.f32 %v828_v1, %v339_v47  ;;  %v376_v62 = vmul.f32 %v823_v0, %v308_v48  ;;  %v347_v51 = vld [vmem:[%s840_s29 + $0xf0] sm:$0xff]  ;;  %v316_v52 = vld [vmem:[%s834_s26 + $0xf8] sm:$0xff] }
  0x33   : > { %575 = vst.msk [vmem:[%s893_s10 + $0x88] sm:$0xff] %vm557_vm0, %v542_v54  ;;  %v543_v5 = vmax.f32 %v511_v55, 0.0  ;;  %v544_v6 = vmax.f32 %v512_v56, 0.0  ;;  %v513_v7 = vadd.f32 %v872_v25, %v477_v57  ;;  %v448_v8 = vmul.f32 %v828_v1, %v340_v53  ;;  %v348_v57 = vld [vmem:[%s840_s29 + $0xf8] sm:$0xff] }
  0x34   : > { %v514_v9 = vadd.f32 %v872_v25, %v478_v59  ;;  %v479_v10 = vadd.f32 %v447_v61, %v411_v60  ;;  %v412_v11 = vadd.f32 %v845_v2, %v376_v62  ;;  %v377_v12 = vmul.f32 %v823_v0, %v309_v58 }
  0x35   : > { %576 = vst.msk [vmem:[%s893_s10 + $0x90] sm:$0xff] %vm557_vm0, %v543_v5  ;;  %577 = vst.msk [vmem:[%s893_s10 + $0x98] sm:$0xff] %vm557_vm0, %v544_v6  ;;  %v545_v16 = vmax.f32 %v513_v7, 0.0  ;;  %v449_v17 = vmul.f32 %v828_v1, %v341_v63  ;;  %v378_v18 = vmul.f32 %v823_v0, %v310_v3  ;;  %v450_v19 = vmul.f32 %v828_v1, %v342_v4 }
  0x36   : > { %v546_v21 = vmax.f32 %v514_v9, 0.0  ;;  %v515_v22 = vadd.f32 %v872_v25, %v479_v10  ;;  %v480_v23 = vadd.f32 %v448_v8, %v412_v11  ;;  %v413_v24 = vadd.f32 %v845_v2, %v377_v12 }
  0x37   : > { %578 = vst.msk [vmem:[%s893_s10 + $0xa0] sm:$0xff] %vm557_vm0, %v545_v16  ;;  %v414_v27 = vadd.f32 %v845_v2, %v378_v18  ;;  %v379_v28 = vmul.f32 %v823_v0, %v311_v13  ;;  %v451_v29 = vmul.f32 %v828_v1, %v343_v14  ;;  %v380_v30 = vmul.f32 %v823_v0, %v312_v15 }
  0x38   : > { %579 = vst.msk [vmem:[%s893_s10 + $0xa8] sm:$0xff] %vm557_vm0, %v546_v21  ;;  %v547_v33 = vmax.f32 %v515_v22, 0.0  ;;  %v516_v34 = vadd.f32 %v872_v25, %v480_v23  ;;  %v481_v35 = vadd.f32 %v449_v17, %v413_v24  ;;  %v452_v36 = vmul.f32 %v828_v1, %v344_v20 }
  0x39   : > { %v482_v37 = vadd.f32 %v450_v19, %v414_v27  ;;  %v415_v38 = vadd.f32 %v845_v2, %v379_v28  ;;  %v416_v39 = vadd.f32 %v845_v2, %v380_v30  ;;  %v381_v40 = vmul.f32 %v823_v0, %v313_v26 }
  0x3a   : > { %580 = vst.msk [vmem:[%s893_s10 + $0xb0] sm:$0xff] %vm557_vm0, %v547_v33  ;;  %v548_v43 = vmax.f32 %v516_v34, 0.0  ;;  %v517_v44 = vadd.f32 %v872_v25, %v481_v35  ;;  %v453_v45 = vmul.f32 %v828_v1, %v345_v31  ;;  %v382_v46 = vmul.f32 %v823_v0, %v314_v32 }
  0x3b   : > { %v518_v47 = vadd.f32 %v872_v25, %v482_v37  ;;  %v483_v48 = vadd.f32 %v451_v29, %v415_v38  ;;  %v484_v49 = vadd.f32 %v452_v36, %v416_v39  ;;  %v417_v50 = vadd.f32 %v845_v2, %v381_v40 }
  0x3c   : > { %581 = vst.msk [vmem:[%s893_s10 + $0xb8] sm:$0xff] %vm557_vm0, %v548_v43  ;;  %v549_v53 = vmax.f32 %v517_v44, 0.0  ;;  %v418_v54 = vadd.f32 %v845_v2, %v382_v46  ;;  %v454_v55 = vmul.f32 %v828_v1, %v346_v41  ;;  %v383_v56 = vmul.f32 %v823_v0, %v315_v42 }
  0x3d   : > { %v550_v58 = vmax.f32 %v518_v47, 0.0  ;;  %v519_v59 = vadd.f32 %v872_v25, %v483_v48  ;;  %v520_v60 = vadd.f32 %v872_v25, %v484_v49  ;;  %v485_v61 = vadd.f32 %v453_v45, %v417_v50 }
  0x3e   : > { %582 = vst.msk [vmem:[%s893_s10 + $0xc0] sm:$0xff] %vm557_vm0, %v549_v53  ;;  %v486_v62 = vadd.f32 %v454_v55, %v418_v54  ;;  %v419_v63 = vadd.f32 %v845_v2, %v383_v56  ;;  %v455_v3 = vmul.f32 %v828_v1, %v347_v51  ;;  %v384_v4 = vmul.f32 %v823_v0, %v316_v52 }
  0x3f   : > { %583 = vst.msk [vmem:[%s893_s10 + $0xc8] sm:$0xff] %vm557_vm0, %v550_v58  ;;  %v551_v5 = vmax.f32 %v519_v59, 0.0  ;;  %v552_v6 = vmax.f32 %v520_v60, 0.0  ;;  %v521_v7 = vadd.f32 %v872_v25, %v485_v61  ;;  %v456_v8 = vmul.f32 %v828_v1, %v348_v57 }
  0x40   : > { %v522_v9 = vadd.f32 %v872_v25, %v486_v62  ;;  %v487_v10 = vadd.f32 %v455_v3, %v419_v63  ;;  %v420_v11 = vadd.f32 %v845_v2, %v384_v4 }
  0x41   : > { %584 = vst.msk [vmem:[%s893_s10 + $0xd0] sm:$0xff] %vm557_vm0, %v551_v5  ;;  %585 = vst.msk [vmem:[%s893_s10 + $0xd8] sm:$0xff] %vm557_vm0, %v552_v6  ;;  %v553_v0 = vmax.f32 %v521_v7, 0.0 }
  0x42   : > { %v554_v12 = vmax.f32 %v522_v9, 0.0  ;;  %v523_v13 = vadd.f32 %v872_v25, %v487_v10  ;;  %v488_v14 = vadd.f32 %v456_v8, %v420_v11 }
  0x43   : > { %586 = vst.msk [vmem:[%s893_s10 + $0xe0] sm:$0xff] %vm557_vm0, %v553_v0 }
  0x44   : > { %587 = vst.msk [vmem:[%s893_s10 + $0xe8] sm:$0xff] %vm557_vm0, %v554_v12  ;;  %v555_v1 = vmax.f32 %v523_v13, 0.0  ;;  %v524_v15 = vadd.f32 %v872_v25, %v488_v14 }
  0x46   : > { %588 = vst.msk [vmem:[%s893_s10 + $0xf0] sm:$0xff] %vm557_vm0, %v555_v1  ;;  %v556_v16 = vmax.f32 %v524_v15, 0.0 }
  0x48   : > { %589 = vst.msk [vmem:[%s893_s10 + $0xf8] sm:$0xff] %vm557_vm0, %v556_v16 }
  0x49 PF: > { %s14_s17 = sadd.s32 1, %s773_s17   ;;  %s1128_s15 = smov %s769_s16 }
  0x4a   : > { %p11_p5 = scmp.ge.s32.totalorder %s14_s17, 4   ;;  %s1129_s16 = smov %s1131_s18 }
  0x4c   :  { %13 = sbr.rel (!%p11_p5) target bundleno = 2 (0x2), region = 69 }

// kernel: resblock_forward.4
= control target key start
LH: loop header
LB: loop body
LE: loop exit
PB: predicated region body
PF: predicated region fallthrough
CT: control target
= control target key end

     0   :  { %s2930_s15 = smov 0   ;;  %s4134_s0 = inlined_call_operand.vmem [shape: f32[2,16,16,8], index: 0, kind: input, shape index: {}]   ;;  %s4135_s1 = inlined_call_operand.vmem [shape: f32[2,8], index: 1, kind: input, shape index: {}]   ;;  %s4136_s2 = inlined_call_operand.vmem [shape: f32[72,8], index: 2, kind: input, shape index: {}]   ;;  %s4137_s3 = inlined_call_operand.vmem [shape: f32[2,16,16,8], index: 3, kind: output, shape index: {0}]   ;;  %s4138_s4 = inlined_call_operand.vmem [shape: f32[2,2,8], index: 4, kind: output, shape index: {1}]  }
   0x1 LB: > { %s2688_s16 = sadd.s32 4294967295, %s2894_s15   ;;  %p2692_p0 = scmp.ge.s32.totalorder %s2894_s15, 1  ;;  %s2894_s15 = sphi %s2930_s15, %s15_s15  }
   0x2   : > { %p165_p1 = scmp.lt.s32.totalorder %s2894_s15, 3 }
   0x4   : > { %p166_p2 = pnand %p2692_p0, %p165_p1 }
   0x5   : > { %vm347_vm0 = vcmask (!%p166_p2), 64512   ;;  %vm356_vm1 = vcmask (!%p166_p2), 57344   ;;  %vm350_vm2 = vcmask (!%p166_p2), 58368   ;;  %p2940_p3 = scmp.lt.s32.totalorder (!%p166_p2), %s2688_s16, 1  ;;  %v2896_v0 = vmov (!%p166_p2), 0.0   ;;  %s2897_s26 = smov (!%p166_p2), 8  }
   0x6   : > { %169 = sbr.rel (%p166_p2) target bundleno = 899 (0x383), region = 32  ;;  %348 = vst.msk [vmem:[#allocation2] sm:$0xff] (!%p166_p2), %vm347_vm0, %v2896_v0  ;;  %349 = vst.msk [vmem:[#allocation2 + $0x8] sm:$0xff] (!%p166_p2), %vm347_vm0, %v2896_v0  ;;  %v2996_v1 = vld [vmem:[%s4135_s1] ss:$0 sm:$0xff] (!%p166_p2)  ;;  %s2898_s27 = smov (!%p166_p2), 16  }
   0x7   : > { %353 = vst.msk [vmem:[#allocation2 + $0x198] sm:$0xff] (!%p166_p2), %vm347_vm0, %v2896_v0  ;;  %354 = vst.msk [vmem:[#allocation2 + $0x1a0] sm:$0xff] (!%p166_p2), %vm347_vm0, %v2896_v0  ;;  %v3008_v2 = vld [vmem:[%s4135_s1 + $0x1] ss:$0 sm:$0xff] (!%p166_p2)  ;;  %vm650_vm3 = vcmask (!%p166_p2), 130112   ;;  %s2899_s28 = smov (!%p166_p2), 24  }
   0x8   : > { %358 = vst.msk [vmem:[#allocation2 + $0x18] sm:$0x1] (!%p166_p2), %vm356_vm1, %v2896_v0  ;;  %359 = vst.msk [vmem:[#allocation2 + $0x30] sm:$0x1] (!%p166_p2), %vm356_vm1, %v2896_v0  ;;  %s2900_s29 = smov (!%p166_p2), 32   ;;  %s2901_s8 = smov (!%p166_p2), 40  }
   0x9   : > { %360 = vst.msk [vmem:[#allocation2 + $0x48] sm:$0x1] (!%p166_p2), %vm356_vm1, %v2896_v0  ;;  %361 = vst.msk [vmem:[#allocation2 + $0x60] sm:$0x1] (!%p166_p2), %vm356_vm1, %v2896_v0  ;;  %s2902_s13 = smov (!%p166_p2), 48   ;;  %vm843_vm4 = vcmask (!%p166_p2), 195712  }
   0xa   : > { %362 = vst.msk [vmem:[#allocation2 + $0x78] sm:$0x1] (!%p166_p2), %vm356_vm1, %v2896_v0  ;;  %363 = vst.msk [vmem:[#allocation2 + $0x90] sm:$0x1] (!%p166_p2), %vm356_vm1, %v2896_v0  ;;  %vm1036_vm5 = vcmask (!%p166_p2), 261312   ;;  %vm1229_vm6 = vcmask (!%p166_p2), 326912  }
   0xb   : > { %364 = vst.msk [vmem:[#allocation2 + $0xa8] sm:$0x1] (!%p166_p2), %vm356_vm1, %v2896_v0  ;;  %365 = vst.msk [vmem:[#allocation2 + $0xc0] sm:$0x1] (!%p166_p2), %vm356_vm1, %v2896_v0  ;;  %vm1422_vm7 = vcmask (!%p166_p2), 392512   ;;  %vm1616_vm8 = vcmask (!%p166_p2), 458112  }
   0xc   : > { %366 = vst.msk [vmem:[#allocation2 + $0xd8] sm:$0x1] (!%p166_p2), %vm356_vm1, %v2896_v0  ;;  %367 = vst.msk [vmem:[#allocation2 + $0xf0] sm:$0x1] (!%p166_p2), %vm356_vm1, %v2896_v0  ;;  %vm1809_vm9 = vcmask (!%p166_p2), 523712   ;;  %vm2002_vm10 = vcmask (!%p166_p2), 589312  }
   0xd   : > { %368 = vst.msk [vmem:[#allocation2 + $0x108] sm:$0x1] %vm356_vm1, %v2896_v0  ;;  %369 = vst.msk [vmem:[#allocation2 + $0x120] sm:$0x1] %vm356_vm1, %v2896_v0  ;;  %s4141_s16 = smov (!%p2940_p3, %s2688_s16), 1  ;;  %v490_v12 = vld [vmem:[#allocation2 + $0x1] sm:$0xff] }
   0xe   : > { %370 = vst.msk [vmem:[#allocation2 + $0x138] sm:$0x1] %vm356_vm1, %v2896_v0  ;;  %371 = vst.msk [vmem:[#allocation2 + $0x150] sm:$0x1] %vm356_vm1, %v2896_v0  ;;  %s2734_s18 = sshll.u32 %s4141_s16, 8  ;;  %554 = vrot.lane.b32.xlu0 %v490_v12, %s2897_s26  ;;  %vm2076_vm11 = vcmask 588800  }
   0xf   : > { %372 = vst.msk [vmem:[#allocation2 + $0x168] sm:$0x1] %vm356_vm1, %v2896_v0  ;;  %373 = vst.msk [vmem:[#allocation2 + $0x180] sm:$0x1] %vm356_vm1, %v2896_v0  ;;  %s3003_s23 = scalar_lea.vmem %s4134_s0, %s2734_s18 }
  0x10   : > { %376 = vst.msk [vmem:[#allocation2 + $0x29] sm:$0x1] %vm356_vm1, %v2896_v0  ;;  %377 = vst.msk [vmem:[#allocation2 + $0x41] sm:$0x1] %vm356_vm1, %v2896_v0  ;;  %v211_v3 = vld [vmem:[%s3003_s23] sm:$0xff]  ;;  %v213_v4 = vld [vmem:[%s3003_s23 + $0x10] sm:$0xff] }
  0x11   : > { %378 = vst.msk [vmem:[#allocation2 + $0x59] sm:$0x1] %vm356_vm1, %v2896_v0  ;;  %379 = vst.msk [vmem:[#allocation2 + $0x71] sm:$0x1] %vm356_vm1, %v2896_v0  ;;  %v212_v5 = vld [vmem:[%s3003_s23 + $0x8] sm:$0xff]  ;;  %v247_v6 = vmul.f32 %v2996_v1, %v211_v3  ;;  %v249_v7 = vmul.f32 %v2996_v1, %v213_v4  ;;  %v215_v9 = vld [vmem:[%s3003_s23 + $0x20] sm:$0xff] }
  0x12   : > { %380 = vst.msk [vmem:[#allocation2 + $0x89] sm:$0x1] %vm356_vm1, %v2896_v0  ;;  %381 = vst.msk [vmem:[#allocation2 + $0xa1] sm:$0x1] %vm356_vm1, %v2896_v0  ;;  %v248_v8 = vmul.f32 %v2996_v1, %v212_v5  ;;  %v214_v10 = vld [vmem:[%s3003_s23 + $0x18] sm:$0xff]  ;;  %v217_v11 = vld [vmem:[%s3003_s23 + $0x30] sm:$0xff]  ;;  %v251_v13 = vmul.f32 %v2996_v1, %v215_v9 }
  0x13   : > { %382 = vst.msk [vmem:[#allocation2 + $0xb9] sm:$0x1] %vm356_vm1, %v2896_v0  ;;  %383 = vst.msk [vmem:[#allocation2 + $0xd1] sm:$0x1] %vm356_vm1, %v2896_v0  ;;  %v250_v14 = vmul.f32 %v2996_v1, %v214_v10  ;;  %v253_v15 = vmul.f32 %v2996_v1, %v217_v11  ;;  %v216_v16 = vld [vmem:[%s3003_s23 + $0x28] sm:$0xff]  ;;  %v283_v18 = vadd.f32 %v3008_v2, %v247_v6  ;;  %v219_v22 = vld [vmem:[%s3003_s23 + $0x40] sm:$0xff] }
  0x14   : > { %384 = vst.msk [vmem:[#allocation2 + $0xe9] sm:$0x1] %vm356_vm1, %v2896_v0  ;;  %385 = vst.msk [vmem:[#allocation2 + $0x101] sm:$0x1] %vm356_vm1, %v2896_v0  ;;  %v285_v19 = vadd.f32 %v3008_v2, %v249_v7  ;;  %v284_v20 = vadd.f32 %v3008_v2, %v248_v8  ;;  %v252_v21 = vmul.f32 %v2996_v1, %v216_v16  ;;  %v218_v27 = vld [vmem:[%s3003_s23 + $0x38] sm:$0xff]  ;;  %v221_v28 = vld [vmem:[%s3003_s23 + $0x50] sm:$0xff] }
  0x15   : > { %386 = vst.msk [vmem:[#allocation2 + $0x119] sm:$0x1] %vm356_vm1, %v2896_v0  ;;  %387 = vst.msk [vmem:[#allocation2 + $0x131] sm:$0x1] %vm356_vm1, %v2896_v0  ;;  %v287_v23 = vadd.f32 %v3008_v2, %v251_v13  ;;  %v286_v24 = vadd.f32 %v3008_v2, %v250_v14  ;;  %v289_v25 = vadd.f32 %v3008_v2, %v253_v15  ;;  %v220_v29 = vld [vmem:[%s3003_s23 + $0x48] sm:$0xff]  ;;  %v315_v30 = vmax.f32 %v283_v18, 0.0 }
  0x16   : > { %388 = vst.msk [vmem:[#allocation2 + $0x149] sm:$0x1] %vm356_vm1, %v2896_v0  ;;  %389 = vst.msk [vmem:[#allocation2 + $0x161] sm:$0x1] %vm356_vm1, %v2896_v0  ;;  %v255_v26 = vmul.f32 %v2996_v1, %v219_v22  ;;  %v317_v31 = vmax.f32 %v285_v19, 0.0  ;;  %v316_v32 = vmax.f32 %v284_v20, 0.0  ;;  %v288_v33 = vadd.f32 %v3008_v2, %v252_v21 }
  0x17   : > { %390 = vst.msk [vmem:[#allocation2 + $0x179] sm:$0x1] %vm356_vm1, %v2896_v0  ;;  %391 = vst.msk [vmem:[#allocation2 + $0x191] sm:$0x1] %vm356_vm1, %v2896_v0  ;;  %v223_v34 = vld [vmem:[%s3003_s23 + $0x60] sm:$0xff]  ;;  %v222_v35 = vld [vmem:[%s3003_s23 + $0x58] sm:$0xff]  ;;  %v254_v43 = vmul.f32 %v2996_v1, %v218_v27  ;;  %v257_v44 = vmul.f32 %v2996_v1, %v221_v28  ;;  %v256_v45 = vmul.f32 %v2996_v1, %v220_v29 }
  0x18   : > { %351 = vst.msk [vmem:[#allocation2 + $0x10] sm:$0x3] %vm350_vm2, %v2896_v0  ;;  %355 = vst.msk [vmem:[#allocation2 + $0x1a8] sm:$0x3] %vm350_vm2, %v2896_v0  ;;  %v225_v36 = vld [vmem:[%s3003_s23 + $0x70] sm:$0xff]  ;;  %v319_v37 = vmax.f32 %v287_v23, 0.0  ;;  %v291_v40 = vadd.f32 %v3008_v2, %v255_v26  ;;  %v259_v48 = vmul.f32 %v2996_v1, %v223_v34  ;;  %v258_v49 = vmul.f32 %v2996_v1, %v222_v35 }
  0x19   : > { %357 = vst.msk [vmem:[#allocation2] sm:$0x1] %vm356_vm1, %v2896_v0  ;;  %374 = vst.msk [vmem:[#allocation2 + $0x198] sm:$0x1] %vm356_vm1, %v2896_v0  ;;  %v318_v38 = vmax.f32 %v286_v24, 0.0  ;;  %v321_v39 = vmax.f32 %v289_v25, 0.0  ;;  %v261_v50 = vmul.f32 %v2996_v1, %v225_v36  ;;  %v290_v51 = vadd.f32 %v3008_v2, %v254_v43 }
  0x1a   : > { %375 = vst.msk [vmem:[#allocation2 + $0x11] sm:$0x1] %vm356_vm1, %v2896_v0  ;;  %392 = vst.msk [vmem:[#allocation2 + $0x1a9] sm:$0x1] %vm356_vm1, %v2896_v0  ;;  %v224_v41 = vld [vmem:[%s3003_s23 + $0x68] sm:$0xff]  ;;  %v320_v42 = vmax.f32 %v288_v33, 0.0  ;;  %v293_v52 = vadd.f32 %v3008_v2, %v257_v44  ;;  %v292_v53 = vadd.f32 %v3008_v2, %v256_v45  ;;  %v295_v57 = vadd.f32 %v3008_v2, %v259_v48 }
  0x1b   : > { %394 = vst.msk [vmem:[#allocation2 + $0x19] sm:$0xff] %vm347_vm0, %v315_v30  ;;  %396 = vst.msk [vmem:[#allocation2 + $0x31] sm:$0xff] %vm347_vm0, %v317_v31  ;;  %v227_v46 = vld [vmem:[%s3003_s23 + $0x80] sm:$0xff]  ;;  %v323_v47 = vmax.f32 %v291_v40, 0.0  ;;  %v260_v54 = vmul.f32 %v2996_v1, %v224_v41  ;;  %v226_v55 = vld [vmem:[%s3003_s23 + $0x78] sm:$0xff]  ;;  %v294_v58 = vadd.f32 %v3008_v2, %v258_v49  ;;  %v297_v59 = vadd.f32 %v3008_v2, %v261_v50 }
  0x1c   : > { %395 = vst.msk [vmem:[#allocation2 + $0x21] sm:$0xff] %vm347_vm0, %v316_v32  ;;  %398 = vst.msk [vmem:[#allocation2 + $0x49] sm:$0xff] %vm347_vm0, %v319_v37  ;;  %v229_v56 = vld [vmem:[%s3003_s23 + $0x90] sm:$0xff]  ;;  %v263_v60 = vmul.f32 %v2996_v1, %v227_v46  ;;  %v228_v61 = vld [vmem:[%s3003_s23 + $0x88] sm:$0xff]  ;;  %v322_v0 = vmax.f32 %v290_v51, 0.0  ;;  %v325_v3 = vmax.f32 %v293_v52, 0.0  ;;  %v262_v14 = vmul.f32 %v2996_v1, %v226_v55 }
  0x1d   : > { %397 = vst.msk [vmem:[#allocation2 + $0x39] sm:$0xff] %vm347_vm0, %v318_v38  ;;  %400 = vst.msk [vmem:[#allocation2 + $0x61] sm:$0xff] %vm347_vm0, %v321_v39  ;;  %v231_v62 = vld [vmem:[%s3003_s23 + $0xa0] sm:$0xff]  ;;  %v230_v63 = vld [vmem:[%s3003_s23 + $0x98] sm:$0xff]  ;;  %v324_v4 = vmax.f32 %v292_v53, 0.0  ;;  %v296_v5 = vadd.f32 %v3008_v2, %v260_v54  ;;  %v327_v9 = vmax.f32 %v295_v57, 0.0  ;;  %v265_v15 = vmul.f32 %v2996_v1, %v229_v56 }
  0x1e   : > { %399 = vst.msk [vmem:[#allocation2 + $0x51] sm:$0xff] %vm347_vm0, %v320_v42  ;;  %402 = vst.msk [vmem:[#allocation2 + $0x79] sm:$0xff] %vm347_vm0, %v323_v47  ;;  %v233_v6 = vld [vmem:[%s3003_s23 + $0xb0] sm:$0xff]  ;;  %v427_v8 = vld [vmem:[#allocation2 + $0x8] sm:$0xff]  ;;  %v326_v10 = vmax.f32 %v294_v58, 0.0  ;;  %v329_v11 = vmax.f32 %v297_v59, 0.0  ;;  %v299_v12 = vadd.f32 %v3008_v2, %v263_v60  ;;  %v264_v16 = vmul.f32 %v2996_v1, %v228_v61 }
  0x1f   : > { %v491_v17 = vld [vmem:[#allocation2 + $0x9] sm:$0xff]  ;;  %459 = vst.msk [vmem:[#allocation3 + $0x8] sm:$0xff] %vm347_vm0, %v427_v8  ;;  %401 = vst.msk [vmem:[#allocation2 + $0x69] sm:$0xff] %vm347_vm0, %v322_v0  ;;  %v328_v13 = vmax.f32 %v296_v5, 0.0  ;;  %v267_v21 = vmul.f32 %v2996_v1, %v231_v62  ;;  %v266_v22 = vmul.f32 %v2996_v1, %v230_v63  ;;  %v269_v23 = vmul.f32 %v2996_v1, %v233_v6  ;;  %v235_v24 = vld [vmem:[%s3003_s23 + $0xc0] sm:$0xff] }
  0x20   : > { %556 = vrot.lane.b32.xlu0 %v491_v17, %s2897_s26  ;;  %v426_v7 = vld [vmem:[#allocation2] sm:$0xff]  ;;  %404 = vst.msk [vmem:[#allocation2 + $0x91] sm:$0xff] %vm347_vm0, %v325_v3  ;;  %403 = vst.msk [vmem:[#allocation2 + $0x81] sm:$0xff] %vm347_vm0, %v324_v4  ;;  %v232_v17 = vld [vmem:[%s3003_s23 + $0xa8] sm:$0xff]  ;;  %v331_v20 = vmax.f32 %v299_v12, 0.0  ;;  %v298_v25 = vadd.f32 %v3008_v2, %v262_v14  ;;  %v301_v26 = vadd.f32 %v3008_v2, %v265_v15 }
  0x21   : > { %458 = vst.msk [vmem:[#allocation3] sm:$0xff] %vm347_vm0, %v426_v7  ;;  %406 = vst.msk [vmem:[#allocation2 + $0xa9] sm:$0xff] %vm347_vm0, %v327_v9  ;;  %v300_v27 = vadd.f32 %v3008_v2, %v264_v16  ;;  %v234_v28 = vld [vmem:[%s3003_s23 + $0xb8] sm:$0xff]  ;;  %v303_v31 = vadd.f32 %v3008_v2, %v267_v21  ;;  %v302_v32 = vadd.f32 %v3008_v2, %v266_v22  ;;  %v237_v35 = vld [vmem:[%s3003_s23 + $0xd0] sm:$0xff] }
  0x22   : > { %v3083_v18 = vld [vmem:[#allocation2 + $0x19] sm:$0xff]  ;;  %v3085_v19 = vld [vmem:[#allocation2 + $0x31] sm:$0xff]  ;;  %405 = vst.msk [vmem:[#allocation2 + $0x99] sm:$0xff] %vm347_vm0, %v326_v10  ;;  %408 = vst.msk [vmem:[#allocation2 + $0xc1] sm:$0xff] %vm347_vm0, %v329_v11  ;;  %v305_v33 = vadd.f32 %v3008_v2, %v269_v23  ;;  %v268_v34 = vmul.f32 %v2996_v1, %v232_v17  ;;  %v330_v36 = vmax.f32 %v298_v25, 0.0  ;;  %v333_v37 = vmax.f32 %v301_v26, 0.0 }
  0x23   : > { %558 = vrot.lane.b32.xlu1 %v3083_v18, %s2897_s26  ;;  %407 = vst.msk [vmem:[#allocation2 + $0xb1] sm:$0xff] %vm347_vm0, %v328_v13  ;;  %v3103_v29 = vld [vmem:[#allocation2 + $0x21] sm:$0xff]  ;;  %v3105_v30 = vld [vmem:[#allocation2 + $0x49] sm:$0xff]  ;;  %410 = vst.msk [vmem:[#allocation2 + $0xd9] sm:$0xff] %vm347_vm0, %v331_v20  ;;  %v332_v38 = vmax.f32 %v300_v27, 0.0  ;;  %v271_v39 = vmul.f32 %v2996_v1, %v235_v24  ;;  %v335_v43 = vmax.f32 %v303_v31, 0.0  ;;  %v270_v50 = vmul.f32 %v2996_v1, %v234_v28 }
  0x24   : > { %562 = vrot.lane.b32.xlu0 %v3085_v19, %s2897_s26  ;;  %v236_v40 = vld [vmem:[%s3003_s23 + $0xc8] sm:$0xff]  ;;  %v239_v41 = vld [vmem:[%s3003_s23 + $0xe0] sm:$0xff]  ;;  %v238_v42 = vld [vmem:[%s3003_s23 + $0xd8] sm:$0xff]  ;;  %v334_v44 = vmax.f32 %v302_v32, 0.0  ;;  %v337_v45 = vmax.f32 %v305_v33, 0.0  ;;  %v304_v46 = vadd.f32 %v3008_v2, %v268_v34  ;;  %409 = vst.msk [vmem:[#allocation2 + $0xc9] sm:$0xff] %vm347_vm0, %v330_v36  ;;  %v273_v51 = vmul.f32 %v2996_v1, %v237_v35 }
  0x25   : > { %v240_v47 = vld [vmem:[%s3003_s23 + $0xe8] sm:$0xff]  ;;  %v3119_v48 = vld [vmem:[#allocation2 + $0x18] sm:$0xff]  ;;  %412 = vst.msk [vmem:[#allocation2 + $0xf1] sm:$0xff] %vm347_vm0, %v333_v37  ;;  %411 = vst.msk [vmem:[#allocation2 + $0xe1] sm:$0xff] %vm347_vm0, %v332_v38  ;;  %v307_v49 = vadd.f32 %v3008_v2, %v271_v39  ;;  %v272_v58 = vmul.f32 %v2996_v1, %v236_v40  ;;  %v275_v59 = vmul.f32 %v2996_v1, %v239_v41 }
  0x26   : > { %460 = vst.msk [vmem:[#allocation3 + $0x10] sm:$0xff] %vm347_vm0, %v3119_v48  ;;  %v3133_v52 = vld [vmem:[#allocation2 + $0x30] sm:$0xff]  ;;  %v3135_v53 = vld [vmem:[#allocation2 + $0x20] sm:$0xff]  ;;  %v3137_v54 = vld [vmem:[#allocation2 + $0x48] sm:$0xff]  ;;  %v336_v57 = vmax.f32 %v304_v46, 0.0  ;;  %v274_v60 = vmul.f32 %v2996_v1, %v238_v42  ;;  %v306_v62 = vadd.f32 %v3008_v2, %v270_v50  ;;  %v309_v63 = vadd.f32 %v3008_v2, %v273_v51 }
  0x27   : > { %560 = vrot.lane.b32.xlu1 %v3103_v29, %s2897_s26  ;;  %v3139_v55 = vld [vmem:[#allocation2 + $0x39] sm:$0xff]  ;;  %v3141_v56 = vld [vmem:[#allocation2 + $0x61] sm:$0xff]  ;;  %414 = vst.msk [vmem:[#allocation2 + $0x109] sm:$0xff] %vm347_vm0, %v335_v43  ;;  %413 = vst.msk [vmem:[#allocation2 + $0xf9] sm:$0xff] %vm347_vm0, %v334_v44  ;;  %v339_v61 = vmax.f32 %v307_v49, 0.0  ;;  %v276_v0 = vmul.f32 %v2996_v1, %v240_v47  ;;  %v308_v3 = vadd.f32 %v3008_v2, %v272_v58 }
  0x28   : > { %566 = vrot.lane.b32.xlu0 %v3105_v30, %s2897_s26  ;;  %416 = vst.msk [vmem:[#allocation2 + $0x121] sm:$0xff] %vm347_vm0, %v337_v45  ;;  %462 = vst.msk [vmem:[#allocation3 + $0x20] sm:$0xff] %vm347_vm0, %v3133_v52  ;;  %v311_v4 = vadd.f32 %v3008_v2, %v275_v59  ;;  %v310_v5 = vadd.f32 %v3008_v2, %v274_v60  ;;  %v338_v6 = vmax.f32 %v306_v62, 0.0  ;;  %v341_v7 = vmax.f32 %v309_v63, 0.0  ;;  %v3168_v8 = vld [vmem:[#allocation2 + $0x51] sm:$0xff]  ;;  %v3170_v9 = vld [vmem:[#allocation2 + $0x79] sm:$0xff] }
  0x29   : > { %461 = vst.msk [vmem:[#allocation3 + $0x18] sm:$0xff] %vm347_vm0, %v3135_v53  ;;  %464 = vst.msk [vmem:[#allocation3 + $0x30] sm:$0xff] %vm347_vm0, %v3137_v54  ;;  %v312_v1 = vadd.f32 %v3008_v2, %v276_v0  ;;  %v340_v10 = vmax.f32 %v308_v3, 0.0  ;;  %v3174_v14 = vld [vmem:[#allocation2 + $0x38] sm:$0xff]  ;;  %v3176_v15 = vld [vmem:[#allocation2 + $0x60] sm:$0xff] }
  0x2a   : > { %415 = vst.msk [vmem:[#allocation2 + $0x111] sm:$0xff] %vm347_vm0, %v336_v57  ;;  %418 = vst.msk [vmem:[#allocation2 + $0x139] sm:$0xff] %vm347_vm0, %v339_v61  ;;  %v343_v11 = vmax.f32 %v311_v4, 0.0  ;;  %v342_v12 = vmax.f32 %v310_v5, 0.0  ;;  %v3190_v2 = vld [vmem:[#allocation2 + $0x69] sm:$0xff]  ;;  %v502_v16 = vld [vmem:[#allocation2 + $0x91] sm:$0xff] }
  0x2b   : > { %564 = vrot.lane.b32.xlu1 %v3139_v55, %s2897_s26  ;;  %417 = vst.msk [vmem:[#allocation2 + $0x129] sm:$0xff] %vm347_vm0, %v338_v6  ;;  %420 = vst.msk [vmem:[#allocation2 + $0x151] sm:$0xff] %vm347_vm0, %v341_v7  ;;  %v344_v13 = vmax.f32 %v312_v1, 0.0  ;;  %v3195_v17 = vld [vmem:[#allocation2 + $0x50] sm:$0xff]  ;;  %v3197_v20 = vld [vmem:[#allocation2 + $0x78] sm:$0xff] }
  0x2c   : > { %570 = vrot.lane.b32.xlu0 %v3141_v56, %s2897_s26  ;;  %419 = vst.msk [vmem:[#allocation2 + $0x141] sm:$0xff] %vm347_vm0, %v340_v10  ;;  %422 = vst.msk [vmem:[#allocation2 + $0x169] sm:$0xff] %vm347_vm0, %v343_v11  ;;  %v3199_v21 = vld [vmem:[#allocation2 + $0x81] sm:$0xff]  ;;  %v504_v22 = vld [vmem:[#allocation2 + $0xa9] sm:$0xff] }
  0x2d   : > { %421 = vst.msk [vmem:[#allocation2 + $0x159] sm:$0xff] %vm347_vm0, %v342_v12  ;;  %463 = vst.msk [vmem:[#allocation3 + $0x28] sm:$0xff] %vm347_vm0, %v3174_v14  ;;  %v3208_v23 = vld [vmem:[#allocation2 + $0x99] sm:$0xff]  ;;  %v506_v24 = vld [vmem:[#allocation2 + $0xc1] sm:$0xff] }
  0x2e   : > { %466 = vst.msk [vmem:[#allocation3 + $0x40] sm:$0xff] %vm347_vm0, %v3176_v15  ;;  %423 = vst.msk [vmem:[#allocation2 + $0x171] sm:$0xff] %vm347_vm0, %v344_v13  ;;  %v3210_v25 = vld [vmem:[#allocation2 + $0x68] sm:$0xff]  ;;  %v3214_v26 = vld [vmem:[#allocation2 + $0x90] sm:$0xff] }
  0x2f   : > { %568 = vrot.lane.b32.xlu1 %v3168_v8, %s2897_s26  ;;  %465 = vst.msk [vmem:[#allocation3 + $0x38] sm:$0xff] %vm347_vm0, %v3195_v17  ;;  %468 = vst.msk [vmem:[#allocation3 + $0x50] sm:$0xff] %vm347_vm0, %v3197_v20  ;;  %v3216_v27 = vld [vmem:[#allocation2 + $0x80] sm:$0xff]  ;;  %v3218_v28 = vld [vmem:[#allocation2 + $0xa8] sm:$0xff] }
  0x30   : > { %574 = vrot.lane.b32.xlu0 %v3170_v9, %s2897_s26  ;;  %467 = vst.msk [vmem:[#allocation3 + $0x48] sm:$0xff] %vm347_vm0, %v3210_v25  ;;  %v505_v31 = vld [vmem:[#allocation2 + $0xb1] sm:$0xff]  ;;  %v508_v32 = vld [vmem:[#allocation2 + $0xd9] sm:$0xff]  ;;  %470 = vst.msk [vmem:[#allocation3 + $0x60] sm:$0xff] %vm347_vm0, %v3214_v26 }
  0x31   : > { %469 = vst.msk [vmem:[#allocation3 + $0x58] sm:$0xff] %vm347_vm0, %v3216_v27  ;;  %472 = vst.msk [vmem:[#allocation3 + $0x70] sm:$0xff] %vm347_vm0, %v3218_v28  ;;  %v3226_v33 = vld [vmem:[#allocation2 + $0x98] sm:$0xff]  ;;  %v3228_v34 = vld [vmem:[#allocation2 + $0xc0] sm:$0xff] }
  0x32   : > { %v3230_v35 = vld [vmem:[#allocation2 + $0xb0] sm:$0xff]  ;;  %471 = vst.msk [vmem:[#allocation3 + $0x68] sm:$0xff] %vm347_vm0, %v3226_v33  ;;  %474 = vst.msk [vmem:[#allocation3 + $0x80] sm:$0xff] %vm347_vm0, %v3228_v34  ;;  %v3241_v36 = vld [vmem:[#allocation2 + $0xd8] sm:$0xff] }
  0x33   : > { %572 = vrot.lane.b32.xlu1 %v3190_v2, %s2897_s26  ;;  %473 = vst.msk [vmem:[#allocation3 + $0x78] sm:$0xff] %vm347_vm0, %v3230_v35  ;;  %v3243_v37 = vld [vmem:[#allocation2 + $0xc8] sm:$0xff]  ;;  %v3245_v38 = vld [vmem:[#allocation2 + $0xf0] sm:$0xff]  ;;  %476 = vst.msk [vmem:[#allocation3 + $0x90] sm:$0xff] %vm347_vm0, %v3241_v36 }
  0x34   : > { %578 = vrot.lane.b32.xlu0 %v502_v16, %s2897_s26  ;;  %475 = vst.msk [vmem:[#allocation3 + $0x88] sm:$0xff] %vm347_vm0, %v3243_v37  ;;  %478 = vst.msk [vmem:[#allocation3 + $0xa0] sm:$0xff] %vm347_vm0, %v3245_v38  ;;  %v3253_v39 = vld [vmem:[#allocation2 + $0xe0] sm:$0xff]  ;;  %v3255_v40 = vld [vmem:[#allocation2 + $0x108] sm:$0xff] }
  0x35   : > { %v3257_v41 = vld [vmem:[#allocation2 + $0xf8] sm:$0xff]  ;;  %477 = vst.msk [vmem:[#allocation3 + $0x98] sm:$0xff] %vm347_vm0, %v3253_v39  ;;  %480 = vst.msk [vmem:[#allocation3 + $0xb0] sm:$0xff] %vm347_vm0, %v3255_v40  ;;  %v3265_v42 = vld [vmem:[#allocation2 + $0x120] sm:$0xff] }
  0x36   : > { %479 = vst.msk [vmem:[#allocation3 + $0xa8] sm:$0xff] %vm347_vm0, %v3257_v41  ;;  %482 = vst.msk [vmem:[#allocation3 + $0xc0] sm:$0xff] %vm347_vm0, %v3265_v42  ;;  %v3271_v43 = vld [vmem:[#allocation2 + $0x110] sm:$0xff]  ;;  %v452_v46 = vld [vmem:[#allocation2 + $0x138] sm:$0xff] }
  0x37   : > { %576 = vrot.lane.b32.xlu1 %v3199_v21, %s2897_s26  ;;  %v507_v44 = vld [vmem:[#allocation2 + $0xc9] sm:$0xff]  ;;  %v510_v45 = vld [vmem:[#allocation2 + $0xf1] sm:$0xff]  ;;  %481 = vst.msk [vmem:[#allocation3 + $0xb8] sm:$0xff] %vm347_vm0, %v3271_v43  ;;  %484 = vst.msk [vmem:[#allocation3 + $0xd0] sm:$0xff] %vm347_vm0, %v452_v46 }
  0x38   : > { %582 = vrot.lane.b32.xlu0 %v504_v22, %s2897_s26  ;;  %v3278_v47 = vld [vmem:[#allocation2 + $0x128] sm:$0xff]  ;;  %v454_v51 = vld [vmem:[#allocation2 + $0x150] sm:$0xff]  ;;  %v453_v57 = vld [vmem:[#allocation2 + $0x140] sm:$0xff] }
  0x39   : > { %v509_v49 = vld [vmem:[#allocation2 + $0xe1] sm:$0xff]  ;;  %v512_v50 = vld [vmem:[#allocation2 + $0x109] sm:$0xff]  ;;  %483 = vst.msk [vmem:[#allocation3 + $0xc8] sm:$0xff] %vm347_vm0, %v3278_v47  ;;  %486 = vst.msk [vmem:[#allocation3 + $0xe0] sm:$0xff] %vm347_vm0, %v454_v51 }
  0x3a   : > { %v511_v58 = vld [vmem:[#allocation2 + $0xf9] sm:$0xff]  ;;  %v514_v59 = vld [vmem:[#allocation2 + $0x121] sm:$0xff]  ;;  %485 = vst.msk [vmem:[#allocation3 + $0xd8] sm:$0xff] %vm347_vm0, %v453_v57  ;;  %v513_v62 = vld [vmem:[#allocation2 + $0x111] sm:$0xff] }
  0x3b   : > { %580 = vrot.lane.b32.xlu1 %v3208_v23, %s2897_s26  ;;  %v456_v60 = vld [vmem:[#allocation2 + $0x168] sm:$0xff]  ;;  %v455_v61 = vld [vmem:[#allocation2 + $0x158] sm:$0xff]  ;;  %v457_v0 = vld [vmem:[#allocation2 + $0x170] sm:$0xff] }
  0x3c   : > { %586 = vrot.lane.b32.xlu0 %v506_v24, %s2897_s26  ;;  %488 = vst.msk [vmem:[#allocation3 + $0xf0] sm:$0xff] %vm347_vm0, %v456_v60  ;;  %v516_v63 = vld [vmem:[#allocation2 + $0x139] sm:$0xff]  ;;  %487 = vst.msk [vmem:[#allocation3 + $0xe8] sm:$0xff] %vm347_vm0, %v455_v61  ;;  %v515_v3 = vld [vmem:[#allocation2 + $0x129] sm:$0xff] }
  0x3d   : > { %v518_v4 = vld [vmem:[#allocation2 + $0x151] sm:$0xff]  ;;  %489 = vst.msk [vmem:[#allocation3 + $0xf8] sm:$0xff] %vm347_vm0, %v457_v0  ;;  %v517_v5 = vld [vmem:[#allocation2 + $0x141] sm:$0xff]  ;;  %v520_v6 = vld [vmem:[#allocation2 + $0x169] sm:$0xff] }
  0x3e   : > { %v519_v7 = vld [vmem:[#allocation2 + $0x159] sm:$0xff]  ;;  %v683_v1 = vld [vmem:[#allocation2 + $0x2] sm:$0xff]  ;;  %v521_v10 = vld [vmem:[#allocation2 + $0x171] sm:$0xff] }
  0x3f   : > { %584 = vrot.lane.b32.xlu1 %v505_v31, %s2897_s26  ;;  %v3299_v11 = vld [vmem:[#allocation2 + $0x1a] sm:$0xff]  ;;  %v684_v12 = vld [vmem:[#allocation2 + $0xa] sm:$0xff]  ;;  %v3304_v13 = vld [vmem:[#allocation2 + $0x32] sm:$0xff] }
  0x40   : > { %590 = vrot.lane.b32.xlu0 %v508_v32, %s2897_s26  ;;  %v3309_v16 = vld [vmem:[#allocation2 + $0x22] sm:$0xff]  ;;  %v3311_v22 = vld [vmem:[#allocation2 + $0x4a] sm:$0xff]  ;;  %v3317_v24 = vld [vmem:[#allocation2 + $0x3a] sm:$0xff] }
  0x41   : > { %v3319_v31 = vld [vmem:[#allocation2 + $0x62] sm:$0xff]  ;;  %v3325_v32 = vld [vmem:[#allocation2 + $0x52] sm:$0xff]  ;;  %v3349_v51 = vld [vmem:[#allocation2 + $0x9a] sm:$0xff] }
  0x42   : > { %v3335_v46 = vld [vmem:[#allocation2 + $0x92] sm:$0xff]  ;;  %v3351_v57 = vld [vmem:[#allocation2 + $0xc2] sm:$0xff]  ;;  %v3362_v60 = vld [vmem:[#allocation2 + $0xca] sm:$0xff] }
  0x43   : > { %588 = vrot.lane.b32.xlu1 %v507_v44, %s2897_s26  ;;  %v3327_v44 = vld [vmem:[#allocation2 + $0x7a] sm:$0xff]  ;;  %v703_v61 = vld [vmem:[#allocation2 + $0xf2] sm:$0xff] }
  0x44   : > { %594 = vrot.lane.b32.xlu0 %v510_v45, %s2897_s26  ;;  %v3333_v45 = vld [vmem:[#allocation2 + $0x6a] sm:$0xff]  ;;  %v704_v0 = vld [vmem:[#allocation2 + $0xfa] sm:$0xff] }
  0x47   : > { %592 = vrot.lane.b32.xlu1 %v509_v49, %s2897_s26  ;;  %v3341_v49 = vld [vmem:[#allocation2 + $0x82] sm:$0xff] }
  0x48   : > { %598 = vrot.lane.b32.xlu0 %v512_v50, %s2897_s26  ;;  %v3343_v50 = vld [vmem:[#allocation2 + $0xaa] sm:$0xff] }
  0x4b   : > { %596 = vrot.lane.b32.xlu1 %v511_v58, %s2897_s26  ;;  %v3357_v58 = vld [vmem:[#allocation2 + $0xb2] sm:$0xff] }
  0x4c   : > { %602 = vrot.lane.b32.xlu0 %v514_v59, %s2897_s26  ;;  %v701_v59 = vld [vmem:[#allocation2 + $0xda] sm:$0xff] }
  0x4f   : > { %600 = vrot.lane.b32.xlu1 %v513_v62, %s2897_s26  ;;  %v702_v62 = vld [vmem:[#allocation2 + $0xe2] sm:$0xff] }
  0x50   : > { %606 = vrot.lane.b32.xlu0 %v516_v63, %s2897_s26  ;;  %v705_v63 = vld [vmem:[#allocation2 + $0x10a] sm:$0xff] }
  0x53   : > { %604 = vrot.lane.b32.xlu1 %v515_v3, %s2897_s26  ;;  %v707_v3 = vld [vmem:[#allocation2 + $0x122] sm:$0xff] }
  0x54   : > { %610 = vrot.lane.b32.xlu0 %v518_v4, %s2897_s26 }
  0x57   : > { %608 = vrot.lane.b32.xlu1 %v517_v5, %s2897_s26  ;;  %v706_v5 = vld [vmem:[#allocation2 + $0x112] sm:$0xff] }
  0x58   : > { %614 = vrot.lane.b32.xlu0 %v520_v6, %s2897_s26  ;;  %v709_v6 = vld [vmem:[#allocation2 + $0x13a] sm:$0xff] }
  0x5b   : > { %612 = vrot.lane.b32.xlu1 %v519_v7, %s2897_s26 }
  0x5c   : > { %747 = vrot.lane.b32.xlu0 %v683_v1, %s2898_s27  ;;  %v708_v1 = vld [vmem:[#allocation2 + $0x12a] sm:$0xff] }
  0x5f   : > { %616 = vrot.lane.b32.xlu1 %v521_v10, %s2897_s26  ;;  %v711_v10 = vld [vmem:[#allocation2 + $0x152] sm:$0xff]  ;;  %s2903_s26 = smov 56  }
  0x60   : > { %751 = vrot.lane.b32.xlu0 %v3299_v11, %s2898_s27 }
  0x63   : > { %749 = vrot.lane.b32.xlu1 %v684_v12, %s2898_s27  ;;  %v710_v12 = vld [vmem:[#allocation2 + $0x142] sm:$0xff] }
  0x64   : > { %755 = vrot.lane.b32.xlu0 %v3304_v13, %s2898_s27 }
  0x67   : > { %753 = vrot.lane.b32.xlu1 %v3309_v16, %s2898_s27 }
  0x68   : > { %759 = vrot.lane.b32.xlu0 %v3311_v22, %s2898_s27 }
  0x6b   : > { %757 = vrot.lane.b32.xlu1 %v3317_v24, %s2898_s27 }
  0x6c   : > { %763 = vrot.lane.b32.xlu0 %v3319_v31, %s2898_s27 }
  0x6f   : > { %761 = vrot.lane.b32.xlu1 %v3325_v32, %s2898_s27 }
  0x70   : > { %767 = vrot.lane.b32.xlu0 %v3327_v44, %s2898_s27 }
  0x73   : > { %765 = vrot.lane.b32.xlu1 %v3333_v45, %s2898_s27 }
  0x74   : > { %771 = vrot.lane.b32.xlu0 %v3335_v46, %s2898_s27 }
  0x77   : > { %769 = vrot.lane.b32.xlu1 %v3341_v49, %s2898_s27 }
  0x78   : > { %775 = vrot.lane.b32.xlu0 %v3343_v50, %s2898_s27 }
  0x7b   : > { %773 = vrot.lane.b32.xlu1 %v3349_v51, %s2898_s27 }
  0x7c   : > { %779 = vrot.lane.b32.xlu0 %v3351_v57, %s2898_s27 }
  0x7f   : > { %777 = vrot.lane.b32.xlu1 %v3357_v58, %s2898_s27 }
  0x80   : > { %783 = vrot.lane.b32.xlu0 %v701_v59, %s2898_s27  ;;  %v555_v4 = vpop.permute.xlu0 %554  ;;  %v713_v59 = vld [vmem:[#allocation2 + $0x16a] sm:$0xff] }
  0x81   : > { %651 = vst.msk [vmem:[#allocation3] sm:$0xff] %vm650_vm3, %v555_v4  ;;  %v714_v4 = vld [vmem:[#allocation2 + $0x172] sm:$0xff] }
  0x83   : > { %781 = vrot.lane.b32.xlu1 %v3362_v60, %s2898_s27 }
  0x84   : > { %787 = vrot.lane.b32.xlu0 %v703_v61, %s2898_s27 }
  0x87   : > { %785 = vrot.lane.b32.xlu1 %v702_v62, %s2898_s27 }
  0x88   : > { %791 = vrot.lane.b32.xlu0 %v705_v63, %s2898_s27  ;;  %v712_v63 = vld [vmem:[#allocation2 + $0x15a] sm:$0xff] }
  0x8b   : > { %789 = vrot.lane.b32.xlu1 %v704_v0, %s2898_s27 }
  0x8c   : > { %795 = vrot.lane.b32.xlu0 %v707_v3, %s2898_s27 }
  0x8f   : > { %793 = vrot.lane.b32.xlu1 %v706_v5, %s2898_s27 }
  0x90   : > { %799 = vrot.lane.b32.xlu0 %v709_v6, %s2898_s27 }
  0x92   : > { %v557_v7 = vpop.permute.xlu0 %556 }
  0x93   : > { %652 = vst.msk [vmem:[#allocation3 + $0x8] sm:$0xff] %vm650_vm3, %v557_v7  ;;  %797 = vrot.lane.b32.xlu1 %v708_v1, %s2898_s27 }
  0x94   : > { %803 = vrot.lane.b32.xlu0 %v711_v10, %s2898_s27 }
  0x95   : > { %v559_v61 = vpop.permute.xlu1 %558 }
  0x96   : > { %v563_v62 = vpop.permute.xlu0 %562  ;;  %653 = vst.msk [vmem:[#allocation3 + $0x10] sm:$0xff] %vm650_vm3, %v559_v61 }
  0x97   : > { %655 = vst.msk [vmem:[#allocation3 + $0x20] sm:$0xff] %vm650_vm3, %v563_v62  ;;  %801 = vrot.lane.b32.xlu1 %v710_v12, %s2898_s27 }
  0x98   : > { %807 = vrot.lane.b32.xlu0 %v713_v59, %s2898_s27 }
  0x99   : > { %v561_v0 = vpop.permute.xlu1 %560 }
  0x9a   : > { %v567_v3 = vpop.permute.xlu0 %566  ;;  %654 = vst.msk [vmem:[#allocation3 + $0x18] sm:$0xff] %vm650_vm3, %v561_v0 }
  0x9b   : > { %657 = vst.msk [vmem:[#allocation3 + $0x30] sm:$0xff] %vm650_vm3, %v567_v3  ;;  %805 = vrot.lane.b32.xlu1 %v712_v63, %s2898_s27 }
  0x9c   : > { %940 = vrot.lane.b32.xlu0 %v3119_v48, %s2899_s28 }
  0x9d   : > { %v565_v5 = vpop.permute.xlu1 %564 }
  0x9e   : > { %v571_v6 = vpop.permute.xlu0 %570  ;;  %656 = vst.msk [vmem:[#allocation3 + $0x28] sm:$0xff] %vm650_vm3, %v565_v5  ;;  %v2068_v5 = vld [vmem:[%s4136_s2 + $0x8] sm:$0xff] }
  0x9f   : > { %659 = vst.msk [vmem:[#allocation3 + $0x40] sm:$0xff] %vm650_vm3, %v571_v6  ;;  %809 = vrot.lane.b32.xlu1 %v714_v4, %s2898_s27  ;;  %v2067_v4 = vld [vmem:[%s4136_s2] sm:$0xff]  ;;  %s2904_s27 = smov 64  }
  0xa0   : > { %944 = vrot.lane.b32.xlu0 %v3133_v52, %s2899_s28  ;;  %v2843_v6 = vpack.c.bf16 %v2068_v5, %v2067_v4 }
  0xa1   : > { %v569_v7 = vpop.permute.xlu1 %568 }
  0xa2   : > { %v575_v1 = vpop.permute.xlu0 %574  ;;  %658 = vst.msk [vmem:[#allocation3 + $0x38] sm:$0xff] %vm650_vm3, %v569_v7  ;;  %2844 = vmatprep.subr.bf16.mxu0 %v2843_v6  ;;  %2859 = vmatprep.subr.bf16.mxu1 %v2843_v6 }
  0xa3   : > { %661 = vst.msk [vmem:[#allocation3 + $0x50] sm:$0xff] %vm650_vm3, %v575_v1  ;;  %942 = vrot.lane.b32.xlu1 %v3135_v53, %s2899_s28  ;;  %2846 = vmatpush3.bf16.msra.mxu0 %v2843_v6  ;;  %v2069_v1 = vld [vmem:[%s4136_s2 + $0x10] sm:$0xff] }
  0xa4   : > { %948 = vrot.lane.b32.xlu0 %v3137_v54, %s2899_s28  ;;  %2864 = vmatpush3.bf16.msra.mxu1 %v2843_v6 }
  0xa5   : > { %v573_v48 = vpop.permute.xlu1 %572 }
  0xa6   : > { %v579_v10 = vpop.permute.xlu0 %578  ;;  %660 = vst.msk [vmem:[#allocation3 + $0x48] sm:$0xff] %vm650_vm3, %v573_v48  ;;  %v2070_v48 = vld [vmem:[%s4136_s2 + $0x18] sm:$0xff] }
  0xa7   : > { %663 = vst.msk [vmem:[#allocation3 + $0x60] sm:$0xff] %vm650_vm3, %v579_v10  ;;  %946 = vrot.lane.b32.xlu1 %v3174_v14, %s2899_s28 }
  0xa8   : > { %952 = vrot.lane.b32.xlu0 %v3176_v15, %s2899_s28 }
  0xa9   : > { %v577_v12 = vpop.permute.xlu1 %576 }
  0xaa   : > { %v583_v59 = vpop.permute.xlu0 %582  ;;  %662 = vst.msk [vmem:[#allocation3 + $0x58] sm:$0xff] %vm650_vm3, %v577_v12  ;;  %v2071_v12 = vld [vmem:[%s4136_s2 + $0x20] sm:$0xff] }
  0xab   : > { %665 = vst.msk [vmem:[#allocation3 + $0x70] sm:$0xff] %vm650_vm3, %v583_v59  ;;  %950 = vrot.lane.b32.xlu1 %v3195_v17, %s2899_s28  ;;  %v2072_v59 = vld [vmem:[%s4136_s2 + $0x28] sm:$0xff] }
  0xac   : > { %956 = vrot.lane.b32.xlu0 %v3197_v20, %s2899_s28 }
  0xad   : > { %v581_v53 = vpop.permute.xlu1 %580 }
  0xae   : > { %v587_v61 = vpop.permute.xlu0 %586  ;;  %664 = vst.msk [vmem:[#allocation3 + $0x68] sm:$0xff] %vm650_vm3, %v581_v53 }
  0xaf   : > { %667 = vst.msk [vmem:[#allocation3 + $0x80] sm:$0xff] %vm650_vm3, %v587_v61  ;;  %954 = vrot.lane.b32.xlu1 %v3210_v25, %s2899_s28  ;;  %v2073_v61 = vld [vmem:[%s4136_s2 + $0x30] sm:$0xff] }
  0xb0   : > { %960 = vrot.lane.b32.xlu0 %v3214_v26, %s2899_s28 }
  0xb1   : > { %v585_v62 = vpop.permute.xlu1 %584 }
  0xb2   : > { %v591_v63 = vpop.permute.xlu0 %590  ;;  %666 = vst.msk [vmem:[#allocation3 + $0x78] sm:$0xff] %vm650_vm3, %v585_v62  ;;  %v2074_v62 = vld [vmem:[%s4136_s2 + $0x38] sm:$0xff] }
  0xb3   : > { %669 = vst.msk [vmem:[#allocation3 + $0x90] sm:$0xff] %vm650_vm3, %v591_v63  ;;  %958 = vrot.lane.b32.xlu1 %v3216_v27, %s2899_s28 }
  0xb4   : > { %1135 = vrot.lane.b32.xlu0 %v3103_v29, %s2900_s29 }
  0xb5   : > { %v589_v0 = vpop.permute.xlu1 %588 }
  0xb6   : > { %v595_v3 = vpop.permute.xlu0 %594  ;;  %668 = vst.msk [vmem:[#allocation3 + $0x88] sm:$0xff] %vm650_vm3, %v589_v0 }
  0xb7   : > { %671 = vst.msk [vmem:[#allocation3 + $0xa0] sm:$0xff] %vm650_vm3, %v595_v3  ;;  %1133 = vrot.lane.b32.xlu1 %v3083_v18, %s2900_s29  ;;  %v2847_v18 = vpack.c.bf16 %v2070_v48, %v2069_v1 }
  0xb8   : > { %1328 = vrot.lane.b32.xlu0 %v3309_v16, %s2901_s8 }
  0xb9   : > { %v593_v29 = vpop.permute.xlu1 %592  ;;  %2848 = vmatprep.subr.bf16.mxu0 %v2847_v18  ;;  %2860 = vmatprep.subr.bf16.mxu1 %v2847_v18 }
  0xba   : > { %v599_v7 = vpop.permute.xlu0 %598  ;;  %670 = vst.msk [vmem:[#allocation3 + $0x98] sm:$0xff] %vm650_vm3, %v593_v29  ;;  %2850 = vmatpush3.bf16.msra.mxu0 %v2847_v18  ;;  %2865 = vmatpush3.bf16.msra.mxu1 %v2847_v18 }
  0xbb   : > { %673 = vst.msk [vmem:[#allocation3 + $0xb0] sm:$0xff] %vm650_vm3, %v599_v7  ;;  %1326 = vrot.lane.b32.xlu1 %v3299_v11, %s2901_s8  ;;  %v2851_v11 = vpack.c.bf16 %v2072_v59, %v2071_v12 }
  0xbc   : > { %1522 = vrot.lane.b32.xlu0 %v3174_v14, %s2902_s13 }
  0xbd   : > { %v597_v16 = vpop.permute.xlu1 %596  ;;  %2852 = vmatprep.subr.bf16.mxu0 %v2851_v11  ;;  %2861 = vmatprep.subr.bf16.mxu1 %v2851_v11 }
  0xbe   : > { %v603_v10 = vpop.permute.xlu0 %602  ;;  %672 = vst.msk [vmem:[#allocation3 + $0xa8] sm:$0xff] %vm650_vm3, %v597_v16  ;;  %2854 = vmatpush3.bf16.msra.mxu0 %v2851_v11  ;;  %2866 = vmatpush3.bf16.msra.mxu1 %v2851_v11 }
  0xbf   : > { %675 = vst.msk [vmem:[#allocation3 + $0xc0] sm:$0xff] %vm650_vm3, %v603_v10  ;;  %1520 = vrot.lane.b32.xlu1 %v3133_v52, %s2902_s13  ;;  %v2855_v52 = vpack.c.bf16 %v2074_v62, %v2073_v61 }
  0xc0   : > { %1137 = vrot.lane.b32.xlu0 %v3085_v19, %s2900_s29 }
  0xc1   : > { %v601_v14 = vpop.permute.xlu1 %600  ;;  %2856 = vmatprep.subr.bf16.mxu0 %v2855_v52  ;;  %2862 = vmatprep.subr.bf16.mxu1 %v2855_v52 }
  0xc2   : > { %v607_v53 = vpop.permute.xlu0 %606  ;;  %674 = vst.msk [vmem:[#allocation3 + $0xb8] sm:$0xff] %vm650_vm3, %v601_v14  ;;  %2858 = vmatpush3.bf16.msra.mxu0 %v2855_v52  ;;  %2867 = vmatpush3.bf16.msra.mxu1 %v2855_v52 }
  0xc3   : > { %677 = vst.msk [vmem:[#allocation3 + $0xd0] sm:$0xff] %vm650_vm3, %v607_v53  ;;  %1713 = vrot.lane.b32.xlu1 %v3085_v19, %s2903_s26  ;;  %v2075_v19 = vld [vmem:[%s4136_s2 + $0x40] sm:$0xff] }
  0xc4   : > { %1906 = vrot.lane.b32.xlu0 %v3304_v13, %s2904_s27  ;;  %2793 = vmatprep.subr.mxu0 %v2075_v19 }
  0xc5   : > { %v605_v63 = vpop.permute.xlu1 %604  ;;  %2863 = vmatprep.subr.mxu1 %v2075_v19 }
  0xc6   : > { %v611_v0 = vpop.permute.xlu0 %610  ;;  %676 = vst.msk [vmem:[#allocation3 + $0xc8] sm:$0xff] %vm650_vm3, %v605_v63  ;;  %2794 = vmatpush3.msra.mxu0 %v2075_v19  ;;  %2868 = vmatpush3.msra.mxu1 %v2075_v19 }
  0xc7   : > { %679 = vst.msk [vmem:[#allocation3 + $0xe0] sm:$0xff] %vm650_vm3, %v611_v0  ;;  %1715 = vrot.lane.b32.xlu1 %v3139_v55, %s2903_s26 }
  0xc8   : > { %1330 = vrot.lane.b32.xlu0 %v3304_v13, %s2901_s8 }
  0xc9   : > { %v609_v3 = vpop.permute.xlu1 %608 }
  0xca   : > { %v615_v4 = vpop.permute.xlu0 %614  ;;  %678 = vst.msk [vmem:[#allocation3 + $0xd8] sm:$0xff] %vm650_vm3, %v609_v3 }
  0xcb   : > { %681 = vst.msk [vmem:[#allocation3 + $0xf0] sm:$0xff] %vm650_vm3, %v615_v4  ;;  %1139 = vrot.lane.b32.xlu1 %v3139_v55, %s2900_s29 }
  0xcc   : > { %1332 = vrot.lane.b32.xlu0 %v3317_v24, %s2901_s8 }
  0xcd   : > { %v613_v13 = vpop.permute.xlu1 %612 }
  0xce   : > { %v748_v5 = vpop.permute.xlu0 %747  ;;  %680 = vst.msk [vmem:[#allocation3 + $0xe8] sm:$0xff] %vm650_vm3, %v613_v13 }
  0xcf   : > { %844 = vst.msk [vmem:[#allocation3] sm:$0xff] %vm843_vm4, %v748_v5  ;;  %1908 = vrot.lane.b32.xlu1 %v3317_v24, %s2904_s27 }
  0xd0   : > { %1526 = vrot.lane.b32.xlu0 %v3195_v17, %s2902_s13 }
  0xd1   : > { %v617_v6 = vpop.permute.xlu1 %616 }
  0xd2   : > { %v752_v29 = vpop.permute.xlu0 %751  ;;  %682 = vst.msk [vmem:[#allocation3 + $0xf8] sm:$0xff] %vm650_vm3, %v617_v6  ;;  %v1660_v6 = vld [vmem:[#allocation2 + $0xb1] sm:$0xff] }
  0xd3   : > { %846 = vst.msk [vmem:[#allocation3 + $0x10] sm:$0xff] %vm843_vm4, %v752_v29  ;;  %1524 = vrot.lane.b32.xlu1 %v3137_v54, %s2902_s13 }
  0xd4   : > { %1141 = vrot.lane.b32.xlu0 %v3105_v30, %s2900_s29 }
  0xd5   : > { %v750_v55 = vpop.permute.xlu1 %749 }
  0xd6   : > { %v756_v7 = vpop.permute.xlu0 %755  ;;  %845 = vst.msk [vmem:[#allocation3 + $0x8] sm:$0xff] %vm843_vm4, %v750_v55 }
  0xd7   : > { %848 = vst.msk [vmem:[#allocation3 + $0x20] sm:$0xff] %vm843_vm4, %v756_v7  ;;  %1717 = vrot.lane.b32.xlu1 %v3105_v30, %s2903_s26 }
  0xd8   : > { %1910 = vrot.lane.b32.xlu0 %v3311_v22, %s2904_s27 }
  0xd9   : > { %v754_v17 = vpop.permute.xlu1 %753 }
  0xda   : > { %v760_v24 = vpop.permute.xlu0 %759  ;;  %847 = vst.msk [vmem:[#allocation3 + $0x18] sm:$0xff] %vm843_vm4, %v754_v17 }
  0xdb   : > { %850 = vst.msk [vmem:[#allocation3 + $0x30] sm:$0xff] %vm843_vm4, %v760_v24  ;;  %1719 = vrot.lane.b32.xlu1 %v3168_v8, %s2903_s26 }
  0xdc   : > { %1334 = vrot.lane.b32.xlu0 %v3311_v22, %s2901_s8 }
  0xdd   : > { %v758_v54 = vpop.permute.xlu1 %757 }
  0xde   : > { %v764_v1 = vpop.permute.xlu0 %763  ;;  %849 = vst.msk [vmem:[#allocation3 + $0x28] sm:$0xff] %vm843_vm4, %v758_v54 }
  0xdf   : > { %852 = vst.msk [vmem:[#allocation3 + $0x40] sm:$0xff] %vm843_vm4, %v764_v1  ;;  %1143 = vrot.lane.b32.xlu1 %v3168_v8, %s2900_s29 }
  0xe0   : > { %1336 = vrot.lane.b32.xlu0 %v3325_v32, %s2901_s8 }
  0xe1   : > { %v762_v30 = vpop.permute.xlu1 %761 }
  0xe2   : > { %v768_v48 = vpop.permute.xlu0 %767  ;;  %851 = vst.msk [vmem:[#allocation3 + $0x38] sm:$0xff] %vm843_vm4, %v762_v30 }
  0xe3   : > { %854 = vst.msk [vmem:[#allocation3 + $0x50] sm:$0xff] %vm843_vm4, %v768_v48  ;;  %1912 = vrot.lane.b32.xlu1 %v3325_v32, %s2904_s27 }
  0xe4   : > { %1530 = vrot.lane.b32.xlu0 %v3210_v25, %s2902_s13 }
  0xe5   : > { %v766_v22 = vpop.permute.xlu1 %765 }
  0xe6   : > { %v772_v18 = vpop.permute.xlu0 %771  ;;  %853 = vst.msk [vmem:[#allocation3 + $0x48] sm:$0xff] %vm843_vm4, %v766_v22  ;;  %v1661_v22 = vld [vmem:[#allocation2 + $0xc1] sm:$0xff] }
  0xe7   : > { %856 = vst.msk [vmem:[#allocation3 + $0x60] sm:$0xff] %vm843_vm4, %v772_v18  ;;  %1528 = vrot.lane.b32.xlu1 %v3176_v15, %s2902_s13  ;;  %v1662_v18 = vld [vmem:[#allocation2 + $0xc9] sm:$0xff] }
  0xe8   : > { %1145 = vrot.lane.b32.xlu0 %v3141_v56, %s2900_s29 }
  0xe9   : > { %v770_v8 = vpop.permute.xlu1 %769 }
  0xea   : > { %v776_v16 = vpop.permute.xlu0 %775  ;;  %855 = vst.msk [vmem:[#allocation3 + $0x58] sm:$0xff] %vm843_vm4, %v770_v8 }
  0xeb   : > { %858 = vst.msk [vmem:[#allocation3 + $0x70] sm:$0xff] %vm843_vm4, %v776_v16  ;;  %1721 = vrot.lane.b32.xlu1 %v3141_v56, %s2903_s26 }
  0xec   : > { %1914 = vrot.lane.b32.xlu0 %v3319_v31, %s2904_s27 }
  0xed   : > { %v774_v25 = vpop.permute.xlu1 %773 }
  0xee   : > { %v780_v32 = vpop.permute.xlu0 %779  ;;  %857 = vst.msk [vmem:[#allocation3 + $0x68] sm:$0xff] %vm843_vm4, %v774_v25 }
  0xef   : > { %860 = vst.msk [vmem:[#allocation3 + $0x80] sm:$0xff] %vm843_vm4, %v780_v32  ;;  %1723 = vrot.lane.b32.xlu1 %v3190_v2, %s2903_s26 }
  0xf0   : > { %1338 = vrot.lane.b32.xlu0 %v3319_v31, %s2901_s8 }
  0xf1   : > { %v778_v15 = vpop.permute.xlu1 %777 }
  0xf2   : > { %v784_v10 = vpop.permute.xlu0 %783  ;;  %859 = vst.msk [vmem:[#allocation3 + $0x78] sm:$0xff] %vm843_vm4, %v778_v15 }
  0xf3   : > { %862 = vst.msk [vmem:[#allocation3 + $0x90] sm:$0xff] %vm843_vm4, %v784_v10  ;;  %1147 = vrot.lane.b32.xlu1 %v3190_v2, %s2900_s29 }
  0xf4   : > { %1340 = vrot.lane.b32.xlu0 %v3333_v45, %s2901_s8 }
  0xf5   : > { %v782_v56 = vpop.permute.xlu1 %781 }
  0xf6   : > { %v788_v12 = vpop.permute.xlu0 %787  ;;  %861 = vst.msk [vmem:[#allocation3 + $0x88] sm:$0xff] %vm843_vm4, %v782_v56 }
  0xf7   : > { %864 = vst.msk [vmem:[#allocation3 + $0xa0] sm:$0xff] %vm843_vm4, %v788_v12  ;;  %1916 = vrot.lane.b32.xlu1 %v3333_v45, %s2904_s27 }
  0xf8   : > { %1534 = vrot.lane.b32.xlu0 %v3216_v27, %s2902_s13 }
  0xf9   : > { %v786_v31 = vpop.permute.xlu1 %785 }
  0xfa   : > { %v792_v59 = vpop.permute.xlu0 %791  ;;  %863 = vst.msk [vmem:[#allocation3 + $0x98] sm:$0xff] %vm843_vm4, %v786_v31 }
  0xfb   : > { %866 = vst.msk [vmem:[#allocation3 + $0xb0] sm:$0xff] %vm843_vm4, %v792_v59  ;;  %1532 = vrot.lane.b32.xlu1 %v3197_v20, %s2902_s13 }
  0xfc   : > { %1149 = vrot.lane.b32.xlu0 %v3170_v9, %s2900_s29 }
  0xfd   : > { %v790_v2 = vpop.permute.xlu1 %789 }
  0xfe   : > { %v796_v11 = vpop.permute.xlu0 %795  ;;  %865 = vst.msk [vmem:[#allocation3 + $0xa8] sm:$0xff] %vm843_vm4, %v790_v2  ;;  %v1663_v2 = vld [vmem:[#allocation2 + $0xd9] sm:$0xff] }
  0xff   : > { %868 = vst.msk [vmem:[#allocation3 + $0xc0] sm:$0xff] %vm843_vm4, %v796_v11  ;;  %1725 = vrot.lane.b32.xlu1 %v3170_v9, %s2903_s26  ;;  %v1664_v11 = vld [vmem:[#allocation2 + $0xe1] sm:$0xff] }
 0x100   : > { %1918 = vrot.lane.b32.xlu0 %v3327_v44, %s2904_s27 }
 0x101   : > { %v794_v27 = vpop.permute.xlu1 %793 }
 0x102   : > { %v800_v45 = vpop.permute.xlu0 %799  ;;  %867 = vst.msk [vmem:[#allocation3 + $0xb8] sm:$0xff] %vm843_vm4, %v794_v27 }
 0x103   : > { %870 = vst.msk [vmem:[#allocation3 + $0xd0] sm:$0xff] %vm843_vm4, %v800_v45  ;;  %1727 = vrot.lane.b32.xlu1 %v3199_v21, %s2903_s26 }
 0x104   : > { %1342 = vrot.lane.b32.xlu0 %v3327_v44, %s2901_s8 }
 0x105   : > { %v798_v20 = vpop.permute.xlu1 %797 }
 0x106   : > { %v804_v14 = vpop.permute.xlu0 %803  ;;  %869 = vst.msk [vmem:[#allocation3 + $0xc8] sm:$0xff] %vm843_vm4, %v798_v20 }
 0x107   : > { %872 = vst.msk [vmem:[#allocation3 + $0xe0] sm:$0xff] %vm843_vm4, %v804_v14  ;;  %1151 = vrot.lane.b32.xlu1 %v3199_v21, %s2900_s29  ;;  %v1657_v21 = vld [vmem:[#allocation2 + $0x91] sm:$0xff] }
 0x108   : > { %1344 = vrot.lane.b32.xlu0 %v3341_v49, %s2901_s8 }
 0x109   : > { %v802_v9 = vpop.permute.xlu1 %801 }
 0x10a   : > { %v808_v53 = vpop.permute.xlu0 %807  ;;  %871 = vst.msk [vmem:[#allocation3 + $0xd8] sm:$0xff] %vm843_vm4, %v802_v9 }
 0x10b   : > { %874 = vst.msk [vmem:[#allocation3 + $0xf0] sm:$0xff] %vm843_vm4, %v808_v53  ;;  %1920 = vrot.lane.b32.xlu1 %v3341_v49, %s2904_s27  ;;  %v1080_v49 = vld [vmem:[#allocation2 + $0x99] sm:$0xff] }
 0x10c   : > { %1538 = vrot.lane.b32.xlu0 %v3226_v33, %s2902_s13 }
 0x10d   : > { %v806_v44 = vpop.permute.xlu1 %805 }
 0x10e   : > { %v941_v61 = vpop.permute.xlu0 %940  ;;  %873 = vst.msk [vmem:[#allocation3 + $0xe8] sm:$0xff] %vm843_vm4, %v806_v44 }
 0x10f   : > { %1037 = vst.msk [vmem:[#allocation3] sm:$0xff] %vm1036_vm5, %v941_v61  ;;  %1536 = vrot.lane.b32.xlu1 %v3214_v26, %s2902_s13 }
 0x110   : > { %962 = vrot.lane.b32.xlu0 %v3226_v33, %s2899_s28 }
 0x111   : > { %v810_v62 = vpop.permute.xlu1 %809 }
 0x112   : > { %v945_v52 = vpop.permute.xlu0 %944  ;;  %875 = vst.msk [vmem:[#allocation3 + $0xf8] sm:$0xff] %vm843_vm4, %v810_v62 }
 0x113   : > { %1039 = vst.msk [vmem:[#allocation3 + $0x10] sm:$0xff] %vm1036_vm5, %v945_v52  ;;  %1729 = vrot.lane.b32.xlu1 %v1657_v21, %s2903_s26 }
 0x114   : > { %1731 = vrot.lane.b32.xlu0 %v3208_v23, %s2903_s26 }
 0x115   : > { %v943_v63 = vpop.permute.xlu1 %942 }
 0x116   : > { %v949_v0 = vpop.permute.xlu0 %948  ;;  %1038 = vst.msk [vmem:[#allocation3 + $0x8] sm:$0xff] %vm1036_vm5, %v943_v63  ;;  %v2886_v63 = vld [vmem:[%s4135_s1] ss:$0 sm:$0xff] }
 0x117   : > { %1041 = vst.msk [vmem:[#allocation3 + $0x20] sm:$0xff] %vm1036_vm5, %v949_v0  ;;  %1153 = vrot.lane.b32.xlu1 %v1657_v21, %s2900_s29 }
 0x118   : > { %1155 = vrot.lane.b32.xlu0 %v1080_v49, %s2900_s29  ;;  %v241_v49 = vld [vmem:[%s3003_s23 + $0xf0] sm:$0xff] }
 0x119   : > { %v947_v26 = vpop.permute.xlu1 %946  ;;  %v277_v0 = vmul.f32 %v2886_v63, %v241_v49  ;;  %v1478_v49 = vld [vmem:[#allocation2 + $0x138] sm:$0xff] }
 0x11a   : > { %v953_v33 = vpop.permute.xlu0 %952  ;;  %1040 = vst.msk [vmem:[#allocation3 + $0x18] sm:$0xff] %vm1036_vm5, %v947_v26  ;;  %v2887_v26 = vld [vmem:[%s4135_s1 + $0x1] ss:$0 sm:$0xff] }
 0x11b   : > { %1043 = vst.msk [vmem:[#allocation3 + $0x30] sm:$0xff] %vm1036_vm5, %v953_v33  ;;  %1922 = vrot.lane.b32.xlu1 %v3335_v46, %s2904_s27  ;;  %v313_v33 = vadd.f32 %v2887_v26, %v277_v0 }
 0x11c   : > { %1924 = vrot.lane.b32.xlu0 %v3349_v51, %s2904_s27 }
 0x11d   : > { %v951_v23 = vpop.permute.xlu1 %950 }
 0x11e   : > { %v957_v19 = vpop.permute.xlu0 %956  ;;  %1042 = vst.msk [vmem:[#allocation3 + $0x28] sm:$0xff] %vm1036_vm5, %v951_v23 }
 0x11f   : > { %1045 = vst.msk [vmem:[#allocation3 + $0x40] sm:$0xff] %vm1036_vm5, %v957_v19  ;;  %1346 = vrot.lane.b32.xlu1 %v3335_v46, %s2901_s8  ;;  %v1659_v46 = vld [vmem:[#allocation2 + $0xa9] sm:$0xff] }
 0x120   : > { %1540 = vrot.lane.b32.xlu0 %v3218_v28, %s2902_s13 }
 0x121   : > { %v955_v3 = vpop.permute.xlu1 %954 }
 0x122   : > { %v961_v4 = vpop.permute.xlu0 %960  ;;  %1044 = vst.msk [vmem:[#allocation3 + $0x38] sm:$0xff] %vm1036_vm5, %v955_v3  ;;  %v242_v3 = vld [vmem:[%s3003_s23 + $0xf8] sm:$0xff] }
 0x123   : > { %1047 = vst.msk [vmem:[#allocation3 + $0x50] sm:$0xff] %vm1036_vm5, %v961_v4  ;;  %1348 = vrot.lane.b32.xlu1 %v3349_v51, %s2901_s8  ;;  %v345_v4 = vmax.f32 %v313_v33, 0.0 }
 0x124   : > { %1542 = vrot.lane.b32.xlu0 %v3230_v35, %s2902_s13 }
 0x125   : > { %v959_v13 = vpop.permute.xlu1 %958  ;;  %424 = vst.msk [vmem:[#allocation2 + $0x181] sm:$0xff] %vm347_vm0, %v345_v4 }
 0x126   : > { %v1136_v5 = vpop.permute.xlu0 %1135  ;;  %1046 = vst.msk [vmem:[#allocation3 + $0x48] sm:$0xff] %vm1036_vm5, %v959_v13  ;;  %v278_v13 = vmul.f32 %v2886_v63, %v242_v3 }
 0x127   : > { %1231 = vst.msk [vmem:[#allocation3 + $0x8] sm:$0xff] %vm1229_vm6, %v1136_v5  ;;  %964 = vrot.lane.b32.xlu1 %v3218_v28, %s2899_s28  ;;  %v1665_v5 = vld [vmem:[#allocation2 + $0xf1] sm:$0xff] }
 0x128   : > { %966 = vrot.lane.b32.xlu0 %v3230_v35, %s2899_s28 }
 0x129   : > { %v1134_v29 = vpop.permute.xlu1 %1133 }
 0x12a   : > { %v1329_v51 = vpop.permute.xlu0 %1328  ;;  %1230 = vst.msk [vmem:[#allocation3] sm:$0xff] %vm1229_vm6, %v1134_v29 }
 0x12b   : > { %1424 = vst.msk [vmem:[#allocation3 + $0x8] sm:$0xff] %vm1422_vm7, %v1329_v51  ;;  %1733 = vrot.lane.b32.xlu1 %v1659_v46, %s2903_s26 }
 0x12c   : > { %1735 = vrot.lane.b32.xlu0 %v1660_v6, %s2903_s26 }
 0x12d   : > { %v1327_v55 = vpop.permute.xlu1 %1326 }
 0x12e   : > { %v1523_v7 = vpop.permute.xlu0 %1522  ;;  %1423 = vst.msk [vmem:[#allocation3] sm:$0xff] %vm1422_vm7, %v1327_v55 }
 0x12f   : > { %1618 = vst.msk [vmem:[#allocation3 + $0x8] sm:$0xff] %vm1616_vm8, %v1523_v7  ;;  %1157 = vrot.lane.b32.xlu1 %v1659_v46, %s2900_s29  ;;  %v1666_v46 = vld [vmem:[#allocation2 + $0xf9] sm:$0xff] }
 0x130   : > { %1159 = vrot.lane.b32.xlu0 %v1660_v6, %s2900_s29  ;;  %v314_v6 = vadd.f32 %v2887_v26, %v278_v13  ;;  %v1479_v26 = vld [vmem:[#allocation2 + $0x140] sm:$0xff] }
 0x131   : > { %v1521_v28 = vpop.permute.xlu1 %1520  ;;  %v1672_v13 = vld [vmem:[#allocation2 + $0x141] sm:$0xff] }
 0x132   : > { %v1138_v35 = vpop.permute.xlu0 %1137  ;;  %1617 = vst.msk [vmem:[#allocation3] sm:$0xff] %vm1616_vm8, %v1521_v28  ;;  %v346_v7 = vmax.f32 %v314_v6, 0.0  ;;  %v1858_v28 = vld [vmem:[#allocation2 + $0xf2] sm:$0xff]  ;;  %v1864_v6 = vld [vmem:[#allocation2 + $0x13a] sm:$0xff] }
 0x133   : > { %1232 = vst.msk [vmem:[#allocation3 + $0x10] sm:$0xff] %vm1229_vm6, %v1138_v35  ;;  %1926 = vrot.lane.b32.xlu1 %v3343_v50, %s2904_s27  ;;  %v1859_v35 = vld [vmem:[#allocation2 + $0xfa] sm:$0xff] }
 0x134   : > { %1928 = vrot.lane.b32.xlu0 %v3357_v58, %s2904_s27  ;;  %425 = vst.msk [vmem:[#allocation2 + $0x189] sm:$0xff] %vm347_vm0, %v346_v7 }
 0x135   : > { %v1714_v17 = vpop.permute.xlu1 %1713 }
 0x136   : > { %v1907_v24 = vpop.permute.xlu0 %1906  ;;  %1810 = vst.msk [vmem:[#allocation3] sm:$0xff] %vm1809_vm9, %v1714_v17 }
 0x137   : > { %2003 = vst.msk [vmem:[#allocation3] sm:$0xff] %vm2002_vm10, %v1907_v24  ;;  %1350 = vrot.lane.b32.xlu1 %v3343_v50, %s2901_s8 }
 0x138   : > { %1544 = vrot.lane.b32.xlu0 %v3228_v34, %s2902_s13 }
 0x139   : > { %v1716_v54 = vpop.permute.xlu1 %1715 }
 0x13a   : > { %v1331_v1 = vpop.permute.xlu0 %1330  ;;  %1811 = vst.msk [vmem:[#allocation3 + $0x8] sm:$0xff] %vm1809_vm9, %v1716_v54 }
 0x13b   : > { %1425 = vst.msk [vmem:[#allocation3 + $0x10] sm:$0xff] %vm1422_vm7, %v1331_v1  ;;  %1352 = vrot.lane.b32.xlu1 %v3357_v58, %s2901_s8 }
 0x13c   : > { %1546 = vrot.lane.b32.xlu0 %v3243_v37, %s2902_s13 }
 0x13d   : > { %v1140_v30 = vpop.permute.xlu1 %1139 }
 0x13e   : > { %v1333_v48 = vpop.permute.xlu0 %1332  ;;  %1233 = vst.msk [vmem:[#allocation3 + $0x18] sm:$0xff] %vm1229_vm6, %v1140_v30  ;;  %v2035_v50 = vld [vmem:[#allocation3] sm:$0xff] }
 0x13f   : > { %1426 = vst.msk [vmem:[#allocation3 + $0x18] sm:$0xff] %vm1422_vm7, %v1333_v48  ;;  %968 = vrot.lane.b32.xlu1 %v3228_v34, %s2899_s28  ;;  %2795 = vmatprep.mubr.msk.f32.mxu0 %vm2076_vm11, %v2035_v50 }
 0x140   : > { %970 = vrot.lane.b32.xlu0 %v3243_v37, %s2899_s28 }
 0x141   : > { %v1909_v58 = vpop.permute.xlu1 %1908 }
 0x142   : > { %v1527_v8 = vpop.permute.xlu0 %1526  ;;  %2004 = vst.msk [vmem:[#allocation3 + $0x8] sm:$0xff] %vm2002_vm10, %v1909_v58 }
 0x143   : > { %1620 = vst.msk [vmem:[#allocation3 + $0x18] sm:$0xff] %vm1616_vm8, %v1527_v8  ;;  %1737 = vrot.lane.b32.xlu1 %v1661_v22, %s2903_s26  ;;  %v1667_v8 = vld [vmem:[#allocation2 + $0x109] sm:$0xff] }
 0x144   : > { %1739 = vrot.lane.b32.xlu0 %v1662_v18, %s2903_s26 }
 0x145   : > { %v1525_v16 = vpop.permute.xlu1 %1524 }
 0x146   : > { %v1142_v25 = vpop.permute.xlu0 %1141  ;;  %1619 = vst.msk [vmem:[#allocation3 + $0x10] sm:$0xff] %vm1616_vm8, %v1525_v16  ;;  %v1668_v16 = vld [vmem:[#allocation2 + $0x111] sm:$0xff] }
 0x147   : > { %1234 = vst.msk [vmem:[#allocation3 + $0x20] sm:$0xff] %vm1229_vm6, %v1142_v25  ;;  %1161 = vrot.lane.b32.xlu1 %v1661_v22, %s2900_s29 }
 0x148   : > { %1163 = vrot.lane.b32.xlu0 %v1662_v18, %s2900_s29 }
 0x149   : > { %v1718_v34 = vpop.permute.xlu1 %1717  ;;  %v2036_v32 = vld [vmem:[#allocation3 + $0x8] sm:$0xff] }
 0x14a   : > { %v1911_v37 = vpop.permute.xlu0 %1910  ;;  %1812 = vst.msk [vmem:[#allocation3 + $0x10] sm:$0xff] %vm1809_vm9, %v1718_v34  ;;  %2796 = vmatmul.mubr.msk.f32.vlgmr.msra.gmra.mrb[0].mxu0 %vm2076_vm11, %v2036_v32 }
 0x14b   : > { %2005 = vst.msk [vmem:[#allocation3 + $0x10] sm:$0xff] %vm2002_vm10, %v1911_v37  ;;  %1930 = vrot.lane.b32.xlu1 %v3351_v57, %s2904_s27 }
 0x14c   : > { %1932 = vrot.lane.b32.xlu0 %v3362_v60, %s2904_s27 }
 0x14d   : > { %v1720_v15 = vpop.permute.xlu1 %1719 }
 0x14e   : > { %v1335_v10 = vpop.permute.xlu0 %1334  ;;  %1813 = vst.msk [vmem:[#allocation3 + $0x18] sm:$0xff] %vm1809_vm9, %v1720_v15 }
 0x14f   : > { %1427 = vst.msk [vmem:[#allocation3 + $0x20] sm:$0xff] %vm1422_vm7, %v1335_v10  ;;  %1354 = vrot.lane.b32.xlu1 %v3351_v57, %s2901_s8 }
 0x150   : > { %1548 = vrot.lane.b32.xlu0 %v3241_v36, %s2902_s13 }
 0x151   : > { %v1144_v56 = vpop.permute.xlu1 %1143 }
 0x152   : > { %v1337_v12 = vpop.permute.xlu0 %1336  ;;  %1235 = vst.msk [vmem:[#allocation3 + $0x28] sm:$0xff] %vm1229_vm6, %v1144_v56  ;;  %v2037_v31 = vld [vmem:[#allocation3 + $0x10] sm:$0xff] }
 0x153   : > { %1428 = vst.msk [vmem:[#allocation3 + $0x28] sm:$0xff] %vm1422_vm7, %v1337_v12  ;;  %1356 = vrot.lane.b32.xlu1 %v3362_v60, %s2901_s8  ;;  %2798 = vmatprep.mubr.msk.f32.mxu0 %vm2076_vm11, %v2037_v31 }
 0x154   : > { %1550 = vrot.lane.b32.xlu0 %v3253_v39, %s2902_s13 }
 0x155   : > { %v1913_v59 = vpop.permute.xlu1 %1912 }
 0x156   : > { %v1531_v57 = vpop.permute.xlu0 %1530  ;;  %2006 = vst.msk [vmem:[#allocation3 + $0x18] sm:$0xff] %vm2002_vm10, %v1913_v59 }
 0x157   : > { %1622 = vst.msk [vmem:[#allocation3 + $0x28] sm:$0xff] %vm1616_vm8, %v1531_v57  ;;  %972 = vrot.lane.b32.xlu1 %v3241_v36, %s2899_s28  ;;  %v1856_v36 = vld [vmem:[#allocation2 + $0xda] sm:$0xff] }
 0x158   : > { %974 = vrot.lane.b32.xlu0 %v3253_v39, %s2899_s28  ;;  %v1857_v39 = vld [vmem:[#allocation2 + $0xe2] sm:$0xff] }
 0x159   : > { %v1529_v60 = vpop.permute.xlu1 %1528 }
 0x15a   : > { %v1146_v27 = vpop.permute.xlu0 %1145  ;;  %1621 = vst.msk [vmem:[#allocation3 + $0x20] sm:$0xff] %vm1616_vm8, %v1529_v60 }
 0x15b   : > { %1236 = vst.msk [vmem:[#allocation3 + $0x30] sm:$0xff] %vm1229_vm6, %v1146_v27  ;;  %1741 = vrot.lane.b32.xlu1 %v1663_v2, %s2903_s26 }
 0x15c   : > { %1743 = vrot.lane.b32.xlu0 %v1664_v11, %s2903_s26 }
 0x15d   : > { %v1722_v45 = vpop.permute.xlu1 %1721  ;;  %v2038_v14 = vld [vmem:[#allocation3 + $0x18] sm:$0xff] }
 0x15e   : > { %v1915_v20 = vpop.permute.xlu0 %1914  ;;  %1814 = vst.msk [vmem:[#allocation3 + $0x20] sm:$0xff] %vm1809_vm9, %v1722_v45  ;;  %2799 = vmatmul.mubr.msk.f32.gmra.mrb[2].mxu0 %vm2076_vm11, %v2038_v14  ;;  %v1670_v14 = vld [vmem:[#allocation2 + $0x129] sm:$0xff] }
 0x15f   : > { %2007 = vst.msk [vmem:[#allocation3 + $0x20] sm:$0xff] %vm2002_vm10, %v1915_v20  ;;  %1165 = vrot.lane.b32.xlu1 %v1663_v2, %s2900_s29 }
 0x160   : > { %1167 = vrot.lane.b32.xlu0 %v1664_v11, %s2900_s29  ;;  %v898_v11 = vld [vmem:[#allocation2 + $0x120] sm:$0xff] }
 0x161   : > { %v1724_v9 = vpop.permute.xlu1 %1723 }
 0x162   : > { %v1339_v53 = vpop.permute.xlu0 %1338  ;;  %1815 = vst.msk [vmem:[#allocation3 + $0x28] sm:$0xff] %vm1809_vm9, %v1724_v9 }
 0x163   : > { %1429 = vst.msk [vmem:[#allocation3 + $0x30] sm:$0xff] %vm1422_vm7, %v1339_v53  ;;  %1934 = vrot.lane.b32.xlu1 %v1856_v36, %s2904_s27 }
 0x164   : > { %1936 = vrot.lane.b32.xlu0 %v1857_v39, %s2904_s27 }
 0x165   : > { %v1148_v44 = vpop.permute.xlu1 %1147 }
 0x166   : > { %v1341_v61 = vpop.permute.xlu0 %1340  ;;  %1237 = vst.msk [vmem:[#allocation3 + $0x38] sm:$0xff] %vm1229_vm6, %v1148_v44  ;;  %v2039_v21 = vld [vmem:[#allocation3 + $0x20] sm:$0xff] }
 0x167   : > { %1430 = vst.msk [vmem:[#allocation3 + $0x38] sm:$0xff] %vm1422_vm7, %v1341_v61  ;;  %1358 = vrot.lane.b32.xlu1 %v1856_v36, %s2901_s8  ;;  %2801 = vmatprep.mubr.msk.f32.mxu0 %vm2076_vm11, %v2039_v21  ;;  %v1863_v44 = vld [vmem:[#allocation2 + $0x12a] sm:$0xff] }
 0x168   : > { %1552 = vrot.lane.b32.xlu0 %v3245_v38, %s2902_s13 }
 0x169   : > { %v1917_v62 = vpop.permute.xlu1 %1916 }
 0x16a   : > { %v1535_v52 = vpop.permute.xlu0 %1534  ;;  %2008 = vst.msk [vmem:[#allocation3 + $0x28] sm:$0xff] %vm2002_vm10, %v1917_v62 }
 0x16b   : > { %1624 = vst.msk [vmem:[#allocation3 + $0x38] sm:$0xff] %vm1616_vm8, %v1535_v52  ;;  %1360 = vrot.lane.b32.xlu1 %v1857_v39, %s2901_s8 }
 0x16c   : > { %1554 = vrot.lane.b32.xlu0 %v3257_v41, %s2902_s13 }
 0x16d   : > { %v1533_v23 = vpop.permute.xlu1 %1532 }
 0x16e   : > { %v1150_v19 = vpop.permute.xlu0 %1149  ;;  %1623 = vst.msk [vmem:[#allocation3 + $0x30] sm:$0xff] %vm1616_vm8, %v1533_v23 }
 0x16f   : > { %1238 = vst.msk [vmem:[#allocation3 + $0x40] sm:$0xff] %vm1229_vm6, %v1150_v19  ;;  %976 = vrot.lane.b32.xlu1 %v3245_v38, %s2899_s28  ;;  %v1671_v19 = vld [vmem:[#allocation2 + $0x139] sm:$0xff] }
 0x170   : > { %978 = vrot.lane.b32.xlu0 %v3257_v41, %s2899_s28 }
 0x171   : > { %v1726_v29 = vpop.permute.xlu1 %1725  ;;  %v2040_v55 = vld [vmem:[#allocation3 + $0x28] sm:$0xff] }
 0x172   : > { %v1919_v51 = vpop.permute.xlu0 %1918  ;;  %1816 = vst.msk [vmem:[#allocation3 + $0x30] sm:$0xff] %vm1809_vm9, %v1726_v29  ;;  %2802 = vmatmul.mubr.msk.f32.gmra.mrb[4].mxu0 %vm2076_vm11, %v2040_v55  ;;  %v1865_v55 = vld [vmem:[#allocation2 + $0x142] sm:$0xff] }
 0x173   : > { %2009 = vst.msk [vmem:[#allocation3 + $0x30] sm:$0xff] %vm2002_vm10, %v1919_v51  ;;  %1745 = vrot.lane.b32.xlu1 %v1665_v5, %s2903_s26 }
 0x174   : > { %1747 = vrot.lane.b32.xlu0 %v1666_v46, %s2903_s26 }
 0x175   : > { %v1728_v38 = vpop.permute.xlu1 %1727 }
 0x176   : > { %v1343_v41 = vpop.permute.xlu0 %1342  ;;  %1817 = vst.msk [vmem:[#allocation3 + $0x38] sm:$0xff] %vm1809_vm9, %v1728_v38 }
 0x177   : > { %1431 = vst.msk [vmem:[#allocation3 + $0x40] sm:$0xff] %vm1422_vm7, %v1343_v41  ;;  %1169 = vrot.lane.b32.xlu1 %v1665_v5, %s2900_s29 }
 0x178   : > { %1171 = vrot.lane.b32.xlu0 %v1666_v46, %s2900_s29 }
 0x179   : > { %v1152_v17 = vpop.permute.xlu1 %1151 }
 0x17a   : > { %v1345_v24 = vpop.permute.xlu0 %1344  ;;  %1239 = vst.msk [vmem:[#allocation3 + $0x48] sm:$0xff] %vm1229_vm6, %v1152_v17  ;;  %v2041_v54 = vld [vmem:[#allocation3 + $0x30] sm:$0xff] }
 0x17b   : > { %1432 = vst.msk [vmem:[#allocation3 + $0x48] sm:$0xff] %vm1422_vm7, %v1345_v24  ;;  %1938 = vrot.lane.b32.xlu1 %v1858_v28, %s2904_s27  ;;  %2804 = vmatprep.mubr.msk.f32.mxu0 %vm2076_vm11, %v2041_v54  ;;  %v1481_v54 = vld [vmem:[#allocation2 + $0x158] sm:$0xff] }
 0x17c   : > { %1940 = vrot.lane.b32.xlu0 %v1859_v35, %s2904_s27 }
 0x17d   : > { %v1921_v1 = vpop.permute.xlu1 %1920 }
 0x17e   : > { %v1539_v30 = vpop.permute.xlu0 %1538  ;;  %2010 = vst.msk [vmem:[#allocation3 + $0x38] sm:$0xff] %vm2002_vm10, %v1921_v1 }
 0x17f   : > { %1626 = vst.msk [vmem:[#allocation3 + $0x48] sm:$0xff] %vm1616_vm8, %v1539_v30  ;;  %1362 = vrot.lane.b32.xlu1 %v1858_v28, %s2901_s8 }
 0x180   : > { %1556 = vrot.lane.b32.xlu0 %v3255_v40, %s2902_s13 }
 0x181   : > { %v1537_v48 = vpop.permute.xlu1 %1536 }
 0x182   : > { %v963_v50 = vpop.permute.xlu0 %962  ;;  %1625 = vst.msk [vmem:[#allocation3 + $0x40] sm:$0xff] %vm1616_vm8, %v1537_v48  ;;  %v1673_v48 = vld [vmem:[#allocation2 + $0x151] sm:$0xff] }
 0x183   : > { %1048 = vst.msk [vmem:[#allocation3 + $0x58] sm:$0xff] %vm1036_vm5, %v963_v50  ;;  %1364 = vrot.lane.b32.xlu1 %v1859_v35, %s2901_s8  ;;  %v1480_v35 = vld [vmem:[#allocation2 + $0x150] sm:$0xff] }
 0x184   : > { %1558 = vrot.lane.b32.xlu0 %v3271_v43, %s2902_s13 }
 0x185   : > { %v1730_v22 = vpop.permute.xlu1 %1729  ;;  %v2042_v58 = vld [vmem:[#allocation3 + $0x38] sm:$0xff] }
 0x186   : > { %v1732_v18 = vpop.permute.xlu0 %1731  ;;  %1818 = vst.msk [vmem:[#allocation3 + $0x40] sm:$0xff] %vm1809_vm9, %v1730_v22  ;;  %2805 = vmatmul.mubr.msk.f32.gmra.mrb[6].mxu0 %vm2076_vm11, %v2042_v58 }
 0x187   : > { %1819 = vst.msk [vmem:[#allocation3 + $0x48] sm:$0xff] %vm1809_vm9, %v1732_v18  ;;  %980 = vrot.lane.b32.xlu1 %v3255_v40, %s2899_s28  ;;  %v1860_v40 = vld [vmem:[#allocation2 + $0x10a] sm:$0xff]  ;;  %v1674_v18 = vld [vmem:[#allocation2 + $0x159] sm:$0xff] }
 0x188   : > { %982 = vrot.lane.b32.xlu0 %v3271_v43, %s2899_s28  ;;  %v1861_v43 = vld [vmem:[#allocation2 + $0x112] sm:$0xff] }
 0x189   : > { %v1154_v25 = vpop.permute.xlu1 %1153 }
 0x18a   : > { %v1156_v34 = vpop.permute.xlu0 %1155  ;;  %1240 = vst.msk [vmem:[#allocation3 + $0x50] sm:$0xff] %vm1229_vm6, %v1154_v25 }
 0x18b   : > { %1241 = vst.msk [vmem:[#allocation3 + $0x58] sm:$0xff] %vm1229_vm6, %v1156_v34  ;;  %1749 = vrot.lane.b32.xlu1 %v1667_v8, %s2903_s26 }
 0x18c   : > { %1751 = vrot.lane.b32.xlu0 %v1668_v16, %s2903_s26 }
 0x18d   : > { %v1923_v37 = vpop.permute.xlu1 %1922 }
 0x18e   : > { %v1925_v32 = vpop.permute.xlu0 %1924  ;;  %2011 = vst.msk [vmem:[#allocation3 + $0x40] sm:$0xff] %vm2002_vm10, %v1923_v37  ;;  %v1867_v37 = vld [vmem:[#allocation2 + $0x15a] sm:$0xff] }
 0x18f   : > { %2012 = vst.msk [vmem:[#allocation3 + $0x48] sm:$0xff] %vm2002_vm10, %v1925_v32  ;;  %1173 = vrot.lane.b32.xlu1 %v1667_v8, %s2900_s29 }
 0x190   : > { %1175 = vrot.lane.b32.xlu0 %v1668_v16, %s2900_s29  ;;  %v1866_v16 = vld [vmem:[#allocation2 + $0x152] sm:$0xff] }
 0x191   : > { %v1347_v15 = vpop.permute.xlu1 %1346 }
 0x192   : > { %v1541_v10 = vpop.permute.xlu0 %1540  ;;  %1433 = vst.msk [vmem:[#allocation3 + $0x50] sm:$0xff] %vm1422_vm7, %v1347_v15 }
 0x193   : > { %1627 = vst.msk [vmem:[#allocation3 + $0x50] sm:$0xff] %vm1616_vm8, %v1541_v10  ;;  %1942 = vrot.lane.b32.xlu1 %v1860_v40, %s2904_s27  ;;  %v1482_v10 = vld [vmem:[#allocation2 + $0x168] sm:$0xff] }
 0x194   : > { %1944 = vrot.lane.b32.xlu0 %v1861_v43, %s2904_s27 }
 0x195   : > { %v1349_v56 = vpop.permute.xlu1 %1348  ;;  %v2043_v31 = vld [vmem:[#allocation3 + $0x40] sm:$0xff] }
 0x196   : > { %v1543_v12 = vpop.permute.xlu0 %1542  ;;  %v2044_v59 = vld [vmem:[#allocation3 + $0x48] sm:$0xff]  ;;  %1434 = vst.msk [vmem:[#allocation3 + $0x58] sm:$0xff] %vm1422_vm7, %v1349_v56  ;;  %2807 = vmatprep.mubr.msk.f32.mxu0 %vm2076_vm11, %v2043_v31  ;;  %v1483_v31 = vld [vmem:[#allocation2 + $0x170] sm:$0xff] }
 0x197   : > { %1628 = vst.msk [vmem:[#allocation3 + $0x58] sm:$0xff] %vm1616_vm8, %v1543_v12  ;;  %1366 = vrot.lane.b32.xlu1 %v1860_v40, %s2901_s8  ;;  %2808 = vmatmul.mubr.msk.f32.gmra.mrb[8].mxu0 %vm2076_vm11, %v2044_v59 }
 0x198   : > { %1560 = vrot.lane.b32.xlu0 %v3265_v42, %s2902_s13  ;;  %v1669_v42 = vld [vmem:[#allocation2 + $0x121] sm:$0xff] }
 0x199   : > { %v965_v57 = vpop.permute.xlu1 %964 }
 0x19a   : > { %v967_v2 = vpop.permute.xlu0 %966  ;;  %1049 = vst.msk [vmem:[#allocation3 + $0x60] sm:$0xff] %vm1036_vm5, %v965_v57 }
 0x19b   : > { %1050 = vst.msk [vmem:[#allocation3 + $0x68] sm:$0xff] %vm1036_vm5, %v967_v2  ;;  %1368 = vrot.lane.b32.xlu1 %v1861_v43, %s2901_s8  ;;  %v1675_v2 = vld [vmem:[#allocation2 + $0x169] sm:$0xff] }
 0x19c   : > { %1562 = vrot.lane.b32.xlu0 %v3278_v47, %s2902_s13 }
 0x19d   : > { %v1734_v60 = vpop.permute.xlu1 %1733 }
 0x19e   : > { %v1736_v27 = vpop.permute.xlu0 %1735  ;;  %1820 = vst.msk [vmem:[#allocation3 + $0x50] sm:$0xff] %vm1809_vm9, %v1734_v60 }
 0x19f   : > { %1821 = vst.msk [vmem:[#allocation3 + $0x58] sm:$0xff] %vm1809_vm9, %v1736_v27  ;;  %984 = vrot.lane.b32.xlu1 %v898_v11, %s2899_s28  ;;  %v1676_v27 = vld [vmem:[#allocation2 + $0x171] sm:$0xff] }
 0x1a0   : > { %986 = vrot.lane.b32.xlu0 %v3278_v47, %s2899_s28  ;;  %v1862_v47 = vld [vmem:[#allocation2 + $0x122] sm:$0xff] }
 0x1a1   : > { %v1158_v45 = vpop.permute.xlu1 %1157 }
 0x1a2   : > { %v1160_v20 = vpop.permute.xlu0 %1159  ;;  %1242 = vst.msk [vmem:[#allocation3 + $0x60] sm:$0xff] %vm1229_vm6, %v1158_v45 }
 0x1a3   : > { %1243 = vst.msk [vmem:[#allocation3 + $0x68] sm:$0xff] %vm1229_vm6, %v1160_v20  ;;  %1753 = vrot.lane.b32.xlu1 %v1669_v42, %s2903_s26  ;;  %v1868_v20 = vld [vmem:[#allocation2 + $0x16a] sm:$0xff] }
 0x1a4   : > { %1755 = vrot.lane.b32.xlu0 %v1670_v14, %s2903_s26 }
 0x1a5   : > { %v1927_v36 = vpop.permute.xlu1 %1926 }
 0x1a6   : > { %v1929_v39 = vpop.permute.xlu0 %1928  ;;  %2013 = vst.msk [vmem:[#allocation3 + $0x50] sm:$0xff] %vm2002_vm10, %v1927_v36 }
 0x1a7   : > { %2014 = vst.msk [vmem:[#allocation3 + $0x58] sm:$0xff] %vm2002_vm10, %v1929_v39  ;;  %1177 = vrot.lane.b32.xlu1 %v1669_v42, %s2900_s29  ;;  %v1869_v39 = vld [vmem:[#allocation2 + $0x172] sm:$0xff] }
 0x1a8   : > { %1179 = vrot.lane.b32.xlu0 %v1670_v14, %s2900_s29 }
 0x1a9   : > { %v1351_v9 = vpop.permute.xlu1 %1350 }
 0x1aa   : > { %v1545_v53 = vpop.permute.xlu0 %1544  ;;  %1435 = vst.msk [vmem:[#allocation3 + $0x60] sm:$0xff] %vm1422_vm7, %v1351_v9 }
 0x1ab   : > { %1629 = vst.msk [vmem:[#allocation3 + $0x60] sm:$0xff] %vm1616_vm8, %v1545_v53  ;;  %1946 = vrot.lane.b32.xlu1 %v1862_v47, %s2904_s27 }
 0x1ac   : > { %1948 = vrot.lane.b32.xlu0 %v1863_v44, %s2904_s27 }
 0x1ad   : > { %v1353_v61 = vpop.permute.xlu1 %1352  ;;  %v2045_v62 = vld [vmem:[#allocation3 + $0x50] sm:$0xff] }
 0x1ae   : > { %v1547_v21 = vpop.permute.xlu0 %1546  ;;  %v2046_v52 = vld [vmem:[#allocation3 + $0x58] sm:$0xff]  ;;  %1436 = vst.msk [vmem:[#allocation3 + $0x68] sm:$0xff] %vm1422_vm7, %v1353_v61  ;;  %2810 = vmatprep.mubr.msk.f32.mxu0 %vm2076_vm11, %v2045_v62  ;;  %v1484_v61 = vld [vmem:[#allocation2 + $0x180] sm:$0xff] }
 0x1af   : > { %1630 = vst.msk [vmem:[#allocation3 + $0x68] sm:$0xff] %vm1616_vm8, %v1547_v21  ;;  %1370 = vrot.lane.b32.xlu1 %v1862_v47, %s2901_s8  ;;  %2811 = vmatmul.mubr.msk.f32.gmra.mrb[10].mxu0 %vm2076_vm11, %v2046_v52  ;;  %v1485_v52 = vld [vmem:[#allocation2 + $0x188] sm:$0xff] }
 0x1b0   : > { %1564 = vrot.lane.b32.xlu0 %v1478_v49, %s2902_s13 }
 0x1b1   : > { %v969_v63 = vpop.permute.xlu1 %968 }
 0x1b2   : > { %v971_v0 = vpop.permute.xlu0 %970  ;;  %1051 = vst.msk [vmem:[#allocation3 + $0x70] sm:$0xff] %vm1036_vm5, %v969_v63 }
 0x1b3   : > { %1052 = vst.msk [vmem:[#allocation3 + $0x78] sm:$0xff] %vm1036_vm5, %v971_v0  ;;  %1372 = vrot.lane.b32.xlu1 %v1863_v44, %s2901_s8  ;;  %v1677_v0 = vld [vmem:[#allocation2 + $0x181] sm:$0xff] }
 0x1b4   : > { %1566 = vrot.lane.b32.xlu0 %v1479_v26, %s2902_s13 }
 0x1b5   : > { %v1738_v33 = vpop.permute.xlu1 %1737 }
 0x1b6   : > { %v1740_v23 = vpop.permute.xlu0 %1739  ;;  %1822 = vst.msk [vmem:[#allocation3 + $0x60] sm:$0xff] %vm1809_vm9, %v1738_v33 }
 0x1b7   : > { %1823 = vst.msk [vmem:[#allocation3 + $0x68] sm:$0xff] %vm1809_vm9, %v1740_v23  ;;  %988 = vrot.lane.b32.xlu1 %v1478_v49, %s2899_s28  ;;  %v1678_v23 = vld [vmem:[#allocation2 + $0x189] sm:$0xff] }
 0x1b8   : > { %990 = vrot.lane.b32.xlu0 %v1479_v26, %s2899_s28 }
 0x1b9   : > { %v1162_v3 = vpop.permute.xlu1 %1161 }
 0x1ba   : > { %v1164_v4 = vpop.permute.xlu0 %1163  ;;  %1244 = vst.msk [vmem:[#allocation3 + $0x70] sm:$0xff] %vm1229_vm6, %v1162_v3 }
 0x1bb   : > { %1245 = vst.msk [vmem:[#allocation3 + $0x78] sm:$0xff] %vm1229_vm6, %v1164_v4  ;;  %1757 = vrot.lane.b32.xlu1 %v1671_v19, %s2903_s26  ;;  %v1870_v4 = vld [vmem:[#allocation2 + $0x182] sm:$0xff] }
 0x1bc   : > { %1759 = vrot.lane.b32.xlu0 %v1672_v13, %s2903_s26 }
 0x1bd   : > { %v1931_v5 = vpop.permute.xlu1 %1930 }
 0x1be   : > { %v1933_v46 = vpop.permute.xlu0 %1932  ;;  %2015 = vst.msk [vmem:[#allocation3 + $0x60] sm:$0xff] %vm2002_vm10, %v1931_v5  ;;  %v1871_v5 = vld [vmem:[#allocation2 + $0x18a] sm:$0xff] }
 0x1bf   : > { %2016 = vst.msk [vmem:[#allocation3 + $0x68] sm:$0xff] %vm2002_vm10, %v1933_v46  ;;  %1181 = vrot.lane.b32.xlu1 %v1671_v19, %s2900_s29 }
 0x1c0   : > { %1183 = vrot.lane.b32.xlu0 %v1672_v13, %s2900_s29 }
 0x1c1   : > { %v1355_v29 = vpop.permute.xlu1 %1354 }
 0x1c2   : > { %v1549_v51 = vpop.permute.xlu0 %1548  ;;  %1437 = vst.msk [vmem:[#allocation3 + $0x70] sm:$0xff] %vm1422_vm7, %v1355_v29 }
 0x1c3   : > { %1631 = vst.msk [vmem:[#allocation3 + $0x70] sm:$0xff] %vm1616_vm8, %v1549_v51  ;;  %1950 = vrot.lane.b32.xlu1 %v1864_v6, %s2904_s27 }
 0x1c4   : > { %1952 = vrot.lane.b32.xlu0 %v1865_v55, %s2904_s27 }
 0x1c5   : > { %v1357_v7 = vpop.permute.xlu1 %1356  ;;  %v2047_v41 = vld [vmem:[#allocation3 + $0x60] sm:$0xff] }
 0x1c6   : > { %v1551_v38 = vpop.permute.xlu0 %1550  ;;  %v2048_v28 = vld [vmem:[#allocation3 + $0x68] sm:$0xff]  ;;  %1438 = vst.msk [vmem:[#allocation3 + $0x78] sm:$0xff] %vm1422_vm7, %v1357_v7  ;;  %2813 = vmatprep.mubr.msk.f32.mxu0 %vm2076_vm11, %v2047_v41 }
 0x1c7   : > { %1632 = vst.msk [vmem:[#allocation3 + $0x78] sm:$0xff] %vm1616_vm8, %v1551_v38  ;;  %1374 = vrot.lane.b32.xlu1 %v1864_v6, %s2901_s8  ;;  %2814 = vmatmul.mubr.msk.f32.gmra.mrb[12].mxu0 %vm2076_vm11, %v2048_v28  ;;  %v1679_v41 = vld [vmem:[#allocation2 + $0x199] sm:$0xff] }
 0x1c8   : > { %1568 = vrot.lane.b32.xlu0 %v1480_v35, %s2902_s13 }
 0x1c9   : > { %v973_v17 = vpop.permute.xlu1 %972 }
 0x1ca   : > { %v975_v24 = vpop.permute.xlu0 %974  ;;  %1053 = vst.msk [vmem:[#allocation3 + $0x80] sm:$0xff] %vm1036_vm5, %v973_v17 }
 0x1cb   : > { %1054 = vst.msk [vmem:[#allocation3 + $0x88] sm:$0xff] %vm1036_vm5, %v975_v24  ;;  %1376 = vrot.lane.b32.xlu1 %v1865_v55, %s2901_s8  ;;  %v1486_v55 = vld [vmem:[#allocation2 + $0x198] sm:$0xff] }
 0x1cc   : > { %1570 = vrot.lane.b32.xlu0 %v1481_v54, %s2902_s13  ;;  %v1872_v24 = vld [vmem:[#allocation2 + $0x19a] sm:$0xff] }
 0x1cd   : > { %v1742_v1 = vpop.permute.xlu1 %1741 }
 0x1ce   : > { %v1744_v30 = vpop.permute.xlu0 %1743  ;;  %1824 = vst.msk [vmem:[#allocation3 + $0x70] sm:$0xff] %vm1809_vm9, %v1742_v1  ;;  %v1680_v1 = vld [vmem:[#allocation2 + $0x1a1] sm:$0xff] }
 0x1cf   : > { %1825 = vst.msk [vmem:[#allocation3 + $0x78] sm:$0xff] %vm1809_vm9, %v1744_v30  ;;  %992 = vrot.lane.b32.xlu1 %v1480_v35, %s2899_s28  ;;  %v1487_v35 = vld [vmem:[#allocation2 + $0x1a0] sm:$0xff] }
 0x1d0   : > { %994 = vrot.lane.b32.xlu0 %v1481_v54, %s2899_s28 }
 0x1d1   : > { %v1166_v50 = vpop.permute.xlu1 %1165 }
 0x1d2   : > { %v1168_v22 = vpop.permute.xlu0 %1167  ;;  %1246 = vst.msk [vmem:[#allocation3 + $0x80] sm:$0xff] %vm1229_vm6, %v1166_v50  ;;  %v1873_v50 = vld [vmem:[#allocation2 + $0x1a2] sm:$0xff] }
 0x1d3   : > { %1247 = vst.msk [vmem:[#allocation3 + $0x88] sm:$0xff] %vm1229_vm6, %v1168_v22  ;;  %1761 = vrot.lane.b32.xlu1 %v1673_v48, %s2903_s26 }
 0x1d4   : > { %1763 = vrot.lane.b32.xlu0 %v1674_v18, %s2903_s26 }
 0x1d5   : > { %v1935_v58 = vpop.permute.xlu1 %1934 }
 0x1d6   : > { %v1937_v8 = vpop.permute.xlu0 %1936  ;;  %2017 = vst.msk [vmem:[#allocation3 + $0x70] sm:$0xff] %vm2002_vm10, %v1935_v58 }
 0x1d7   : > { %2018 = vst.msk [vmem:[#allocation3 + $0x78] sm:$0xff] %vm2002_vm10, %v1937_v8  ;;  %1185 = vrot.lane.b32.xlu1 %v1673_v48, %s2900_s29 }
 0x1d8   : > { %1187 = vrot.lane.b32.xlu0 %v1674_v18, %s2900_s29 }
 0x1d9   : > { %v1359_v25 = vpop.permute.xlu1 %1358 }
 0x1da   : > { %v1553_v34 = vpop.permute.xlu0 %1552  ;;  %1439 = vst.msk [vmem:[#allocation3 + $0x80] sm:$0xff] %vm1422_vm7, %v1359_v25 }
 0x1db   : > { %1633 = vst.msk [vmem:[#allocation3 + $0x80] sm:$0xff] %vm1616_vm8, %v1553_v34  ;;  %1954 = vrot.lane.b32.xlu1 %v1866_v16, %s2904_s27 }
 0x1dc   : > { %1956 = vrot.lane.b32.xlu0 %v1867_v37, %s2904_s27 }
 0x1dd   : > { %v1361_v32 = vpop.permute.xlu1 %1360  ;;  %v2049_v43 = vld [vmem:[#allocation3 + $0x70] sm:$0xff] }
 0x1de   : > { %v1555_v40 = vpop.permute.xlu0 %1554  ;;  %v2050_v15 = vld [vmem:[#allocation3 + $0x78] sm:$0xff]  ;;  %1440 = vst.msk [vmem:[#allocation3 + $0x88] sm:$0xff] %vm1422_vm7, %v1361_v32  ;;  %2816 = vmatprep.mubr.msk.f32.mxu0 %vm2076_vm11, %v2049_v43 }
 0x1df   : > { %1634 = vst.msk [vmem:[#allocation3 + $0x88] sm:$0xff] %vm1616_vm8, %v1555_v40  ;;  %1378 = vrot.lane.b32.xlu1 %v1866_v16, %s2901_s8  ;;  %2817 = vmatmul.mubr.msk.f32.gmra.mrb[14].mxu0 %vm2076_vm11, %v2050_v15 }
 0x1e0   : > { %1572 = vrot.lane.b32.xlu0 %v1482_v10, %s2902_s13 }
 0x1e1   : > { %v977_v56 = vpop.permute.xlu1 %976 }
 0x1e2   : > { %v979_v12 = vpop.permute.xlu0 %978  ;;  %1055 = vst.msk [vmem:[#allocation3 + $0x90] sm:$0xff] %vm1036_vm5, %v977_v56 }
 0x1e3   : > { %1056 = vst.msk [vmem:[#allocation3 + $0x98] sm:$0xff] %vm1036_vm5, %v979_v12  ;;  %1380 = vrot.lane.b32.xlu1 %v1867_v37, %s2901_s8 }
 0x1e4   : > { %1574 = vrot.lane.b32.xlu0 %v1483_v31, %s2902_s13 }
 0x1e5   : > { %v1746_v59 = vpop.permute.xlu1 %1745 }
 0x1e6   : > { %v1748_v57 = vpop.permute.xlu0 %1747  ;;  %1826 = vst.msk [vmem:[#allocation3 + $0x80] sm:$0xff] %vm1809_vm9, %v1746_v59 }
 0x1e7   : > { %1827 = vst.msk [vmem:[#allocation3 + $0x88] sm:$0xff] %vm1809_vm9, %v1748_v57  ;;  %996 = vrot.lane.b32.xlu1 %v1482_v10, %s2899_s28 }
 0x1e8   : > { %998 = vrot.lane.b32.xlu0 %v1483_v31, %s2899_s28 }
 0x1e9   : > { %v1170_v11 = vpop.permute.xlu1 %1169 }
 0x1ea   : > { %v1172_v60 = vpop.permute.xlu0 %1171  ;;  %1248 = vst.msk [vmem:[#allocation3 + $0x90] sm:$0xff] %vm1229_vm6, %v1170_v11 }
 0x1eb   : > { %1249 = vst.msk [vmem:[#allocation3 + $0x98] sm:$0xff] %vm1229_vm6, %v1172_v60  ;;  %1765 = vrot.lane.b32.xlu1 %v1675_v2, %s2903_s26 }
 0x1ec   : > { %1767 = vrot.lane.b32.xlu0 %v1676_v27, %s2903_s26 }
 0x1ed   : > { %v1939_v42 = vpop.permute.xlu1 %1938 }
 0x1ee   : > { %v1941_v45 = vpop.permute.xlu0 %1940  ;;  %2019 = vst.msk [vmem:[#allocation3 + $0x80] sm:$0xff] %vm2002_vm10, %v1939_v42 }
 0x1ef   : > { %2020 = vst.msk [vmem:[#allocation3 + $0x88] sm:$0xff] %vm2002_vm10, %v1941_v45  ;;  %1189 = vrot.lane.b32.xlu1 %v1675_v2, %s2900_s29 }
 0x1f0   : > { %1191 = vrot.lane.b32.xlu0 %v1676_v27, %s2900_s29 }
 0x1f1   : > { %v1363_v14 = vpop.permute.xlu1 %1362 }
 0x1f2   : > { %v1557_v36 = vpop.permute.xlu0 %1556  ;;  %1441 = vst.msk [vmem:[#allocation3 + $0x90] sm:$0xff] %vm1422_vm7, %v1363_v14 }
 0x1f3   : > { %1635 = vst.msk [vmem:[#allocation3 + $0x90] sm:$0xff] %vm1616_vm8, %v1557_v36  ;;  %1958 = vrot.lane.b32.xlu1 %v1868_v20, %s2904_s27 }
 0x1f4   : > { %1960 = vrot.lane.b32.xlu0 %v1869_v39, %s2904_s27 }
 0x1f5   : > { %v1365_v47 = vpop.permute.xlu1 %1364  ;;  %v2051_v53 = vld [vmem:[#allocation3 + $0x80] sm:$0xff] }
 0x1f6   : > { %v1559_v9 = vpop.permute.xlu0 %1558  ;;  %v2052_v44 = vld [vmem:[#allocation3 + $0x88] sm:$0xff]  ;;  %1442 = vst.msk [vmem:[#allocation3 + $0x98] sm:$0xff] %vm1422_vm7, %v1365_v47  ;;  %2819 = vmatprep.mubr.msk.f32.mxu1 %vm2076_vm11, %v2051_v53 }
 0x1f7   : > { %1636 = vst.msk [vmem:[#allocation3 + $0x98] sm:$0xff] %vm1616_vm8, %v1559_v9  ;;  %1382 = vrot.lane.b32.xlu1 %v1868_v20, %s2901_s8  ;;  %2820 = vmatmul.mubr.msk.f32.vlgmr.msra.gmra.mrb[0].mxu1 %vm2076_vm11, %v2052_v44 }
 0x1f8   : > { %1576 = vrot.lane.b32.xlu0 %v1484_v61, %s2902_s13 }
 0x1f9   : > { %v981_v21 = vpop.permute.xlu1 %980 }
 0x1fa   : > { %v983_v62 = vpop.permute.xlu0 %982  ;;  %1057 = vst.msk [vmem:[#allocation3 + $0xa0] sm:$0xff] %vm1036_vm5, %v981_v21 }
 0x1fb   : > { %1058 = vst.msk [vmem:[#allocation3 + $0xa8] sm:$0xff] %vm1036_vm5, %v983_v62  ;;  %1384 = vrot.lane.b32.xlu1 %v1869_v39, %s2901_s8 }
 0x1fc   : > { %1578 = vrot.lane.b32.xlu0 %v1485_v52, %s2902_s13 }
 0x1fd   : > { %v1750_v49 = vpop.permute.xlu1 %1749 }
 0x1fe   : > { %v1752_v63 = vpop.permute.xlu0 %1751  ;;  %1828 = vst.msk [vmem:[#allocation3 + $0x90] sm:$0xff] %vm1809_vm9, %v1750_v49 }
 0x1ff   : > { %1829 = vst.msk [vmem:[#allocation3 + $0x98] sm:$0xff] %vm1809_vm9, %v1752_v63  ;;  %1000 = vrot.lane.b32.xlu1 %v1484_v61, %s2899_s28 }
 0x200   : > { %1002 = vrot.lane.b32.xlu0 %v1485_v52, %s2899_s28 }
 0x201   : > { %v1174_v26 = vpop.permute.xlu1 %1173 }
 0x202   : > { %v1176_v33 = vpop.permute.xlu0 %1175  ;;  %1250 = vst.msk [vmem:[#allocation3 + $0xa0] sm:$0xff] %vm1229_vm6, %v1174_v26 }
 0x203   : > { %1251 = vst.msk [vmem:[#allocation3 + $0xa8] sm:$0xff] %vm1229_vm6, %v1176_v33  ;;  %1769 = vrot.lane.b32.xlu1 %v1677_v0, %s2903_s26 }
 0x204   : > { %1771 = vrot.lane.b32.xlu0 %v1678_v23, %s2903_s26 }
 0x205   : > { %v1943_v19 = vpop.permute.xlu1 %1942 }
 0x206   : > { %v1945_v3 = vpop.permute.xlu0 %1944  ;;  %2021 = vst.msk [vmem:[#allocation3 + $0x90] sm:$0xff] %vm2002_vm10, %v1943_v19 }
 0x207   : > { %2022 = vst.msk [vmem:[#allocation3 + $0x98] sm:$0xff] %vm2002_vm10, %v1945_v3  ;;  %1193 = vrot.lane.b32.xlu1 %v1677_v0, %s2900_s29 }
 0x208   : > { %1195 = vrot.lane.b32.xlu0 %v1678_v23, %s2900_s29  ;;  %s3924_s29 = scalar_lea.vmem %s4137_s3, %s2734_s18  ;;  %s2697_s18 = sshll.u32 %s4141_s16, 1 }
 0x209   : > { %v1367_v13 = vpop.permute.xlu1 %1366  ;;  %s208_s12 = scalar_lea.vmem %s4138_s4, %s2697_s18 }
 0x20a   : > { %1443 = vst.msk [vmem:[#allocation3 + $0xa0] sm:$0xff] %vm1422_vm7, %v1367_v13  ;;  %v1561_v46 = vpop.permute.xlu0 %1560 }
 0x20b   : > { %1637 = vst.msk [vmem:[#allocation3 + $0xa0] sm:$0xff] %vm1616_vm8, %v1561_v46  ;;  %1962 = vrot.lane.b32.xlu1 %v1870_v4, %s2904_s27 }
 0x20c   : > { %1964 = vrot.lane.b32.xlu0 %v1871_v5, %s2904_s27 }
 0x20d   : > { %v1369_v6 = vpop.permute.xlu1 %1368  ;;  %v2053_v29 = vld [vmem:[#allocation3 + $0x90] sm:$0xff] }
 0x20e   : > { %v2054_v51 = vld [vmem:[#allocation3 + $0x98] sm:$0xff]  ;;  %1444 = vst.msk [vmem:[#allocation3 + $0xa8] sm:$0xff] %vm1422_vm7, %v1369_v6  ;;  %v1563_v7 = vpop.permute.xlu0 %1562  ;;  %2822 = vmatprep.mubr.msk.f32.mxu1 %vm2076_vm11, %v2053_v29 }
 0x20f   : > { %1638 = vst.msk [vmem:[#allocation3 + $0xa8] sm:$0xff] %vm1616_vm8, %v1563_v7  ;;  %1386 = vrot.lane.b32.xlu1 %v1870_v4, %s2901_s8  ;;  %2823 = vmatmul.mubr.msk.f32.gmra.mrb[2].mxu1 %vm2076_vm11, %v2054_v51 }
 0x210   : > { %1580 = vrot.lane.b32.xlu0 %v1486_v55, %s2902_s13 }
 0x211   : > { %v985_v38 = vpop.permute.xlu1 %984 }
 0x212   : > { %1059 = vst.msk [vmem:[#allocation3 + $0xb0] sm:$0xff] %vm1036_vm5, %v985_v38  ;;  %v987_v28 = vpop.permute.xlu0 %986 }
 0x213   : > { %1060 = vst.msk [vmem:[#allocation3 + $0xb8] sm:$0xff] %vm1036_vm5, %v987_v28  ;;  %1388 = vrot.lane.b32.xlu1 %v1871_v5, %s2901_s8 }
 0x214   : > { %1773 = vrot.lane.b32.xlu0 %v1679_v41, %s2903_s26 }
 0x215   : > { %v1754_v17 = vpop.permute.xlu1 %1753 }
 0x216   : > { %1830 = vst.msk [vmem:[#allocation3 + $0xa0] sm:$0xff] %vm1809_vm9, %v1754_v17  ;;  %v1756_v54 = vpop.permute.xlu0 %1755 }
 0x217   : > { %1831 = vst.msk [vmem:[#allocation3 + $0xa8] sm:$0xff] %vm1809_vm9, %v1756_v54  ;;  %1582 = vrot.lane.b32.xlu1 %v1487_v35, %s2902_s13 }
 0x218   : > { %1966 = vrot.lane.b32.xlu0 %v1872_v24, %s2904_s27 }
 0x219   : > { %v1178_v30 = vpop.permute.xlu1 %1177 }
 0x21a   : > { %1252 = vst.msk [vmem:[#allocation3 + $0xb0] sm:$0xff] %vm1229_vm6, %v1178_v30  ;;  %v1180_v48 = vpop.permute.xlu0 %1179 }
 0x21b   : > { %1253 = vst.msk [vmem:[#allocation3 + $0xb8] sm:$0xff] %vm1229_vm6, %v1180_v48  ;;  %1775 = vrot.lane.b32.xlu1 %v1680_v1, %s2903_s26 }
 0x21d   : > { %v2797_v22 = vpop.f32.mrb[0].mxu0  ;;  %v1947_v18 = vpop.permute.xlu1 %1946 }
 0x21e   : > { %2399 = vst.msk [vmem:[%s3924_s29 + $0x8] sm:$0xff] %vm347_vm0, %v2797_v22  ;;  %v2431_v58 = vsel %vm347_vm0, %v2797_v22, 0.0  ;;  %v2501_v8 = vmul.f32 %v2797_v22, %v2797_v22  ;;  %v1949_v16 = vpop.permute.xlu0 %1948  ;;  %v2239_v25 = vpop.f32.mrb[1].mxu0 }
 0x21f   : > { %2023 = vst.msk [vmem:[#allocation3 + $0xa0] sm:$0xff] %vm2002_vm10, %v1947_v18  ;;  %2024 = vst.msk [vmem:[#allocation3 + $0xa8] sm:$0xff] %vm2002_vm10, %v1949_v16  ;;  %v2430_v34 = vsel %vm347_vm0, %v2239_v25, 0.0  ;;  %v2500_v37 = vmul.f32 %v2239_v25, %v2239_v25  ;;  %1968 = vrot.lane.b32.xlu1 %v1873_v50, %s2904_s27 }
 0x220   : > { %2398 = vst.msk [vmem:[%s3924_s29] sm:$0xff] %vm347_vm0, %v2239_v25  ;;  %v2533_v32 = vsel %vm347_vm0, %v2501_v8, 0.0  ;;  %v2432_v40 = vadd.f32 %v2431_v58, %v2430_v34 }
 0x221   : > { %v2532_v43 = vsel %vm347_vm0, %v2500_v37, 0.0  ;;  %v1371_v15 = vpop.permute.xlu1 %1370 }
 0x222   : > { %v2534_v10 = vadd.f32 %v2533_v32, %v2532_v43  ;;  %1445 = vst.msk [vmem:[#allocation3 + $0xb0] sm:$0xff] %vm1422_vm7, %v1371_v15  ;;  %v1565_v56 = vpop.permute.xlu0 %1564 }
 0x223   : > { %1639 = vst.msk [vmem:[#allocation3 + $0xb0] sm:$0xff] %vm1616_vm8, %v1565_v56 }
 0x225   : > { %v1373_v12 = vpop.permute.xlu1 %1372 }
 0x226   : > { %v2055_v31 = vld [vmem:[#allocation3 + $0xa0] sm:$0xff]  ;;  %1446 = vst.msk [vmem:[#allocation3 + $0xb8] sm:$0xff] %vm1422_vm7, %v1373_v12  ;;  %v1567_v59 = vpop.permute.xlu0 %1566  ;;  %v2056_v57 = vld [vmem:[#allocation3 + $0xa8] sm:$0xff] }
 0x227   : > { %2825 = vmatprep.mubr.msk.f32.mxu1 %vm2076_vm11, %v2055_v31  ;;  %1640 = vst.msk [vmem:[#allocation3 + $0xb8] sm:$0xff] %vm1616_vm8, %v1567_v59 }
 0x228   : > { %2826 = vmatmul.mubr.msk.f32.gmra.mrb[4].mxu1 %vm2076_vm11, %v2056_v57 }
 0x229   : > { %v989_v2 = vpop.permute.xlu1 %988 }
 0x22a   : > { %1061 = vst.msk [vmem:[#allocation3 + $0xc0] sm:$0xff] %vm1036_vm5, %v989_v2  ;;  %v991_v11 = vpop.permute.xlu0 %990 }
 0x22b   : > { %1062 = vst.msk [vmem:[#allocation3 + $0xc8] sm:$0xff] %vm1036_vm5, %v991_v11 }
 0x22d   : > { %v1758_v60 = vpop.permute.xlu1 %1757 }
 0x22e   : > { %1832 = vst.msk [vmem:[#allocation3 + $0xb0] sm:$0xff] %vm1809_vm9, %v1758_v60  ;;  %v1760_v27 = vpop.permute.xlu0 %1759 }
 0x22f   : > { %1833 = vst.msk [vmem:[#allocation3 + $0xb8] sm:$0xff] %vm1809_vm9, %v1760_v27 }
 0x231   : > { %v1182_v42 = vpop.permute.xlu1 %1181  ;;  %v2800_v45 = vpop.f32.mrb[2].mxu0 }
 0x232   : > { %1254 = vst.msk [vmem:[#allocation3 + $0xc0] sm:$0xff] %vm1229_vm6, %v1182_v42  ;;  %v1184_v20 = vpop.permute.xlu0 %1183  ;;  %v2249_v14 = vpop.f32.mrb[3].mxu0  ;;  %v2503_v36 = vmul.f32 %v2800_v45, %v2800_v45  ;;  %v2435_v53 = vsel %vm347_vm0, %v2800_v45, 0.0 }
 0x233   : > { %2401 = vst.msk [vmem:[%s3924_s29 + $0x18] sm:$0xff] %vm347_vm0, %v2800_v45  ;;  %2400 = vst.msk [vmem:[%s3924_s29 + $0x10] sm:$0xff] %vm347_vm0, %v2249_v14  ;;  %v2433_v39 = vsel %vm347_vm0, %v2249_v14, 0.0  ;;  %v2502_v47 = vmul.f32 %v2249_v14, %v2249_v14 }
 0x234   : > { %1255 = vst.msk [vmem:[#allocation3 + $0xc8] sm:$0xff] %vm1229_vm6, %v1184_v20  ;;  %v2434_v9 = vadd.f32 %v2433_v39, %v2432_v40  ;;  %v2537_v49 = vsel %vm347_vm0, %v2503_v36, 0.0 }
 0x235   : > { %v2535_v44 = vsel %vm347_vm0, %v2502_v47, 0.0  ;;  %v1951_v61 = vpop.permute.xlu1 %1950 }
 0x236   : > { %v2536_v21 = vadd.f32 %v2535_v44, %v2534_v10  ;;  %2025 = vst.msk [vmem:[#allocation3 + $0xb0] sm:$0xff] %vm2002_vm10, %v1951_v61  ;;  %v1953_v62 = vpop.permute.xlu0 %1952  ;;  %v2436_v52 = vadd.f32 %v2435_v53, %v2434_v9 }
 0x237   : > { %2026 = vst.msk [vmem:[#allocation3 + $0xb8] sm:$0xff] %vm2002_vm10, %v1953_v62 }
 0x238   : > { %v2538_v63 = vadd.f32 %v2537_v49, %v2536_v21 }
 0x239   : > { %v1375_v0 = vpop.permute.xlu1 %1374 }
 0x23a   : > { %1447 = vst.msk [vmem:[#allocation3 + $0xc0] sm:$0xff] %vm1422_vm7, %v1375_v0  ;;  %v1569_v26 = vpop.permute.xlu0 %1568 }
 0x23b   : > { %1641 = vst.msk [vmem:[#allocation3 + $0xc0] sm:$0xff] %vm1616_vm8, %v1569_v26 }
 0x23d   : > { %v1377_v33 = vpop.permute.xlu1 %1376  ;;  %v2057_v23 = vld [vmem:[#allocation3 + $0xb0] sm:$0xff] }
 0x23e   : > { %1448 = vst.msk [vmem:[#allocation3 + $0xc8] sm:$0xff] %vm1422_vm7, %v1377_v33  ;;  %v1571_v19 = vpop.permute.xlu0 %1570  ;;  %2828 = vmatprep.mubr.msk.f32.mxu1 %vm2076_vm11, %v2057_v23  ;;  %v2058_v3 = vld [vmem:[#allocation3 + $0xb8] sm:$0xff] }
 0x23f   : > { %1642 = vst.msk [vmem:[#allocation3 + $0xc8] sm:$0xff] %vm1616_vm8, %v1571_v19  ;;  %2829 = vmatmul.mubr.msk.f32.gmra.mrb[6].mxu1 %vm2076_vm11, %v2058_v3 }
 0x241   : > { %v993_v4 = vpop.permute.xlu1 %992 }
 0x242   : > { %1063 = vst.msk [vmem:[#allocation3 + $0xd0] sm:$0xff] %vm1036_vm5, %v993_v4  ;;  %v995_v13 = vpop.permute.xlu0 %994 }
 0x243   : > { %1064 = vst.msk [vmem:[#allocation3 + $0xd8] sm:$0xff] %vm1036_vm5, %v995_v13 }
 0x245   : > { %v1762_v5 = vpop.permute.xlu1 %1761  ;;  %v2803_v46 = vpop.f32.mrb[4].mxu0 }
 0x246   : > { %1834 = vst.msk [vmem:[#allocation3 + $0xc0] sm:$0xff] %vm1809_vm9, %v1762_v5  ;;  %v1764_v6 = vpop.permute.xlu0 %1763  ;;  %v2259_v29 = vpop.f32.mrb[5].mxu0  ;;  %v2505_v51 = vmul.f32 %v2803_v46, %v2803_v46  ;;  %v2439_v41 = vsel %vm347_vm0, %v2803_v46, 0.0 }
 0x247   : > { %2403 = vst.msk [vmem:[%s3924_s29 + $0x28] sm:$0xff] %vm347_vm0, %v2803_v46  ;;  %2402 = vst.msk [vmem:[%s3924_s29 + $0x20] sm:$0xff] %vm347_vm0, %v2259_v29  ;;  %v2437_v55 = vsel %vm347_vm0, %v2259_v29, 0.0  ;;  %v2504_v7 = vmul.f32 %v2259_v29, %v2259_v29 }
 0x248   : > { %1835 = vst.msk [vmem:[#allocation3 + $0xc8] sm:$0xff] %vm1809_vm9, %v1764_v6  ;;  %v2438_v38 = vadd.f32 %v2437_v55, %v2436_v52  ;;  %v2541_v1 = vsel %vm347_vm0, %v2505_v51, 0.0 }
 0x249   : > { %v2539_v28 = vsel %vm347_vm0, %v2504_v7, 0.0  ;;  %v1186_v35 = vpop.permute.xlu1 %1185 }
 0x24a   : > { %v2540_v17 = vadd.f32 %v2539_v28, %v2538_v63  ;;  %1256 = vst.msk [vmem:[#allocation3 + $0xd0] sm:$0xff] %vm1229_vm6, %v1186_v35  ;;  %v1188_v24 = vpop.permute.xlu0 %1187  ;;  %v2440_v54 = vadd.f32 %v2439_v41, %v2438_v38 }
 0x24b   : > { %1257 = vst.msk [vmem:[#allocation3 + $0xd8] sm:$0xff] %vm1229_vm6, %v1188_v24 }
 0x24c   : > { %v2542_v30 = vadd.f32 %v2541_v1, %v2540_v17 }
 0x24d   : > { %v1955_v48 = vpop.permute.xlu1 %1954 }
 0x24e   : > { %2027 = vst.msk [vmem:[#allocation3 + $0xc0] sm:$0xff] %vm2002_vm10, %v1955_v48  ;;  %v1957_v50 = vpop.permute.xlu0 %1956 }
 0x24f   : > { %2028 = vst.msk [vmem:[#allocation3 + $0xc8] sm:$0xff] %vm2002_vm10, %v1957_v50 }
 0x251   : > { %v1379_v22 = vpop.permute.xlu1 %1378 }
 0x252   : > { %1449 = vst.msk [vmem:[#allocation3 + $0xd0] sm:$0xff] %vm1422_vm7, %v1379_v22  ;;  %v1573_v18 = vpop.permute.xlu0 %1572 }
 0x253   : > { %1643 = vst.msk [vmem:[#allocation3 + $0xd0] sm:$0xff] %vm1616_vm8, %v1573_v18 }
 0x255   : > { %v1381_v58 = vpop.permute.xlu1 %1380  ;;  %v2059_v8 = vld [vmem:[#allocation3 + $0xc0] sm:$0xff] }
 0x256   : > { %1450 = vst.msk [vmem:[#allocation3 + $0xd8] sm:$0xff] %vm1422_vm7, %v1381_v58  ;;  %v1575_v16 = vpop.permute.xlu0 %1574  ;;  %2831 = vmatprep.mubr.msk.f32.mxu1 %vm2076_vm11, %v2059_v8  ;;  %v2060_v25 = vld [vmem:[#allocation3 + $0xc8] sm:$0xff] }
 0x257   : > { %1644 = vst.msk [vmem:[#allocation3 + $0xd8] sm:$0xff] %vm1616_vm8, %v1575_v16  ;;  %2832 = vmatmul.mubr.msk.f32.gmra.mrb[8].mxu1 %vm2076_vm11, %v2060_v25 }
 0x259   : > { %v997_v34 = vpop.permute.xlu1 %996  ;;  %v2806_v37 = vpop.f32.mrb[6].mxu0 }
 0x25a   : > { %1065 = vst.msk [vmem:[#allocation3 + $0xe0] sm:$0xff] %vm1036_vm5, %v997_v34  ;;  %v999_v32 = vpop.permute.xlu0 %998  ;;  %v2269_v40 = vpop.f32.mrb[7].mxu0  ;;  %v2507_v43 = vmul.f32 %v2806_v37, %v2806_v37  ;;  %v2443_v12 = vsel %vm347_vm0, %v2806_v37, 0.0 }
 0x25b   : > { %2405 = vst.msk [vmem:[%s3924_s29 + $0x38] sm:$0xff] %vm347_vm0, %v2806_v37  ;;  %2404 = vst.msk [vmem:[%s3924_s29 + $0x30] sm:$0xff] %vm347_vm0, %v2269_v40  ;;  %v2441_v15 = vsel %vm347_vm0, %v2269_v40, 0.0  ;;  %v2506_v10 = vmul.f32 %v2269_v40, %v2269_v40 }
 0x25c   : > { %1066 = vst.msk [vmem:[#allocation3 + $0xe8] sm:$0xff] %vm1036_vm5, %v999_v32  ;;  %v2442_v56 = vadd.f32 %v2441_v15, %v2440_v54  ;;  %v2545_v60 = vsel %vm347_vm0, %v2507_v43, 0.0 }
 0x25d   : > { %v2543_v31 = vsel %vm347_vm0, %v2506_v10, 0.0  ;;  %v1766_v59 = vpop.permute.xlu1 %1765 }
 0x25e   : > { %v2544_v57 = vadd.f32 %v2543_v31, %v2542_v30  ;;  %1836 = vst.msk [vmem:[#allocation3 + $0xd0] sm:$0xff] %vm1809_vm9, %v1766_v59  ;;  %v1768_v2 = vpop.permute.xlu0 %1767  ;;  %v2444_v11 = vadd.f32 %v2443_v12, %v2442_v56 }
 0x25f   : > { %1837 = vst.msk [vmem:[#allocation3 + $0xd8] sm:$0xff] %vm1809_vm9, %v1768_v2 }
 0x260   : > { %v2546_v27 = vadd.f32 %v2545_v60, %v2544_v57 }
 0x261   : > { %v1190_v42 = vpop.permute.xlu1 %1189 }
 0x262   : > { %1258 = vst.msk [vmem:[#allocation3 + $0xe0] sm:$0xff] %vm1229_vm6, %v1190_v42  ;;  %v1192_v45 = vpop.permute.xlu0 %1191 }
 0x263   : > { %1259 = vst.msk [vmem:[#allocation3 + $0xe8] sm:$0xff] %vm1229_vm6, %v1192_v45 }
 0x265   : > { %v1959_v20 = vpop.permute.xlu1 %1958 }
 0x266   : > { %2029 = vst.msk [vmem:[#allocation3 + $0xd0] sm:$0xff] %vm2002_vm10, %v1959_v20  ;;  %v1961_v14 = vpop.permute.xlu0 %1960 }
 0x267   : > { %2030 = vst.msk [vmem:[#allocation3 + $0xd8] sm:$0xff] %vm2002_vm10, %v1961_v14 }
 0x269   : > { %v1383_v36 = vpop.permute.xlu1 %1382 }
 0x26a   : > { %1451 = vst.msk [vmem:[#allocation3 + $0xe0] sm:$0xff] %vm1422_vm7, %v1383_v36  ;;  %v1577_v39 = vpop.permute.xlu0 %1576  ;;  %v2809_v47 = vpop.f32.mrb[8].mxu0 }
 0x26b   : > { %1645 = vst.msk [vmem:[#allocation3 + $0xe0] sm:$0xff] %vm1616_vm8, %v1577_v39  ;;  %v2509_v9 = vmul.f32 %v2809_v47, %v2809_v47  ;;  %v2279_v53 = vpop.f32.mrb[9].mxu0  ;;  %v2447_v44 = vsel %vm347_vm0, %v2809_v47, 0.0 }
 0x26c   : > { %2407 = vst.msk [vmem:[%s3924_s29 + $0x48] sm:$0xff] %vm347_vm0, %v2809_v47  ;;  %2406 = vst.msk [vmem:[%s3924_s29 + $0x40] sm:$0xff] %vm347_vm0, %v2279_v53  ;;  %v2445_v61 = vsel %vm347_vm0, %v2279_v53, 0.0  ;;  %v2508_v21 = vmul.f32 %v2279_v53, %v2279_v53 }
 0x26d   : > { %v2446_v62 = vadd.f32 %v2445_v61, %v2444_v11  ;;  %v1385_v52 = vpop.permute.xlu1 %1384  ;;  %v2061_v49 = vld [vmem:[#allocation3 + $0xd0] sm:$0xff]  ;;  %v2549_v63 = vsel %vm347_vm0, %v2509_v9, 0.0 }
 0x26e   : > { %v2547_v0 = vsel %vm347_vm0, %v2508_v21, 0.0  ;;  %1452 = vst.msk [vmem:[#allocation3 + $0xe8] sm:$0xff] %vm1422_vm7, %v1385_v52  ;;  %v1579_v26 = vpop.permute.xlu0 %1578  ;;  %2834 = vmatprep.mubr.msk.f32.mxu1 %vm2076_vm11, %v2061_v49  ;;  %v2062_v33 = vld [vmem:[#allocation3 + $0xd8] sm:$0xff] }
 0x26f   : > { %v2548_v23 = vadd.f32 %v2547_v0, %v2546_v27  ;;  %1646 = vst.msk [vmem:[#allocation3 + $0xe8] sm:$0xff] %vm1616_vm8, %v1579_v26  ;;  %2835 = vmatmul.mubr.msk.f32.gmra.mrb[10].mxu1 %vm2076_vm11, %v2062_v33  ;;  %v2448_v19 = vadd.f32 %v2447_v44, %v2446_v62 }
 0x271   : > { %v1001_v3 = vpop.permute.xlu1 %1000  ;;  %v2550_v4 = vadd.f32 %v2549_v63, %v2548_v23 }
 0x272   : > { %1067 = vst.msk [vmem:[#allocation3 + $0xf0] sm:$0xff] %vm1036_vm5, %v1001_v3  ;;  %v1003_v13 = vpop.permute.xlu0 %1002 }
 0x273   : > { %1068 = vst.msk [vmem:[#allocation3 + $0xf8] sm:$0xff] %vm1036_vm5, %v1003_v13 }
 0x275   : > { %v1770_v5 = vpop.permute.xlu1 %1769 }
 0x276   : > { %1838 = vst.msk [vmem:[#allocation3 + $0xe0] sm:$0xff] %vm1809_vm9, %v1770_v5  ;;  %v1772_v46 = vpop.permute.xlu0 %1771 }
 0x277   : > { %1839 = vst.msk [vmem:[#allocation3 + $0xe8] sm:$0xff] %vm1809_vm9, %v1772_v46 }
 0x279   : > { %v1194_v6 = vpop.permute.xlu1 %1193 }
 0x27a   : > { %1260 = vst.msk [vmem:[#allocation3 + $0xf0] sm:$0xff] %vm1229_vm6, %v1194_v6  ;;  %v1196_v29 = vpop.permute.xlu0 %1195 }
 0x27b   : > { %1261 = vst.msk [vmem:[#allocation3 + $0xf8] sm:$0xff] %vm1229_vm6, %v1196_v29 }
 0x27d   : > { %v1963_v51 = vpop.permute.xlu1 %1962 }
 0x27e   : > { %2031 = vst.msk [vmem:[#allocation3 + $0xe0] sm:$0xff] %vm2002_vm10, %v1963_v51  ;;  %v1965_v55 = vpop.permute.xlu0 %1964 }
 0x27f   : > { %2032 = vst.msk [vmem:[#allocation3 + $0xe8] sm:$0xff] %vm2002_vm10, %v1965_v55 }
 0x281   : > { %v1387_v7 = vpop.permute.xlu1 %1386 }
 0x282   : > { %1453 = vst.msk [vmem:[#allocation3 + $0xf0] sm:$0xff] %vm1422_vm7, %v1387_v7  ;;  %v2812_v38 = vpop.f32.mrb[10].mxu0  ;;  %v1581_v41 = vpop.permute.xlu0 %1580 }
 0x283   : > { %2409 = vst.msk [vmem:[%s3924_s29 + $0x58] sm:$0xff] %vm347_vm0, %v2812_v38  ;;  %v2511_v28 = vmul.f32 %v2812_v38, %v2812_v38  ;;  %v2289_v35 = vpop.f32.mrb[11].mxu0  ;;  %v2451_v17 = vsel %vm347_vm0, %v2812_v38, 0.0 }
 0x284   : > { %1647 = vst.msk [vmem:[#allocation3 + $0xf0] sm:$0xff] %vm1616_vm8, %v1581_v41  ;;  %v2449_v24 = vsel %vm347_vm0, %v2289_v35, 0.0  ;;  %v2510_v54 = vmul.f32 %v2289_v35, %v2289_v35 }
 0x285   : > { %2408 = vst.msk [vmem:[%s3924_s29 + $0x50] sm:$0xff] %vm347_vm0, %v2289_v35  ;;  %v2450_v1 = vadd.f32 %v2449_v24, %v2448_v19  ;;  %v1389_v30 = vpop.permute.xlu1 %1388  ;;  %v2063_v48 = vld [vmem:[#allocation3 + $0xe0] sm:$0xff]  ;;  %v2553_v50 = vsel %vm347_vm0, %v2511_v28, 0.0 }
 0x286   : > { %v2551_v22 = vsel %vm347_vm0, %v2510_v54, 0.0  ;;  %1454 = vst.msk [vmem:[#allocation3 + $0xf8] sm:$0xff] %vm1422_vm7, %v1389_v30  ;;  %2837 = vmatprep.mubr.msk.f32.mxu1 %vm2076_vm11, %v2063_v48  ;;  %v2064_v18 = vld [vmem:[#allocation3 + $0xe8] sm:$0xff]  ;;  %v1774_v58 = vpop.permute.xlu0 %1773 }
 0x287   : > { %v2552_v8 = vadd.f32 %v2551_v22, %v2550_v4  ;;  %2838 = vmatmul.mubr.msk.f32.gmra.mrb[12].mxu1 %vm2076_vm11, %v2064_v18  ;;  %1840 = vst.msk [vmem:[#allocation3 + $0xf0] sm:$0xff] %vm1809_vm9, %v1774_v58  ;;  %v2452_v16 = vadd.f32 %v2451_v17, %v2450_v1 }
 0x289   : > { %v1583_v25 = vpop.permute.xlu1 %1582  ;;  %v2554_v34 = vadd.f32 %v2553_v50, %v2552_v8 }
 0x28a   : > { %1648 = vst.msk [vmem:[#allocation3 + $0xf8] sm:$0xff] %vm1616_vm8, %v1583_v25  ;;  %v1967_v37 = vpop.permute.xlu0 %1966 }
 0x28b   : > { %2033 = vst.msk [vmem:[#allocation3 + $0xf0] sm:$0xff] %vm2002_vm10, %v1967_v37 }
 0x28d   : > { %v1776_v32 = vpop.permute.xlu1 %1775 }
 0x28e   : > { %1841 = vst.msk [vmem:[#allocation3 + $0xf8] sm:$0xff] %vm1809_vm9, %v1776_v32 }
 0x291   : > { %v1969_v40 = vpop.permute.xlu1 %1968 }
 0x292   : > { %2034 = vst.msk [vmem:[#allocation3 + $0xf8] sm:$0xff] %vm2002_vm10, %v1969_v40  ;;  %v2065_v43 = vld [vmem:[#allocation3 + $0xf0] sm:$0xff] }
 0x293   : > { %2840 = vmatprep.mubr.msk.f32.mxu1 %vm2076_vm11, %v2065_v43 }
 0x299   : > { %v2066_v15 = vld [vmem:[#allocation3 + $0xf8] sm:$0xff] }
 0x29a   : > { %v2815_v10 = vpop.f32.mrb[12].mxu0  ;;  %2841 = vmatmul.mubr.msk.f32.gmra.mrb[14].mxu1 %vm2076_vm11, %v2066_v15 }
 0x29b   : > { %2411 = vst.msk [vmem:[%s3924_s29 + $0x68] sm:$0xff] %vm347_vm0, %v2815_v10  ;;  %v2513_v56 = vmul.f32 %v2815_v10, %v2815_v10  ;;  %v2299_v12 = vpop.f32.mrb[13].mxu0  ;;  %v2455_v31 = vsel %vm347_vm0, %v2815_v10, 0.0 }
 0x29c   : > { %2410 = vst.msk [vmem:[%s3924_s29 + $0x60] sm:$0xff] %vm347_vm0, %v2299_v12  ;;  %v2453_v59 = vsel %vm347_vm0, %v2299_v12, 0.0  ;;  %v2512_v57 = vmul.f32 %v2299_v12, %v2299_v12 }
 0x29d   : > { %v2454_v2 = vadd.f32 %v2453_v59, %v2452_v16  ;;  %v2557_v11 = vsel %vm347_vm0, %v2513_v56, 0.0 }
 0x29e   : > { %v2555_v60 = vsel %vm347_vm0, %v2512_v57, 0.0 }
 0x29f   : > { %v2556_v27 = vadd.f32 %v2555_v60, %v2554_v34  ;;  %v2456_v42 = vadd.f32 %v2455_v31, %v2454_v2 }
 0x2a1   : > { %v2558_v45 = vadd.f32 %v2557_v11, %v2556_v27 }
 0x2b2   : > { %v2818_v20 = vpop.f32.mrb[14].mxu0 }
 0x2b3   : > { %2413 = vst.msk [vmem:[%s3924_s29 + $0x78] sm:$0xff] %vm347_vm0, %v2818_v20  ;;  %v2515_v14 = vmul.f32 %v2818_v20, %v2818_v20  ;;  %v2309_v36 = vpop.f32.mrb[15].mxu0  ;;  %v2459_v39 = vsel %vm347_vm0, %v2818_v20, 0.0 }
 0x2b4   : > { %2412 = vst.msk [vmem:[%s3924_s29 + $0x70] sm:$0xff] %vm347_vm0, %v2309_v36  ;;  %v2457_v47 = vsel %vm347_vm0, %v2309_v36, 0.0  ;;  %v2514_v9 = vmul.f32 %v2309_v36, %v2309_v36 }
 0x2b5   : > { %v2458_v53 = vadd.f32 %v2457_v47, %v2456_v42  ;;  %v2561_v44 = vsel %vm347_vm0, %v2515_v14, 0.0 }
 0x2b6   : > { %v2559_v61 = vsel %vm347_vm0, %v2514_v9, 0.0 }
 0x2b7   : > { %v2460_v21 = vadd.f32 %v2459_v39, %v2458_v53  ;;  %v2560_v62 = vadd.f32 %v2559_v61, %v2558_v45 }
 0x2b9   : > { %v2562_v52 = vadd.f32 %v2561_v44, %v2560_v62 }
 0x2ca   : > { %v2821_v49 = vpop.f32.mrb[0].mxu1 }
 0x2cb   : > { %2415 = vst.msk [vmem:[%s3924_s29 + $0x88] sm:$0xff] %vm347_vm0, %v2821_v49  ;;  %v2517_v63 = vmul.f32 %v2821_v49, %v2821_v49  ;;  %v2319_v0 = vpop.f32.mrb[1].mxu1  ;;  %v2463_v26 = vsel %vm347_vm0, %v2821_v49, 0.0 }
 0x2cc   : > { %2414 = vst.msk [vmem:[%s3924_s29 + $0x80] sm:$0xff] %vm347_vm0, %v2319_v0  ;;  %v2461_v33 = vsel %vm347_vm0, %v2319_v0, 0.0  ;;  %v2516_v23 = vmul.f32 %v2319_v0, %v2319_v0 }
 0x2cd   : > { %v2462_v19 = vadd.f32 %v2461_v33, %v2460_v21  ;;  %v2565_v3 = vsel %vm347_vm0, %v2517_v63, 0.0 }
 0x2ce   : > { %v2563_v4 = vsel %vm347_vm0, %v2516_v23, 0.0 }
 0x2cf   : > { %v2564_v13 = vadd.f32 %v2563_v4, %v2562_v52  ;;  %v2464_v5 = vadd.f32 %v2463_v26, %v2462_v19 }
 0x2d1   : > { %v2566_v46 = vadd.f32 %v2565_v3, %v2564_v13 }
 0x2e2   : > { %v2824_v6 = vpop.f32.mrb[2].mxu1 }
 0x2e3   : > { %2417 = vst.msk [vmem:[%s3924_s29 + $0x98] sm:$0xff] %vm347_vm0, %v2824_v6  ;;  %v2519_v29 = vmul.f32 %v2824_v6, %v2824_v6  ;;  %v2329_v51 = vpop.f32.mrb[3].mxu1  ;;  %v2467_v55 = vsel %vm347_vm0, %v2824_v6, 0.0 }
 0x2e4   : > { %2416 = vst.msk [vmem:[%s3924_s29 + $0x90] sm:$0xff] %vm347_vm0, %v2329_v51  ;;  %v2465_v7 = vsel %vm347_vm0, %v2329_v51, 0.0  ;;  %v2518_v38 = vmul.f32 %v2329_v51, %v2329_v51 }
 0x2e5   : > { %v2466_v41 = vadd.f32 %v2465_v7, %v2464_v5  ;;  %v2569_v28 = vsel %vm347_vm0, %v2519_v29, 0.0 }
 0x2e6   : > { %v2567_v35 = vsel %vm347_vm0, %v2518_v38, 0.0 }
 0x2e7   : > { %v2568_v17 = vadd.f32 %v2567_v35, %v2566_v46  ;;  %v2468_v24 = vadd.f32 %v2467_v55, %v2466_v41 }
 0x2e9   : > { %v2570_v54 = vadd.f32 %v2569_v28, %v2568_v17 }
 0x2fb   : > { %v2827_v1 = vpop.f32.mrb[4].mxu1 }
 0x2fc   : > { %2419 = vst.msk [vmem:[%s3924_s29 + $0xa8] sm:$0xff] %vm347_vm0, %v2827_v1  ;;  %v2521_v30 = vmul.f32 %v2827_v1, %v2827_v1  ;;  %v2339_v48 = vpop.f32.mrb[5].mxu1  ;;  %v2471_v50 = vsel %vm347_vm0, %v2827_v1, 0.0 }
 0x2fd   : > { %2418 = vst.msk [vmem:[%s3924_s29 + $0xa0] sm:$0xff] %vm347_vm0, %v2339_v48  ;;  %v2469_v22 = vsel %vm347_vm0, %v2339_v48, 0.0  ;;  %v2520_v18 = vmul.f32 %v2339_v48, %v2339_v48 }
 0x2fe   : > { %v2470_v58 = vadd.f32 %v2469_v22, %v2468_v24  ;;  %v2573_v8 = vsel %vm347_vm0, %v2521_v30, 0.0 }
 0x2ff   : > { %v2571_v16 = vsel %vm347_vm0, %v2520_v18, 0.0 }
 0x300   : > { %v2572_v25 = vadd.f32 %v2571_v16, %v2570_v54  ;;  %v2472_v34 = vadd.f32 %v2471_v50, %v2470_v58 }
 0x302   : > { %v2574_v37 = vadd.f32 %v2573_v8, %v2572_v25 }
 0x312   : > { %v2830_v32 = vpop.f32.mrb[6].mxu1 }
 0x313   : > { %2421 = vst.msk [vmem:[%s3924_s29 + $0xb8] sm:$0xff] %vm347_vm0, %v2830_v32  ;;  %v2523_v40 = vmul.f32 %v2830_v32, %v2830_v32  ;;  %v2349_v43 = vpop.f32.mrb[7].mxu1  ;;  %v2475_v15 = vsel %vm347_vm0, %v2830_v32, 0.0 }
 0x314   : > { %2420 = vst.msk [vmem:[%s3924_s29 + $0xb0] sm:$0xff] %vm347_vm0, %v2349_v43  ;;  %v2473_v10 = vsel %vm347_vm0, %v2349_v43, 0.0  ;;  %v2522_v56 = vmul.f32 %v2349_v43, %v2349_v43 }
 0x315   : > { %v2474_v12 = vadd.f32 %v2473_v10, %v2472_v34  ;;  %v2577_v31 = vsel %vm347_vm0, %v2523_v40, 0.0 }
 0x316   : > { %v2575_v59 = vsel %vm347_vm0, %v2522_v56, 0.0 }
 0x317   : > { %v2576_v57 = vadd.f32 %v2575_v59, %v2574_v37  ;;  %v2476_v2 = vadd.f32 %v2475_v15, %v2474_v12 }
 0x319   : > { %v2578_v11 = vadd.f32 %v2577_v31, %v2576_v57 }
 0x32a   : > { %v2833_v60 = vpop.f32.mrb[8].mxu1 }
 0x32b   : > { %2423 = vst.msk [vmem:[%s3924_s29 + $0xc8] sm:$0xff] %vm347_vm0, %v2833_v60  ;;  %v2525_v27 = vmul.f32 %v2833_v60, %v2833_v60  ;;  %v2359_v42 = vpop.f32.mrb[9].mxu1  ;;  %v2479_v45 = vsel %vm347_vm0, %v2833_v60, 0.0 }
 0x32c   : > { %2422 = vst.msk [vmem:[%s3924_s29 + $0xc0] sm:$0xff] %vm347_vm0, %v2359_v42  ;;  %v2477_v20 = vsel %vm347_vm0, %v2359_v42, 0.0  ;;  %v2524_v14 = vmul.f32 %v2359_v42, %v2359_v42 }
 0x32d   : > { %v2478_v36 = vadd.f32 %v2477_v20, %v2476_v2  ;;  %v2581_v39 = vsel %vm347_vm0, %v2525_v27, 0.0 }
 0x32e   : > { %v2579_v47 = vsel %vm347_vm0, %v2524_v14, 0.0 }
 0x32f   : > { %v2580_v9 = vadd.f32 %v2579_v47, %v2578_v11  ;;  %v2480_v53 = vadd.f32 %v2479_v45, %v2478_v36 }
 0x331   : > { %v2582_v44 = vadd.f32 %v2581_v39, %v2580_v9 }
 0x342   : > { %v2836_v61 = vpop.f32.mrb[10].mxu1 }
 0x343   : > { %2425 = vst.msk [vmem:[%s3924_s29 + $0xd8] sm:$0xff] %vm347_vm0, %v2836_v61  ;;  %v2527_v21 = vmul.f32 %v2836_v61, %v2836_v61  ;;  %v2369_v62 = vpop.f32.mrb[11].mxu1  ;;  %v2483_v52 = vsel %vm347_vm0, %v2836_v61, 0.0 }
 0x344   : > { %2424 = vst.msk [vmem:[%s3924_s29 + $0xd0] sm:$0xff] %vm347_vm0, %v2369_v62  ;;  %v2481_v49 = vsel %vm347_vm0, %v2369_v62, 0.0  ;;  %v2526_v63 = vmul.f32 %v2369_v62, %v2369_v62 }
 0x345   : > { %v2482_v0 = vadd.f32 %v2481_v49, %v2480_v53  ;;  %v2585_v26 = vsel %vm347_vm0, %v2527_v21, 0.0 }
 0x346   : > { %v2583_v33 = vsel %vm347_vm0, %v2526_v63, 0.0 }
 0x347   : > { %v2584_v23 = vadd.f32 %v2583_v33, %v2582_v44  ;;  %v2484_v19 = vadd.f32 %v2483_v52, %v2482_v0 }
 0x349   : > { %v2586_v3 = vadd.f32 %v2585_v26, %v2584_v23 }
 0x35a   : > { %v2839_v4 = vpop.f32.mrb[12].mxu1 }
 0x35b   : > { %2427 = vst.msk [vmem:[%s3924_s29 + $0xe8] sm:$0xff] %vm347_vm0, %v2839_v4  ;;  %v2529_v13 = vmul.f32 %v2839_v4, %v2839_v4  ;;  %v2379_v5 = vpop.f32.mrb[13].mxu1  ;;  %v2487_v46 = vsel %vm347_vm0, %v2839_v4, 0.0 }
 0x35c   : > { %2426 = vst.msk [vmem:[%s3924_s29 + $0xe0] sm:$0xff] %vm347_vm0, %v2379_v5  ;;  %v2485_v6 = vsel %vm347_vm0, %v2379_v5, 0.0  ;;  %v2528_v29 = vmul.f32 %v2379_v5, %v2379_v5 }
 0x35d   : > { %v2486_v51 = vadd.f32 %v2485_v6, %v2484_v19  ;;  %v2589_v55 = vsel %vm347_vm0, %v2529_v13, 0.0 }
 0x35e   : > { %v2587_v7 = vsel %vm347_vm0, %v2528_v29, 0.0 }
 0x35f   : > { %v2588_v38 = vadd.f32 %v2587_v7, %v2586_v3  ;;  %v2488_v41 = vadd.f32 %v2487_v46, %v2486_v51 }
 0x361   : > { %v2590_v28 = vadd.f32 %v2589_v55, %v2588_v38 }
 0x36d   : > { %v2842_v35 = vpop.f32.mrb[14].mxu1 }
 0x36e   : > { %2429 = vst.msk [vmem:[%s3924_s29 + $0xf8] sm:$0xff] %vm347_vm0, %v2842_v35  ;;  %v2389_v17 = vpop.f32.mrb[15].mxu1  ;;  %v2531_v24 = vmul.f32 %v2842_v35, %v2842_v35  ;;  %v2491_v48 = vsel %vm347_vm0, %v2842_v35, 0.0 }
 0x36f   : > { %2428 = vst.msk [vmem:[%s3924_s29 + $0xf0] sm:$0xff] %vm347_vm0, %v2389_v17  ;;  %v2489_v54 = vsel %vm347_vm0, %v2389_v17, 0.0  ;;  %v2530_v1 = vmul.f32 %v2389_v17, %v2389_v17 }
 0x370   : > { %v2490_v30 = vadd.f32 %v2489_v54, %v2488_v41  ;;  %v2593_v58 = vsel %vm347_vm0, %v2531_v24, 0.0 }
 0x371   : > { %v2591_v50 = vsel %vm347_vm0, %v2530_v1, 0.0 }
 0x372   : > { %v2492_v22 = vadd.f32 %v2491_v48, %v2490_v30  ;;  %v2592_v18 = vadd.f32 %v2591_v50, %v2590_v28 }
 0x374   : > { %v2493_v8 = vrot.slane %v2492_v22, 4  ;;  %v2594_v16 = vadd.f32 %v2593_v58, %v2592_v18 }
 0x376   : > { %v2494_v25 = vadd.f32 %v2493_v8, %v2492_v22  ;;  %v2595_v34 = vrot.slane %v2594_v16, 4 }
 0x378   : > { %v2495_v37 = vrot.slane %v2494_v25, 2  ;;  %v2596_v32 = vadd.f32 %v2595_v34, %v2594_v16 }
 0x37a   : > { %v2496_v40 = vadd.f32 %v2495_v37, %v2494_v25  ;;  %v2597_v43 = vrot.slane %v2596_v32, 2 }
 0x37c   : > { %v2497_v15 = vrot.slane %v2496_v40, 1  ;;  %v2598_v10 = vadd.f32 %v2597_v43, %v2596_v32 }
 0x37e   : > { %v2498_v56 = vadd.f32 %v2497_v15, %v2496_v40  ;;  %v2599_v12 = vrot.slane %v2598_v10, 1 }
 0x380   : > { %2499 = vst.msk [vmem:[%s208_s12] sm:$0x1] %vm356_vm1, %v2498_v56  ;;  %v2600_v31 = vadd.f32 %v2599_v12, %v2598_v10 }
 0x382   : > { %2601 = vst.msk [vmem:[%s208_s12 + $0x1] sm:$0x1] %vm356_vm1, %v2600_v31 }
 0x383 PF: > { %s15_s15 = sadd.s32 1, %s2894_s15  }
 0x384   : > { %p12_p4 = scmp.ge.s32.totalorder %s15_s15, 4  }
 0x386   :  { %14 = sbr.rel (!%p12_p4) target bundleno = 1 (0x1), region = 77 }

// kernel: resblock_forward.3
= control target key start
LH: loop header
LB: loop body
LE: loop exit
PB: predicated region body
PF: predicated region fallthrough
CT: control target
= control target key end

     0   :  { %s3598_s21 = smov 0   ;;  %s5124_s0 = inlined_call_operand.vmem [shape: f32[2,16,16,4], index: 0, kind: input, shape index: {}]   ;;  %s5125_s1 = inlined_call_operand.vmem [shape: f32[36,8], index: 1, kind: input, shape index: {}]   ;;  %s5126_s2 = inlined_call_operand.vmem [shape: f32[4,8], index: 2, kind: input, shape index: {}]   ;;  %s5127_s3 = inlined_call_operand.vmem [shape: f32[2,16,16,8], index: 3, kind: output, shape index: {0}]   ;;  %s5128_s4 = inlined_call_operand.vmem [shape: f32[2,16,16,8], index: 4, kind: output, shape index: {1}]   ;;  %s5129_s5 = inlined_call_operand.vmem [shape: f32[2,2,8], index: 5, kind: output, shape index: {2}]   ;;  %s5130_s6 = inlined_call_operand.vmem [shape: f32[2,2,8], index: 6, kind: output, shape index: {3}]  }
   0x1 LB: > { %s3253_s22 = sadd.s32 4294967295, %s3552_s21   ;;  %p3257_p0 = scmp.ge.s32.totalorder %s3552_s21, 1  ;;  %s3552_s21 = sphi %s3598_s21, %s17_s21  }
   0x2   : > { %p219_p1 = scmp.lt.s32.totalorder %s3552_s21, 3 }
   0x4   : > { %p220_p2 = pnand %p3257_p0, %p219_p1 }
   0x6   : > { %223 = sbr.rel (%p220_p2) target bundleno = 907 (0x38b), region = 32 }
   0xd   : > { %vm317_vm0 = vcmask 31744   ;;  %vm326_vm1 = vcmask 24576   ;;  %vm320_vm2 = vcmask 25600   ;;  %p3608_p3 = scmp.lt.s32.totalorder %s3253_s22, 1  ;;  %v3554_v0 = vmov 0.0   ;;  %s3555_s28 = smov 4  }
   0xe   : > { %318 = vst.msk [vmem:[#allocation2] sm:$0xff] %vm317_vm0, %v3554_v0  ;;  %319 = vst.msk [vmem:[#allocation2 + $0x8] sm:$0xff] %vm317_vm0, %v3554_v0  ;;  %s3556_s29 = smov 8   ;;  %vm946_vm3 = vcmask 64544   ;;  %vm493_vm4 = vcmask 1043456   ;;  %s3557_s8 = smov 12  }
   0xf   : > { %323 = vst.msk [vmem:[#allocation2 + $0x198] sm:$0xff] %vm317_vm0, %v3554_v0  ;;  %324 = vst.msk [vmem:[#allocation2 + $0x1a0] sm:$0xff] %vm317_vm0, %v3554_v0  ;;  %s5219_s22 = smov (!%p3608_p3, %s3253_s22), 1  ;;  %s3558_s9 = smov 16   ;;  %vm1139_vm5 = vcmask 97344   ;;  %vm1332_vm6 = vcmask 130144  }
  0x10   : > { %328 = vst.msk [vmem:[#allocation2 + $0x18] sm:$0x1] %vm326_vm1, %v3554_v0  ;;  %329 = vst.msk [vmem:[#allocation2 + $0x30] sm:$0x1] %vm326_vm1, %v3554_v0  ;;  %s3661_s24 = sshll.u32 %s5219_s22, 8  ;;  %s3559_s10 = smov 20  }
  0x11   : > { %330 = vst.msk [vmem:[#allocation2 + $0x48] sm:$0x1] %vm326_vm1, %v3554_v0  ;;  %331 = vst.msk [vmem:[#allocation2 + $0x60] sm:$0x1] %vm326_vm1, %v3554_v0  ;;  %s3667_s27 = scalar_lea.vmem %s5124_s0, %s3661_s24  ;;  %s3560_s11 = smov 24   ;;  %vm1525_vm7 = vcmask 162944  }
  0x12   : > { %332 = vst.msk [vmem:[#allocation2 + $0x78] sm:$0x1] %vm326_vm1, %v3554_v0  ;;  %333 = vst.msk [vmem:[#allocation2 + $0x90] sm:$0x1] %vm326_vm1, %v3554_v0  ;;  %v285_v1 = vld [vmem:[%s3667_s27] sm:$0xff]  ;;  %v3671_v2 = vld [vmem:[%s3667_s27 + $0x10] sm:$0xff] }
  0x13   : > { %334 = vst.msk [vmem:[#allocation2 + $0xa8] sm:$0x1] %vm326_vm1, %v3554_v0  ;;  %335 = vst.msk [vmem:[#allocation2 + $0xc0] sm:$0x1] %vm326_vm1, %v3554_v0  ;;  %v3674_v3 = vld [vmem:[%s3667_s27 + $0x8] sm:$0xff]  ;;  %v3682_v4 = vld [vmem:[%s3667_s27 + $0x20] sm:$0xff]  ;;  %3409 = vmatprep.mubr.msk.f32.mxu0 %vm317_vm0, %v285_v1 }
  0x14   : > { %336 = vst.msk [vmem:[#allocation2 + $0xd8] sm:$0x1] %vm326_vm1, %v3554_v0  ;;  %337 = vst.msk [vmem:[#allocation2 + $0xf0] sm:$0x1] %vm326_vm1, %v3554_v0  ;;  %v3685_v5 = vld [vmem:[%s3667_s27 + $0x18] sm:$0xff]  ;;  %v3688_v6 = vld [vmem:[%s3667_s27 + $0x30] sm:$0xff] }
  0x15   : > { %338 = vst.msk [vmem:[#allocation2 + $0x108] sm:$0x1] %vm326_vm1, %v3554_v0  ;;  %339 = vst.msk [vmem:[#allocation2 + $0x120] sm:$0x1] %vm326_vm1, %v3554_v0  ;;  %v786_v7 = vld [vmem:[#allocation2 + $0x1] sm:$0xff]  ;;  %v3707_v11 = vld [vmem:[%s3667_s27 + $0x38] sm:$0xff] }
  0x16   : > { %340 = vst.msk [vmem:[#allocation2 + $0x138] sm:$0x1] %vm326_vm1, %v3554_v0  ;;  %341 = vst.msk [vmem:[#allocation2 + $0x150] sm:$0x1] %vm326_vm1, %v3554_v0  ;;  %v3698_v9 = vld [vmem:[%s3667_s27 + $0x28] sm:$0xff]  ;;  %850 = vrot.lane.b32.xlu0 %v786_v7, %s3555_s28  ;;  %v3704_v10 = vld [vmem:[%s3667_s27 + $0x40] sm:$0xff] }
  0x17   : > { %342 = vst.msk [vmem:[#allocation2 + $0x168] sm:$0x1] %vm326_vm1, %v3554_v0  ;;  %343 = vst.msk [vmem:[#allocation2 + $0x180] sm:$0x1] %vm326_vm1, %v3554_v0  ;;  %v3710_v12 = vld [vmem:[%s3667_s27 + $0x50] sm:$0xff]  ;;  %v3719_v13 = vld [vmem:[%s3667_s27 + $0x48] sm:$0xff] }
  0x18   : > { %346 = vst.msk [vmem:[#allocation2 + $0x29] sm:$0x1] %vm326_vm1, %v3554_v0  ;;  %347 = vst.msk [vmem:[#allocation2 + $0x41] sm:$0x1] %vm326_vm1, %v3554_v0  ;;  %v3722_v14 = vld [vmem:[%s3667_s27 + $0x60] sm:$0xff]  ;;  %v3725_v15 = vld [vmem:[%s3667_s27 + $0x58] sm:$0xff] }
  0x19   : > { %348 = vst.msk [vmem:[#allocation2 + $0x59] sm:$0x1] %vm326_vm1, %v3554_v0  ;;  %349 = vst.msk [vmem:[#allocation2 + $0x71] sm:$0x1] %vm326_vm1, %v3554_v0  ;;  %v3734_v16 = vld [vmem:[%s3667_s27 + $0x70] sm:$0xff]  ;;  %v3737_v17 = vld [vmem:[%s3667_s27 + $0x68] sm:$0xff] }
  0x1a   : > { %350 = vst.msk [vmem:[#allocation2 + $0x89] sm:$0x1] %vm326_vm1, %v3554_v0  ;;  %351 = vst.msk [vmem:[#allocation2 + $0xa1] sm:$0x1] %vm326_vm1, %v3554_v0  ;;  %v3740_v18 = vld [vmem:[%s3667_s27 + $0x80] sm:$0xff]  ;;  %v3749_v19 = vld [vmem:[%s3667_s27 + $0x78] sm:$0xff] }
  0x1b   : > { %352 = vst.msk [vmem:[#allocation2 + $0xb9] sm:$0x1] %vm326_vm1, %v3554_v0  ;;  %353 = vst.msk [vmem:[#allocation2 + $0xd1] sm:$0x1] %vm326_vm1, %v3554_v0  ;;  %v3752_v20 = vld [vmem:[%s3667_s27 + $0x90] sm:$0xff]  ;;  %v3755_v21 = vld [vmem:[%s3667_s27 + $0x88] sm:$0xff] }
  0x1c   : > { %354 = vst.msk [vmem:[#allocation2 + $0xe9] sm:$0x1] %vm326_vm1, %v3554_v0  ;;  %355 = vst.msk [vmem:[#allocation2 + $0x101] sm:$0x1] %vm326_vm1, %v3554_v0  ;;  %v3765_v22 = vld [vmem:[%s3667_s27 + $0xa0] sm:$0xff]  ;;  %v3768_v23 = vld [vmem:[%s3667_s27 + $0x98] sm:$0xff] }
  0x1d   : > { %356 = vst.msk [vmem:[#allocation2 + $0x119] sm:$0x1] %vm326_vm1, %v3554_v0  ;;  %357 = vst.msk [vmem:[#allocation2 + $0x131] sm:$0x1] %vm326_vm1, %v3554_v0  ;;  %v3771_v24 = vld [vmem:[%s3667_s27 + $0xb0] sm:$0xff]  ;;  %v3788_v28 = vld [vmem:[%s3667_s27 + $0xa8] sm:$0xff] }
  0x1e   : > { %358 = vst.msk [vmem:[#allocation2 + $0x149] sm:$0x1] %vm326_vm1, %v3554_v0  ;;  %359 = vst.msk [vmem:[#allocation2 + $0x161] sm:$0x1] %vm326_vm1, %v3554_v0  ;;  %v3791_v29 = vld [vmem:[%s3667_s27 + $0xc0] sm:$0xff]  ;;  %v3810_v33 = vld [vmem:[%s3667_s27 + $0xb8] sm:$0xff] }
  0x1f   : > { %360 = vst.msk [vmem:[#allocation2 + $0x179] sm:$0x1] %vm326_vm1, %v3554_v0  ;;  %361 = vst.msk [vmem:[#allocation2 + $0x191] sm:$0x1] %vm326_vm1, %v3554_v0  ;;  %v3813_v34 = vld [vmem:[%s3667_s27 + $0xd0] sm:$0xff]  ;;  %v3816_v35 = vld [vmem:[%s3667_s27 + $0xc8] sm:$0xff] }
  0x20   : > { %321 = vst.msk [vmem:[#allocation2 + $0x10] sm:$0x3] %vm320_vm2, %v3554_v0  ;;  %325 = vst.msk [vmem:[#allocation2 + $0x1a8] sm:$0x3] %vm320_vm2, %v3554_v0  ;;  %v3827_v36 = vld [vmem:[%s3667_s27 + $0xe0] sm:$0xff]  ;;  %v3830_v37 = vld [vmem:[%s3667_s27 + $0xd8] sm:$0xff] }
  0x21   : > { %327 = vst.msk [vmem:[#allocation2] sm:$0x1] %vm326_vm1, %v3554_v0  ;;  %344 = vst.msk [vmem:[#allocation2 + $0x198] sm:$0x1] %vm326_vm1, %v3554_v0  ;;  %v3839_v39 = vld [vmem:[%s3667_s27 + $0xe8] sm:$0xff]  ;;  %s3561_s16 = smov 28  }
  0x22   : > { %345 = vst.msk [vmem:[#allocation2 + $0x11] sm:$0x1] %vm326_vm1, %v3554_v0  ;;  %362 = vst.msk [vmem:[#allocation2 + $0x1a9] sm:$0x1] %vm326_vm1, %v3554_v0  ;;  %v723_v46 = vld [vmem:[#allocation2 + $0x8] sm:$0xff]  ;;  %s3562_s26 = smov 32  }
  0x23   : > { %364 = vst.msk [vmem:[#allocation2 + $0x19] sm:$0xff] %vm317_vm0, %v285_v1  ;;  %366 = vst.msk [vmem:[#allocation2 + $0x31] sm:$0xff] %vm317_vm0, %v3671_v2  ;;  %vm1718_vm8 = vcmask 195744   ;;  %vm1912_vm9 = vcmask 228544   ;;  %vm2105_vm10 = vcmask 261344   ;;  %vm2298_vm11 = vcmask 294144  }
  0x24   : > { %365 = vst.msk [vmem:[#allocation2 + $0x21] sm:$0xff] %vm317_vm0, %v3674_v3  ;;  %368 = vst.msk [vmem:[#allocation2 + $0x49] sm:$0xff] %vm317_vm0, %v3682_v4  ;;  %vm2368_vm12 = vcmask 293888   ;;  %vm2693_vm13 = vcmask 64512   ;;  %s3264_s30 = sshll.u32 %s5219_s22, 1  ;;  %vm2827_vm14 = vcmask 57344  }
  0x25   : > { %367 = vst.msk [vmem:[#allocation2 + $0x39] sm:$0xff] %vm317_vm0, %v3685_v5  ;;  %370 = vst.msk [vmem:[#allocation2 + $0x61] sm:$0xff] %vm317_vm0, %v3688_v6  ;;  %s284_s13 = scalar_lea.vmem %s5130_s6, %s3264_s30  ;;  %s280_s14 = scalar_lea.vmem %s5129_s5, %s3264_s30 }
  0x26   : > { %369 = vst.msk [vmem:[#allocation2 + $0x51] sm:$0xff] %vm317_vm0, %v3698_v9  ;;  %372 = vst.msk [vmem:[#allocation2 + $0x79] sm:$0xff] %vm317_vm0, %v3704_v10 }
  0x27   : > { %v787_v8 = vld [vmem:[#allocation2 + $0x9] sm:$0xff]  ;;  %371 = vst.msk [vmem:[#allocation2 + $0x69] sm:$0xff] %vm317_vm0, %v3707_v11  ;;  %374 = vst.msk [vmem:[#allocation2 + $0x91] sm:$0xff] %vm317_vm0, %v3710_v12 }
  0x28   : > { %373 = vst.msk [vmem:[#allocation2 + $0x81] sm:$0xff] %vm317_vm0, %v3719_v13  ;;  %376 = vst.msk [vmem:[#allocation2 + $0xa9] sm:$0xff] %vm317_vm0, %v3722_v14  ;;  %852 = vrot.lane.b32.xlu0 %v787_v8, %s3555_s28  ;;  %v722_v45 = vld [vmem:[#allocation2] sm:$0xff] }
  0x29   : > { %375 = vst.msk [vmem:[#allocation2 + $0x99] sm:$0xff] %vm317_vm0, %v3725_v15  ;;  %378 = vst.msk [vmem:[#allocation2 + $0xc1] sm:$0xff] %vm317_vm0, %v3734_v16 }
  0x2a   : > { %377 = vst.msk [vmem:[#allocation2 + $0xb1] sm:$0xff] %vm317_vm0, %v3737_v17  ;;  %380 = vst.msk [vmem:[#allocation2 + $0xd9] sm:$0xff] %vm317_vm0, %v3740_v18  ;;  %v3773_v25 = vld [vmem:[#allocation2 + $0x19] sm:$0xff]  ;;  %v3775_v26 = vld [vmem:[#allocation2 + $0x31] sm:$0xff] }
  0x2b   : > { %379 = vst.msk [vmem:[#allocation2 + $0xc9] sm:$0xff] %vm317_vm0, %v3749_v19  ;;  %382 = vst.msk [vmem:[#allocation2 + $0xf1] sm:$0xff] %vm317_vm0, %v3752_v20  ;;  %854 = vrot.lane.b32.xlu1 %v3773_v25, %s3555_s28  ;;  %v3785_v27 = vld [vmem:[#allocation2 + $0x21] sm:$0xff]  ;;  %v3799_v30 = vld [vmem:[#allocation2 + $0x49] sm:$0xff] }
  0x2c   : > { %381 = vst.msk [vmem:[#allocation2 + $0xe1] sm:$0xff] %vm317_vm0, %v3755_v21  ;;  %384 = vst.msk [vmem:[#allocation2 + $0x109] sm:$0xff] %vm317_vm0, %v3765_v22  ;;  %858 = vrot.lane.b32.xlu0 %v3775_v26, %s3555_s28  ;;  %v3803_v31 = vld [vmem:[#allocation2 + $0x39] sm:$0xff]  ;;  %v3807_v32 = vld [vmem:[#allocation2 + $0x61] sm:$0xff] }
  0x2d   : > { %383 = vst.msk [vmem:[#allocation2 + $0xf9] sm:$0xff] %vm317_vm0, %v3768_v23  ;;  %386 = vst.msk [vmem:[#allocation2 + $0x121] sm:$0xff] %vm317_vm0, %v3771_v24  ;;  %v3832_v38 = vld [vmem:[#allocation2 + $0x51] sm:$0xff]  ;;  %v3845_v40 = vld [vmem:[#allocation2 + $0x79] sm:$0xff] }
  0x2e   : > { %385 = vst.msk [vmem:[#allocation2 + $0x111] sm:$0xff] %vm317_vm0, %v3788_v28  ;;  %388 = vst.msk [vmem:[#allocation2 + $0x139] sm:$0xff] %vm317_vm0, %v3791_v29  ;;  %v3849_v41 = vld [vmem:[#allocation2 + $0x69] sm:$0xff]  ;;  %v3853_v42 = vld [vmem:[#allocation2 + $0x91] sm:$0xff] }
  0x2f   : > { %856 = vrot.lane.b32.xlu1 %v3785_v27, %s3555_s28  ;;  %387 = vst.msk [vmem:[#allocation2 + $0x129] sm:$0xff] %vm317_vm0, %v3810_v33  ;;  %390 = vst.msk [vmem:[#allocation2 + $0x151] sm:$0xff] %vm317_vm0, %v3813_v34  ;;  %v3857_v43 = vld [vmem:[#allocation2 + $0x81] sm:$0xff]  ;;  %v800_v44 = vld [vmem:[#allocation2 + $0xa9] sm:$0xff] }
  0x30   : > { %862 = vrot.lane.b32.xlu0 %v3799_v30, %s3555_s28  ;;  %389 = vst.msk [vmem:[#allocation2 + $0x141] sm:$0xff] %vm317_vm0, %v3816_v35  ;;  %392 = vst.msk [vmem:[#allocation2 + $0x169] sm:$0xff] %vm317_vm0, %v3827_v36  ;;  %v3864_v47 = vld [vmem:[#allocation2 + $0x99] sm:$0xff]  ;;  %v3872_v49 = vld [vmem:[#allocation2 + $0x30] sm:$0xff] }
  0x31   : > { %391 = vst.msk [vmem:[#allocation2 + $0x159] sm:$0xff] %vm317_vm0, %v3830_v37  ;;  %393 = vst.msk [vmem:[#allocation2 + $0x171] sm:$0xff] %vm317_vm0, %v3839_v39  ;;  %v3867_v48 = vld [vmem:[#allocation2 + $0x18] sm:$0xff]  ;;  %v802_v50 = vld [vmem:[#allocation2 + $0xc1] sm:$0xff] }
  0x32   : > { %5174 = vst [vmem:[#allocation4_spill] sm:$0xff] %v3845_v40  ;;  %5175 = vst [vmem:[#allocation5_spill] sm:$0xff] %v3853_v42  ;;  %v3876_v51 = vld [vmem:[#allocation2 + $0x20] sm:$0xff]  ;;  %v3878_v52 = vld [vmem:[#allocation2 + $0x48] sm:$0xff] }
  0x33   : > { %860 = vrot.lane.b32.xlu1 %v3803_v31, %s3555_s28  ;;  %5176 = vst [vmem:[#allocation6_spill] sm:$0xff] %v3857_v43  ;;  %754 = vst.msk [vmem:[#allocation3] sm:$0xff] %vm317_vm0, %v722_v45  ;;  %v801_v53 = vld [vmem:[#allocation2 + $0xb1] sm:$0xff]  ;;  %v3888_v55 = vld [vmem:[#allocation2 + $0x60] sm:$0xff] }
  0x34   : > { %866 = vrot.lane.b32.xlu0 %v3807_v32, %s3555_s28  ;;  %5177 = vst [vmem:[#allocation7_spill] sm:$0xff] %v3864_v47  ;;  %755 = vst.msk [vmem:[#allocation3 + $0x8] sm:$0xff] %vm317_vm0, %v723_v46  ;;  %v3886_v54 = vld [vmem:[#allocation2 + $0x38] sm:$0xff]  ;;  %v3894_v57 = vld [vmem:[#allocation2 + $0x50] sm:$0xff] }
  0x35   : > { %756 = vst.msk [vmem:[#allocation3 + $0x10] sm:$0xff] %vm317_vm0, %v3867_v48  ;;  %758 = vst.msk [vmem:[#allocation3 + $0x20] sm:$0xff] %vm317_vm0, %v3872_v49  ;;  %v804_v56 = vld [vmem:[#allocation2 + $0xd9] sm:$0xff]  ;;  %v3898_v59 = vld [vmem:[#allocation2 + $0x68] sm:$0xff] }
  0x36   : > { %757 = vst.msk [vmem:[#allocation3 + $0x18] sm:$0xff] %vm317_vm0, %v3876_v51  ;;  %760 = vst.msk [vmem:[#allocation3 + $0x30] sm:$0xff] %vm317_vm0, %v3878_v52  ;;  %v3896_v58 = vld [vmem:[#allocation2 + $0x78] sm:$0xff]  ;;  %v3907_v60 = vld [vmem:[#allocation2 + $0x90] sm:$0xff] }
  0x37   : > { %864 = vrot.lane.b32.xlu1 %v3832_v38, %s3555_s28  ;;  %759 = vst.msk [vmem:[#allocation3 + $0x28] sm:$0xff] %vm317_vm0, %v3886_v54  ;;  %762 = vst.msk [vmem:[#allocation3 + $0x40] sm:$0xff] %vm317_vm0, %v3888_v55  ;;  %v3909_v61 = vld [vmem:[#allocation2 + $0x80] sm:$0xff]  ;;  %v3911_v62 = vld [vmem:[#allocation2 + $0xa8] sm:$0xff] }
  0x38   : > { %870 = vrot.lane.b32.xlu0 %v3845_v40, %s3555_s28  ;;  %761 = vst.msk [vmem:[#allocation3 + $0x38] sm:$0xff] %vm317_vm0, %v3894_v57  ;;  %764 = vst.msk [vmem:[#allocation3 + $0x50] sm:$0xff] %vm317_vm0, %v3896_v58  ;;  %v803_v63 = vld [vmem:[#allocation2 + $0xc9] sm:$0xff]  ;;  %v3919_v0 = vld [vmem:[#allocation2 + $0x98] sm:$0xff] }
  0x39   : > { %763 = vst.msk [vmem:[#allocation3 + $0x48] sm:$0xff] %vm317_vm0, %v3898_v59  ;;  %5178 = vst [vmem:[#allocation8_spill] sm:$0xff] %v3911_v62  ;;  %v3921_v1 = vld [vmem:[#allocation2 + $0xc0] sm:$0xff]  ;;  %v3923_v7 = vld [vmem:[#allocation2 + $0xb0] sm:$0xff] }
  0x3a   : > { %766 = vst.msk [vmem:[#allocation3 + $0x60] sm:$0xff] %vm317_vm0, %v3907_v60  ;;  %765 = vst.msk [vmem:[#allocation3 + $0x58] sm:$0xff] %vm317_vm0, %v3909_v61  ;;  %v3932_v8 = vld [vmem:[#allocation2 + $0xd8] sm:$0xff]  ;;  %v3936_v45 = vld [vmem:[#allocation2 + $0xf0] sm:$0xff] }
  0x3b   : > { %868 = vrot.lane.b32.xlu1 %v3849_v41, %s3555_s28  ;;  %768 = vst.msk [vmem:[#allocation3 + $0x70] sm:$0xff] %vm317_vm0, %v3911_v62  ;;  %5179 = vst [vmem:[#allocation9_spill] sm:$0xff] %v3921_v1  ;;  %v3944_v46 = vld [vmem:[#allocation2 + $0xe0] sm:$0xff]  ;;  %v999_v40 = vld [vmem:[#allocation2 + $0xf2] sm:$0xff] }
  0x3c   : > { %874 = vrot.lane.b32.xlu0 %v3853_v42, %s3555_s28  ;;  %5180 = vst [vmem:[#allocation10_spill] sm:$0xff] %v3923_v7  ;;  %767 = vst.msk [vmem:[#allocation3 + $0x68] sm:$0xff] %vm317_vm0, %v3919_v0  ;;  %v4023_v62 = vld [vmem:[#allocation2 + $0x82] sm:$0xff]  ;;  %v4031_v42 = vld [vmem:[#allocation2 + $0x9a] sm:$0xff] }
  0x3d   : > { %770 = vst.msk [vmem:[#allocation3 + $0x80] sm:$0xff] %vm317_vm0, %v3921_v1  ;;  %769 = vst.msk [vmem:[#allocation3 + $0x78] sm:$0xff] %vm317_vm0, %v3923_v7  ;;  %v748_v1 = vld [vmem:[#allocation2 + $0x138] sm:$0xff]  ;;  %v749_v7 = vld [vmem:[#allocation2 + $0x140] sm:$0xff] }
  0x3e   : > { %5181 = vst [vmem:[#allocation11_spill] sm:$0xff] %v3932_v8  ;;  %5183 = vst [vmem:[#allocation13_spill] sm:$0xff] %v3936_v45 }
  0x3f   : > { %872 = vrot.lane.b32.xlu1 %v3857_v43, %s3555_s28  ;;  %772 = vst.msk [vmem:[#allocation3 + $0x90] sm:$0xff] %vm317_vm0, %v3932_v8  ;;  %774 = vst.msk [vmem:[#allocation3 + $0xa0] sm:$0xff] %vm317_vm0, %v3936_v45  ;;  %v746_v8 = vld [vmem:[#allocation2 + $0x120] sm:$0xff]  ;;  %v806_v45 = vld [vmem:[#allocation2 + $0xf1] sm:$0xff] }
  0x40   : > { %878 = vrot.lane.b32.xlu0 %v800_v44, %s3555_s28  ;;  %v3934_v44 = vld [vmem:[#allocation2 + $0xc8] sm:$0xff]  ;;  %5184 = vst [vmem:[#allocation14_spill] sm:$0xff] %v3944_v46  ;;  %773 = vst.msk [vmem:[#allocation3 + $0x98] sm:$0xff] %vm317_vm0, %v3944_v46  ;;  %v4039_v43 = vld [vmem:[#allocation2 + $0xb2] sm:$0xff] }
  0x41   : > { %5182 = vst [vmem:[#allocation12_spill] sm:$0xff] %v3934_v44  ;;  %771 = vst.msk [vmem:[#allocation3 + $0x88] sm:$0xff] %vm317_vm0, %v3934_v44  ;;  %v3957_v44 = vld [vmem:[#allocation2 + $0x110] sm:$0xff]  ;;  %v747_v46 = vld [vmem:[#allocation2 + $0x128] sm:$0xff] }
  0x42   : > { %5187 = vst [vmem:[#allocation17_spill] sm:$0xff] %v3957_v44  ;;  %778 = vst.msk [vmem:[#allocation3 + $0xc0] sm:$0xff] %vm317_vm0, %v746_v8  ;;  %v807_v8 = vld [vmem:[#allocation2 + $0xf9] sm:$0xff] }
  0x43   : > { %876 = vrot.lane.b32.xlu1 %v3864_v47, %s3555_s28  ;;  %777 = vst.msk [vmem:[#allocation3 + $0xb8] sm:$0xff] %vm317_vm0, %v3957_v44  ;;  %780 = vst.msk [vmem:[#allocation3 + $0xd0] sm:$0xff] %vm317_vm0, %v748_v1  ;;  %v752_v1 = vld [vmem:[#allocation2 + $0x168] sm:$0xff]  ;;  %v753_v44 = vld [vmem:[#allocation2 + $0x170] sm:$0xff] }
  0x44   : > { %882 = vrot.lane.b32.xlu0 %v802_v50, %s3555_s28  ;;  %v3946_v50 = vld [vmem:[#allocation2 + $0x108] sm:$0xff]  ;;  %779 = vst.msk [vmem:[#allocation3 + $0xc8] sm:$0xff] %vm317_vm0, %v747_v46  ;;  %781 = vst.msk [vmem:[#allocation3 + $0xd8] sm:$0xff] %vm317_vm0, %v749_v7  ;;  %v751_v46 = vld [vmem:[#allocation2 + $0x158] sm:$0xff] }
  0x45   : > { %5185 = vst [vmem:[#allocation15_spill] sm:$0xff] %v3946_v50  ;;  %776 = vst.msk [vmem:[#allocation3 + $0xb0] sm:$0xff] %vm317_vm0, %v3946_v50  ;;  %v808_v50 = vld [vmem:[#allocation2 + $0x109] sm:$0xff]  ;;  %v814_v7 = vld [vmem:[#allocation2 + $0x151] sm:$0xff] }
  0x46   : > { %784 = vst.msk [vmem:[#allocation3 + $0xf0] sm:$0xff] %vm317_vm0, %v752_v1  ;;  %783 = vst.msk [vmem:[#allocation3 + $0xe8] sm:$0xff] %vm317_vm0, %v751_v46  ;;  %v979_v1 = vld [vmem:[#allocation2 + $0x2] sm:$0xff]  ;;  %v980_v46 = vld [vmem:[#allocation2 + $0xa] sm:$0xff] }
  0x47   : > { %880 = vrot.lane.b32.xlu1 %v801_v53, %s3555_s28  ;;  %v3948_v53 = vld [vmem:[#allocation2 + $0xf8] sm:$0xff]  ;;  %785 = vst.msk [vmem:[#allocation3 + $0xf8] sm:$0xff] %vm317_vm0, %v753_v44  ;;  %5192 = vst [vmem:[#allocation22_spill] sm:$0xff] %v4023_v62  ;;  %v4027_v47 = vld [vmem:[#allocation2 + $0xaa] sm:$0xff] }
  0x48   : > { %5186 = vst [vmem:[#allocation16_spill] sm:$0xff] %v3948_v53  ;;  %886 = vrot.lane.b32.xlu0 %v804_v56, %s3555_s28  ;;  %775 = vst.msk [vmem:[#allocation3 + $0xa8] sm:$0xff] %vm317_vm0, %v3948_v53  ;;  %v805_v56 = vld [vmem:[#allocation2 + $0xe1] sm:$0xff]  ;;  %v750_v53 = vld [vmem:[#allocation2 + $0x150] sm:$0xff] }
  0x49   : > { %782 = vst.msk [vmem:[#allocation3 + $0xe0] sm:$0xff] %vm317_vm0, %v750_v53  ;;  %v811_v53 = vld [vmem:[#allocation2 + $0x129] sm:$0xff]  ;;  %v3983_v44 = vld [vmem:[#allocation2 + $0x1a] sm:$0xff]  ;;  %5193 = vst [vmem:[#allocation23_spill] sm:$0xff] %v4027_v47 }
  0x4a   : > { %5194 = vst [vmem:[#allocation24_spill] sm:$0xff] %v4031_v42 }
  0x4b   : > { %884 = vrot.lane.b32.xlu1 %v803_v63, %s3555_s28  ;;  %v810_v63 = vld [vmem:[#allocation2 + $0x121] sm:$0xff] }
  0x4c   : > { %890 = vrot.lane.b32.xlu0 %v806_v45, %s3555_s28  ;;  %v809_v45 = vld [vmem:[#allocation2 + $0x111] sm:$0xff] }
  0x4f   : > { %888 = vrot.lane.b32.xlu1 %v805_v56, %s3555_s28  ;;  %v812_v56 = vld [vmem:[#allocation2 + $0x139] sm:$0xff] }
  0x50   : > { %894 = vrot.lane.b32.xlu0 %v808_v50, %s3555_s28  ;;  %v813_v50 = vld [vmem:[#allocation2 + $0x141] sm:$0xff] }
  0x53   : > { %892 = vrot.lane.b32.xlu1 %v807_v8, %s3555_s28  ;;  %v816_v8 = vld [vmem:[#allocation2 + $0x169] sm:$0xff] }
  0x54   : > { %898 = vrot.lane.b32.xlu0 %v810_v63, %s3555_s28  ;;  %v815_v63 = vld [vmem:[#allocation2 + $0x159] sm:$0xff] }
  0x57   : > { %896 = vrot.lane.b32.xlu1 %v809_v45, %s3555_s28  ;;  %v817_v45 = vld [vmem:[#allocation2 + $0x171] sm:$0xff] }
  0x58   : > { %902 = vrot.lane.b32.xlu0 %v812_v56, %s3555_s28  ;;  %v3988_v56 = vld [vmem:[#allocation2 + $0x32] sm:$0xff] }
  0x5b   : > { %900 = vrot.lane.b32.xlu1 %v811_v53, %s3555_s28  ;;  %v3991_v53 = vld [vmem:[#allocation2 + $0x22] sm:$0xff] }
  0x5c   : > { %906 = vrot.lane.b32.xlu0 %v814_v7, %s3555_s28  ;;  %v3995_v7 = vld [vmem:[#allocation2 + $0x4a] sm:$0xff] }
  0x5f   : > { %904 = vrot.lane.b32.xlu1 %v813_v50, %s3555_s28  ;;  %v3999_v50 = vld [vmem:[#allocation2 + $0x3a] sm:$0xff] }
  0x60   : > { %910 = vrot.lane.b32.xlu0 %v816_v8, %s3555_s28  ;;  %v4003_v8 = vld [vmem:[#allocation2 + $0x62] sm:$0xff] }
  0x61   : > { %5188 = vst [vmem:[#allocation18_spill] sm:$0xff] %v4003_v8 }
  0x63   : > { %908 = vrot.lane.b32.xlu1 %v815_v63, %s3555_s28  ;;  %v4007_v63 = vld [vmem:[#allocation2 + $0x52] sm:$0xff] }
  0x64   : > { %1043 = vrot.lane.b32.xlu0 %v979_v1, %s3556_s29  ;;  %v4011_v1 = vld [vmem:[#allocation2 + $0x7a] sm:$0xff] }
  0x65   : > { %5189 = vst [vmem:[#allocation19_spill] sm:$0xff] %v4011_v1 }
  0x67   : > { %912 = vrot.lane.b32.xlu1 %v817_v45, %s3555_s28  ;;  %v4015_v45 = vld [vmem:[#allocation2 + $0x6a] sm:$0xff] }
  0x68   : > { %1047 = vrot.lane.b32.xlu0 %v3983_v44, %s3556_s29  ;;  %5190 = vst [vmem:[#allocation20_spill] sm:$0xff] %v4015_v45 }
  0x6b   : > { %1045 = vrot.lane.b32.xlu1 %v980_v46, %s3556_s29  ;;  %v4019_v46 = vld [vmem:[#allocation2 + $0x92] sm:$0xff] }
  0x6c   : > { %1051 = vrot.lane.b32.xlu0 %v3988_v56, %s3556_s29  ;;  %5191 = vst [vmem:[#allocation21_spill] sm:$0xff] %v4019_v46 }
  0x6f   : > { %1049 = vrot.lane.b32.xlu1 %v3991_v53, %s3556_s29 }
  0x70   : > { %1055 = vrot.lane.b32.xlu0 %v3995_v7, %s3556_s29 }
  0x73   : > { %1053 = vrot.lane.b32.xlu1 %v3999_v50, %s3556_s29 }
  0x74   : > { %1059 = vrot.lane.b32.xlu0 %v4003_v8, %s3556_s29  ;;  %v1002_v8 = vld [vmem:[#allocation2 + $0x112] sm:$0xff] }
  0x77   : > { %1057 = vrot.lane.b32.xlu1 %v4007_v63, %s3556_s29 }
  0x78   : > { %1063 = vrot.lane.b32.xlu0 %v4011_v1, %s3556_s29  ;;  %v4035_v1 = vld [vmem:[#allocation2 + $0xc2] sm:$0xff] }
  0x79   : > { %5195 = vst [vmem:[#allocation25_spill] sm:$0xff] %v4035_v1 }
  0x7b   : > { %1061 = vrot.lane.b32.xlu1 %v4015_v45, %s3556_s29  ;;  %v1001_v45 = vld [vmem:[#allocation2 + $0x10a] sm:$0xff] }
  0x7c   : > { %1067 = vrot.lane.b32.xlu0 %v4019_v46, %s3556_s29  ;;  %v997_v46 = vld [vmem:[#allocation2 + $0xda] sm:$0xff] }
  0x7f   : > { %1065 = vrot.lane.b32.xlu1 %v4023_v62, %s3556_s29  ;;  %v996_v62 = vld [vmem:[#allocation2 + $0xca] sm:$0xff] }
  0x80   : > { %1071 = vrot.lane.b32.xlu0 %v4027_v47, %s3556_s29  ;;  %v998_v47 = vld [vmem:[#allocation2 + $0xe2] sm:$0xff] }
  0x83   : > { %1069 = vrot.lane.b32.xlu1 %v4031_v42, %s3556_s29  ;;  %v1000_v42 = vld [vmem:[#allocation2 + $0xfa] sm:$0xff] }
  0x84   : > { %1075 = vrot.lane.b32.xlu0 %v4035_v1, %s3556_s29  ;;  %v1003_v1 = vld [vmem:[#allocation2 + $0x122] sm:$0xff] }
  0x87   : > { %1073 = vrot.lane.b32.xlu1 %v4039_v43, %s3556_s29 }
  0x88   : > { %1079 = vrot.lane.b32.xlu0 %v997_v46, %s3556_s29  ;;  %v1005_v46 = vld [vmem:[#allocation2 + $0x13a] sm:$0xff] }
  0x8b   : > { %1077 = vrot.lane.b32.xlu1 %v996_v62, %s3556_s29  ;;  %v396_v62 = vld [vmem:[%s5126_s2] sm:$0xf] }
  0x8c   : > { %1083 = vrot.lane.b32.xlu0 %v999_v40, %s3556_s29  ;;  %v851_v40 = vpop.permute.xlu0 %850  ;;  %3407 = vmatprep.subr.msk.mxu0 %vm493_vm4, %v396_v62 }
  0x8d   : > { %947 = vst.msk [vmem:[#allocation3] sm:$0xff] %vm946_vm3, %v851_v40  ;;  %3408 = vmatpush3.msk.msra.mxu0 %vm493_vm4, %v396_v62 }
  0x8e   : > { %3410 = vmatmul.mubr.msk.f32.vlgmr.msra.gmra.mrb[0].mxu0 %vm317_vm0, %v3674_v3 }
  0x8f   : > { %1081 = vrot.lane.b32.xlu1 %v998_v47, %s3556_s29  ;;  %v1004_v47 = vld [vmem:[#allocation2 + $0x12a] sm:$0xff]  ;;  %3412 = vmatprep.mubr.msk.f32.mxu0 %vm317_vm0, %v3671_v2  ;;  %v1008_v2 = vld [vmem:[#allocation2 + $0x15a] sm:$0xff] }
  0x90   : > { %1087 = vrot.lane.b32.xlu0 %v1001_v45, %s3556_s29 }
  0x92   : > { %3413 = vmatmul.mubr.msk.f32.gmra.mrb[2].mxu0 %vm317_vm0, %v3685_v5 }
  0x93   : > { %1085 = vrot.lane.b32.xlu1 %v1000_v42, %s3556_s29  ;;  %v1007_v42 = vld [vmem:[#allocation2 + $0x152] sm:$0xff]  ;;  %3415 = vmatprep.mubr.msk.f32.mxu0 %vm317_vm0, %v3682_v4 }
  0x94   : > { %1091 = vrot.lane.b32.xlu0 %v1003_v1, %s3556_s29  ;;  %v1010_v4 = vld [vmem:[#allocation2 + $0x172] sm:$0xff] }
  0x96   : > { %3416 = vmatmul.mubr.msk.f32.gmra.mrb[4].mxu0 %vm317_vm0, %v3698_v9 }
  0x97   : > { %1089 = vrot.lane.b32.xlu1 %v1002_v8, %s3556_s29  ;;  %v1006_v8 = vld [vmem:[#allocation2 + $0x142] sm:$0xff]  ;;  %3418 = vmatprep.mubr.msk.f32.mxu0 %vm317_vm0, %v3688_v6 }
  0x98   : > { %1095 = vrot.lane.b32.xlu0 %v1005_v46, %s3556_s29  ;;  %v1009_v46 = vld [vmem:[#allocation2 + $0x16a] sm:$0xff] }
  0x9a   : > { %v853_v1 = vpop.permute.xlu0 %852  ;;  %3419 = vmatmul.mubr.msk.f32.gmra.mrb[6].mxu0 %vm317_vm0, %v3707_v11 }
  0x9b   : > { %1093 = vrot.lane.b32.xlu1 %v1004_v47, %s3556_s29  ;;  %948 = vst.msk [vmem:[#allocation3 + $0x8] sm:$0xff] %vm946_vm3, %v853_v1  ;;  %3421 = vmatprep.mubr.msk.f32.mxu0 %vm317_vm0, %v3704_v10 }
  0x9c   : > { %1099 = vrot.lane.b32.xlu0 %v1007_v42, %s3556_s29 }
  0x9d   : > { %v855_v45 = vpop.permute.xlu1 %854 }
  0x9e   : > { %949 = vst.msk [vmem:[#allocation3 + $0x10] sm:$0xff] %vm946_vm3, %v855_v45  ;;  %v859_v3 = vpop.permute.xlu0 %858  ;;  %3422 = vmatmul.mubr.msk.f32.gmra.mrb[8].mxu0 %vm317_vm0, %v3719_v13 }
  0x9f   : > { %1097 = vrot.lane.b32.xlu1 %v1006_v8, %s3556_s29  ;;  %951 = vst.msk [vmem:[#allocation3 + $0x20] sm:$0xff] %vm946_vm3, %v859_v3  ;;  %3424 = vmatprep.mubr.msk.f32.mxu0 %vm317_vm0, %v3710_v12 }
  0xa0   : > { %1103 = vrot.lane.b32.xlu0 %v1009_v46, %s3556_s29 }
  0xa1   : > { %v857_v62 = vpop.permute.xlu1 %856 }
  0xa2   : > { %950 = vst.msk [vmem:[#allocation3 + $0x18] sm:$0xff] %vm946_vm3, %v857_v62  ;;  %v863_v5 = vpop.permute.xlu0 %862  ;;  %3425 = vmatmul.mubr.msk.f32.gmra.mrb[10].mxu0 %vm317_vm0, %v3725_v15  ;;  %v5197_v62 = vld [vmem:[#allocation20_spill] sm:$0xff] }
  0xa3   : > { %1101 = vrot.lane.b32.xlu1 %v1008_v2, %s3556_s29  ;;  %953 = vst.msk [vmem:[#allocation3 + $0x30] sm:$0xff] %vm946_vm3, %v863_v5  ;;  %3427 = vmatprep.mubr.msk.f32.mxu0 %vm317_vm0, %v3722_v14  ;;  %v5196_v2 = vld [vmem:[#allocation18_spill] sm:$0xff] }
  0xa4   : > { %1236 = vrot.lane.b32.xlu0 %v3867_v48, %s3557_s8  ;;  %v315_v48 = vld [vmem:[%s3667_s27 + $0xf0] sm:$0xff] }
  0xa5   : > { %v861_v40 = vpop.permute.xlu1 %860  ;;  %394 = vst.msk [vmem:[#allocation2 + $0x181] sm:$0xff] %vm317_vm0, %v315_v48 }
  0xa6   : > { %952 = vst.msk [vmem:[#allocation3 + $0x28] sm:$0xff] %vm946_vm3, %v861_v40  ;;  %v867_v6 = vpop.permute.xlu0 %866  ;;  %3428 = vmatmul.mubr.msk.f32.gmra.mrb[12].mxu0 %vm317_vm0, %v3737_v17  ;;  %v5198_v40 = vld [vmem:[#allocation4_spill] sm:$0xff] }
  0xa7   : > { %1105 = vrot.lane.b32.xlu1 %v1010_v4, %s3556_s29  ;;  %955 = vst.msk [vmem:[#allocation3 + $0x40] sm:$0xff] %vm946_vm3, %v867_v6  ;;  %3430 = vmatprep.mubr.msk.f32.mxu0 %vm317_vm0, %v3734_v16  ;;  %s4488_s29 = scalar_lea.vmem %s5128_s4, %s3661_s24 }
  0xa8   : > { %1240 = vrot.lane.b32.xlu0 %v3872_v49, %s3557_s8 }
  0xa9   : > { %v865_v9 = vpop.permute.xlu1 %864 }
  0xaa   : > { %954 = vst.msk [vmem:[#allocation3 + $0x38] sm:$0xff] %vm946_vm3, %v865_v9  ;;  %v871_v11 = vpop.permute.xlu0 %870  ;;  %3431 = vmatmul.mubr.msk.f32.gmra.mrb[14].mxu0 %vm317_vm0, %v3749_v19 }
  0xab   : > { %1238 = vrot.lane.b32.xlu1 %v3876_v51, %s3557_s8  ;;  %957 = vst.msk [vmem:[#allocation3 + $0x50] sm:$0xff] %vm946_vm3, %v871_v11  ;;  %3433 = vmatprep.mubr.msk.f32.mxu0 %vm317_vm0, %v3740_v18  ;;  %v2366_v51 = vld [vmem:[%s5125_s1 + $0x18] sm:$0xff] }
  0xac   : > { %1244 = vrot.lane.b32.xlu0 %v3878_v52, %s3557_s8 }
  0xad   : > { %v869_v10 = vpop.permute.xlu1 %868 }
  0xae   : > { %956 = vst.msk [vmem:[#allocation3 + $0x48] sm:$0xff] %vm946_vm3, %v869_v10  ;;  %v875_v13 = vpop.permute.xlu0 %874  ;;  %3434 = vmatmul.mubr.msk.f32.gmra.mrb[16].mxu0 %vm317_vm0, %v3755_v21 }
  0xaf   : > { %1242 = vrot.lane.b32.xlu1 %v3886_v54, %s3557_s8  ;;  %959 = vst.msk [vmem:[#allocation3 + $0x60] sm:$0xff] %vm946_vm3, %v875_v13  ;;  %3436 = vmatprep.mubr.msk.f32.mxu0 %vm317_vm0, %v3752_v20 }
  0xb0   : > { %1248 = vrot.lane.b32.xlu0 %v3888_v55, %s3557_s8 }
  0xb1   : > { %v873_v12 = vpop.permute.xlu1 %872 }
  0xb2   : > { %958 = vst.msk [vmem:[#allocation3 + $0x58] sm:$0xff] %vm946_vm3, %v873_v12  ;;  %v879_v15 = vpop.permute.xlu0 %878  ;;  %3437 = vmatmul.mubr.msk.f32.gmra.mrb[18].mxu0 %vm317_vm0, %v3768_v23  ;;  %v5200_v12 = vld [vmem:[#allocation19_spill] sm:$0xff] }
  0xb3   : > { %1246 = vrot.lane.b32.xlu1 %v3894_v57, %s3557_s8  ;;  %961 = vst.msk [vmem:[#allocation3 + $0x70] sm:$0xff] %vm946_vm3, %v879_v15  ;;  %3439 = vmatprep.mubr.msk.f32.mxu0 %vm317_vm0, %v3765_v22  ;;  %v5201_v15 = vld [vmem:[#allocation22_spill] sm:$0xff] }
  0xb4   : > { %1252 = vrot.lane.b32.xlu0 %v3896_v58, %s3557_s8 }
  0xb5   : > { %v877_v14 = vpop.permute.xlu1 %876 }
  0xb6   : > { %960 = vst.msk [vmem:[#allocation3 + $0x68] sm:$0xff] %vm946_vm3, %v877_v14  ;;  %v883_v17 = vpop.permute.xlu0 %882  ;;  %3440 = vmatmul.mubr.msk.f32.gmra.mrb[20].mxu0 %vm317_vm0, %v3788_v28 }
  0xb7   : > { %1250 = vrot.lane.b32.xlu1 %v3898_v59, %s3557_s8  ;;  %963 = vst.msk [vmem:[#allocation3 + $0x80] sm:$0xff] %vm946_vm3, %v883_v17  ;;  %3442 = vmatprep.mubr.msk.f32.mxu0 %vm317_vm0, %v3771_v24 }
  0xb8   : > { %1256 = vrot.lane.b32.xlu0 %v3907_v60, %s3557_s8 }
  0xb9   : > { %v881_v16 = vpop.permute.xlu1 %880 }
  0xba   : > { %962 = vst.msk [vmem:[#allocation3 + $0x78] sm:$0xff] %vm946_vm3, %v881_v16  ;;  %v887_v19 = vpop.permute.xlu0 %886  ;;  %3443 = vmatmul.mubr.msk.f32.gmra.mrb[22].mxu0 %vm317_vm0, %v3810_v33  ;;  %v2363_v33 = vld [vmem:[%s5125_s1] sm:$0xff] }
  0xbb   : > { %1254 = vrot.lane.b32.xlu1 %v3909_v61, %s3557_s8  ;;  %965 = vst.msk [vmem:[#allocation3 + $0x90] sm:$0xff] %vm946_vm3, %v887_v19  ;;  %3445 = vmatprep.mubr.msk.f32.mxu0 %vm317_vm0, %v3791_v29 }
  0xbc   : > { %1429 = vrot.lane.b32.xlu0 %v3773_v25, %s3558_s9 }
  0xbd   : > { %v885_v18 = vpop.permute.xlu1 %884 }
  0xbe   : > { %964 = vst.msk [vmem:[#allocation3 + $0x88] sm:$0xff] %vm946_vm3, %v885_v18  ;;  %v891_v20 = vpop.permute.xlu0 %890  ;;  %3446 = vmatmul.mubr.msk.f32.gmra.mrb[24].mxu0 %vm317_vm0, %v3816_v35  ;;  %v5202_v18 = vld [vmem:[#allocation5_spill] sm:$0xff] }
  0xbf   : > { %1258 = vrot.lane.b32.xlu1 %v3919_v0, %s3557_s8  ;;  %967 = vst.msk [vmem:[#allocation3 + $0xa0] sm:$0xff] %vm946_vm3, %v891_v20  ;;  %3448 = vmatprep.mubr.msk.f32.mxu0 %vm317_vm0, %v3813_v34  ;;  %v2364_v34 = vld [vmem:[%s5125_s1 + $0x8] sm:$0xff] }
  0xc0   : > { %1622 = vrot.lane.b32.xlu0 %v3983_v44, %s3559_s10  ;;  %v3515_v35 = vpack.c.bf16 %v2364_v34, %v2363_v33  ;;  %v5206_v33 = vld [vmem:[#allocation8_spill] sm:$0xff] }
  0xc1   : > { %v889_v21 = vpop.permute.xlu1 %888 }
  0xc2   : > { %966 = vst.msk [vmem:[#allocation3 + $0x98] sm:$0xff] %vm946_vm3, %v889_v21  ;;  %v895_v22 = vpop.permute.xlu0 %894  ;;  %3449 = vmatmul.mubr.msk.f32.gmra.mrb[26].mxu0 %vm317_vm0, %v3830_v37  ;;  %3516 = vmatprep.subr.bf16.mxu0 %v3515_v35 }
  0xc3   : > { %1431 = vrot.lane.b32.xlu1 %v3785_v27, %s3558_s9  ;;  %969 = vst.msk [vmem:[#allocation3 + $0xb0] sm:$0xff] %vm946_vm3, %v895_v22  ;;  %3451 = vmatprep.mubr.msk.f32.mxu0 %vm317_vm0, %v3827_v36 }
  0xc4   : > { %1624 = vrot.lane.b32.xlu0 %v3991_v53, %s3559_s10  ;;  %3523 = vmatprep.subr.bf16.mxu1 %v3515_v35  ;;  %v2367_v53 = vld [vmem:[%s5125_s1 + $0x20] sm:$0xf] }
  0xc5   : > { %v893_v23 = vpop.permute.xlu1 %892  ;;  %3518 = vmatpush3.bf16.msra.mxu0 %v3515_v35  ;;  %3526 = vmatpush3.bf16.msra.mxu1 %v3515_v35 }
  0xc6   : > { %968 = vst.msk [vmem:[#allocation3 + $0xa8] sm:$0xff] %vm946_vm3, %v893_v23  ;;  %v899_v25 = vpop.permute.xlu0 %898  ;;  %3452 = vmatmul.mubr.msk.f32.gmra.mrb[28].mxu0 %vm317_vm0, %v3839_v39  ;;  %v316_v39 = vld [vmem:[%s3667_s27 + $0xf8] sm:$0xff] }
  0xc7   : > { %1433 = vrot.lane.b32.xlu1 %v3775_v26, %s3558_s9  ;;  %971 = vst.msk [vmem:[#allocation3 + $0xc0] sm:$0xff] %vm946_vm3, %v899_v25  ;;  %3454 = vmatprep.mubr.msk.f32.mxu0 %vm317_vm0, %v315_v48 }
  0xc8   : > { %1435 = vrot.lane.b32.xlu0 %v3803_v31, %s3558_s9  ;;  %395 = vst.msk [vmem:[#allocation2 + $0x189] sm:$0xff] %vm317_vm0, %v316_v39 }
  0xc9   : > { %v897_v24 = vpop.permute.xlu1 %896 }
  0xca   : > { %970 = vst.msk [vmem:[#allocation3 + $0xb8] sm:$0xff] %vm946_vm3, %v897_v24  ;;  %v903_v27 = vpop.permute.xlu0 %902  ;;  %3455 = vmatmul.mubr.msk.f32.gmra.mrb[30].mxu0 %vm317_vm0, %v316_v39  ;;  %v5204_v24 = vld [vmem:[#allocation21_spill] sm:$0xff] }
  0xcb   : > { %1816 = vrot.lane.b32.xlu1 %v3872_v49, %s3560_s11  ;;  %973 = vst.msk [vmem:[#allocation3 + $0xd0] sm:$0xff] %vm946_vm3, %v903_v27  ;;  %v2365_v49 = vld [vmem:[%s5125_s1 + $0x10] sm:$0xff] }
  0xcc   : > { %1818 = vrot.lane.b32.xlu0 %v3886_v54, %s3560_s11  ;;  %v3519_v54 = vpack.c.bf16 %v2366_v51, %v2365_v49  ;;  %v5205_v27 = vld [vmem:[#allocation24_spill] sm:$0xff] }
  0xcd   : > { %v901_v28 = vpop.permute.xlu1 %900  ;;  %v1955_v49 = vld [vmem:[#allocation2 + $0xa9] sm:$0xff]  ;;  %v1956_v39 = vld [vmem:[#allocation2 + $0xb1] sm:$0xff] }
  0xce   : > { %972 = vst.msk [vmem:[#allocation3 + $0xc8] sm:$0xff] %vm946_vm3, %v901_v28  ;;  %v907_v29 = vpop.permute.xlu0 %906  ;;  %3520 = vmatprep.subr.bf16.mxu0 %v3519_v54  ;;  %3524 = vmatprep.subr.bf16.mxu1 %v3519_v54 }
  0xcf   : > { %1626 = vrot.lane.b32.xlu1 %v3988_v56, %s3559_s10  ;;  %975 = vst.msk [vmem:[#allocation3 + $0xe0] sm:$0xff] %vm946_vm3, %v907_v29  ;;  %3522 = vmatpush3.bf16.msra.mxu0 %v3519_v54 }
  0xd0   : > { %1628 = vrot.lane.b32.xlu0 %v3999_v50, %s3559_s10  ;;  %3527 = vmatpush3.bf16.msra.mxu1 %v3519_v54 }
  0xd1   : > { %v905_v36 = vpop.permute.xlu1 %904  ;;  %3465 = vmatprep.subr.msk.mxu0 %vm493_vm4, %v2367_v53  ;;  %3525 = vmatprep.subr.msk.mxu1 %vm493_vm4, %v2367_v53 }
  0xd2   : > { %974 = vst.msk [vmem:[#allocation3 + $0xd8] sm:$0xff] %vm946_vm3, %v905_v36  ;;  %v911_v37 = vpop.permute.xlu0 %910  ;;  %v5207_v36 = vld [vmem:[#allocation10_spill] sm:$0xff] }
  0xd3   : > { %2009 = vrot.lane.b32.xlu1 %v3775_v26, %s3561_s16  ;;  %977 = vst.msk [vmem:[#allocation3 + $0xf0] sm:$0xff] %vm946_vm3, %v911_v37  ;;  %3466 = vmatpush3.msk.msra.mxu0 %vm493_vm4, %v2367_v53 }
  0xd4   : > { %2011 = vrot.lane.b32.xlu0 %v3803_v31, %s3561_s16  ;;  %3528 = vmatpush3.msk.msra.mxu1 %vm493_vm4, %v2367_v53 }
  0xd5   : > { %v909_v26 = vpop.permute.xlu1 %908 }
  0xd6   : > { %976 = vst.msk [vmem:[#allocation3 + $0xe8] sm:$0xff] %vm946_vm3, %v909_v26  ;;  %v1044_v44 = vpop.permute.xlu0 %1043 }
  0xd7   : > { %1820 = vrot.lane.b32.xlu1 %v3878_v52, %s3560_s11  ;;  %1140 = vst.msk [vmem:[#allocation3] sm:$0xff] %vm1139_vm5, %v1044_v44 }
  0xd8   : > { %1822 = vrot.lane.b32.xlu0 %v3894_v57, %s3560_s11 }
  0xd9   : > { %v913_v31 = vpop.permute.xlu1 %912 }
  0xda   : > { %978 = vst.msk [vmem:[#allocation3 + $0xf8] sm:$0xff] %vm946_vm3, %v913_v31  ;;  %v1048_v47 = vpop.permute.xlu0 %1047 }
  0xdb   : > { %2202 = vrot.lane.b32.xlu1 %v3988_v56, %s3562_s26  ;;  %1142 = vst.msk [vmem:[#allocation3 + $0x10] sm:$0xff] %vm1139_vm5, %v1048_v47  ;;  %v5208_v47 = vld [vmem:[#allocation23_spill] sm:$0xff] }
  0xdc   : > { %2204 = vrot.lane.b32.xlu0 %v3999_v50, %s3562_s26 }
  0xdd   : > { %v1046_v52 = vpop.permute.xlu1 %1045 }
  0xde   : > { %1141 = vst.msk [vmem:[#allocation3 + $0x8] sm:$0xff] %vm1139_vm5, %v1046_v52  ;;  %v1052_v57 = vpop.permute.xlu0 %1051 }
  0xdf   : > { %2013 = vrot.lane.b32.xlu1 %v3799_v30, %s3561_s16  ;;  %1144 = vst.msk [vmem:[#allocation3 + $0x20] sm:$0xff] %vm1139_vm5, %v1052_v57 }
  0xe0   : > { %2015 = vrot.lane.b32.xlu0 %v3832_v38, %s3561_s16 }
  0xe1   : > { %v1050_v56 = vpop.permute.xlu1 %1049 }
  0xe2   : > { %1143 = vst.msk [vmem:[#allocation3 + $0x18] sm:$0xff] %vm1139_vm5, %v1050_v56  ;;  %v1056_v42 = vpop.permute.xlu0 %1055  ;;  %v5209_v56 = vld [vmem:[#allocation9_spill] sm:$0xff] }
  0xe3   : > { %1437 = vrot.lane.b32.xlu1 %v3799_v30, %s3558_s9  ;;  %1146 = vst.msk [vmem:[#allocation3 + $0x30] sm:$0xff] %vm1139_vm5, %v1056_v42 }
  0xe4   : > { %1439 = vrot.lane.b32.xlu0 %v3832_v38, %s3558_s9 }
  0xe5   : > { %v1054_v50 = vpop.permute.xlu1 %1053 }
  0xe6   : > { %1145 = vst.msk [vmem:[#allocation3 + $0x28] sm:$0xff] %vm1139_vm5, %v1054_v50  ;;  %v1060_v1 = vpop.permute.xlu0 %1059 }
  0xe7   : > { %2206 = vrot.lane.b32.xlu1 %v3995_v7, %s3562_s26  ;;  %1148 = vst.msk [vmem:[#allocation3 + $0x40] sm:$0xff] %vm1139_vm5, %v1060_v1  ;;  %v5210_v1 = vld [vmem:[#allocation12_spill] sm:$0xff] }
  0xe8   : > { %2208 = vrot.lane.b32.xlu0 %v4007_v63, %s3562_s26 }
  0xe9   : > { %v1058_v8 = vpop.permute.xlu1 %1057 }
  0xea   : > { %1147 = vst.msk [vmem:[#allocation3 + $0x38] sm:$0xff] %vm1139_vm5, %v1058_v8  ;;  %v1064_v30 = vpop.permute.xlu0 %1063 }
  0xeb   : > { %1630 = vrot.lane.b32.xlu1 %v3995_v7, %s3559_s10  ;;  %1150 = vst.msk [vmem:[#allocation3 + $0x50] sm:$0xff] %vm1139_vm5, %v1064_v30 }
  0xec   : > { %1824 = vrot.lane.b32.xlu0 %v3888_v55, %s3560_s11 }
  0xed   : > { %v1062_v38 = vpop.permute.xlu1 %1061 }
  0xee   : > { %1149 = vst.msk [vmem:[#allocation3 + $0x48] sm:$0xff] %vm1139_vm5, %v1062_v38  ;;  %v1068_v45 = vpop.permute.xlu0 %1067  ;;  %v1957_v38 = vld [vmem:[#allocation2 + $0xc1] sm:$0xff] }
  0xef   : > { %1632 = vrot.lane.b32.xlu1 %v4007_v63, %s3559_s10  ;;  %1152 = vst.msk [vmem:[#allocation3 + $0x60] sm:$0xff] %vm1139_vm5, %v1068_v45  ;;  %v1958_v45 = vld [vmem:[#allocation2 + $0xc9] sm:$0xff] }
  0xf0   : > { %2017 = vrot.lane.b32.xlu0 %v3807_v32, %s3561_s16 }
  0xf1   : > { %v1066_v46 = vpop.permute.xlu1 %1065 }
  0xf2   : > { %1151 = vst.msk [vmem:[#allocation3 + $0x58] sm:$0xff] %vm1139_vm5, %v1066_v46  ;;  %v1072_v7 = vpop.permute.xlu0 %1071 }
  0xf3   : > { %1826 = vrot.lane.b32.xlu1 %v3898_v59, %s3560_s11  ;;  %1154 = vst.msk [vmem:[#allocation3 + $0x70] sm:$0xff] %vm1139_vm5, %v1072_v7 }
  0xf4   : > { %2019 = vrot.lane.b32.xlu0 %v3849_v41, %s3561_s16 }
  0xf5   : > { %v1070_v55 = vpop.permute.xlu1 %1069 }
  0xf6   : > { %1153 = vst.msk [vmem:[#allocation3 + $0x68] sm:$0xff] %vm1139_vm5, %v1070_v55  ;;  %v1076_v63 = vpop.permute.xlu0 %1075 }
  0xf7   : > { %1441 = vrot.lane.b32.xlu1 %v3807_v32, %s3558_s9  ;;  %1156 = vst.msk [vmem:[#allocation3 + $0x80] sm:$0xff] %vm1139_vm5, %v1076_v63 }
  0xf8   : > { %1443 = vrot.lane.b32.xlu0 %v3849_v41, %s3558_s9 }
  0xf9   : > { %v1074_v3 = vpop.permute.xlu1 %1073 }
  0xfa   : > { %1155 = vst.msk [vmem:[#allocation3 + $0x78] sm:$0xff] %vm1139_vm5, %v1074_v3  ;;  %v1080_v59 = vpop.permute.xlu0 %1079  ;;  %v2151_v3 = vld [vmem:[#allocation2 + $0xca] sm:$0xff] }
  0xfb   : > { %2210 = vrot.lane.b32.xlu1 %v5196_v2, %s3562_s26  ;;  %1158 = vst.msk [vmem:[#allocation3 + $0x90] sm:$0xff] %vm1139_vm5, %v1080_v59 }
  0xfc   : > { %2212 = vrot.lane.b32.xlu0 %v5197_v62, %s3562_s26 }
  0xfd   : > { %v1078_v5 = vpop.permute.xlu1 %1077 }
  0xfe   : > { %1157 = vst.msk [vmem:[#allocation3 + $0x88] sm:$0xff] %vm1139_vm5, %v1078_v5  ;;  %v1084_v32 = vpop.permute.xlu0 %1083 }
  0xff   : > { %1634 = vrot.lane.b32.xlu1 %v5196_v2, %s3559_s10  ;;  %1160 = vst.msk [vmem:[#allocation3 + $0xa0] sm:$0xff] %vm1139_vm5, %v1084_v32  ;;  %v5211_v2 = vld [vmem:[#allocation25_spill] sm:$0xff] }
 0x100   : > { %1828 = vrot.lane.b32.xlu0 %v3896_v58, %s3560_s11  ;;  %v5199_v58 = vld [vmem:[#allocation6_spill] sm:$0xff] }
 0x101   : > { %v1082_v41 = vpop.permute.xlu1 %1081 }
 0x102   : > { %1159 = vst.msk [vmem:[#allocation3 + $0x98] sm:$0xff] %vm1139_vm5, %v1082_v41  ;;  %v1088_v4 = vpop.permute.xlu0 %1087 }
 0x103   : > { %1636 = vrot.lane.b32.xlu1 %v5197_v62, %s3559_s10  ;;  %1162 = vst.msk [vmem:[#allocation3 + $0xb0] sm:$0xff] %vm1139_vm5, %v1088_v4  ;;  %v1572_v62 = vld [vmem:[#allocation2 + $0xc2] sm:$0xff] }
 0x104   : > { %2021 = vrot.lane.b32.xlu0 %v5198_v40, %s3561_s16 }
 0x105   : > { %v1086_v6 = vpop.permute.xlu1 %1085 }
 0x106   : > { %1161 = vst.msk [vmem:[#allocation3 + $0xa8] sm:$0xff] %vm1139_vm5, %v1086_v6  ;;  %v1092_v9 = vpop.permute.xlu0 %1091 }
 0x107   : > { %1830 = vrot.lane.b32.xlu1 %v3909_v61, %s3560_s11  ;;  %1164 = vst.msk [vmem:[#allocation3 + $0xc0] sm:$0xff] %vm1139_vm5, %v1092_v9 }
 0x108   : > { %2023 = vrot.lane.b32.xlu0 %v5199_v58, %s3561_s16 }
 0x109   : > { %v1090_v11 = vpop.permute.xlu1 %1089 }
 0x10a   : > { %1163 = vst.msk [vmem:[#allocation3 + $0xb8] sm:$0xff] %vm1139_vm5, %v1090_v11  ;;  %v1096_v10 = vpop.permute.xlu0 %1095 }
 0x10b   : > { %1445 = vrot.lane.b32.xlu1 %v5198_v40, %s3558_s9  ;;  %1166 = vst.msk [vmem:[#allocation3 + $0xd0] sm:$0xff] %vm1139_vm5, %v1096_v10  ;;  %v5212_v40 = vld [vmem:[#allocation11_spill] sm:$0xff] }
 0x10c   : > { %1447 = vrot.lane.b32.xlu0 %v5199_v58, %s3558_s9  ;;  %v5213_v58 = vld [vmem:[#allocation14_spill] sm:$0xff] }
 0x10d   : > { %v1094_v13 = vpop.permute.xlu1 %1093 }
 0x10e   : > { %1165 = vst.msk [vmem:[#allocation3 + $0xc8] sm:$0xff] %vm1139_vm5, %v1094_v13  ;;  %v1100_v61 = vpop.permute.xlu0 %1099  ;;  %v1959_v13 = vld [vmem:[#allocation2 + $0xd9] sm:$0xff] }
 0x10f   : > { %2214 = vrot.lane.b32.xlu1 %v5200_v12, %s3562_s26  ;;  %1168 = vst.msk [vmem:[#allocation3 + $0xe0] sm:$0xff] %vm1139_vm5, %v1100_v61 }
 0x110   : > { %2216 = vrot.lane.b32.xlu0 %v5201_v15, %s3562_s26 }
 0x111   : > { %v1098_v14 = vpop.permute.xlu1 %1097 }
 0x112   : > { %1167 = vst.msk [vmem:[#allocation3 + $0xd8] sm:$0xff] %vm1139_vm5, %v1098_v14  ;;  %v1104_v17 = vpop.permute.xlu0 %1103 }
 0x113   : > { %1638 = vrot.lane.b32.xlu1 %v5200_v12, %s3559_s10  ;;  %1170 = vst.msk [vmem:[#allocation3 + $0xf0] sm:$0xff] %vm1139_vm5, %v1104_v17 }
 0x114   : > { %1832 = vrot.lane.b32.xlu0 %v3907_v60, %s3560_s11  ;;  %v5203_v60 = vld [vmem:[#allocation7_spill] sm:$0xff] }
 0x115   : > { %v1102_v16 = vpop.permute.xlu1 %1101 }
 0x116   : > { %1169 = vst.msk [vmem:[#allocation3 + $0xe8] sm:$0xff] %vm1139_vm5, %v1102_v16  ;;  %v1237_v19 = vpop.permute.xlu0 %1236 }
 0x117   : > { %1640 = vrot.lane.b32.xlu1 %v5201_v15, %s3559_s10  ;;  %1333 = vst.msk [vmem:[#allocation3] sm:$0xff] %vm1332_vm6, %v1237_v19  ;;  %v1960_v15 = vld [vmem:[#allocation2 + $0xe1] sm:$0xff] }
 0x118   : > { %2025 = vrot.lane.b32.xlu0 %v5202_v18, %s3561_s16 }
 0x119   : > { %v1106_v20 = vpop.permute.xlu1 %1105 }
 0x11a   : > { %1171 = vst.msk [vmem:[#allocation3 + $0xf8] sm:$0xff] %vm1139_vm5, %v1106_v20  ;;  %v1241_v21 = vpop.permute.xlu0 %1240 }
 0x11b   : > { %1834 = vrot.lane.b32.xlu1 %v3919_v0, %s3560_s11  ;;  %1335 = vst.msk [vmem:[#allocation3 + $0x10] sm:$0xff] %vm1332_vm6, %v1241_v21  ;;  %v2153_v21 = vld [vmem:[#allocation2 + $0xe2] sm:$0xff] }
 0x11c   : > { %2027 = vrot.lane.b32.xlu0 %v5203_v60, %s3561_s16 }
 0x11d   : > { %v1239_v22 = vpop.permute.xlu1 %1238 }
 0x11e   : > { %1334 = vst.msk [vmem:[#allocation3 + $0x8] sm:$0xff] %vm1332_vm6, %v1239_v22  ;;  %v1245_v23 = vpop.permute.xlu0 %1244 }
 0x11f   : > { %1449 = vrot.lane.b32.xlu1 %v5202_v18, %s3558_s9  ;;  %1337 = vst.msk [vmem:[#allocation3 + $0x20] sm:$0xff] %vm1332_vm6, %v1245_v23  ;;  %v2152_v18 = vld [vmem:[#allocation2 + $0xda] sm:$0xff] }
 0x120   : > { %1451 = vrot.lane.b32.xlu0 %v5203_v60, %s3558_s9 }
 0x121   : > { %v1243_v25 = vpop.permute.xlu1 %1242 }
 0x122   : > { %1336 = vst.msk [vmem:[#allocation3 + $0x18] sm:$0xff] %vm1332_vm6, %v1243_v25  ;;  %v1249_v0 = vpop.permute.xlu0 %1248  ;;  %v5214_v25 = vld [vmem:[#allocation13_spill] sm:$0xff] }
 0x123   : > { %2218 = vrot.lane.b32.xlu1 %v5204_v24, %s3562_s26  ;;  %1339 = vst.msk [vmem:[#allocation3 + $0x30] sm:$0xff] %vm1332_vm6, %v1249_v0 }
 0x124   : > { %2220 = vrot.lane.b32.xlu0 %v5205_v27, %s3562_s26 }
 0x125   : > { %v1247_v28 = vpop.permute.xlu1 %1246 }
 0x126   : > { %1338 = vst.msk [vmem:[#allocation3 + $0x28] sm:$0xff] %vm1332_vm6, %v1247_v28  ;;  %v1253_v29 = vpop.permute.xlu0 %1252 }
 0x127   : > { %1642 = vrot.lane.b32.xlu1 %v5204_v24, %s3559_s10  ;;  %1341 = vst.msk [vmem:[#allocation3 + $0x40] sm:$0xff] %vm1332_vm6, %v1253_v29 }
 0x128   : > { %1836 = vrot.lane.b32.xlu0 %v5206_v33, %s3560_s11 }
 0x129   : > { %v1251_v34 = vpop.permute.xlu1 %1250 }
 0x12a   : > { %1340 = vst.msk [vmem:[#allocation3 + $0x38] sm:$0xff] %vm1332_vm6, %v1251_v34  ;;  %v1257_v35 = vpop.permute.xlu0 %1256 }
 0x12b   : > { %1644 = vrot.lane.b32.xlu1 %v5205_v27, %s3559_s10  ;;  %1343 = vst.msk [vmem:[#allocation3 + $0x50] sm:$0xff] %vm1332_vm6, %v1257_v35  ;;  %v5215_v27 = vld [vmem:[#allocation16_spill] sm:$0xff] }
 0x12c   : > { %1838 = vrot.lane.b32.xlu0 %v5207_v36, %s3560_s11  ;;  %v1961_v35 = vld [vmem:[#allocation2 + $0xf1] sm:$0xff] }
 0x12d   : > { %v1255_v37 = vpop.permute.xlu1 %1254 }
 0x12e   : > { %1342 = vst.msk [vmem:[#allocation3 + $0x48] sm:$0xff] %vm1332_vm6, %v1255_v37  ;;  %v1430_v48 = vpop.permute.xlu0 %1429  ;;  %v1962_v37 = vld [vmem:[#allocation2 + $0xf9] sm:$0xff] }
 0x12f   : > { %1260 = vrot.lane.b32.xlu1 %v5206_v33, %s3557_s8  ;;  %1526 = vst.msk [vmem:[#allocation3] sm:$0xff] %vm1525_vm7, %v1430_v48 }
 0x130   : > { %1262 = vrot.lane.b32.xlu0 %v5207_v36, %s3557_s8 }
 0x131   : > { %v1259_v51 = vpop.permute.xlu1 %1258 }
 0x132   : > { %1344 = vst.msk [vmem:[#allocation3 + $0x58] sm:$0xff] %vm1332_vm6, %v1259_v51  ;;  %v1623_v54 = vpop.permute.xlu0 %1622 }
 0x133   : > { %2029 = vrot.lane.b32.xlu1 %v1955_v49, %s3561_s16  ;;  %1719 = vst.msk [vmem:[#allocation3] sm:$0xff] %vm1718_vm8, %v1623_v54 }
 0x134   : > { %2031 = vrot.lane.b32.xlu0 %v1956_v39, %s3561_s16 }
 0x135   : > { %v1432_v26 = vpop.permute.xlu1 %1431 }
 0x136   : > { %1527 = vst.msk [vmem:[#allocation3 + $0x8] sm:$0xff] %vm1525_vm7, %v1432_v26  ;;  %v1625_v44 = vpop.permute.xlu0 %1624  ;;  %v2155_v26 = vld [vmem:[#allocation2 + $0xfa] sm:$0xff] }
 0x137   : > { %1453 = vrot.lane.b32.xlu1 %v1955_v49, %s3558_s9  ;;  %1720 = vst.msk [vmem:[#allocation3 + $0x8] sm:$0xff] %vm1718_vm8, %v1625_v44 }
 0x138   : > { %1455 = vrot.lane.b32.xlu0 %v1956_v39, %s3558_s9  ;;  %v2154_v39 = vld [vmem:[#allocation2 + $0xf2] sm:$0xff] }
 0x139   : > { %v1434_v31 = vpop.permute.xlu1 %1433 }
 0x13a   : > { %1528 = vst.msk [vmem:[#allocation3 + $0x10] sm:$0xff] %vm1525_vm7, %v1434_v31  ;;  %v1436_v53 = vpop.permute.xlu0 %1435 }
 0x13b   : > { %2222 = vrot.lane.b32.xlu1 %v5208_v47, %s3562_s26  ;;  %1529 = vst.msk [vmem:[#allocation3 + $0x18] sm:$0xff] %vm1525_vm7, %v1436_v53 }
 0x13c   : > { %2224 = vrot.lane.b32.xlu0 %v4039_v43, %s3562_s26 }
 0x13d   : > { %v1817_v52 = vpop.permute.xlu1 %1816 }
 0x13e   : > { %1913 = vst.msk [vmem:[#allocation3] sm:$0xff] %vm1912_vm9, %v1817_v52  ;;  %v1819_v57 = vpop.permute.xlu0 %1818 }
 0x13f   : > { %1646 = vrot.lane.b32.xlu1 %v5208_v47, %s3559_s10  ;;  %1914 = vst.msk [vmem:[#allocation3 + $0x8] sm:$0xff] %vm1912_vm9, %v1819_v57  ;;  %v5216_v47 = vld [vmem:[#allocation15_spill] sm:$0xff] }
 0x140   : > { %1840 = vrot.lane.b32.xlu0 %v5209_v56, %s3560_s11 }
 0x141   : > { %v1627_v42 = vpop.permute.xlu1 %1626 }
 0x142   : > { %1721 = vst.msk [vmem:[#allocation3 + $0x10] sm:$0xff] %vm1718_vm8, %v1627_v42  ;;  %v1629_v50 = vpop.permute.xlu0 %1628 }
 0x143   : > { %1648 = vrot.lane.b32.xlu1 %v4039_v43, %s3559_s10  ;;  %1722 = vst.msk [vmem:[#allocation3 + $0x18] sm:$0xff] %vm1718_vm8, %v1629_v50  ;;  %v1192_v50 = vld [vmem:[#allocation2 + $0x108] sm:$0xff] }
 0x144   : > { %1842 = vrot.lane.b32.xlu0 %v5210_v1, %s3560_s11 }
 0x145   : > { %v2010_v8 = vpop.permute.xlu1 %2009 }
 0x146   : > { %2106 = vst.msk [vmem:[#allocation3] sm:$0xff] %vm2105_vm10, %v2010_v8  ;;  %v2012_v30 = vpop.permute.xlu0 %2011 }
 0x147   : > { %1264 = vrot.lane.b32.xlu1 %v5209_v56, %s3557_s8  ;;  %2107 = vst.msk [vmem:[#allocation3 + $0x8] sm:$0xff] %vm2105_vm10, %v2012_v30 }
 0x148   : > { %1266 = vrot.lane.b32.xlu0 %v5210_v1, %s3557_s8  ;;  %v5217_v1 = vld [vmem:[#allocation17_spill] sm:$0xff] }
 0x149   : > { %v1821_v43 = vpop.permute.xlu1 %1820 }
 0x14a   : > { %1915 = vst.msk [vmem:[#allocation3 + $0x10] sm:$0xff] %vm1912_vm9, %v1821_v43  ;;  %v1823_v46 = vpop.permute.xlu0 %1822 }
 0x14b   : > { %2033 = vrot.lane.b32.xlu1 %v1957_v38, %s3561_s16  ;;  %1916 = vst.msk [vmem:[#allocation3 + $0x18] sm:$0xff] %vm1912_vm9, %v1823_v46  ;;  %v1963_v46 = vld [vmem:[#allocation2 + $0x109] sm:$0xff] }
 0x14c   : > { %2035 = vrot.lane.b32.xlu0 %v1958_v45, %s3561_s16 }
 0x14d   : > { %v2203_v7 = vpop.permute.xlu1 %2202 }
 0x14e   : > { %2299 = vst.msk [vmem:[#allocation3] sm:$0xff] %vm2298_vm11, %v2203_v7  ;;  %v2205_v55 = vpop.permute.xlu0 %2204 }
 0x14f   : > { %1457 = vrot.lane.b32.xlu1 %v1957_v38, %s3558_s9  ;;  %2300 = vst.msk [vmem:[#allocation3 + $0x8] sm:$0xff] %vm2298_vm11, %v2205_v55 }
 0x150   : > { %1459 = vrot.lane.b32.xlu0 %v1958_v45, %s3558_s9 }
 0x151   : > { %v2014_v63 = vpop.permute.xlu1 %2013 }
 0x152   : > { %2108 = vst.msk [vmem:[#allocation3 + $0x10] sm:$0xff] %vm2105_vm10, %v2014_v63  ;;  %v2016_v59 = vpop.permute.xlu0 %2015 }
 0x153   : > { %2226 = vrot.lane.b32.xlu1 %v5211_v2, %s3562_s26  ;;  %2109 = vst.msk [vmem:[#allocation3 + $0x18] sm:$0xff] %vm2105_vm10, %v2016_v59 }
 0x154   : > { %2228 = vrot.lane.b32.xlu0 %v2151_v3, %s3562_s26 }
 0x155   : > { %v1438_v5 = vpop.permute.xlu1 %1437  ;;  %v2331_v32 = vld [vmem:[#allocation3] sm:$0xff] }
 0x156   : > { %1530 = vst.msk [vmem:[#allocation3 + $0x20] sm:$0xff] %vm1525_vm7, %v1438_v5  ;;  %3467 = vmatprep.mubr.msk.f32.mxu0 %vm2368_vm12, %v2331_v32  ;;  %v1440_v41 = vpop.permute.xlu0 %1439  ;;  %v2332_v4 = vld [vmem:[#allocation3 + $0x8] sm:$0xff] }
 0x157   : > { %1650 = vrot.lane.b32.xlu1 %v1572_v62, %s3559_s10  ;;  %1531 = vst.msk [vmem:[#allocation3 + $0x28] sm:$0xff] %vm1525_vm7, %v1440_v41  ;;  %3468 = vmatmul.mubr.msk.f32.vlgmr.msra.gmra.mrb[32].mxu0 %vm2368_vm12, %v2332_v4  ;;  %v1964_v62 = vld [vmem:[#allocation2 + $0x111] sm:$0xff] }
 0x158   : > { %1844 = vrot.lane.b32.xlu0 %v5212_v40, %s3560_s11 }
 0x159   : > { %v2207_v6 = vpop.permute.xlu1 %2206 }
 0x15a   : > { %2301 = vst.msk [vmem:[#allocation3 + $0x10] sm:$0xff] %vm2298_vm11, %v2207_v6  ;;  %v2209_v9 = vpop.permute.xlu0 %2208 }
 0x15b   : > { %1652 = vrot.lane.b32.xlu1 %v2151_v3, %s3559_s10  ;;  %2302 = vst.msk [vmem:[#allocation3 + $0x18] sm:$0xff] %vm2298_vm11, %v2209_v9 }
 0x15c   : > { %1846 = vrot.lane.b32.xlu0 %v5213_v58, %s3560_s11 }
 0x15d   : > { %v1631_v11 = vpop.permute.xlu1 %1630 }
 0x15e   : > { %1723 = vst.msk [vmem:[#allocation3 + $0x20] sm:$0xff] %vm1718_vm8, %v1631_v11  ;;  %v1825_v10 = vpop.permute.xlu0 %1824 }
 0x15f   : > { %1268 = vrot.lane.b32.xlu1 %v5212_v40, %s3557_s8  ;;  %1917 = vst.msk [vmem:[#allocation3 + $0x20] sm:$0xff] %vm1912_vm9, %v1825_v10 }
 0x160   : > { %1270 = vrot.lane.b32.xlu0 %v5213_v58, %s3557_s8 }
 0x161   : > { %v1633_v61 = vpop.permute.xlu1 %1632  ;;  %v2333_v12 = vld [vmem:[#allocation3 + $0x10] sm:$0xff]  ;;  %v3411_v30 = vpop.f32.mrb[0].mxu0 }
 0x162   : > { %1724 = vst.msk [vmem:[#allocation3 + $0x28] sm:$0xff] %vm1718_vm8, %v1633_v61  ;;  %3470 = vmatprep.mubr.msk.f32.mxu1 %vm2368_vm12, %v2333_v12  ;;  %v2018_v14 = vpop.permute.xlu0 %2017  ;;  %v2334_v17 = vld [vmem:[#allocation3 + $0x18] sm:$0xff]  ;;  %v2932_v43 = vsel %vm2693_vm13, %v3411_v30, 0.0  ;;  %v3002_v45 = vmul.f32 %v3411_v30, %v3411_v30  ;;  %v563_v7 = vpop.f32.mrb[1].mxu0 }
 0x163   : > { %2037 = vrot.lane.b32.xlu1 %v1959_v13, %s3561_s16  ;;  %2110 = vst.msk [vmem:[#allocation3 + $0x20] sm:$0xff] %vm2105_vm10, %v2018_v14  ;;  %3471 = vmatmul.mubr.msk.f32.vlgmr.msra.gmra.mrb[0].mxu1 %vm2368_vm12, %v2334_v17  ;;  %v2931_v3 = vsel %vm2693_vm13, %v563_v7, 0.0  ;;  %v3001_v59 = vmul.f32 %v563_v7, %v563_v7 }
 0x164   : > { %2039 = vrot.lane.b32.xlu0 %v1960_v15, %s3561_s16  ;;  %2727 = vst.msk [vmem:[%s4488_s29 + $0x8] sm:$0xff] %vm2693_vm13, %v3411_v30  ;;  %v3034_v63 = vsel %vm2693_vm13, %v3002_v45, 0.0  ;;  %2726 = vst.msk [vmem:[%s4488_s29] sm:$0xff] %vm2693_vm13, %v563_v7  ;;  %v2933_v5 = vadd.f32 %v2932_v43, %v2931_v3  ;;  %v1772_v43 = vld [vmem:[#allocation2 + $0x120] sm:$0xff] }
 0x165   : > { %v1827_v16 = vpop.permute.xlu1 %1826  ;;  %v3414_v2 = vpop.f32.mrb[2].mxu0  ;;  %v3033_v40 = vsel %vm2693_vm13, %v3001_v59, 0.0 }
 0x166   : > { %1918 = vst.msk [vmem:[#allocation3 + $0x28] sm:$0xff] %vm1912_vm9, %v1827_v16  ;;  %v2020_v19 = vpop.permute.xlu0 %2019  ;;  %v3004_v32 = vmul.f32 %v3414_v2, %v3414_v2  ;;  %v573_v41 = vpop.f32.mrb[3].mxu0  ;;  %v2936_v6 = vsel %vm2693_vm13, %v3414_v2, 0.0  ;;  %v3035_v10 = vadd.f32 %v3034_v63, %v3033_v40 }
 0x167   : > { %1461 = vrot.lane.b32.xlu1 %v1959_v13, %s3558_s9  ;;  %2111 = vst.msk [vmem:[#allocation3 + $0x28] sm:$0xff] %vm2105_vm10, %v2020_v19  ;;  %v2934_v9 = vsel %vm2693_vm13, %v573_v41, 0.0  ;;  %v3003_v58 = vmul.f32 %v573_v41, %v573_v41 }
 0x168   : > { %1463 = vrot.lane.b32.xlu0 %v1960_v15, %s3558_s9  ;;  %2729 = vst.msk [vmem:[%s4488_s29 + $0x18] sm:$0xff] %vm2693_vm13, %v3414_v2  ;;  %2728 = vst.msk [vmem:[%s4488_s29 + $0x10] sm:$0xff] %vm2693_vm13, %v573_v41  ;;  %v3038_v13 = vsel %vm2693_vm13, %v3004_v32, 0.0  ;;  %v2935_v61 = vadd.f32 %v2934_v9, %v2933_v5 }
 0x169   : > { %v1442_v20 = vpop.permute.xlu1 %1441  ;;  %v3417_v11 = vpop.f32.mrb[4].mxu0  ;;  %v3036_v14 = vsel %vm2693_vm13, %v3003_v58, 0.0 }
 0x16a   : > { %1532 = vst.msk [vmem:[#allocation3 + $0x30] sm:$0xff] %vm1525_vm7, %v1442_v20  ;;  %v1444_v60 = vpop.permute.xlu0 %1443  ;;  %v583_v12 = vpop.f32.mrb[5].mxu0  ;;  %v3006_v17 = vmul.f32 %v3417_v11, %v3417_v11  ;;  %v3037_v20 = vadd.f32 %v3036_v14, %v3035_v10 }
 0x16b   : > { %2230 = vrot.lane.b32.xlu1 %v2152_v18, %s3562_s26  ;;  %1533 = vst.msk [vmem:[#allocation3 + $0x38] sm:$0xff] %vm1525_vm7, %v1444_v60  ;;  %v2938_v16 = vsel %vm2693_vm13, %v583_v12, 0.0  ;;  %v3005_v19 = vmul.f32 %v583_v12, %v583_v12 }
 0x16c   : > { %2232 = vrot.lane.b32.xlu0 %v2153_v21, %s3562_s26  ;;  %2731 = vst.msk [vmem:[%s4488_s29 + $0x28] sm:$0xff] %vm2693_vm13, %v3417_v11  ;;  %2730 = vst.msk [vmem:[%s4488_s29 + $0x20] sm:$0xff] %vm2693_vm13, %v583_v12 }
 0x16d   : > { %v2211_v22 = vpop.permute.xlu1 %2210 }
 0x16e   : > { %2303 = vst.msk [vmem:[#allocation3 + $0x20] sm:$0xff] %vm2298_vm11, %v2211_v22  ;;  %v2213_v23 = vpop.permute.xlu0 %2212 }
 0x16f   : > { %1654 = vrot.lane.b32.xlu1 %v2152_v18, %s3559_s10  ;;  %2304 = vst.msk [vmem:[#allocation3 + $0x28] sm:$0xff] %vm2298_vm11, %v2213_v23  ;;  %v3420_v18 = vpop.f32.mrb[6].mxu0  ;;  %v2940_v23 = vsel %vm2693_vm13, %v3417_v11, 0.0  ;;  %v1773_v11 = vld [vmem:[#allocation2 + $0x128] sm:$0xff] }
 0x170   : > { %1848 = vrot.lane.b32.xlu0 %v5214_v25, %s3560_s11  ;;  %2733 = vst.msk [vmem:[%s4488_s29 + $0x38] sm:$0xff] %vm2693_vm13, %v3420_v18  ;;  %v593_v60 = vpop.f32.mrb[7].mxu0 }
 0x171   : > { %v1635_v0 = vpop.permute.xlu1 %1634  ;;  %2732 = vst.msk [vmem:[%s4488_s29 + $0x30] sm:$0xff] %vm2693_vm13, %v593_v60 }
 0x172   : > { %1725 = vst.msk [vmem:[#allocation3 + $0x30] sm:$0xff] %vm1718_vm8, %v1635_v0  ;;  %v1829_v24 = vpop.permute.xlu0 %1828  ;;  %v3007_v0 = vmul.f32 %v593_v60, %v593_v60 }
 0x173   : > { %1656 = vrot.lane.b32.xlu1 %v2153_v21, %s3559_s10  ;;  %1919 = vst.msk [vmem:[#allocation3 + $0x30] sm:$0xff] %vm1912_vm9, %v1829_v24  ;;  %v2937_v21 = vadd.f32 %v2936_v6, %v2935_v61  ;;  %v3423_v24 = vpop.f32.mrb[8].mxu0 }
 0x174   : > { %1850 = vrot.lane.b32.xlu0 %v5215_v27, %s3560_s11  ;;  %2735 = vst.msk [vmem:[%s4488_s29 + $0x48] sm:$0xff] %vm2693_vm13, %v3423_v24  ;;  %v2948_v3 = vsel %vm2693_vm13, %v3423_v24, 0.0 }
 0x175   : > { %v1637_v28 = vpop.permute.xlu1 %1636  ;;  %v2335_v29 = vld [vmem:[#allocation3 + $0x20] sm:$0xff] }
 0x176   : > { %1726 = vst.msk [vmem:[#allocation3 + $0x38] sm:$0xff] %vm1718_vm8, %v1637_v28  ;;  %3473 = vmatprep.mubr.msk.f32.mxu1 %vm2368_vm12, %v2335_v29  ;;  %v2022_v33 = vpop.permute.xlu0 %2021  ;;  %v2336_v34 = vld [vmem:[#allocation3 + $0x28] sm:$0xff]  ;;  %v2939_v28 = vadd.f32 %v2938_v16, %v2937_v21  ;;  %v3039_v29 = vadd.f32 %v3038_v13, %v3037_v20 }
 0x177   : > { %1272 = vrot.lane.b32.xlu1 %v5214_v25, %s3557_s8  ;;  %2112 = vst.msk [vmem:[#allocation3 + $0x30] sm:$0xff] %vm2105_vm10, %v2022_v33  ;;  %3474 = vmatmul.mubr.msk.f32.gmra.mrb[2].mxu1 %vm2368_vm12, %v2336_v34  ;;  %v3040_v25 = vsel %vm2693_vm13, %v3005_v19, 0.0  ;;  %v603_v33 = vpop.f32.mrb[9].mxu0 }
 0x178   : > { %1274 = vrot.lane.b32.xlu0 %v5215_v27, %s3557_s8  ;;  %v2156_v27 = vld [vmem:[#allocation2 + $0x10a] sm:$0xff]  ;;  %2734 = vst.msk [vmem:[%s4488_s29 + $0x40] sm:$0xff] %vm2693_vm13, %v603_v33  ;;  %v2946_v30 = vsel %vm2693_vm13, %v603_v33, 0.0 }
 0x179   : > { %v1831_v36 = vpop.permute.xlu1 %1830 }
 0x17a   : > { %1920 = vst.msk [vmem:[#allocation3 + $0x38] sm:$0xff] %vm1912_vm9, %v1831_v36  ;;  %v2024_v48 = vpop.permute.xlu0 %2023  ;;  %v3008_v36 = vmul.f32 %v3420_v18, %v3420_v18 }
 0x17b   : > { %2041 = vrot.lane.b32.xlu1 %v1961_v35, %s3561_s16  ;;  %2113 = vst.msk [vmem:[#allocation3 + $0x38] sm:$0xff] %vm2105_vm10, %v2024_v48  ;;  %v4535_v48 = vpop.f32.mrb[10].mxu0 }
 0x17c   : > { %2043 = vrot.lane.b32.xlu0 %v1962_v37, %s3561_s16  ;;  %2737 = vst.msk [vmem:[%s4488_s29 + $0x58] sm:$0xff] %vm2693_vm13, %v4535_v48  ;;  %v3012_v6 = vmul.f32 %v4535_v48, %v4535_v48 }
 0x17d   : > { %v1446_v49 = vpop.permute.xlu1 %1445 }
 0x17e   : > { %1534 = vst.msk [vmem:[#allocation3 + $0x40] sm:$0xff] %vm1525_vm7, %v1446_v49  ;;  %v1448_v51 = vpop.permute.xlu0 %1447  ;;  %v2157_v49 = vld [vmem:[#allocation2 + $0x112] sm:$0xff] }
 0x17f   : > { %1465 = vrot.lane.b32.xlu1 %v1961_v35, %s3558_s9  ;;  %1535 = vst.msk [vmem:[#allocation3 + $0x48] sm:$0xff] %vm1525_vm7, %v1448_v51  ;;  %v3042_v35 = vsel %vm2693_vm13, %v3006_v17, 0.0  ;;  %v3041_v51 = vadd.f32 %v3040_v25, %v3039_v29 }
 0x180   : > { %1467 = vrot.lane.b32.xlu0 %v1962_v37, %s3558_s9  ;;  %v2942_v37 = vsel %vm2693_vm13, %v593_v60, 0.0  ;;  %v3054_v60 = vsel %vm2693_vm13, %v3012_v6, 0.0 }
 0x181   : > { %v2215_v54 = vpop.permute.xlu1 %2214 }
 0x182   : > { %2305 = vst.msk [vmem:[#allocation3 + $0x30] sm:$0xff] %vm2298_vm11, %v2215_v54  ;;  %v2217_v44 = vpop.permute.xlu0 %2216  ;;  %v613_v54 = vpop.f32.mrb[11].mxu0 }
 0x183   : > { %2234 = vrot.lane.b32.xlu1 %v2154_v39, %s3562_s26  ;;  %2306 = vst.msk [vmem:[#allocation3 + $0x38] sm:$0xff] %vm2298_vm11, %v2217_v44  ;;  %v2944_v44 = vsel %vm2693_vm13, %v3420_v18, 0.0  ;;  %v3011_v2 = vmul.f32 %v613_v54, %v613_v54  ;;  %v2950_v9 = vsel %vm2693_vm13, %v613_v54, 0.0 }
 0x184   : > { %2236 = vrot.lane.b32.xlu0 %v2155_v26, %s3562_s26  ;;  %2736 = vst.msk [vmem:[%s4488_s29 + $0x50] sm:$0xff] %vm2693_vm13, %v613_v54 }
 0x185   : > { %v1639_v31 = vpop.permute.xlu1 %1638  ;;  %v3052_v14 = vsel %vm2693_vm13, %v3011_v2, 0.0 }
 0x186   : > { %1727 = vst.msk [vmem:[#allocation3 + $0x40] sm:$0xff] %vm1718_vm8, %v1639_v31  ;;  %v1833_v53 = vpop.permute.xlu0 %1832  ;;  %v3044_v31 = vsel %vm2693_vm13, %v3007_v0, 0.0 }
 0x187   : > { %1658 = vrot.lane.b32.xlu1 %v2154_v39, %s3559_s10  ;;  %1921 = vst.msk [vmem:[#allocation3 + $0x40] sm:$0xff] %vm1912_vm9, %v1833_v53  ;;  %v2941_v39 = vadd.f32 %v2940_v23, %v2939_v28  ;;  %v3009_v53 = vmul.f32 %v603_v33, %v603_v33 }
 0x188   : > { %1852 = vrot.lane.b32.xlu0 %v5216_v47, %s3560_s11  ;;  %v4546_v47 = vpop.f32.mrb[12].mxu0 }
 0x189   : > { %v1641_v52 = vpop.permute.xlu1 %1640  ;;  %v2337_v57 = vld [vmem:[#allocation3 + $0x30] sm:$0xff]  ;;  %2739 = vst.msk [vmem:[%s4488_s29 + $0x68] sm:$0xff] %vm2693_vm13, %v4546_v47  ;;  %v3048_v59 = vsel %vm2693_vm13, %v3009_v53, 0.0  ;;  %v2956_v29 = vsel %vm2693_vm13, %v4546_v47, 0.0 }
 0x18a   : > { %1728 = vst.msk [vmem:[#allocation3 + $0x48] sm:$0xff] %vm1718_vm8, %v1641_v52  ;;  %3476 = vmatprep.mubr.msk.f32.mxu1 %vm2368_vm12, %v2337_v57  ;;  %v2026_v56 = vpop.permute.xlu0 %2025  ;;  %v2338_v42 = vld [vmem:[#allocation3 + $0x38] sm:$0xff]  ;;  %v2943_v52 = vadd.f32 %v2942_v37, %v2941_v39  ;;  %v3043_v57 = vadd.f32 %v3042_v35, %v3041_v51 }
 0x18b   : > { %1660 = vrot.lane.b32.xlu1 %v2155_v26, %s3559_s10  ;;  %2114 = vst.msk [vmem:[#allocation3 + $0x40] sm:$0xff] %vm2105_vm10, %v2026_v56  ;;  %3477 = vmatmul.mubr.msk.f32.gmra.mrb[4].mxu1 %vm2368_vm12, %v2338_v42  ;;  %v623_v56 = vpop.f32.mrb[13].mxu0 }
 0x18c   : > { %1854 = vrot.lane.b32.xlu0 %v5217_v1, %s3560_s11  ;;  %2738 = vst.msk [vmem:[%s4488_s29 + $0x60] sm:$0xff] %vm2693_vm13, %v623_v56  ;;  %v3045_v45 = vadd.f32 %v3044_v31, %v3043_v57  ;;  %v3013_v17 = vmul.f32 %v623_v56, %v623_v56  ;;  %v2954_v23 = vsel %vm2693_vm13, %v623_v56, 0.0  ;;  %v1966_v31 = vld [vmem:[#allocation2 + $0x129] sm:$0xff] }
 0x18d   : > { %v1835_v8 = vpop.permute.xlu1 %1834 }
 0x18e   : > { %1922 = vst.msk [vmem:[#allocation3 + $0x48] sm:$0xff] %vm1912_vm9, %v1835_v8  ;;  %v2028_v38 = vpop.permute.xlu0 %2027  ;;  %v3010_v8 = vmul.f32 %v3423_v24, %v3423_v24  ;;  %v3056_v33 = vsel %vm2693_vm13, %v3013_v17, 0.0 }
 0x18f   : > { %1276 = vrot.lane.b32.xlu1 %v1192_v50, %s3557_s8  ;;  %2115 = vst.msk [vmem:[#allocation3 + $0x48] sm:$0xff] %vm2105_vm10, %v2028_v38  ;;  %v4557_v38 = vpop.f32.mrb[14].mxu0 }
 0x190   : > { %1278 = vrot.lane.b32.xlu0 %v5217_v1, %s3557_s8  ;;  %v3046_v1 = vsel %vm2693_vm13, %v3008_v36, 0.0  ;;  %2741 = vst.msk [vmem:[%s4488_s29 + $0x78] sm:$0xff] %vm2693_vm13, %v4557_v38  ;;  %v4564_v7 = vpop.f32.mrb[15].mxu0  ;;  %v3050_v40 = vsel %vm2693_vm13, %v3010_v8, 0.0  ;;  %v1965_v36 = vld [vmem:[#allocation2 + $0x121] sm:$0xff]  ;;  %v3016_v54 = vmul.f32 %v4557_v38, %v4557_v38  ;;  %v2960_v56 = vsel %vm2693_vm13, %v4557_v38, 0.0 }
 0x191   : > { %v1450_v55 = vpop.permute.xlu1 %1449  ;;  %2740 = vst.msk [vmem:[%s4488_s29 + $0x70] sm:$0xff] %vm2693_vm13, %v4564_v7  ;;  %v3047_v32 = vadd.f32 %v3046_v1, %v3045_v45 }
 0x192   : > { %1536 = vst.msk [vmem:[#allocation3 + $0x50] sm:$0xff] %vm1525_vm7, %v1450_v55  ;;  %v1452_v4 = vpop.permute.xlu0 %1451  ;;  %v3062_v45 = vsel %vm2693_vm13, %v3016_v54, 0.0 }
 0x193   : > { %2045 = vrot.lane.b32.xlu1 %v1963_v46, %s3561_s16  ;;  %1537 = vst.msk [vmem:[#allocation3 + $0x58] sm:$0xff] %vm1525_vm7, %v1452_v4  ;;  %v3049_v10 = vadd.f32 %v3048_v59, %v3047_v32 }
 0x194   : > { %2047 = vrot.lane.b32.xlu0 %v1964_v62, %s3561_s16 }
 0x195   : > { %v2219_v15 = vpop.permute.xlu1 %2218  ;;  %v3051_v18 = vadd.f32 %v3050_v40, %v3049_v10 }
 0x196   : > { %2307 = vst.msk [vmem:[#allocation3 + $0x40] sm:$0xff] %vm2298_vm11, %v2219_v15  ;;  %v2221_v22 = vpop.permute.xlu0 %2220  ;;  %v2952_v15 = vsel %vm2693_vm13, %v4535_v48, 0.0 }
 0x197   : > { %1469 = vrot.lane.b32.xlu1 %v1963_v46, %s3558_s9  ;;  %2308 = vst.msk [vmem:[#allocation3 + $0x48] sm:$0xff] %vm2298_vm11, %v2221_v22  ;;  %v2945_v46 = vadd.f32 %v2944_v44, %v2943_v52  ;;  %v3014_v22 = vmul.f32 %v4546_v47, %v4546_v47  ;;  %v3053_v0 = vadd.f32 %v3052_v14, %v3051_v18 }
 0x198   : > { %1471 = vrot.lane.b32.xlu0 %v1964_v62, %s3558_s9  ;;  %v4572_v62 = vpop.f32.mrb[16].mxu0 }
 0x199   : > { %v1643_v34 = vpop.permute.xlu1 %1642  ;;  %v2947_v5 = vadd.f32 %v2946_v30, %v2945_v46  ;;  %2743 = vst.msk [vmem:[%s4488_s29 + $0x88] sm:$0xff] %vm2693_vm13, %v4572_v62  ;;  %v4579_v41 = vpop.f32.mrb[17].mxu0  ;;  %v3055_v48 = vadd.f32 %v3054_v60, %v3053_v0  ;;  %v3058_v39 = vsel %vm2693_vm13, %v3014_v22, 0.0  ;;  %v3018_v46 = vmul.f32 %v4572_v62, %v4572_v62 }
 0x19a   : > { %1729 = vst.msk [vmem:[#allocation3 + $0x50] sm:$0xff] %vm1718_vm8, %v1643_v34  ;;  %v1837_v26 = vpop.permute.xlu0 %1836  ;;  %v4589_v58 = vpop.f32.mrb[18].mxu0  ;;  %v3015_v34 = vmul.f32 %v4564_v7, %v4564_v7 }
 0x19b   : > { %2238 = vrot.lane.b32.xlu1 %v2156_v27, %s3562_s26  ;;  %1923 = vst.msk [vmem:[#allocation3 + $0x50] sm:$0xff] %vm1912_vm9, %v1837_v26  ;;  %v2949_v13 = vadd.f32 %v2948_v3, %v2947_v5  ;;  %v4595_v61 = vpop.f32.mrb[19].mxu0  ;;  %v2958_v26 = vsel %vm2693_vm13, %v4564_v7, 0.0  ;;  %v3057_v53 = vadd.f32 %v3056_v33, %v3055_v48  ;;  %v2962_v7 = vsel %vm2693_vm13, %v4579_v41, 0.0 }
 0x19c   : > { %2240 = vrot.lane.b32.xlu0 %v2157_v49, %s3562_s26  ;;  %2742 = vst.msk [vmem:[%s4488_s29 + $0x80] sm:$0xff] %vm2693_vm13, %v4579_v41  ;;  %2745 = vst.msk [vmem:[%s4488_s29 + $0x98] sm:$0xff] %vm2693_vm13, %v4589_v58  ;;  %v4604_v16 = vpop.f32.mrb[20].mxu0  ;;  %v2964_v5 = vsel %vm2693_vm13, %v4572_v62, 0.0  ;;  %v3020_v62 = vmul.f32 %v4589_v58, %v4589_v58  ;;  %v2966_v10 = vsel %vm2693_vm13, %v4595_v61, 0.0  ;;  %v2968_v17 = vsel %vm2693_vm13, %v4589_v58, 0.0 }
 0x19d   : > { %v1645_v42 = vpop.permute.xlu1 %1644  ;;  %v2339_v50 = vld [vmem:[#allocation3 + $0x40] sm:$0xff]  ;;  %2744 = vst.msk [vmem:[%s4488_s29 + $0x90] sm:$0xff] %vm2693_vm13, %v4595_v61  ;;  %v2951_v19 = vadd.f32 %v2950_v9, %v2949_v13  ;;  %2747 = vst.msk [vmem:[%s4488_s29 + $0xa8] sm:$0xff] %vm2693_vm13, %v4604_v16  ;;  %v4610_v20 = vpop.f32.mrb[21].mxu0  ;;  %v3059_v30 = vadd.f32 %v3058_v39, %v3057_v53  ;;  %v3022_v0 = vmul.f32 %v4604_v16, %v4604_v16 }
 0x19e   : > { %1730 = vst.msk [vmem:[#allocation3 + $0x58] sm:$0xff] %vm1718_vm8, %v1645_v42  ;;  %3479 = vmatprep.mubr.msk.f32.mxu1 %vm2368_vm12, %v2339_v50  ;;  %v1839_v55 = vpop.permute.xlu0 %1838  ;;  %v2340_v63 = vld [vmem:[#allocation3 + $0x48] sm:$0xff]  ;;  %v4620_v25 = vpop.f32.mrb[22].mxu0  ;;  %v3060_v42 = vsel %vm2693_vm13, %v3015_v34, 0.0  ;;  %v3017_v50 = vmul.f32 %v4579_v41, %v4579_v41  ;;  %v3019_v41 = vmul.f32 %v4595_v61, %v4595_v61  ;;  %v2159_v13 = vld [vmem:[#allocation2 + $0x12a] sm:$0xff]  ;;  %v3021_v18 = vmul.f32 %v4610_v20, %v4610_v20 }
 0x19f   : > { %1662 = vrot.lane.b32.xlu1 %v2156_v27, %s3559_s10  ;;  %1924 = vst.msk [vmem:[#allocation3 + $0x58] sm:$0xff] %vm1912_vm9, %v1839_v55  ;;  %3480 = vmatmul.mubr.msk.f32.gmra.mrb[6].mxu1 %vm2368_vm12, %v2340_v63  ;;  %v2953_v24 = vadd.f32 %v2952_v15, %v2951_v19  ;;  %v4626_v27 = vpop.f32.mrb[23].mxu0  ;;  %v3061_v63 = vadd.f32 %v3060_v42, %v3059_v30  ;;  %v2970_v58 = vsel %vm2693_vm13, %v4610_v20, 0.0  ;;  %v3074_v54 = vsel %vm2693_vm13, %v3022_v0, 0.0 }
 0x1a0   : > { %1856 = vrot.lane.b32.xlu0 %v1772_v43, %s3560_s11  ;;  %2746 = vst.msk [vmem:[%s4488_s29 + $0xa0] sm:$0xff] %vm2693_vm13, %v4610_v20  ;;  %2749 = vst.msk [vmem:[%s4488_s29 + $0xb8] sm:$0xff] %vm2693_vm13, %v4620_v25  ;;  %v4637_v35 = vpop.f32.mrb[24].mxu0  ;;  %v3064_v32 = vsel %vm2693_vm13, %v3017_v50, 0.0  ;;  %v3068_v19 = vsel %vm2693_vm13, %v3019_v41, 0.0  ;;  %v3023_v48 = vmul.f32 %v4626_v27, %v4626_v27 }
 0x1a1   : > { %v1261_v4 = vpop.permute.xlu1 %1260  ;;  %2748 = vst.msk [vmem:[%s4488_s29 + $0xb0] sm:$0xff] %vm2693_vm13, %v4626_v27  ;;  %v2955_v37 = vadd.f32 %v2954_v23, %v2953_v24  ;;  %2751 = vst.msk [vmem:[%s4488_s29 + $0xc8] sm:$0xff] %vm2693_vm13, %v4637_v35  ;;  %v3063_v6 = vadd.f32 %v3062_v45, %v3061_v63  ;;  %v3070_v23 = vsel %vm2693_vm13, %v3020_v62, 0.0  ;;  %v1774_v24 = vld [vmem:[#allocation2 + $0x138] sm:$0xff]  ;;  %v3026_v45 = vmul.f32 %v4637_v35, %v4637_v35 }
 0x1a2   : > { %1345 = vst.msk [vmem:[#allocation3 + $0x60] sm:$0xff] %vm1332_vm6, %v1261_v4  ;;  %v1263_v12 = vpop.permute.xlu0 %1262  ;;  %v2158_v4 = vld [vmem:[#allocation2 + $0x122] sm:$0xff]  ;;  %v3076_v42 = vsel %vm2693_vm13, %v3023_v48, 0.0 }
 0x1a3   : > { %1664 = vrot.lane.b32.xlu1 %v2157_v49, %s3559_s10  ;;  %1346 = vst.msk [vmem:[#allocation3 + $0x68] sm:$0xff] %vm1332_vm6, %v1263_v12  ;;  %v4643_v49 = vpop.f32.mrb[25].mxu0  ;;  %v2957_v47 = vadd.f32 %v2956_v29, %v2955_v37  ;;  %v3065_v12 = vadd.f32 %v3064_v32, %v3063_v6  ;;  %v3072_v37 = vsel %vm2693_vm13, %v3021_v18, 0.0  ;;  %v1967_v32 = vld [vmem:[#allocation2 + $0x139] sm:$0xff] }
 0x1a4   : > { %1858 = vrot.lane.b32.xlu0 %v1773_v11, %s3560_s11  ;;  %2750 = vst.msk [vmem:[%s4488_s29 + $0xc0] sm:$0xff] %vm2693_vm13, %v4643_v49  ;;  %v4654_v44 = vpop.f32.mrb[26].mxu0  ;;  %v3025_v50 = vmul.f32 %v4643_v49, %v4643_v49 }
 0x1a5   : > { %v2030_v21 = vpop.permute.xlu1 %2029  ;;  %2753 = vst.msk [vmem:[%s4488_s29 + $0xd8] sm:$0xff] %vm2693_vm13, %v4654_v44  ;;  %v4660_v52 = vpop.f32.mrb[27].mxu0  ;;  %v2959_v8 = vadd.f32 %v2958_v26, %v2957_v47  ;;  %v3024_v26 = vmul.f32 %v4620_v25, %v4620_v25  ;;  %v3028_v6 = vmul.f32 %v4654_v44, %v4654_v44 }
 0x1a6   : > { %2116 = vst.msk [vmem:[#allocation3 + $0x50] sm:$0xff] %vm2105_vm10, %v2030_v21  ;;  %v2032_v28 = vpop.permute.xlu0 %2031  ;;  %v4671_v1 = vpop.f32.mrb[28].mxu0 }
 0x1a7   : > { %1280 = vrot.lane.b32.xlu1 %v1772_v43, %s3557_s8  ;;  %2117 = vst.msk [vmem:[#allocation3 + $0x58] sm:$0xff] %vm2105_vm10, %v2032_v28  ;;  %v4677_v43 = vpop.f32.mrb[29].mxu0  ;;  %v2961_v3 = vadd.f32 %v2960_v56, %v2959_v8  ;;  %v2976_v56 = vsel %vm2693_vm13, %v4620_v25, 0.0  ;;  %v2978_v25 = vsel %vm2693_vm13, %v4643_v49, 0.0  ;;  %v3030_v18 = vmul.f32 %v4671_v1, %v4671_v1 }
 0x1a8   : > { %1282 = vrot.lane.b32.xlu0 %v1773_v11, %s3557_s8  ;;  %2752 = vst.msk [vmem:[%s4488_s29 + $0xd0] sm:$0xff] %vm2693_vm13, %v4660_v52  ;;  %2755 = vst.msk [vmem:[%s4488_s29 + $0xe8] sm:$0xff] %vm2693_vm13, %v4671_v1  ;;  %v4688_v55 = vpop.f32.mrb[30].mxu0  ;;  %v3066_v11 = vsel %vm2693_vm13, %v3018_v46, 0.0 }
 0x1a9   : > { %v1454_v51 = vpop.permute.xlu1 %1453  ;;  %2754 = vst.msk [vmem:[%s4488_s29 + $0xe0] sm:$0xff] %vm2693_vm13, %v4677_v43  ;;  %2757 = vst.msk [vmem:[%s4488_s29 + $0xf8] sm:$0xff] %vm2693_vm13, %v4688_v55  ;;  %v4694_v59 = vpop.f32.mrb[31].mxu0  ;;  %v2963_v40 = vadd.f32 %v2962_v7, %v2961_v3  ;;  %v3067_v61 = vadd.f32 %v3066_v11, %v3065_v12  ;;  %v2980_v3 = vsel %vm2693_vm13, %v4637_v35, 0.0  ;;  %v2982_v35 = vsel %vm2693_vm13, %v4660_v52, 0.0 }
 0x1aa   : > { %1538 = vst.msk [vmem:[#allocation3 + $0x60] sm:$0xff] %vm1525_vm7, %v1454_v51  ;;  %v1456_v57 = vpop.permute.xlu0 %1455  ;;  %v3031_v0 = vmul.f32 %v4694_v59, %v4694_v59 }
 0x1ab   : > { %2049 = vrot.lane.b32.xlu1 %v1965_v36, %s3561_s16  ;;  %1539 = vst.msk [vmem:[#allocation3 + $0x68] sm:$0xff] %vm1525_vm7, %v1456_v57  ;;  %v2965_v15 = vadd.f32 %v2964_v5, %v2963_v40  ;;  %v3069_v28 = vadd.f32 %v3068_v19, %v3067_v61  ;;  %v3027_v5 = vmul.f32 %v4660_v52, %v4660_v52  ;;  %v3082_v40 = vsel %vm2693_vm13, %v3026_v45, 0.0 }
 0x1ac   : > { %2051 = vrot.lane.b32.xlu0 %v1966_v31, %s3561_s16  ;;  %2756 = vst.msk [vmem:[%s4488_s29 + $0xf0] sm:$0xff] %vm2693_vm13, %v4694_v59  ;;  %v3086_v19 = vsel %vm2693_vm13, %v3028_v6, 0.0 }
 0x1ad   : > { %v2223_v38 = vpop.permute.xlu1 %2222  ;;  %v2967_v21 = vadd.f32 %v2966_v10, %v2965_v15  ;;  %v3071_v51 = vadd.f32 %v3070_v23, %v3069_v28  ;;  %v3084_v12 = vsel %vm2693_vm13, %v3027_v5, 0.0  ;;  %v3029_v15 = vmul.f32 %v4677_v43, %v4677_v43 }
 0x1ae   : > { %2309 = vst.msk [vmem:[#allocation3 + $0x50] sm:$0xff] %vm2298_vm11, %v2223_v38  ;;  %v2225_v2 = vpop.permute.xlu0 %2224  ;;  %v3078_v38 = vsel %vm2693_vm13, %v3024_v26, 0.0 }
 0x1af   : > { %1473 = vrot.lane.b32.xlu1 %v1965_v36, %s3558_s9  ;;  %2310 = vst.msk [vmem:[#allocation3 + $0x58] sm:$0xff] %vm2298_vm11, %v2225_v2  ;;  %v2969_v29 = vadd.f32 %v2968_v17, %v2967_v21  ;;  %v2972_v36 = vsel %vm2693_vm13, %v4604_v16, 0.0  ;;  %v2974_v16 = vsel %vm2693_vm13, %v4626_v27, 0.0  ;;  %v3073_v53 = vadd.f32 %v3072_v37, %v3071_v51 }
 0x1b0   : > { %1475 = vrot.lane.b32.xlu0 %v1966_v31, %s3558_s9  ;;  %v1775_v31 = vld [vmem:[#allocation2 + $0x140] sm:$0xff]  ;;  %v3080_v2 = vsel %vm2693_vm13, %v3025_v50, 0.0  ;;  %v3088_v23 = vsel %vm2693_vm13, %v3029_v15, 0.0  ;;  %v3092_v51 = vsel %vm2693_vm13, %v3031_v0, 0.0  ;;  %v1972_v0 = vld [vmem:[#allocation2 + $0x171] sm:$0xff] }
 0x1b1   : > { %v1647_v9 = vpop.permute.xlu1 %1646  ;;  %v2971_v20 = vadd.f32 %v2970_v58, %v2969_v29  ;;  %v3075_v27 = vadd.f32 %v3074_v54, %v3073_v53  ;;  %v2160_v58 = vld [vmem:[#allocation2 + $0x13a] sm:$0xff]  ;;  %v3090_v29 = vsel %vm2693_vm13, %v3030_v18, 0.0 }
 0x1b2   : > { %1731 = vst.msk [vmem:[#allocation3 + $0x60] sm:$0xff] %vm1718_vm8, %v1647_v9  ;;  %v1841_v14 = vpop.permute.xlu0 %1840  ;;  %v1968_v9 = vld [vmem:[#allocation2 + $0x141] sm:$0xff] }
 0x1b3   : > { %2242 = vrot.lane.b32.xlu1 %v2158_v4, %s3562_s26  ;;  %1925 = vst.msk [vmem:[#allocation3 + $0x60] sm:$0xff] %vm1912_vm9, %v1841_v14  ;;  %v2973_v47 = vadd.f32 %v2972_v36, %v2971_v20  ;;  %v3077_v46 = vadd.f32 %v3076_v42, %v3075_v27  ;;  %v2992_v20 = vsel %vm2693_vm13, %v4688_v55, 0.0 }
 0x1b4   : > { %2244 = vrot.lane.b32.xlu0 %v2159_v13, %s3562_s26 }
 0x1b5   : > { %v1649_v60 = vpop.permute.xlu1 %1648  ;;  %v2341_v22 = vld [vmem:[#allocation3 + $0x50] sm:$0xff]  ;;  %v2975_v8 = vadd.f32 %v2974_v16, %v2973_v47  ;;  %v3079_v49 = vadd.f32 %v3078_v38, %v3077_v46 }
 0x1b6   : > { %1732 = vst.msk [vmem:[#allocation3 + $0x68] sm:$0xff] %vm1718_vm8, %v1649_v60  ;;  %3482 = vmatprep.mubr.msk.f32.mxu1 %vm2368_vm12, %v2341_v22  ;;  %v1843_v33 = vpop.permute.xlu0 %1842  ;;  %v2342_v34 = vld [vmem:[#allocation3 + $0x58] sm:$0xff]  ;;  %v2988_v22 = vsel %vm2693_vm13, %v4671_v1, 0.0  ;;  %v2990_v1 = vsel %vm2693_vm13, %v4694_v59, 0.0 }
 0x1b7   : > { %1666 = vrot.lane.b32.xlu1 %v2158_v4, %s3559_s10  ;;  %1926 = vst.msk [vmem:[#allocation3 + $0x68] sm:$0xff] %vm1912_vm9, %v1843_v33  ;;  %3483 = vmatmul.mubr.msk.f32.gmra.mrb[8].mxu1 %vm2368_vm12, %v2342_v34  ;;  %v2977_v7 = vadd.f32 %v2976_v56, %v2975_v8  ;;  %v3081_v11 = vadd.f32 %v3080_v2, %v3079_v49  ;;  %v2161_v34 = vld [vmem:[#allocation2 + $0x142] sm:$0xff]  ;;  %v1777_v8 = vld [vmem:[#allocation2 + $0x158] sm:$0xff] }
 0x1b8   : > { %1860 = vrot.lane.b32.xlu0 %v1774_v24, %s3560_s11  ;;  %v3032_v33 = vmul.f32 %v4688_v55, %v4688_v55  ;;  %v1969_v2 = vld [vmem:[#allocation2 + $0x151] sm:$0xff]  ;;  %v1970_v49 = vld [vmem:[#allocation2 + $0x159] sm:$0xff] }
 0x1b9   : > { %v1265_v39 = vpop.permute.xlu1 %1264  ;;  %v2979_v41 = vadd.f32 %v2978_v25, %v2977_v7  ;;  %v3083_v52 = vadd.f32 %v3082_v40, %v3081_v11 }
 0x1ba   : > { %1347 = vst.msk [vmem:[#allocation3 + $0x70] sm:$0xff] %vm1332_vm6, %v1265_v39  ;;  %v1267_v57 = vpop.permute.xlu0 %1266  ;;  %v3094_v16 = vsel %vm2693_vm13, %v3032_v33, 0.0  ;;  %v2165_v33 = vld [vmem:[#allocation2 + $0x172] sm:$0xff] }
 0x1bb   : > { %1668 = vrot.lane.b32.xlu1 %v2159_v13, %s3559_s10  ;;  %1348 = vst.msk [vmem:[#allocation3 + $0x78] sm:$0xff] %vm1332_vm6, %v1267_v57  ;;  %v2981_v62 = vadd.f32 %v2980_v3, %v2979_v41  ;;  %v2984_v13 = vsel %vm2693_vm13, %v4654_v44, 0.0  ;;  %v2986_v44 = vsel %vm2693_vm13, %v4677_v43, 0.0  ;;  %v3085_v21 = vadd.f32 %v3084_v12, %v3083_v52  ;;  %v1778_v52 = vld [vmem:[#allocation2 + $0x168] sm:$0xff] }
 0x1bc   : > { %1862 = vrot.lane.b32.xlu0 %v1775_v31, %s3560_s11 }
 0x1bd   : > { %v2034_v30 = vpop.permute.xlu1 %2033  ;;  %v2983_v14 = vadd.f32 %v2982_v35, %v2981_v62  ;;  %v3087_v43 = vadd.f32 %v3086_v19, %v3085_v21  ;;  %v2162_v62 = vld [vmem:[#allocation2 + $0x152] sm:$0xff] }
 0x1be   : > { %2118 = vst.msk [vmem:[#allocation3 + $0x60] sm:$0xff] %vm2105_vm10, %v2034_v30  ;;  %v2036_v63 = vpop.permute.xlu0 %2035 }
 0x1bf   : > { %1284 = vrot.lane.b32.xlu1 %v1774_v24, %s3557_s8  ;;  %2119 = vst.msk [vmem:[#allocation3 + $0x68] sm:$0xff] %vm2105_vm10, %v2036_v63  ;;  %v2985_v61 = vadd.f32 %v2984_v13, %v2983_v14  ;;  %v3089_v36 = vadd.f32 %v3088_v23, %v3087_v43  ;;  %v2163_v13 = vld [vmem:[#allocation2 + $0x15a] sm:$0xff] }
 0x1c0   : > { %1286 = vrot.lane.b32.xlu0 %v1775_v31, %s3557_s8  ;;  %v1776_v31 = vld [vmem:[#allocation2 + $0x150] sm:$0xff] }
 0x1c1   : > { %v1458_v4 = vpop.permute.xlu1 %1457  ;;  %v2987_v24 = vadd.f32 %v2986_v44, %v2985_v61  ;;  %v3091_v54 = vadd.f32 %v3090_v29, %v3089_v36  ;;  %v1779_v44 = vld [vmem:[#allocation2 + $0x170] sm:$0xff] }
 0x1c2   : > { %1540 = vst.msk [vmem:[#allocation3 + $0x70] sm:$0xff] %vm1525_vm7, %v1458_v4  ;;  %v1460_v10 = vpop.permute.xlu0 %1459 }
 0x1c3   : > { %2053 = vrot.lane.b32.xlu1 %v1967_v32, %s3561_s16  ;;  %1541 = vst.msk [vmem:[#allocation3 + $0x78] sm:$0xff] %vm1525_vm7, %v1460_v10  ;;  %v2989_v37 = vadd.f32 %v2988_v22, %v2987_v24  ;;  %v3093_v47 = vadd.f32 %v3092_v51, %v3091_v54  ;;  %v1971_v22 = vld [vmem:[#allocation2 + $0x169] sm:$0xff] }
 0x1c4   : > { %2055 = vrot.lane.b32.xlu0 %v1968_v9, %s3561_s16 }
 0x1c5   : > { %v2227_v17 = vpop.permute.xlu1 %2226  ;;  %v2991_v39 = vadd.f32 %v2990_v1, %v2989_v37  ;;  %v3095_v42 = vadd.f32 %v3094_v16, %v3093_v47  ;;  %v1780_v37 = vld [vmem:[#allocation2 + $0x180] sm:$0xff] }
 0x1c6   : > { %2311 = vst.msk [vmem:[#allocation3 + $0x60] sm:$0xff] %vm2298_vm11, %v2227_v17  ;;  %v2229_v60 = vpop.permute.xlu0 %2228  ;;  %v1973_v16 = vld [vmem:[#allocation2 + $0x181] sm:$0xff] }
 0x1c7   : > { %1477 = vrot.lane.b32.xlu1 %v1967_v32, %s3558_s9  ;;  %2312 = vst.msk [vmem:[#allocation3 + $0x68] sm:$0xff] %vm2298_vm11, %v2229_v60  ;;  %v2993_v53 = vadd.f32 %v2992_v20, %v2991_v39  ;;  %v3096_v30 = vrot.slane %v3095_v42, 4  ;;  %v1781_v39 = vld [vmem:[#allocation2 + $0x188] sm:$0xff] }
 0x1c8   : > { %1479 = vrot.lane.b32.xlu0 %v1968_v9, %s3558_s9 }
 0x1c9   : > { %v1651_v28 = vpop.permute.xlu1 %1650  ;;  %v2994_v56 = vrot.slane %v2993_v53, 4  ;;  %v3097_v25 = vadd.f32 %v3096_v30, %v3095_v42 }
 0x1ca   : > { %1733 = vst.msk [vmem:[#allocation3 + $0x70] sm:$0xff] %vm1718_vm8, %v1651_v28  ;;  %v1845_v48 = vpop.permute.xlu0 %1844  ;;  %v2164_v28 = vld [vmem:[#allocation2 + $0x16a] sm:$0xff] }
 0x1cb   : > { %2246 = vrot.lane.b32.xlu1 %v2160_v58, %s3562_s26  ;;  %1927 = vst.msk [vmem:[#allocation3 + $0x70] sm:$0xff] %vm1912_vm9, %v1845_v48  ;;  %v2995_v27 = vadd.f32 %v2994_v56, %v2993_v53  ;;  %v3098_v63 = vrot.slane %v3097_v25, 2  ;;  %v1974_v53 = vld [vmem:[#allocation2 + $0x189] sm:$0xff] }
 0x1cc   : > { %2248 = vrot.lane.b32.xlu0 %v2161_v34, %s3562_s26  ;;  %v2166_v56 = vld [vmem:[#allocation2 + $0x182] sm:$0xff] }
 0x1cd   : > { %v1653_v59 = vpop.permute.xlu1 %1652  ;;  %v2343_v26 = vld [vmem:[#allocation3 + $0x60] sm:$0xff]  ;;  %v2996_v45 = vrot.slane %v2995_v27, 2  ;;  %v3099_v32 = vadd.f32 %v3098_v63, %v3097_v25 }
 0x1ce   : > { %1734 = vst.msk [vmem:[#allocation3 + $0x78] sm:$0xff] %vm1718_vm8, %v1653_v59  ;;  %3485 = vmatprep.mubr.msk.f32.mxu1 %vm2368_vm12, %v2343_v26  ;;  %v1847_v55 = vpop.permute.xlu0 %1846  ;;  %v2344_v57 = vld [vmem:[#allocation3 + $0x68] sm:$0xff] }
 0x1cf   : > { %1670 = vrot.lane.b32.xlu1 %v2160_v58, %s3559_s10  ;;  %1928 = vst.msk [vmem:[#allocation3 + $0x78] sm:$0xff] %vm1912_vm9, %v1847_v55  ;;  %3486 = vmatmul.mubr.msk.f32.gmra.mrb[10].mxu1 %vm2368_vm12, %v2344_v57  ;;  %v2997_v7 = vadd.f32 %v2996_v45, %v2995_v27  ;;  %v3100_v40 = vrot.slane %v3099_v32, 1 }
 0x1d0   : > { %1864 = vrot.lane.b32.xlu0 %v1776_v31, %s3560_s11 }
 0x1d1   : > { %v1269_v50 = vpop.permute.xlu1 %1268  ;;  %v2998_v5 = vrot.slane %v2997_v7, 1  ;;  %v3101_v35 = vadd.f32 %v3100_v40, %v3099_v32  ;;  %v2169_v40 = vld [vmem:[#allocation2 + $0x1a2] sm:$0xff] }
 0x1d2   : > { %1349 = vst.msk [vmem:[#allocation3 + $0x80] sm:$0xff] %vm1332_vm6, %v1269_v50  ;;  %v1271_v38 = vpop.permute.xlu0 %1270  ;;  %v2167_v50 = vld [vmem:[#allocation2 + $0x18a] sm:$0xff] }
 0x1d3   : > { %1672 = vrot.lane.b32.xlu1 %v2161_v34, %s3559_s10  ;;  %1350 = vst.msk [vmem:[#allocation3 + $0x88] sm:$0xff] %vm1332_vm6, %v1271_v38  ;;  %v2999_v4 = vadd.f32 %v2998_v5, %v2997_v7  ;;  %v1782_v38 = vld [vmem:[#allocation2 + $0x198] sm:$0xff] }
 0x1d4   : > { %1866 = vrot.lane.b32.xlu0 %v1777_v8, %s3560_s11  ;;  %3102 = vst.msk [vmem:[%s284_s13 + $0x1] sm:$0x1] %vm2827_vm14, %v3101_v35  ;;  %v1975_v7 = vld [vmem:[#allocation2 + $0x199] sm:$0xff] }
 0x1d5   : > { %v2038_v46 = vpop.permute.xlu1 %2037  ;;  %3000 = vst.msk [vmem:[%s284_s13] sm:$0x1] %vm2827_vm14, %v2999_v4  ;;  %v2168_v5 = vld [vmem:[#allocation2 + $0x19a] sm:$0xff] }
 0x1d6   : > { %2120 = vst.msk [vmem:[#allocation3 + $0x70] sm:$0xff] %vm2105_vm10, %v2038_v46  ;;  %v2040_v3 = vpop.permute.xlu0 %2039 }
 0x1d7   : > { %1288 = vrot.lane.b32.xlu1 %v1776_v31, %s3557_s8  ;;  %2121 = vst.msk [vmem:[#allocation3 + $0x78] sm:$0xff] %vm2105_vm10, %v2040_v3  ;;  %v1783_v3 = vld [vmem:[#allocation2 + $0x1a0] sm:$0xff] }
 0x1d8   : > { %1290 = vrot.lane.b32.xlu0 %v1777_v8, %s3557_s8 }
 0x1d9   : > { %v1462_v41 = vpop.permute.xlu1 %1461 }
 0x1da   : > { %1542 = vst.msk [vmem:[#allocation3 + $0x80] sm:$0xff] %vm1525_vm7, %v1462_v41  ;;  %v1464_v6 = vpop.permute.xlu0 %1463  ;;  %v1976_v41 = vld [vmem:[#allocation2 + $0x1a1] sm:$0xff] }
 0x1db   : > { %2057 = vrot.lane.b32.xlu1 %v1969_v2, %s3561_s16  ;;  %1543 = vst.msk [vmem:[#allocation3 + $0x88] sm:$0xff] %vm1525_vm7, %v1464_v6 }
 0x1dc   : > { %2059 = vrot.lane.b32.xlu0 %v1970_v49, %s3561_s16 }
 0x1dd   : > { %v2231_v9 = vpop.permute.xlu1 %2230 }
 0x1de   : > { %2313 = vst.msk [vmem:[#allocation3 + $0x70] sm:$0xff] %vm2298_vm11, %v2231_v9  ;;  %v2233_v11 = vpop.permute.xlu0 %2232 }
 0x1df   : > { %1481 = vrot.lane.b32.xlu1 %v1969_v2, %s3558_s9  ;;  %2314 = vst.msk [vmem:[#allocation3 + $0x78] sm:$0xff] %vm2298_vm11, %v2233_v11 }
 0x1e0   : > { %1483 = vrot.lane.b32.xlu0 %v1970_v49, %s3558_s9 }
 0x1e1   : > { %v1655_v10 = vpop.permute.xlu1 %1654 }
 0x1e2   : > { %1735 = vst.msk [vmem:[#allocation3 + $0x80] sm:$0xff] %vm1718_vm8, %v1655_v10  ;;  %v1849_v12 = vpop.permute.xlu0 %1848 }
 0x1e3   : > { %2250 = vrot.lane.b32.xlu1 %v2162_v62, %s3562_s26  ;;  %1929 = vst.msk [vmem:[#allocation3 + $0x80] sm:$0xff] %vm1912_vm9, %v1849_v12 }
 0x1e4   : > { %2252 = vrot.lane.b32.xlu0 %v2163_v13, %s3562_s26 }
 0x1e5   : > { %v1657_v15 = vpop.permute.xlu1 %1656  ;;  %v2345_v14 = vld [vmem:[#allocation3 + $0x70] sm:$0xff] }
 0x1e6   : > { %1736 = vst.msk [vmem:[#allocation3 + $0x88] sm:$0xff] %vm1718_vm8, %v1657_v15  ;;  %3488 = vmatprep.mubr.msk.f32.mxu1 %vm2368_vm12, %v2345_v14  ;;  %v1851_v17 = vpop.permute.xlu0 %1850  ;;  %v2346_v19 = vld [vmem:[#allocation3 + $0x78] sm:$0xff] }
 0x1e7   : > { %1674 = vrot.lane.b32.xlu1 %v2162_v62, %s3559_s10  ;;  %1930 = vst.msk [vmem:[#allocation3 + $0x88] sm:$0xff] %vm1912_vm9, %v1851_v17  ;;  %3489 = vmatmul.mubr.msk.f32.gmra.mrb[12].mxu1 %vm2368_vm12, %v2346_v19 }
 0x1e8   : > { %1868 = vrot.lane.b32.xlu0 %v1778_v52, %s3560_s11 }
 0x1e9   : > { %v1273_v18 = vpop.permute.xlu1 %1272 }
 0x1ea   : > { %1351 = vst.msk [vmem:[#allocation3 + $0x90] sm:$0xff] %vm1332_vm6, %v1273_v18  ;;  %v1275_v21 = vpop.permute.xlu0 %1274 }
 0x1eb   : > { %1676 = vrot.lane.b32.xlu1 %v2163_v13, %s3559_s10  ;;  %1352 = vst.msk [vmem:[#allocation3 + $0x98] sm:$0xff] %vm1332_vm6, %v1275_v21 }
 0x1ec   : > { %1870 = vrot.lane.b32.xlu0 %v1779_v44, %s3560_s11 }
 0x1ed   : > { %v2042_v61 = vpop.permute.xlu1 %2041 }
 0x1ee   : > { %2122 = vst.msk [vmem:[#allocation3 + $0x80] sm:$0xff] %vm2105_vm10, %v2042_v61  ;;  %v2044_v60 = vpop.permute.xlu0 %2043 }
 0x1ef   : > { %1292 = vrot.lane.b32.xlu1 %v1778_v52, %s3557_s8  ;;  %2123 = vst.msk [vmem:[#allocation3 + $0x88] sm:$0xff] %vm2105_vm10, %v2044_v60 }
 0x1f0   : > { %1294 = vrot.lane.b32.xlu0 %v1779_v44, %s3557_s8 }
 0x1f1   : > { %v1466_v23 = vpop.permute.xlu1 %1465 }
 0x1f2   : > { %1544 = vst.msk [vmem:[#allocation3 + $0x90] sm:$0xff] %vm1525_vm7, %v1466_v23  ;;  %v1468_v58 = vpop.permute.xlu0 %1467 }
 0x1f3   : > { %2061 = vrot.lane.b32.xlu1 %v1971_v22, %s3561_s16  ;;  %1545 = vst.msk [vmem:[#allocation3 + $0x98] sm:$0xff] %vm1525_vm7, %v1468_v58 }
 0x1f4   : > { %2063 = vrot.lane.b32.xlu0 %v1972_v0, %s3561_s16 }
 0x1f5   : > { %v2235_v24 = vpop.permute.xlu1 %2234 }
 0x1f6   : > { %2315 = vst.msk [vmem:[#allocation3 + $0x80] sm:$0xff] %vm2298_vm11, %v2235_v24  ;;  %v2237_v43 = vpop.permute.xlu0 %2236 }
 0x1f7   : > { %1485 = vrot.lane.b32.xlu1 %v1971_v22, %s3558_s9  ;;  %2316 = vst.msk [vmem:[#allocation3 + $0x88] sm:$0xff] %vm2298_vm11, %v2237_v43 }
 0x1f8   : > { %1487 = vrot.lane.b32.xlu0 %v1972_v0, %s3558_s9 }
 0x1f9   : > { %v1659_v29 = vpop.permute.xlu1 %1658 }
 0x1fa   : > { %1737 = vst.msk [vmem:[#allocation3 + $0x90] sm:$0xff] %vm1718_vm8, %v1659_v29  ;;  %v1853_v1 = vpop.permute.xlu0 %1852 }
 0x1fb   : > { %2254 = vrot.lane.b32.xlu1 %v2164_v28, %s3562_s26  ;;  %1931 = vst.msk [vmem:[#allocation3 + $0x90] sm:$0xff] %vm1912_vm9, %v1853_v1 }
 0x1fc   : > { %2256 = vrot.lane.b32.xlu0 %v2165_v33, %s3562_s26 }
 0x1fd   : > { %v1661_v34 = vpop.permute.xlu1 %1660  ;;  %v2347_v36 = vld [vmem:[#allocation3 + $0x80] sm:$0xff] }
 0x1fe   : > { %1738 = vst.msk [vmem:[#allocation3 + $0x98] sm:$0xff] %vm1718_vm8, %v1661_v34  ;;  %3491 = vmatprep.mubr.msk.f32.mxu1 %vm2368_vm12, %v2347_v36  ;;  %v1855_v48 = vpop.permute.xlu0 %1854  ;;  %v2348_v20 = vld [vmem:[#allocation3 + $0x88] sm:$0xff] }
 0x1ff   : > { %1678 = vrot.lane.b32.xlu1 %v2164_v28, %s3559_s10  ;;  %1932 = vst.msk [vmem:[#allocation3 + $0x98] sm:$0xff] %vm1912_vm9, %v1855_v48  ;;  %3492 = vmatmul.mubr.msk.f32.gmra.mrb[14].mxu1 %vm2368_vm12, %v2348_v20 }
 0x200   : > { %1872 = vrot.lane.b32.xlu0 %v1780_v37, %s3560_s11 }
 0x201   : > { %v1277_v51 = vpop.permute.xlu1 %1276 }
 0x202   : > { %1353 = vst.msk [vmem:[#allocation3 + $0xa0] sm:$0xff] %vm1332_vm6, %v1277_v51  ;;  %v1279_v54 = vpop.permute.xlu0 %1278 }
 0x203   : > { %1680 = vrot.lane.b32.xlu1 %v2165_v33, %s3559_s10  ;;  %1354 = vst.msk [vmem:[#allocation3 + $0xa8] sm:$0xff] %vm1332_vm6, %v1279_v54 }
 0x204   : > { %1874 = vrot.lane.b32.xlu0 %v1781_v39, %s3560_s11 }
 0x205   : > { %v2046_v59 = vpop.permute.xlu1 %2045 }
 0x206   : > { %2124 = vst.msk [vmem:[#allocation3 + $0x90] sm:$0xff] %vm2105_vm10, %v2046_v59  ;;  %v2048_v26 = vpop.permute.xlu0 %2047 }
 0x207   : > { %1296 = vrot.lane.b32.xlu1 %v1780_v37, %s3557_s8  ;;  %2125 = vst.msk [vmem:[#allocation3 + $0x98] sm:$0xff] %vm2105_vm10, %v2048_v26 }
 0x208   : > { %1298 = vrot.lane.b32.xlu0 %v1781_v39, %s3557_s8 }
 0x209   : > { %v1470_v31 = vpop.permute.xlu1 %1469 }
 0x20a   : > { %1546 = vst.msk [vmem:[#allocation3 + $0xa0] sm:$0xff] %vm1525_vm7, %v1470_v31  ;;  %v1472_v47 = vpop.permute.xlu0 %1471 }
 0x20b   : > { %2065 = vrot.lane.b32.xlu1 %v1973_v16, %s3561_s16  ;;  %1547 = vst.msk [vmem:[#allocation3 + $0xa8] sm:$0xff] %vm1525_vm7, %v1472_v47 }
 0x20c   : > { %2067 = vrot.lane.b32.xlu0 %v1974_v53, %s3561_s16 }
 0x20d   : > { %v2239_v55 = vpop.permute.xlu1 %2238 }
 0x20e   : > { %2317 = vst.msk [vmem:[#allocation3 + $0x90] sm:$0xff] %vm2298_vm11, %v2239_v55  ;;  %v2241_v57 = vpop.permute.xlu0 %2240 }
 0x20f   : > { %1489 = vrot.lane.b32.xlu1 %v1973_v16, %s3558_s9  ;;  %2318 = vst.msk [vmem:[#allocation3 + $0x98] sm:$0xff] %vm2298_vm11, %v2241_v57 }
 0x210   : > { %1491 = vrot.lane.b32.xlu0 %v1974_v53, %s3558_s9 }
 0x211   : > { %v1663_v42 = vpop.permute.xlu1 %1662 }
 0x212   : > { %1739 = vst.msk [vmem:[#allocation3 + $0xa0] sm:$0xff] %vm1718_vm8, %v1663_v42  ;;  %v1857_v8 = vpop.permute.xlu0 %1856 }
 0x213   : > { %2258 = vrot.lane.b32.xlu1 %v2166_v56, %s3562_s26  ;;  %1933 = vst.msk [vmem:[#allocation3 + $0xa0] sm:$0xff] %vm1912_vm9, %v1857_v8 }
 0x214   : > { %2260 = vrot.lane.b32.xlu0 %v2167_v50, %s3562_s26 }
 0x215   : > { %v1665_v27 = vpop.permute.xlu1 %1664  ;;  %v2349_v30 = vld [vmem:[#allocation3 + $0x90] sm:$0xff] }
 0x216   : > { %1740 = vst.msk [vmem:[#allocation3 + $0xa8] sm:$0xff] %vm1718_vm8, %v1665_v27  ;;  %3494 = vmatprep.mubr.msk.f32.mxu1 %vm2368_vm12, %v2349_v30  ;;  %v1859_v45 = vpop.permute.xlu0 %1858  ;;  %v2350_v25 = vld [vmem:[#allocation3 + $0x98] sm:$0xff] }
 0x217   : > { %1682 = vrot.lane.b32.xlu1 %v2166_v56, %s3559_s10  ;;  %1934 = vst.msk [vmem:[#allocation3 + $0xa8] sm:$0xff] %vm1912_vm9, %v1859_v45  ;;  %3495 = vmatmul.mubr.msk.f32.gmra.mrb[16].mxu1 %vm2368_vm12, %v2350_v25 }
 0x218   : > { %1876 = vrot.lane.b32.xlu0 %v1782_v38, %s3560_s11 }
 0x219   : > { %v1281_v46 = vpop.permute.xlu1 %1280 }
 0x21a   : > { %1355 = vst.msk [vmem:[#allocation3 + $0xb0] sm:$0xff] %vm1332_vm6, %v1281_v46  ;;  %v1283_v63 = vpop.permute.xlu0 %1282 }
 0x21b   : > { %1684 = vrot.lane.b32.xlu1 %v2167_v50, %s3559_s10  ;;  %1356 = vst.msk [vmem:[#allocation3 + $0xb8] sm:$0xff] %vm1332_vm6, %v1283_v63  ;;  %s4916_s10 = scalar_lea.vmem %s5127_s3, %s3661_s24 }
 0x21c   : > { %2069 = vrot.lane.b32.xlu0 %v1975_v7, %s3561_s16 }
 0x21d   : > { %v2050_v2 = vpop.permute.xlu1 %2049 }
 0x21e   : > { %2126 = vst.msk [vmem:[#allocation3 + $0xa0] sm:$0xff] %vm2105_vm10, %v2050_v2  ;;  %v2052_v32 = vpop.permute.xlu0 %2051 }
 0x21f   : > { %1878 = vrot.lane.b32.xlu1 %v1783_v3, %s3560_s11  ;;  %2127 = vst.msk [vmem:[#allocation3 + $0xa8] sm:$0xff] %vm2105_vm10, %v2052_v32 }
 0x220   : > { %2262 = vrot.lane.b32.xlu0 %v2168_v5, %s3562_s26 }
 0x221   : > { %v1474_v49 = vpop.permute.xlu1 %1473 }
 0x222   : > { %1548 = vst.msk [vmem:[#allocation3 + $0xb0] sm:$0xff] %vm1525_vm7, %v1474_v49  ;;  %v1476_v4 = vpop.permute.xlu0 %1475 }
 0x223   : > { %2071 = vrot.lane.b32.xlu1 %v1976_v41, %s3561_s16  ;;  %1549 = vst.msk [vmem:[#allocation3 + $0xb8] sm:$0xff] %vm1525_vm7, %v1476_v4 }
 0x225   : > { %v2243_v6 = vpop.permute.xlu1 %2242 }
 0x226   : > { %2319 = vst.msk [vmem:[#allocation3 + $0xa0] sm:$0xff] %vm2298_vm11, %v2243_v6  ;;  %v2245_v35 = vpop.permute.xlu0 %2244 }
 0x227   : > { %2264 = vrot.lane.b32.xlu1 %v2169_v40, %s3562_s26  ;;  %2320 = vst.msk [vmem:[#allocation3 + $0xa8] sm:$0xff] %vm2298_vm11, %v2245_v35 }
 0x229   : > { %v1667_v9 = vpop.permute.xlu1 %1666 }
 0x22a   : > { %1741 = vst.msk [vmem:[#allocation3 + $0xb0] sm:$0xff] %vm1718_vm8, %v1667_v9  ;;  %v1861_v11 = vpop.permute.xlu0 %1860  ;;  %v3469_v62 = vpop.f32.mrb[32].mxu0 }
 0x22b   : > { %1935 = vst.msk [vmem:[#allocation3 + $0xb0] sm:$0xff] %vm1912_vm9, %v1861_v11  ;;  %v2759_v10 = vsel %vm2693_vm13, %v3469_v62, 0.0  ;;  %v2830_v13 = vmul.f32 %v3469_v62, %v3469_v62  ;;  %v2534_v12 = vpop.f32.mrb[33].mxu0 }
 0x22c   : > { %2695 = vst.msk [vmem:[%s4916_s10 + $0x8] sm:$0xff] %vm2693_vm13, %v3469_v62  ;;  %2694 = vst.msk [vmem:[%s4916_s10] sm:$0xff] %vm2693_vm13, %v2534_v12  ;;  %v2758_v52 = vsel %vm2693_vm13, %v2534_v12, 0.0  ;;  %v2829_v17 = vmul.f32 %v2534_v12, %v2534_v12 }
 0x22d   : > { %v1669_v15 = vpop.permute.xlu1 %1668  ;;  %v2351_v14 = vld [vmem:[#allocation3 + $0xa0] sm:$0xff]  ;;  %v2862_v19 = vsel %vm2693_vm13, %v2830_v13, 0.0  ;;  %v2760_v18 = vadd.f32 %v2759_v10, %v2758_v52 }
 0x22e   : > { %1742 = vst.msk [vmem:[#allocation3 + $0xb8] sm:$0xff] %vm1718_vm8, %v1669_v15  ;;  %3497 = vmatprep.mubr.msk.f32.mxu1 %vm2368_vm12, %v2351_v14  ;;  %v1863_v44 = vpop.permute.xlu0 %1862  ;;  %v2861_v21 = vsel %vm2693_vm13, %v2829_v17, 0.0  ;;  %v2352_v61 = vld [vmem:[#allocation3 + $0xa8] sm:$0xff] }
 0x22f   : > { %1936 = vst.msk [vmem:[#allocation3 + $0xb8] sm:$0xff] %vm1912_vm9, %v1863_v44  ;;  %v2863_v60 = vadd.f32 %v2862_v19, %v2861_v21  ;;  %3498 = vmatmul.mubr.msk.f32.gmra.mrb[18].mxu1 %vm2368_vm12, %v2352_v61 }
 0x231   : > { %v1285_v22 = vpop.permute.xlu1 %1284 }
 0x232   : > { %1357 = vst.msk [vmem:[#allocation3 + $0xc0] sm:$0xff] %vm1332_vm6, %v1285_v22  ;;  %v1287_v23 = vpop.permute.xlu0 %1286 }
 0x233   : > { %1358 = vst.msk [vmem:[#allocation3 + $0xc8] sm:$0xff] %vm1332_vm6, %v1287_v23 }
 0x235   : > { %v2054_v0 = vpop.permute.xlu1 %2053 }
 0x236   : > { %2128 = vst.msk [vmem:[#allocation3 + $0xb0] sm:$0xff] %vm2105_vm10, %v2054_v0  ;;  %v2056_v58 = vpop.permute.xlu0 %2055  ;;  %v3472_v24 = vpop.f32.mrb[0].mxu1 }
 0x237   : > { %2129 = vst.msk [vmem:[#allocation3 + $0xb8] sm:$0xff] %vm2105_vm10, %v2056_v58  ;;  %v2832_v43 = vmul.f32 %v3472_v24, %v3472_v24  ;;  %v2544_v28 = vpop.f32.mrb[1].mxu1  ;;  %v2763_v29 = vsel %vm2693_vm13, %v3472_v24, 0.0 }
 0x238   : > { %2697 = vst.msk [vmem:[%s4916_s10 + $0x18] sm:$0xff] %vm2693_vm13, %v3472_v24  ;;  %2696 = vst.msk [vmem:[%s4916_s10 + $0x10] sm:$0xff] %vm2693_vm13, %v2544_v28  ;;  %v2761_v33 = vsel %vm2693_vm13, %v2544_v28, 0.0  ;;  %v2831_v1 = vmul.f32 %v2544_v28, %v2544_v28 }
 0x239   : > { %v1478_v34 = vpop.permute.xlu1 %1477  ;;  %v2762_v36 = vadd.f32 %v2761_v33, %v2760_v18  ;;  %v2866_v37 = vsel %vm2693_vm13, %v2832_v43, 0.0 }
 0x23a   : > { %1550 = vst.msk [vmem:[#allocation3 + $0xc0] sm:$0xff] %vm1525_vm7, %v1478_v34  ;;  %v2864_v48 = vsel %vm2693_vm13, %v2831_v1, 0.0  ;;  %v1480_v20 = vpop.permute.xlu0 %1479 }
 0x23b   : > { %v2865_v51 = vadd.f32 %v2864_v48, %v2863_v60  ;;  %1551 = vst.msk [vmem:[#allocation3 + $0xc8] sm:$0xff] %vm1525_vm7, %v1480_v20  ;;  %v2764_v39 = vadd.f32 %v2763_v29, %v2762_v36 }
 0x23d   : > { %v2247_v54 = vpop.permute.xlu1 %2246  ;;  %v2867_v59 = vadd.f32 %v2866_v37, %v2865_v51 }
 0x23e   : > { %2321 = vst.msk [vmem:[#allocation3 + $0xb0] sm:$0xff] %vm2298_vm11, %v2247_v54  ;;  %v2249_v26 = vpop.permute.xlu0 %2248 }
 0x23f   : > { %2322 = vst.msk [vmem:[#allocation3 + $0xb8] sm:$0xff] %vm2298_vm11, %v2249_v26 }
 0x241   : > { %v1671_v16 = vpop.permute.xlu1 %1670 }
 0x242   : > { %1743 = vst.msk [vmem:[#allocation3 + $0xc0] sm:$0xff] %vm1718_vm8, %v1671_v16  ;;  %v1865_v31 = vpop.permute.xlu0 %1864 }
 0x243   : > { %1937 = vst.msk [vmem:[#allocation3 + $0xc0] sm:$0xff] %vm1912_vm9, %v1865_v31 }
 0x245   : > { %v1673_v53 = vpop.permute.xlu1 %1672  ;;  %v2353_v47 = vld [vmem:[#allocation3 + $0xb0] sm:$0xff] }
 0x246   : > { %1744 = vst.msk [vmem:[#allocation3 + $0xc8] sm:$0xff] %vm1718_vm8, %v1673_v53  ;;  %3500 = vmatprep.mubr.msk.f32.mxu1 %vm2368_vm12, %v2353_v47  ;;  %v1867_v55 = vpop.permute.xlu0 %1866  ;;  %v2354_v57 = vld [vmem:[#allocation3 + $0xb8] sm:$0xff] }
 0x247   : > { %1938 = vst.msk [vmem:[#allocation3 + $0xc8] sm:$0xff] %vm1912_vm9, %v1867_v55  ;;  %3501 = vmatmul.mubr.msk.f32.gmra.mrb[20].mxu1 %vm2368_vm12, %v2354_v57 }
 0x249   : > { %v1289_v56 = vpop.permute.xlu1 %1288 }
 0x24a   : > { %1359 = vst.msk [vmem:[#allocation3 + $0xd0] sm:$0xff] %vm1332_vm6, %v1289_v56  ;;  %v1291_v42 = vpop.permute.xlu0 %1290  ;;  %v3475_v50 = vpop.f32.mrb[2].mxu1 }
 0x24b   : > { %1360 = vst.msk [vmem:[#allocation3 + $0xd8] sm:$0xff] %vm1332_vm6, %v1291_v42  ;;  %v2834_v8 = vmul.f32 %v3475_v50, %v3475_v50  ;;  %v2554_v27 = vpop.f32.mrb[3].mxu1  ;;  %v2767_v30 = vsel %vm2693_vm13, %v3475_v50, 0.0 }
 0x24c   : > { %2699 = vst.msk [vmem:[%s4916_s10 + $0x28] sm:$0xff] %vm2693_vm13, %v3475_v50  ;;  %2698 = vst.msk [vmem:[%s4916_s10 + $0x20] sm:$0xff] %vm2693_vm13, %v2554_v27  ;;  %v2765_v38 = vsel %vm2693_vm13, %v2554_v27, 0.0  ;;  %v2833_v45 = vmul.f32 %v2554_v27, %v2554_v27 }
 0x24d   : > { %v2058_v25 = vpop.permute.xlu1 %2057  ;;  %v2766_v46 = vadd.f32 %v2765_v38, %v2764_v39  ;;  %v2870_v7 = vsel %vm2693_vm13, %v2834_v8, 0.0 }
 0x24e   : > { %2130 = vst.msk [vmem:[#allocation3 + $0xc0] sm:$0xff] %vm2105_vm10, %v2058_v25  ;;  %v2868_v63 = vsel %vm2693_vm13, %v2833_v45, 0.0  ;;  %v2060_v3 = vpop.permute.xlu0 %2059 }
 0x24f   : > { %v2869_v2 = vadd.f32 %v2868_v63, %v2867_v59  ;;  %2131 = vst.msk [vmem:[#allocation3 + $0xc8] sm:$0xff] %vm2105_vm10, %v2060_v3  ;;  %v2768_v5 = vadd.f32 %v2767_v30, %v2766_v46 }
 0x251   : > { %v1482_v32 = vpop.permute.xlu1 %1481  ;;  %v2871_v41 = vadd.f32 %v2870_v7, %v2869_v2 }
 0x252   : > { %1552 = vst.msk [vmem:[#allocation3 + $0xd0] sm:$0xff] %vm1525_vm7, %v1482_v32  ;;  %v1484_v49 = vpop.permute.xlu0 %1483 }
 0x253   : > { %1553 = vst.msk [vmem:[#allocation3 + $0xd8] sm:$0xff] %vm1525_vm7, %v1484_v49 }
 0x255   : > { %v2251_v4 = vpop.permute.xlu1 %2250 }
 0x256   : > { %2323 = vst.msk [vmem:[#allocation3 + $0xc0] sm:$0xff] %vm2298_vm11, %v2251_v4  ;;  %v2253_v40 = vpop.permute.xlu0 %2252 }
 0x257   : > { %2324 = vst.msk [vmem:[#allocation3 + $0xc8] sm:$0xff] %vm2298_vm11, %v2253_v40 }
 0x259   : > { %v1675_v6 = vpop.permute.xlu1 %1674 }
 0x25a   : > { %1745 = vst.msk [vmem:[#allocation3 + $0xd0] sm:$0xff] %vm1718_vm8, %v1675_v6  ;;  %v1869_v35 = vpop.permute.xlu0 %1868 }
 0x25b   : > { %1939 = vst.msk [vmem:[#allocation3 + $0xd0] sm:$0xff] %vm1912_vm9, %v1869_v35 }
 0x25d   : > { %v1677_v9 = vpop.permute.xlu1 %1676  ;;  %v2355_v11 = vld [vmem:[#allocation3 + $0xc0] sm:$0xff] }
 0x25e   : > { %1746 = vst.msk [vmem:[#allocation3 + $0xd8] sm:$0xff] %vm1718_vm8, %v1677_v9  ;;  %3503 = vmatprep.mubr.msk.f32.mxu1 %vm2368_vm12, %v2355_v11  ;;  %v1871_v62 = vpop.permute.xlu0 %1870  ;;  %v3478_v10 = vpop.f32.mrb[4].mxu1  ;;  %v2356_v13 = vld [vmem:[#allocation3 + $0xc8] sm:$0xff] }
 0x25f   : > { %1940 = vst.msk [vmem:[#allocation3 + $0xd8] sm:$0xff] %vm1912_vm9, %v1871_v62  ;;  %v2836_v12 = vmul.f32 %v3478_v10, %v3478_v10  ;;  %v2564_v15 = vpop.f32.mrb[5].mxu1  ;;  %3504 = vmatmul.mubr.msk.f32.gmra.mrb[22].mxu1 %vm2368_vm12, %v2356_v13  ;;  %v2771_v14 = vsel %vm2693_vm13, %v3478_v10, 0.0 }
 0x260   : > { %2701 = vst.msk [vmem:[%s4916_s10 + $0x38] sm:$0xff] %vm2693_vm13, %v3478_v10  ;;  %2700 = vst.msk [vmem:[%s4916_s10 + $0x30] sm:$0xff] %vm2693_vm13, %v2564_v15  ;;  %v2769_v52 = vsel %vm2693_vm13, %v2564_v15, 0.0  ;;  %v2835_v17 = vmul.f32 %v2564_v15, %v2564_v15 }
 0x261   : > { %v1293_v19 = vpop.permute.xlu1 %1292  ;;  %v2770_v18 = vadd.f32 %v2769_v52, %v2768_v5  ;;  %v2874_v44 = vsel %vm2693_vm13, %v2836_v12, 0.0 }
 0x262   : > { %1361 = vst.msk [vmem:[#allocation3 + $0xe0] sm:$0xff] %vm1332_vm6, %v1293_v19  ;;  %v2872_v21 = vsel %vm2693_vm13, %v2835_v17, 0.0  ;;  %v1295_v61 = vpop.permute.xlu0 %1294 }
 0x263   : > { %v2873_v60 = vadd.f32 %v2872_v21, %v2871_v41  ;;  %1362 = vst.msk [vmem:[#allocation3 + $0xe8] sm:$0xff] %vm1332_vm6, %v1295_v61  ;;  %v2772_v22 = vadd.f32 %v2771_v14, %v2770_v18 }
 0x265   : > { %v2062_v23 = vpop.permute.xlu1 %2061  ;;  %v2875_v0 = vadd.f32 %v2874_v44, %v2873_v60 }
 0x266   : > { %2132 = vst.msk [vmem:[#allocation3 + $0xd0] sm:$0xff] %vm2105_vm10, %v2062_v23  ;;  %v2064_v58 = vpop.permute.xlu0 %2063 }
 0x267   : > { %2133 = vst.msk [vmem:[#allocation3 + $0xd8] sm:$0xff] %vm2105_vm10, %v2064_v58 }
 0x269   : > { %v1486_v24 = vpop.permute.xlu1 %1485 }
 0x26a   : > { %1554 = vst.msk [vmem:[#allocation3 + $0xe0] sm:$0xff] %vm1525_vm7, %v1486_v24  ;;  %v1488_v43 = vpop.permute.xlu0 %1487 }
 0x26b   : > { %1555 = vst.msk [vmem:[#allocation3 + $0xe8] sm:$0xff] %vm1525_vm7, %v1488_v43 }
 0x26d   : > { %v2255_v28 = vpop.permute.xlu1 %2254 }
 0x26e   : > { %2325 = vst.msk [vmem:[#allocation3 + $0xd0] sm:$0xff] %vm2298_vm11, %v2255_v28  ;;  %v2257_v29 = vpop.permute.xlu0 %2256 }
 0x26f   : > { %2326 = vst.msk [vmem:[#allocation3 + $0xd8] sm:$0xff] %vm2298_vm11, %v2257_v29 }
 0x271   : > { %v1679_v33 = vpop.permute.xlu1 %1678 }
 0x272   : > { %1747 = vst.msk [vmem:[#allocation3 + $0xe0] sm:$0xff] %vm1718_vm8, %v1679_v33  ;;  %v1873_v1 = vpop.permute.xlu0 %1872  ;;  %v3481_v34 = vpop.f32.mrb[6].mxu1 }
 0x273   : > { %1941 = vst.msk [vmem:[#allocation3 + $0xe0] sm:$0xff] %vm1912_vm9, %v1873_v1  ;;  %v2838_v36 = vmul.f32 %v3481_v34, %v3481_v34  ;;  %v2574_v37 = vpop.f32.mrb[7].mxu1  ;;  %v2775_v48 = vsel %vm2693_vm13, %v3481_v34, 0.0 }
 0x274   : > { %2703 = vst.msk [vmem:[%s4916_s10 + $0x48] sm:$0xff] %vm2693_vm13, %v3481_v34  ;;  %2702 = vst.msk [vmem:[%s4916_s10 + $0x40] sm:$0xff] %vm2693_vm13, %v2574_v37  ;;  %v2773_v20 = vsel %vm2693_vm13, %v2574_v37, 0.0  ;;  %v2837_v51 = vmul.f32 %v2574_v37, %v2574_v37 }
 0x275   : > { %v1681_v39 = vpop.permute.xlu1 %1680  ;;  %v2357_v54 = vld [vmem:[#allocation3 + $0xd0] sm:$0xff]  ;;  %v2774_v59 = vadd.f32 %v2773_v20, %v2772_v22  ;;  %v2878_v26 = vsel %vm2693_vm13, %v2838_v36, 0.0 }
 0x276   : > { %1748 = vst.msk [vmem:[#allocation3 + $0xe8] sm:$0xff] %vm1718_vm8, %v1681_v39  ;;  %3506 = vmatprep.mubr.msk.f32.mxu1 %vm2368_vm12, %v2357_v54  ;;  %v2876_v16 = vsel %vm2693_vm13, %v2837_v51, 0.0  ;;  %v1875_v31 = vpop.permute.xlu0 %1874  ;;  %v2358_v53 = vld [vmem:[#allocation3 + $0xd8] sm:$0xff] }
 0x277   : > { %v2877_v47 = vadd.f32 %v2876_v16, %v2875_v0  ;;  %1942 = vst.msk [vmem:[#allocation3 + $0xe8] sm:$0xff] %vm1912_vm9, %v1875_v31  ;;  %3507 = vmatmul.mubr.msk.f32.gmra.mrb[24].mxu1 %vm2368_vm12, %v2358_v53  ;;  %v2776_v55 = vadd.f32 %v2775_v48, %v2774_v59 }
 0x279   : > { %v1297_v57 = vpop.permute.xlu1 %1296  ;;  %v2879_v56 = vadd.f32 %v2878_v26, %v2877_v47 }
 0x27a   : > { %1363 = vst.msk [vmem:[#allocation3 + $0xf0] sm:$0xff] %vm1332_vm6, %v1297_v57  ;;  %v1299_v42 = vpop.permute.xlu0 %1298 }
 0x27b   : > { %1364 = vst.msk [vmem:[#allocation3 + $0xf8] sm:$0xff] %vm1332_vm6, %v1299_v42 }
 0x27d   : > { %v2066_v50 = vpop.permute.xlu1 %2065 }
 0x27e   : > { %2134 = vst.msk [vmem:[#allocation3 + $0xe0] sm:$0xff] %vm2105_vm10, %v2066_v50  ;;  %v2068_v8 = vpop.permute.xlu0 %2067 }
 0x27f   : > { %2135 = vst.msk [vmem:[#allocation3 + $0xe8] sm:$0xff] %vm2105_vm10, %v2068_v8 }
 0x281   : > { %v1490_v27 = vpop.permute.xlu1 %1489 }
 0x282   : > { %1556 = vst.msk [vmem:[#allocation3 + $0xf0] sm:$0xff] %vm1525_vm7, %v1490_v27  ;;  %v1492_v30 = vpop.permute.xlu0 %1491 }
 0x283   : > { %1557 = vst.msk [vmem:[#allocation3 + $0xf8] sm:$0xff] %vm1525_vm7, %v1492_v30 }
 0x285   : > { %v2259_v38 = vpop.permute.xlu1 %2258 }
 0x286   : > { %2327 = vst.msk [vmem:[#allocation3 + $0xe0] sm:$0xff] %vm2298_vm11, %v2259_v38  ;;  %v2261_v45 = vpop.permute.xlu0 %2260 }
 0x287   : > { %2328 = vst.msk [vmem:[#allocation3 + $0xe8] sm:$0xff] %vm2298_vm11, %v2261_v45 }
 0x289   : > { %v1683_v25 = vpop.permute.xlu1 %1682 }
 0x28a   : > { %1749 = vst.msk [vmem:[#allocation3 + $0xf0] sm:$0xff] %vm1718_vm8, %v1683_v25  ;;  %v3484_v46 = vpop.f32.mrb[8].mxu1  ;;  %v1877_v7 = vpop.permute.xlu0 %1876 }
 0x28b   : > { %2705 = vst.msk [vmem:[%s4916_s10 + $0x58] sm:$0xff] %vm2693_vm13, %v3484_v46  ;;  %v2840_v63 = vmul.f32 %v3484_v46, %v3484_v46  ;;  %v2584_v3 = vpop.f32.mrb[9].mxu1  ;;  %v2779_v2 = vsel %vm2693_vm13, %v3484_v46, 0.0 }
 0x28c   : > { %1943 = vst.msk [vmem:[#allocation3 + $0xf0] sm:$0xff] %vm1912_vm9, %v1877_v7  ;;  %v2777_v5 = vsel %vm2693_vm13, %v2584_v3, 0.0  ;;  %v2839_v32 = vmul.f32 %v2584_v3, %v2584_v3 }
 0x28d   : > { %2704 = vst.msk [vmem:[%s4916_s10 + $0x50] sm:$0xff] %vm2693_vm13, %v2584_v3  ;;  %v1685_v41 = vpop.permute.xlu1 %1684  ;;  %v2359_v49 = vld [vmem:[#allocation3 + $0xe0] sm:$0xff]  ;;  %v2778_v4 = vadd.f32 %v2777_v5, %v2776_v55  ;;  %v2882_v40 = vsel %vm2693_vm13, %v2840_v63, 0.0 }
 0x28e   : > { %1750 = vst.msk [vmem:[#allocation3 + $0xf8] sm:$0xff] %vm1718_vm8, %v1685_v41  ;;  %3509 = vmatprep.mubr.msk.f32.mxu1 %vm2368_vm12, %v2359_v49  ;;  %v2880_v6 = vsel %vm2693_vm13, %v2839_v32, 0.0  ;;  %v2360_v35 = vld [vmem:[#allocation3 + $0xe8] sm:$0xff]  ;;  %v2070_v9 = vpop.permute.xlu0 %2069 }
 0x28f   : > { %v2881_v11 = vadd.f32 %v2880_v6, %v2879_v56  ;;  %3510 = vmatmul.mubr.msk.f32.gmra.mrb[26].mxu1 %vm2368_vm12, %v2360_v35  ;;  %2136 = vst.msk [vmem:[#allocation3 + $0xf0] sm:$0xff] %vm2105_vm10, %v2070_v9  ;;  %v2780_v62 = vadd.f32 %v2779_v2, %v2778_v4 }
 0x291   : > { %v1879_v10 = vpop.permute.xlu1 %1878  ;;  %v2883_v13 = vadd.f32 %v2882_v40, %v2881_v11 }
 0x292   : > { %1944 = vst.msk [vmem:[#allocation3 + $0xf8] sm:$0xff] %vm1912_vm9, %v1879_v10  ;;  %v2263_v12 = vpop.permute.xlu0 %2262 }
 0x293   : > { %2329 = vst.msk [vmem:[#allocation3 + $0xf0] sm:$0xff] %vm2298_vm11, %v2263_v12 }
 0x295   : > { %v2072_v15 = vpop.permute.xlu1 %2071 }
 0x296   : > { %2137 = vst.msk [vmem:[#allocation3 + $0xf8] sm:$0xff] %vm2105_vm10, %v2072_v15 }
 0x299   : > { %v2265_v14 = vpop.permute.xlu1 %2264 }
 0x29a   : > { %2330 = vst.msk [vmem:[#allocation3 + $0xf8] sm:$0xff] %vm2298_vm11, %v2265_v14  ;;  %v2361_v52 = vld [vmem:[#allocation3 + $0xf0] sm:$0xff] }
 0x29b   : > { %3512 = vmatprep.mubr.msk.f32.mxu1 %vm2368_vm12, %v2361_v52 }
 0x2a1   : > { %v2362_v17 = vld [vmem:[#allocation3 + $0xf8] sm:$0xff] }
 0x2a2   : > { %3513 = vmatmul.mubr.msk.f32.gmra.mrb[28].mxu1 %vm2368_vm12, %v2362_v17  ;;  %v3487_v19 = vpop.f32.mrb[10].mxu1 }
 0x2a3   : > { %2707 = vst.msk [vmem:[%s4916_s10 + $0x68] sm:$0xff] %vm2693_vm13, %v3487_v19  ;;  %v2842_v18 = vmul.f32 %v3487_v19, %v3487_v19  ;;  %v2594_v44 = vpop.f32.mrb[11].mxu1  ;;  %v2783_v21 = vsel %vm2693_vm13, %v3487_v19, 0.0 }
 0x2a4   : > { %2706 = vst.msk [vmem:[%s4916_s10 + $0x60] sm:$0xff] %vm2693_vm13, %v2594_v44  ;;  %v2781_v61 = vsel %vm2693_vm13, %v2594_v44, 0.0  ;;  %v2841_v60 = vmul.f32 %v2594_v44, %v2594_v44 }
 0x2a5   : > { %v2782_v22 = vadd.f32 %v2781_v61, %v2780_v62  ;;  %v2886_v23 = vsel %vm2693_vm13, %v2842_v18, 0.0 }
 0x2a6   : > { %v2884_v0 = vsel %vm2693_vm13, %v2841_v60, 0.0 }
 0x2a7   : > { %v2885_v58 = vadd.f32 %v2884_v0, %v2883_v13  ;;  %v2784_v24 = vadd.f32 %v2783_v21, %v2782_v22 }
 0x2a9   : > { %v2887_v43 = vadd.f32 %v2886_v23, %v2885_v58 }
 0x2ba   : > { %v3490_v28 = vpop.f32.mrb[12].mxu1 }
 0x2bb   : > { %2709 = vst.msk [vmem:[%s4916_s10 + $0x78] sm:$0xff] %vm2693_vm13, %v3490_v28  ;;  %v2844_v29 = vmul.f32 %v3490_v28, %v3490_v28  ;;  %v2604_v33 = vpop.f32.mrb[13].mxu1  ;;  %v2787_v1 = vsel %vm2693_vm13, %v3490_v28, 0.0 }
 0x2bc   : > { %2708 = vst.msk [vmem:[%s4916_s10 + $0x70] sm:$0xff] %vm2693_vm13, %v2604_v33  ;;  %v2785_v34 = vsel %vm2693_vm13, %v2604_v33, 0.0  ;;  %v2843_v36 = vmul.f32 %v2604_v33, %v2604_v33 }
 0x2bd   : > { %v2786_v37 = vadd.f32 %v2785_v34, %v2784_v24  ;;  %v2890_v48 = vsel %vm2693_vm13, %v2844_v29, 0.0 }
 0x2be   : > { %v2888_v20 = vsel %vm2693_vm13, %v2843_v36, 0.0 }
 0x2bf   : > { %v2889_v51 = vadd.f32 %v2888_v20, %v2887_v43  ;;  %v2788_v39 = vadd.f32 %v2787_v1, %v2786_v37 }
 0x2c1   : > { %v2891_v54 = vadd.f32 %v2890_v48, %v2889_v51 }
 0x2d2   : > { %v3493_v59 = vpop.f32.mrb[14].mxu1 }
 0x2d3   : > { %2711 = vst.msk [vmem:[%s4916_s10 + $0x88] sm:$0xff] %vm2693_vm13, %v3493_v59  ;;  %v2846_v26 = vmul.f32 %v3493_v59, %v3493_v59  ;;  %v2614_v16 = vpop.f32.mrb[15].mxu1  ;;  %v2791_v31 = vsel %vm2693_vm13, %v3493_v59, 0.0 }
 0x2d4   : > { %2710 = vst.msk [vmem:[%s4916_s10 + $0x80] sm:$0xff] %vm2693_vm13, %v2614_v16  ;;  %v2789_v53 = vsel %vm2693_vm13, %v2614_v16, 0.0  ;;  %v2845_v47 = vmul.f32 %v2614_v16, %v2614_v16 }
 0x2d5   : > { %v2790_v55 = vadd.f32 %v2789_v53, %v2788_v39  ;;  %v2894_v57 = vsel %vm2693_vm13, %v2846_v26, 0.0 }
 0x2d6   : > { %v2892_v56 = vsel %vm2693_vm13, %v2845_v47, 0.0 }
 0x2d7   : > { %v2893_v42 = vadd.f32 %v2892_v56, %v2891_v54  ;;  %v2792_v50 = vadd.f32 %v2791_v31, %v2790_v55 }
 0x2d9   : > { %v2895_v8 = vadd.f32 %v2894_v57, %v2893_v42 }
 0x2ea   : > { %v3496_v27 = vpop.f32.mrb[16].mxu1 }
 0x2eb   : > { %2713 = vst.msk [vmem:[%s4916_s10 + $0x98] sm:$0xff] %vm2693_vm13, %v3496_v27  ;;  %v2848_v30 = vmul.f32 %v3496_v27, %v3496_v27  ;;  %v2624_v38 = vpop.f32.mrb[17].mxu1  ;;  %v2795_v45 = vsel %vm2693_vm13, %v3496_v27, 0.0 }
 0x2ec   : > { %2712 = vst.msk [vmem:[%s4916_s10 + $0x90] sm:$0xff] %vm2693_vm13, %v2624_v38  ;;  %v2793_v25 = vsel %vm2693_vm13, %v2624_v38, 0.0  ;;  %v2847_v46 = vmul.f32 %v2624_v38, %v2624_v38 }
 0x2ed   : > { %v2794_v7 = vadd.f32 %v2793_v25, %v2792_v50  ;;  %v2898_v63 = vsel %vm2693_vm13, %v2848_v30, 0.0 }
 0x2ee   : > { %v2896_v3 = vsel %vm2693_vm13, %v2847_v46, 0.0 }
 0x2ef   : > { %v2897_v2 = vadd.f32 %v2896_v3, %v2895_v8  ;;  %v2796_v5 = vadd.f32 %v2795_v45, %v2794_v7 }
 0x2f1   : > { %v2899_v32 = vadd.f32 %v2898_v63, %v2897_v2 }
 0x302   : > { %v3499_v41 = vpop.f32.mrb[18].mxu1 }
 0x303   : > { %2715 = vst.msk [vmem:[%s4916_s10 + $0xa8] sm:$0xff] %vm2693_vm13, %v3499_v41  ;;  %v2850_v49 = vmul.f32 %v3499_v41, %v3499_v41  ;;  %v2634_v4 = vpop.f32.mrb[19].mxu1  ;;  %v2799_v40 = vsel %vm2693_vm13, %v3499_v41, 0.0 }
 0x304   : > { %2714 = vst.msk [vmem:[%s4916_s10 + $0xa0] sm:$0xff] %vm2693_vm13, %v2634_v4  ;;  %v2797_v6 = vsel %vm2693_vm13, %v2634_v4, 0.0  ;;  %v2849_v35 = vmul.f32 %v2634_v4, %v2634_v4 }
 0x305   : > { %v2798_v9 = vadd.f32 %v2797_v6, %v2796_v5  ;;  %v2902_v11 = vsel %vm2693_vm13, %v2850_v49, 0.0 }
 0x306   : > { %v2900_v62 = vsel %vm2693_vm13, %v2849_v35, 0.0 }
 0x307   : > { %v2901_v10 = vadd.f32 %v2900_v62, %v2899_v32  ;;  %v2800_v13 = vadd.f32 %v2799_v40, %v2798_v9 }
 0x309   : > { %v2903_v12 = vadd.f32 %v2902_v11, %v2901_v10 }
 0x31a   : > { %v3502_v15 = vpop.f32.mrb[20].mxu1 }
 0x31b   : > { %2717 = vst.msk [vmem:[%s4916_s10 + $0xb8] sm:$0xff] %vm2693_vm13, %v3502_v15  ;;  %v2852_v14 = vmul.f32 %v3502_v15, %v3502_v15  ;;  %v2644_v52 = vpop.f32.mrb[21].mxu1  ;;  %v2803_v17 = vsel %vm2693_vm13, %v3502_v15, 0.0 }
 0x31c   : > { %2716 = vst.msk [vmem:[%s4916_s10 + $0xb0] sm:$0xff] %vm2693_vm13, %v2644_v52  ;;  %v2801_v19 = vsel %vm2693_vm13, %v2644_v52, 0.0  ;;  %v2851_v18 = vmul.f32 %v2644_v52, %v2644_v52 }
 0x31d   : > { %v2802_v44 = vadd.f32 %v2801_v19, %v2800_v13  ;;  %v2906_v21 = vsel %vm2693_vm13, %v2852_v14, 0.0 }
 0x31e   : > { %v2904_v61 = vsel %vm2693_vm13, %v2851_v18, 0.0 }
 0x31f   : > { %v2905_v60 = vadd.f32 %v2904_v61, %v2903_v12  ;;  %v2804_v22 = vadd.f32 %v2803_v17, %v2802_v44 }
 0x321   : > { %v2907_v23 = vadd.f32 %v2906_v21, %v2905_v60 }
 0x332   : > { %v3505_v0 = vpop.f32.mrb[22].mxu1 }
 0x333   : > { %2719 = vst.msk [vmem:[%s4916_s10 + $0xc8] sm:$0xff] %vm2693_vm13, %v3505_v0  ;;  %v2854_v58 = vmul.f32 %v3505_v0, %v3505_v0  ;;  %v2654_v24 = vpop.f32.mrb[23].mxu1  ;;  %v2807_v43 = vsel %vm2693_vm13, %v3505_v0, 0.0 }
 0x334   : > { %2718 = vst.msk [vmem:[%s4916_s10 + $0xc0] sm:$0xff] %vm2693_vm13, %v2654_v24  ;;  %v2805_v28 = vsel %vm2693_vm13, %v2654_v24, 0.0  ;;  %v2853_v29 = vmul.f32 %v2654_v24, %v2654_v24 }
 0x335   : > { %v2806_v33 = vadd.f32 %v2805_v28, %v2804_v22  ;;  %v2910_v1 = vsel %vm2693_vm13, %v2854_v58, 0.0 }
 0x336   : > { %v2908_v34 = vsel %vm2693_vm13, %v2853_v29, 0.0 }
 0x337   : > { %v2909_v36 = vadd.f32 %v2908_v34, %v2907_v23  ;;  %v2808_v37 = vadd.f32 %v2807_v43, %v2806_v33 }
 0x339   : > { %v2911_v48 = vadd.f32 %v2910_v1, %v2909_v36 }
 0x34a   : > { %v3508_v20 = vpop.f32.mrb[24].mxu1 }
 0x34b   : > { %2721 = vst.msk [vmem:[%s4916_s10 + $0xd8] sm:$0xff] %vm2693_vm13, %v3508_v20  ;;  %v2856_v51 = vmul.f32 %v3508_v20, %v3508_v20  ;;  %v2664_v39 = vpop.f32.mrb[25].mxu1  ;;  %v2811_v54 = vsel %vm2693_vm13, %v3508_v20, 0.0 }
 0x34c   : > { %2720 = vst.msk [vmem:[%s4916_s10 + $0xd0] sm:$0xff] %vm2693_vm13, %v2664_v39  ;;  %v2809_v59 = vsel %vm2693_vm13, %v2664_v39, 0.0  ;;  %v2855_v26 = vmul.f32 %v2664_v39, %v2664_v39 }
 0x34d   : > { %v2810_v16 = vadd.f32 %v2809_v59, %v2808_v37  ;;  %v2914_v31 = vsel %vm2693_vm13, %v2856_v51, 0.0 }
 0x34e   : > { %v2912_v53 = vsel %vm2693_vm13, %v2855_v26, 0.0 }
 0x34f   : > { %v2913_v47 = vadd.f32 %v2912_v53, %v2911_v48  ;;  %v2812_v55 = vadd.f32 %v2811_v54, %v2810_v16 }
 0x351   : > { %v2915_v57 = vadd.f32 %v2914_v31, %v2913_v47 }
 0x362   : > { %v3511_v56 = vpop.f32.mrb[26].mxu1 }
 0x363   : > { %2723 = vst.msk [vmem:[%s4916_s10 + $0xe8] sm:$0xff] %vm2693_vm13, %v3511_v56  ;;  %v2858_v42 = vmul.f32 %v3511_v56, %v3511_v56  ;;  %v2674_v50 = vpop.f32.mrb[27].mxu1  ;;  %v2815_v8 = vsel %vm2693_vm13, %v3511_v56, 0.0 }
 0x364   : > { %2722 = vst.msk [vmem:[%s4916_s10 + $0xe0] sm:$0xff] %vm2693_vm13, %v2674_v50  ;;  %v2813_v27 = vsel %vm2693_vm13, %v2674_v50, 0.0  ;;  %v2857_v30 = vmul.f32 %v2674_v50, %v2674_v50 }
 0x365   : > { %v2814_v38 = vadd.f32 %v2813_v27, %v2812_v55  ;;  %v2918_v45 = vsel %vm2693_vm13, %v2858_v42, 0.0 }
 0x366   : > { %v2916_v25 = vsel %vm2693_vm13, %v2857_v30, 0.0 }
 0x367   : > { %v2917_v46 = vadd.f32 %v2916_v25, %v2915_v57  ;;  %v2816_v7 = vadd.f32 %v2815_v8, %v2814_v38 }
 0x369   : > { %v2919_v63 = vadd.f32 %v2918_v45, %v2917_v46 }
 0x375   : > { %v3514_v3 = vpop.f32.mrb[28].mxu1 }
 0x376   : > { %2725 = vst.msk [vmem:[%s4916_s10 + $0xf8] sm:$0xff] %vm2693_vm13, %v3514_v3  ;;  %v2684_v2 = vpop.f32.mrb[29].mxu1  ;;  %v2860_v5 = vmul.f32 %v3514_v3, %v3514_v3  ;;  %v2819_v4 = vsel %vm2693_vm13, %v3514_v3, 0.0 }
 0x377   : > { %2724 = vst.msk [vmem:[%s4916_s10 + $0xf0] sm:$0xff] %vm2693_vm13, %v2684_v2  ;;  %v2817_v32 = vsel %vm2693_vm13, %v2684_v2, 0.0  ;;  %v2859_v41 = vmul.f32 %v2684_v2, %v2684_v2 }
 0x378   : > { %v2818_v49 = vadd.f32 %v2817_v32, %v2816_v7  ;;  %v2922_v9 = vsel %vm2693_vm13, %v2860_v5, 0.0 }
 0x379   : > { %v2920_v40 = vsel %vm2693_vm13, %v2859_v41, 0.0 }
 0x37a   : > { %v2820_v6 = vadd.f32 %v2819_v4, %v2818_v49  ;;  %v2921_v35 = vadd.f32 %v2920_v40, %v2919_v63 }
 0x37c   : > { %v2821_v11 = vrot.slane %v2820_v6, 4  ;;  %v2923_v62 = vadd.f32 %v2922_v9, %v2921_v35 }
 0x37e   : > { %v2822_v10 = vadd.f32 %v2821_v11, %v2820_v6  ;;  %v2924_v13 = vrot.slane %v2923_v62, 4 }
 0x380   : > { %v2823_v12 = vrot.slane %v2822_v10, 2  ;;  %v2925_v15 = vadd.f32 %v2924_v13, %v2923_v62 }
 0x382   : > { %v2824_v14 = vadd.f32 %v2823_v12, %v2822_v10  ;;  %v2926_v52 = vrot.slane %v2925_v15, 2 }
 0x384   : > { %v2825_v17 = vrot.slane %v2824_v14, 1  ;;  %v2927_v19 = vadd.f32 %v2926_v52, %v2925_v15 }
 0x386   : > { %v2826_v18 = vadd.f32 %v2825_v17, %v2824_v14  ;;  %v2928_v44 = vrot.slane %v2927_v19, 1 }
 0x388   : > { %2828 = vst.msk [vmem:[%s280_s14] sm:$0x1] %vm2827_vm14, %v2826_v18  ;;  %v2929_v21 = vadd.f32 %v2928_v44, %v2927_v19 }
 0x38a   : > { %2930 = vst.msk [vmem:[%s280_s14 + $0x1] sm:$0x1] %vm2827_vm14, %v2929_v21 }
 0x38b PF: > { %s17_s21 = sadd.s32 1, %s3552_s21  }
 0x38c   : > { %p14_p4 = scmp.ge.s32.totalorder %s17_s21, 4  }
 0x38e   :  { %16 = sbr.rel (!%p14_p4) target bundleno = 1 (0x1), region = 101 }

</bundles_post_ra>
